<compile_context>
chip_gen: v7x
topology: tpu7x:2x2x1
jax: 0.10.0
libtpu: 0.0.40
codegen_flags: <defaults>
</compile_context>

<pallas_src>
import functools

import jax
import jax.numpy as jnp
from jax.experimental import pallas as pl
from jax.experimental.pallas import tpu as pltpu


# ----------------------------------------------------------------------------
# Fused kernel: encoder (2x 2-layer LSTM) + decoder (2x 2-layer LSTM) + FC
# ----------------------------------------------------------------------------
def _make_kernel(mm_dtype):
    f32 = jnp.float32

    def cell(g, c):
        """LSTM cell update.  Gate columns are pre-permuted to [i | f | o | g]:
        sigmoid covers one contiguous 3H lane block, tanh one H block."""
        H = c.shape[-1]
        sg = jax.nn.sigmoid(g[:, :3 * H])           # [i | f | o]
        gg = jnp.tanh(g[:, 3 * H:])                 # cell candidate
        i_g = sg[:, 0 * H:1 * H]
        f_g = sg[:, 1 * H:2 * H]
        o_g = sg[:, 2 * H:3 * H]
        c_new = f_g * c + i_g * gg
        h_new = o_g * jnp.tanh(c_new)
        return h_new, c_new

    def kernel(x_ref,
               e1_wih0, e1_whh0, e1_b0, e1_wc1, e1_b1,
               e2_wc0, e2_b0, e2_wc1, e2_b1,
               d1_wih0, d1_whh0, d1_b0, d1_wc1, d1_b1,
               d2_wc0, d2_b0, d2_wc1, d2_b1,
               wfc_ref, bfc_ref,
               enc_ref, dec_ref):
        T, tb, In = x_ref.shape                     # time-major input block
        S = dec_ref.shape[0]                        # decoder steps
        out_sz = dec_ref.shape[-1]
        tb2 = 2 * tb                                # decoder batch rows

        def mm(a, w):                               # MXU matmul, f32 accumulation
            return jnp.dot(a.astype(mm_dtype), w, preferred_element_type=f32)

        # ---- hoist every weight out of its ref exactly once -----------------
        # TODO(synk): for large hidden sizes switch to lax.fori_loop(unroll=2..4)
        # over t/s and read the big W matrices from their VMEM refs inside the
        # loop (bounds vreg live ranges, avoids spills).
        w_e1_ih0, w_e1_hh0, w_e1_c1 = e1_wih0[...], e1_whh0[...], e1_wc1[...]
        w_e2_c0, w_e2_c1 = e2_wc0[...], e2_wc1[...]
        w_d1_ih0, w_d1_hh0, w_d1_c1 = d1_wih0[...], d1_whh0[...], d1_wc1[...]
        w_d2_c0, w_d2_c1 = d2_wc0[...], d2_wc1[...]
        wfc, bfc = wfc_ref[...], bfc_ref[...]

        He1 = w_e1_hh0.shape[0]                     # 2 * embedding_dim
        He2 = w_e2_c0.shape[1] // 4                 # embedding_dim
        Hd1 = w_d1_hh0.shape[0]                     # embedding_dim
        Hd2 = w_d2_c0.shape[1] // 4                 # 2 * embedding_dim

        # Pre-broadcast per-step biases ONCE (no per-iteration broadcast_in_dim).
        b_e1_1 = jnp.broadcast_to(e1_b1[...], (tb, 4 * He1))
        b_e2_0 = jnp.broadcast_to(e2_b0[...], (tb, 4 * He2))
        b_e2_1 = jnp.broadcast_to(e2_b1[...], (tb, 4 * He2))
        b_d1_1 = jnp.broadcast_to(d1_b1[...], (tb2, 4 * Hd1))
        b_d2_0 = jnp.broadcast_to(d2_b0[...], (tb2, 4 * Hd2))
        b_d2_1 = jnp.broadcast_to(d2_b1[...], (tb2, 4 * Hd2))

        def zeros(r, h):
            return jnp.zeros((r, h), f32)

        # ------------------------------ encoder ------------------------------
        # Encoder-LSTM1 layer-0 input is NOT recurrent: project all T steps with
        # ONE bulk (T*tb, In) matmul (bias folded in), off the serial chain.
        gx_e1 = mm(x_ref[...].reshape(T * tb, In), w_e1_ih0) + e1_b0[...]

        h10, c10 = zeros(tb, He1), zeros(tb, He1)
        h11, c11 = zeros(tb, He1), zeros(tb, He1)
        h20, c20 = zeros(tb, He2), zeros(tb, He2)
        h21, c21 = zeros(tb, He2), zeros(tb, He2)

        # T is small & static: full unroll.  Recurrent-input layers use the
        # fused [W_ih | W_hh] weight -> ONE matmul per cell.
        for t in range(T):
            h10, c10 = cell(gx_e1[t * tb:(t + 1) * tb, :] + mm(h10, w_e1_hh0), c10)
            h11, c11 = cell(mm(jnp.concatenate([h10, h11], -1), w_e1_c1) + b_e1_1, c11)
            h20, c20 = cell(mm(jnp.concatenate([h11, h20], -1), w_e2_c0) + b_e2_0, c20)
            h21, c21 = cell(mm(jnp.concatenate([h20, h21], -1), w_e2_c1) + b_e2_1, c21)

        # encoded == hidden_state.view(-1, E): rows [layer0 batch ; layer1 batch]
        encoded = jnp.concatenate([h20, h21], axis=0)           # (2*tb, E) in registers
        enc_ref[...] = encoded.reshape(2, tb, He2)              # one dense store

        # ------------------------------ decoder ------------------------------
        # Decoder-LSTM1 layer-0 input is the SAME `encoded` every step -> its
        # input projection (and bias) is loop-invariant: compute once.
        d1_gx0 = mm(encoded, w_d1_ih0) + d1_b0[...]             # (2*tb, 4*E)

        dh10, dc10 = zeros(tb2, Hd1), zeros(tb2, Hd1)
        dh11, dc11 = zeros(tb2, Hd1), zeros(tb2, Hd1)
        dh20, dc20 = zeros(tb2, Hd2), zeros(tb2, Hd2)
        dh21, dc21 = zeros(tb2, Hd2), zeros(tb2, Hd2)

        ys = []
        for _ in range(S):
            dh10, dc10 = cell(d1_gx0 + mm(dh10, w_d1_hh0), dc10)
            dh11, dc11 = cell(mm(jnp.concatenate([dh10, dh11], -1), w_d1_c1) + b_d1_1, dc11)
            dh20, dc20 = cell(mm(jnp.concatenate([dh11, dh20], -1), w_d2_c0) + b_d2_0, dc20)
            dh21, dc21 = cell(mm(jnp.concatenate([dh20, dh21], -1), w_d2_c1) + b_d2_1, dc21)
            ys.append(dh21)

        # FC hoisted out of the loop: ONE bulk matmul + ONE lane-dense store
        # (replaces S tiny matmuls + S masked per-step writebacks).
        y = jnp.concatenate(ys, axis=0)                         # (S*2*tb, 2E)
        dec = mm(y, wfc) + bfc                                  # (S*2*tb, out)
        dec_ref[...] = dec.reshape(S, 2, tb, out_sz)

    return kernel


# ----------------------------------------------------------------------------
# Wrapper: weight preparation + one pallas_call for the whole forward
# ----------------------------------------------------------------------------
def _permute_gate_cols(w):
    """Reorder the 4H gate columns from PyTorch [i|f|g|o] to [i|f|o|g]."""
    i, f, g, o = jnp.split(w, 4, axis=-1)
    return jnp.concatenate([i, f, o, g], axis=-1)


def _prep_lstm(p, fuse_layer0, mm_dtype):
    """Raw PyTorch nn.LSTM(num_layers=2) params -> kernel form: transposed,
    gate-permuted, biases combined, W_ih|W_hh fused for recurrent-input layers.
    Matmul operands cast to mm_dtype; biases kept f32."""
    b0 = _permute_gate_cols((p["bih0"] + p["bhh0"]).reshape(1, -1)).astype(jnp.float32)
    b1 = _permute_gate_cols((p["bih1"] + p["bhh1"]).reshape(1, -1)).astype(jnp.float32)
    wc1 = _permute_gate_cols(
        jnp.concatenate([p["wih1"].T, p["whh1"].T], axis=0)).astype(mm_dtype)
    if fuse_layer0:
        wc0 = _permute_gate_cols(
            jnp.concatenate([p["wih0"].T, p["whh0"].T], axis=0)).astype(mm_dtype)
        return (wc0, b0, wc1, b1)
    wih0 = _permute_gate_cols(p["wih0"].T).astype(mm_dtype)
    whh0 = _permute_gate_cols(p["whh0"].T).astype(mm_dtype)
    return (wih0, whh0, b0, wc1, b1)


def lstm_ae_forward(x, seq_length, enc1, enc2, dec1, dec2, wfc, bfc, *,
                    batch_tiles=1, mm_dtype=jnp.float32):
    """x: (B, T, input_size).  Params are raw PyTorch-layout dicts (see init).
    wfc: (out, 2E), bfc: (out,).  Returns (encoded (2B, E), decoded (2B, S, out)).

    batch_tiles > 1 adds a batch-parallel grid axis (useful on v7x's 2 TCs);
    the batch tile must then be a multiple of 8.  mm_dtype=bf16 targets the
    v6e/v7x MXU (f32 accumulation; state & gate math stay f32)."""
    B, T, In = x.shape
    E = enc2["whh0"].shape[1]
    out_sz = wfc.shape[0]
    S = seq_length
    assert B % batch_tiles == 0
    tb = B // batch_tiles
    assert batch_tiles == 1 or tb % 8 == 0, "batch tile must be a multiple of 8"

    p_e1 = _prep_lstm(enc1, fuse_layer0=False, mm_dtype=mm_dtype)   # x hoisted
    p_e2 = _prep_lstm(enc2, fuse_layer0=True, mm_dtype=mm_dtype)
    p_d1 = _prep_lstm(dec1, fuse_layer0=False, mm_dtype=mm_dtype)   # encoded hoisted
    p_d2 = _prep_lstm(dec2, fuse_layer0=True, mm_dtype=mm_dtype)
    wfc_t = wfc.T.astype(mm_dtype)                                  # (2E, out)
    bfc_r = bfc.reshape(1, -1).astype(jnp.float32)

    x_tm = jnp.transpose(x, (1, 0, 2)).astype(jnp.float32)          # (T, B, In)
    args = (x_tm, *p_e1, *p_e2, *p_d1, *p_d2, wfc_t, bfc_r)

    def pinned(a):                         # full-array block, resident across grid
        return pl.BlockSpec(a.shape, lambda i, _nd=a.ndim: (0,) * _nd)

    in_specs = [pl.BlockSpec((T, tb, In), lambda i: (0, i, 0))]
    in_specs += [pinned(a) for a in args[1:]]

    out_shape = (jax.ShapeDtypeStruct((2, B, E), jnp.float32),
                 jax.ShapeDtypeStruct((S, 2, B, out_sz), jnp.float32))
    out_specs = (pl.BlockSpec((2, tb, E), lambda i: (0, i, 0)),
                 pl.BlockSpec((S, 2, tb, out_sz), lambda i: (0, 0, i, 0)))

    enc_k, dec_k = pl.pallas_call(
        _make_kernel(mm_dtype),
        grid=(batch_tiles,),
        out_shape=out_shape,
        in_specs=in_specs,
        out_specs=out_specs,
        compiler_params=pltpu.CompilerParams(
            dimension_semantics=("parallel",),
            vmem_limit_bytes=32 * 1024 * 1024),
    )(*args)

    encoded = enc_k.reshape(2 * B, E)                                # [layer0 ; layer1]
    decoded = jnp.transpose(dec_k, (1, 2, 0, 3)).reshape(2 * B, S, out_sz)
    return encoded, decoded


# ----------------------------------------------------------------------------
# Pure-JAX reference (lax.scan on the RAW params) for correctness checking
# ----------------------------------------------------------------------------
def _ref_lstm2(x_tbi, p):
    H = p["whh0"].shape[1]
    B = x_tbi.shape[1]

    def cell(x, h, c, wih, whh, bih, bhh):
        g = x @ wih.T + h @ whh.T + bih + bhh
        i, f, gg, o = jnp.split(g, 4, -1)
        c2 = jax.nn.sigmoid(f) * c + jax.nn.sigmoid(i) * jnp.tanh(gg)
        h2 = jax.nn.sigmoid(o) * jnp.tanh(c2)
        return h2, c2

    def step(carry, x_t):
        h0, c0, h1, c1 = carry
        h0, c0 = cell(x_t, h0, c0, p["wih0"], p["whh0"], p["bih0"], p["bhh0"])
        h1, c1 = cell(h0, h1, c1, p["wih1"], p["whh1"], p["bih1"], p["bhh1"])
        return (h0, c0, h1, c1), h1

    z = jnp.zeros((B, H), jnp.float32)
    (h0, _, h1, _), ys = jax.lax.scan(step, (z, z, z, z), x_tbi)
    return ys, (h0, h1)


def _ref_forward(x, seq_length, enc1, enc2, dec1, dec2, wfc, bfc):
    B = x.shape[0]
    o1, _ = _ref_lstm2(jnp.transpose(x, (1, 0, 2)), enc1)
    _, (h0, h1) = _ref_lstm2(o1, enc2)
    encoded = jnp.concatenate([h0, h1], axis=0)                     # (2B, E)
    dec_in = jnp.broadcast_to(encoded[None], (seq_length,) + encoded.shape)
    do1, _ = _ref_lstm2(dec_in, dec1)
    do2, _ = _ref_lstm2(do1, dec2)
    decoded = jnp.transpose(do2, (1, 0, 2)) @ wfc.T + bfc
    return encoded, decoded


# ----------------------------------------------------------------------------
# Deterministic raw-parameter init (PyTorch nn.LSTM uniform(-1/sqrt(H), 1/sqrt(H)))
# ----------------------------------------------------------------------------
def init_lstm2_params(key, in_size, hidden):
    bound = 1.0 / float(hidden) ** 0.5
    ks = jax.random.split(key, 8)

    def u(k_, shape):
        return jax.random.uniform(k_, shape, jnp.float32, -bound, bound)

    return dict(
        wih0=u(ks[0], (4 * hidden, in_size)), whh0=u(ks[1], (4 * hidden, hidden)),
        bih0=u(ks[2], (4 * hidden,)), bhh0=u(ks[3], (4 * hidden,)),
        wih1=u(ks[4], (4 * hidden, hidden)), whh1=u(ks[5], (4 * hidden, hidden)),
        bih1=u(ks[6], (4 * hidden,)), bhh1=u(ks[7], (4 * hidden,)),
    )


if __name__ == "__main__":
    import numpy as np

    input_size = 4
    embedding_dim = 8
    B = 16          # multiple of 8 so the batch-parallel grid path is exercised
    T = 8
    seq_length = T

    key = jax.random.PRNGKey(0)
    kx, k1, k2, k3, k4, kf1, kf2 = jax.random.split(key, 7)
    x = jax.random.normal(kx, (B, T, input_size), jnp.float32)

    # Encoder: LSTM1(in -> 2E, 2 layers), LSTM2(2E -> E, 2 layers)
    enc1 = init_lstm2_params(k1, input_size, 2 * embedding_dim)
    enc2 = init_lstm2_params(k2, 2 * embedding_dim, embedding_dim)
    # Decoder: LSTM1(E -> E, 2 layers), LSTM2(E -> 2E, 2 layers), fc(2E -> in)
    dec1 = init_lstm2_params(k3, embedding_dim, embedding_dim)
    dec2 = init_lstm2_params(k4, embedding_dim, 2 * embedding_dim)
    fb = 1.0 / (2.0 * embedding_dim) ** 0.5
    wfc = jax.random.uniform(kf1, (input_size, 2 * embedding_dim), jnp.float32, -fb, fb)
    bfc = jax.random.uniform(kf2, (input_size,), jnp.float32, -fb, fb)

    ref_enc, ref_dec = _ref_forward(x, seq_length, enc1, enc2, dec1, dec2, wfc, bfc)

    # --- f32 matmul operands, 2 batch tiles (sharded across TCs on v7x) -------
    @functools.partial(jax.jit, static_argnums=(1,))
    def fwd32(x_, s_, *p_):
        return lstm_ae_forward(x_, s_, *p_, batch_tiles=2, mm_dtype=jnp.float32)

    enc32, dec32 = fwd32(x, seq_length, enc1, enc2, dec1, dec2, wfc, bfc)
    jax.block_until_ready((enc32, dec32))
    assert enc32.shape == (2 * B, embedding_dim)
    assert dec32.shape == (2 * B, seq_length, input_size)
    np.testing.assert_allclose(np.asarray(enc32), np.asarray(ref_enc), rtol=1e-3, atol=1e-3)
    np.testing.assert_allclose(np.asarray(dec32), np.asarray(ref_dec), rtol=1e-3, atol=1e-3)

    # --- bf16 matmul operands (v6e/v7x MXU), f32 accumulation / state ---------
    @functools.partial(jax.jit, static_argnums=(1,))
    def fwd16(x_, s_, *p_):
        return lstm_ae_forward(x_, s_, *p_, batch_tiles=1, mm_dtype=jnp.bfloat16)

    enc16, dec16 = fwd16(x, seq_length, enc1, enc2, dec1, dec2, wfc, bfc)
    jax.block_until_ready((enc16, dec16))
    np.testing.assert_allclose(np.asarray(enc16), np.asarray(ref_enc), rtol=5e-2, atol=5e-2)
    np.testing.assert_allclose(np.asarray(dec16), np.asarray(ref_dec), rtol=5e-2, atol=5e-2)

    print("KERNEL_OK")
</pallas_src>

<mosaic_0001>
module attributes {stable_mosaic.version = 11 : i64} {
  func.func @kernel(%arg0: i32, %arg1: memref<8x8x4xf32, #tpu.memory_space<vmem>>, %arg2: memref<4x64xf32, #tpu.memory_space<vmem>>, %arg3: memref<16x64xf32, #tpu.memory_space<vmem>>, %arg4: memref<1x64xf32, #tpu.memory_space<vmem>>, %arg5: memref<32x64xf32, #tpu.memory_space<vmem>>, %arg6: memref<1x64xf32, #tpu.memory_space<vmem>>, %arg7: memref<24x32xf32, #tpu.memory_space<vmem>>, %arg8: memref<1x32xf32, #tpu.memory_space<vmem>>, %arg9: memref<16x32xf32, #tpu.memory_space<vmem>>, %arg10: memref<1x32xf32, #tpu.memory_space<vmem>>, %arg11: memref<8x32xf32, #tpu.memory_space<vmem>>, %arg12: memref<8x32xf32, #tpu.memory_space<vmem>>, %arg13: memref<1x32xf32, #tpu.memory_space<vmem>>, %arg14: memref<16x32xf32, #tpu.memory_space<vmem>>, %arg15: memref<1x32xf32, #tpu.memory_space<vmem>>, %arg16: memref<24x64xf32, #tpu.memory_space<vmem>>, %arg17: memref<1x64xf32, #tpu.memory_space<vmem>>, %arg18: memref<32x64xf32, #tpu.memory_space<vmem>>, %arg19: memref<1x64xf32, #tpu.memory_space<vmem>>, %arg20: memref<16x4xf32, #tpu.memory_space<vmem>>, %arg21: memref<1x4xf32, #tpu.memory_space<vmem>>, %arg22: memref<2x8x8xf32, #tpu.memory_space<vmem>>, %arg23: memref<8x2x8x4xf32, #tpu.memory_space<vmem>>) attributes {dimension_semantics = [#tpu.dimension_semantics<parallel>], iteration_bounds = array<i64: 2>, scalar_prefetch = 0 : i64, scratch_operands = 0 : i64, tpu.core_type = #tpu.core_type<tc>, window_params = [{transform_indices = @transform_0, window_bounds = array<i64: 8, 8, 4>}, {pipeline_mode = #tpu.pipeline_mode<synchronous>, transform_indices = @transform_1, window_bounds = array<i64: 4, 64>}, {pipeline_mode = #tpu.pipeline_mode<synchronous>, transform_indices = @transform_2, window_bounds = array<i64: 16, 64>}, {pipeline_mode = #tpu.pipeline_mode<synchronous>, transform_indices = @transform_3, window_bounds = array<i64: 1, 64>}, {pipeline_mode = #tpu.pipeline_mode<synchronous>, transform_indices = @transform_4, window_bounds = array<i64: 32, 64>}, {pipeline_mode = #tpu.pipeline_mode<synchronous>, transform_indices = @transform_5, window_bounds = array<i64: 1, 64>}, {pipeline_mode = #tpu.pipeline_mode<synchronous>, transform_indices = @transform_6, window_bounds = array<i64: 24, 32>}, {pipeline_mode = #tpu.pipeline_mode<synchronous>, transform_indices = @transform_7, window_bounds = array<i64: 1, 32>}, {pipeline_mode = #tpu.pipeline_mode<synchronous>, transform_indices = @transform_8, window_bounds = array<i64: 16, 32>}, {pipeline_mode = #tpu.pipeline_mode<synchronous>, transform_indices = @transform_9, window_bounds = array<i64: 1, 32>}, {pipeline_mode = #tpu.pipeline_mode<synchronous>, transform_indices = @transform_10, window_bounds = array<i64: 8, 32>}, {pipeline_mode = #tpu.pipeline_mode<synchronous>, transform_indices = @transform_11, window_bounds = array<i64: 8, 32>}, {pipeline_mode = #tpu.pipeline_mode<synchronous>, transform_indices = @transform_12, window_bounds = array<i64: 1, 32>}, {pipeline_mode = #tpu.pipeline_mode<synchronous>, transform_indices = @transform_13, window_bounds = array<i64: 16, 32>}, {pipeline_mode = #tpu.pipeline_mode<synchronous>, transform_indices = @transform_14, window_bounds = array<i64: 1, 32>}, {pipeline_mode = #tpu.pipeline_mode<synchronous>, transform_indices = @transform_15, window_bounds = array<i64: 24, 64>}, {pipeline_mode = #tpu.pipeline_mode<synchronous>, transform_indices = @transform_16, window_bounds = array<i64: 1, 64>}, {pipeline_mode = #tpu.pipeline_mode<synchronous>, transform_indices = @transform_17, window_bounds = array<i64: 32, 64>}, {pipeline_mode = #tpu.pipeline_mode<synchronous>, transform_indices = @transform_18, window_bounds = array<i64: 1, 64>}, {pipeline_mode = #tpu.pipeline_mode<synchronous>, transform_indices = @transform_19, window_bounds = array<i64: 16, 4>}, {pipeline_mode = #tpu.pipeline_mode<synchronous>, transform_indices = @transform_20, window_bounds = array<i64: 1, 4>}, {transform_indices = @transform_21, window_bounds = array<i64: 2, 8, 8>}, {transform_indices = @transform_22, window_bounds = array<i64: 8, 2, 8, 4>}]} {
    %c0 = arith.constant 0 : index
    %c0_0 = arith.constant 0 : index
    %0 = vector.load %arg2[%c0, %c0_0] : memref<4x64xf32, #tpu.memory_space<vmem>>, vector<4x64xf32>
    %c0_1 = arith.constant 0 : index
    %c0_2 = arith.constant 0 : index
    %1 = vector.load %arg3[%c0_1, %c0_2] : memref<16x64xf32, #tpu.memory_space<vmem>>, vector<16x64xf32>
    %c0_3 = arith.constant 0 : index
    %c0_4 = arith.constant 0 : index
    %2 = vector.load %arg5[%c0_3, %c0_4] : memref<32x64xf32, #tpu.memory_space<vmem>>, vector<32x64xf32>
    %c0_5 = arith.constant 0 : index
    %c0_6 = arith.constant 0 : index
    %3 = vector.load %arg7[%c0_5, %c0_6] : memref<24x32xf32, #tpu.memory_space<vmem>>, vector<24x32xf32>
    %c0_7 = arith.constant 0 : index
    %c0_8 = arith.constant 0 : index
    %4 = vector.load %arg9[%c0_7, %c0_8] : memref<16x32xf32, #tpu.memory_space<vmem>>, vector<16x32xf32>
    %c0_9 = arith.constant 0 : index
    %c0_10 = arith.constant 0 : index
    %5 = vector.load %arg11[%c0_9, %c0_10] : memref<8x32xf32, #tpu.memory_space<vmem>>, vector<8x32xf32>
    %c0_11 = arith.constant 0 : index
    %c0_12 = arith.constant 0 : index
    %6 = vector.load %arg12[%c0_11, %c0_12] : memref<8x32xf32, #tpu.memory_space<vmem>>, vector<8x32xf32>
    %c0_13 = arith.constant 0 : index
    %c0_14 = arith.constant 0 : index
    %7 = vector.load %arg14[%c0_13, %c0_14] : memref<16x32xf32, #tpu.memory_space<vmem>>, vector<16x32xf32>
    %c0_15 = arith.constant 0 : index
    %c0_16 = arith.constant 0 : index
    %8 = vector.load %arg16[%c0_15, %c0_16] : memref<24x64xf32, #tpu.memory_space<vmem>>, vector<24x64xf32>
    %c0_17 = arith.constant 0 : index
    %c0_18 = arith.constant 0 : index
    %9 = vector.load %arg18[%c0_17, %c0_18] : memref<32x64xf32, #tpu.memory_space<vmem>>, vector<32x64xf32>
    %c0_19 = arith.constant 0 : index
    %c0_20 = arith.constant 0 : index
    %10 = vector.load %arg20[%c0_19, %c0_20] : memref<16x4xf32, #tpu.memory_space<vmem>>, vector<16x4xf32>
    %c0_21 = arith.constant 0 : index
    %c0_22 = arith.constant 0 : index
    %11 = vector.load %arg21[%c0_21, %c0_22] : memref<1x4xf32, #tpu.memory_space<vmem>>, vector<1x4xf32>
    %c0_23 = arith.constant 0 : index
    %c0_24 = arith.constant 0 : index
    %12 = vector.load %arg6[%c0_23, %c0_24] : memref<1x64xf32, #tpu.memory_space<vmem>>, vector<1x64xf32>
    %13 = vector.shape_cast %12 : vector<1x64xf32> to vector<1x64xf32>
    %14 = vector.broadcast %13 : vector<1x64xf32> to vector<8x64xf32>
    %c0_25 = arith.constant 0 : index
    %c0_26 = arith.constant 0 : index
    %15 = vector.load %arg8[%c0_25, %c0_26] : memref<1x32xf32, #tpu.memory_space<vmem>>, vector<1x32xf32>
    %16 = vector.shape_cast %15 : vector<1x32xf32> to vector<1x32xf32>
    %17 = vector.broadcast %16 : vector<1x32xf32> to vector<8x32xf32>
    %c0_27 = arith.constant 0 : index
    %c0_28 = arith.constant 0 : index
    %18 = vector.load %arg10[%c0_27, %c0_28] : memref<1x32xf32, #tpu.memory_space<vmem>>, vector<1x32xf32>
    %19 = vector.shape_cast %18 : vector<1x32xf32> to vector<1x32xf32>
    %20 = vector.broadcast %19 : vector<1x32xf32> to vector<8x32xf32>
    %c0_29 = arith.constant 0 : index
    %c0_30 = arith.constant 0 : index
    %21 = vector.load %arg15[%c0_29, %c0_30] : memref<1x32xf32, #tpu.memory_space<vmem>>, vector<1x32xf32>
    %22 = vector.shape_cast %21 : vector<1x32xf32> to vector<1x32xf32>
    %23 = vector.broadcast %22 : vector<1x32xf32> to vector<16x32xf32>
    %c0_31 = arith.constant 0 : index
    %c0_32 = arith.constant 0 : index
    %24 = vector.load %arg17[%c0_31, %c0_32] : memref<1x64xf32, #tpu.memory_space<vmem>>, vector<1x64xf32>
    %25 = vector.shape_cast %24 : vector<1x64xf32> to vector<1x64xf32>
    %26 = vector.broadcast %25 : vector<1x64xf32> to vector<16x64xf32>
    %c0_33 = arith.constant 0 : index
    %c0_34 = arith.constant 0 : index
    %27 = vector.load %arg19[%c0_33, %c0_34] : memref<1x64xf32, #tpu.memory_space<vmem>>, vector<1x64xf32>
    %28 = vector.shape_cast %27 : vector<1x64xf32> to vector<1x64xf32>
    %29 = vector.broadcast %28 : vector<1x64xf32> to vector<16x64xf32>
    %c0_35 = arith.constant 0 : index
    %c0_36 = arith.constant 0 : index
    %c0_37 = arith.constant 0 : index
    %30 = vector.load %arg1[%c0_35, %c0_36, %c0_37] : memref<8x8x4xf32, #tpu.memory_space<vmem>>, vector<8x8x4xf32>
    %31 = vector.shape_cast %30 : vector<8x8x4xf32> to vector<64x4xf32>
    %cst = arith.constant dense<0.000000e+00> : vector<64x64xf32>
    %32 = tpu.matmul %31, %0, %cst {dimension_numbers = #tpu.dot_dimension_numbers<[1], [0], [0], [1], [0, 0, 1, 1], [], []>} : vector<64x4xf32>, vector<4x64xf32>, vector<64x64xf32> -> vector<64x64xf32>
    %c0_38 = arith.constant 0 : index
    %c0_39 = arith.constant 0 : index
    %33 = vector.load %arg4[%c0_38, %c0_39] : memref<1x64xf32, #tpu.memory_space<vmem>>, vector<1x64xf32>
    %34 = vector.broadcast %33 : vector<1x64xf32> to vector<64x64xf32>
    %35 = arith.addf %32, %34 : vector<64x64xf32>
    %cst_40 = arith.constant 0.000000e+00 : f32
    %36 = vector.broadcast %cst_40 : f32 to vector<8x16xf32>
    %cst_41 = arith.constant 0.000000e+00 : f32
    %37 = vector.broadcast %cst_41 : f32 to vector<8x16xf32>
    %cst_42 = arith.constant 0.000000e+00 : f32
    %38 = vector.broadcast %cst_42 : f32 to vector<8x16xf32>
    %cst_43 = arith.constant 0.000000e+00 : f32
    %39 = vector.broadcast %cst_43 : f32 to vector<8x16xf32>
    %cst_44 = arith.constant 0.000000e+00 : f32
    %40 = vector.broadcast %cst_44 : f32 to vector<8x8xf32>
    %cst_45 = arith.constant 0.000000e+00 : f32
    %41 = vector.broadcast %cst_45 : f32 to vector<8x8xf32>
    %cst_46 = arith.constant 0.000000e+00 : f32
    %42 = vector.broadcast %cst_46 : f32 to vector<8x8xf32>
    %cst_47 = arith.constant 0.000000e+00 : f32
    %43 = vector.broadcast %cst_47 : f32 to vector<8x8xf32>
    %44 = vector.extract_strided_slice %35 {offsets = [0, 0], sizes = [8, 64], strides = [1, 1]} : vector<64x64xf32> to vector<8x64xf32>
    %cst_48 = arith.constant dense<0.000000e+00> : vector<8x64xf32>
    %45 = tpu.matmul %36, %1, %cst_48 {dimension_numbers = #tpu.dot_dimension_numbers<[1], [0], [0], [1], [0, 0, 1, 1], [], []>} : vector<8x16xf32>, vector<16x64xf32>, vector<8x64xf32> -> vector<8x64xf32>
    %46 = arith.addf %44, %45 : vector<8x64xf32>
    %47 = vector.extract_strided_slice %46 {offsets = [0, 0], sizes = [8, 48], strides = [1, 1]} : vector<8x64xf32> to vector<8x48xf32>
    %48 = arith.negf %47 : vector<8x48xf32>
    %49 = math.exp %48 : vector<8x48xf32>
    %cst_49 = arith.constant 1.000000e+00 : f32
    %50 = vector.broadcast %cst_49 : f32 to vector<8x48xf32>
    %51 = arith.addf %50, %49 : vector<8x48xf32>
    %52 = arith.divf %50, %51 : vector<8x48xf32>
    %53 = vector.extract_strided_slice %46 {offsets = [0, 48], sizes = [8, 16], strides = [1, 1]} : vector<8x64xf32> to vector<8x16xf32>
    %54 = math.tanh %53 : vector<8x16xf32>
    %55 = vector.extract_strided_slice %52 {offsets = [0, 0], sizes = [8, 16], strides = [1, 1]} : vector<8x48xf32> to vector<8x16xf32>
    %56 = vector.extract_strided_slice %52 {offsets = [0, 16], sizes = [8, 16], strides = [1, 1]} : vector<8x48xf32> to vector<8x16xf32>
    %57 = vector.extract_strided_slice %52 {offsets = [0, 32], sizes = [8, 16], strides = [1, 1]} : vector<8x48xf32> to vector<8x16xf32>
    %58 = arith.mulf %56, %37 : vector<8x16xf32>
    %59 = arith.mulf %55, %54 : vector<8x16xf32>
    %60 = arith.addf %58, %59 : vector<8x16xf32>
    %61 = math.tanh %60 : vector<8x16xf32>
    %62 = arith.mulf %57, %61 : vector<8x16xf32>
    %63 = tpu.concatenate %62, %38 in 1 : vector<8x16xf32>, vector<8x16xf32> -> vector<8x32xf32>
    %cst_50 = arith.constant dense<0.000000e+00> : vector<8x64xf32>
    %64 = tpu.matmul %63, %2, %cst_50 {dimension_numbers = #tpu.dot_dimension_numbers<[1], [0], [0], [1], [0, 0, 1, 1], [], []>} : vector<8x32xf32>, vector<32x64xf32>, vector<8x64xf32> -> vector<8x64xf32>
    %65 = arith.addf %64, %14 : vector<8x64xf32>
    %66 = vector.extract_strided_slice %65 {offsets = [0, 0], sizes = [8, 48], strides = [1, 1]} : vector<8x64xf32> to vector<8x48xf32>
    %67 = arith.negf %66 : vector<8x48xf32>
    %68 = math.exp %67 : vector<8x48xf32>
    %cst_51 = arith.constant 1.000000e+00 : f32
    %69 = vector.broadcast %cst_51 : f32 to vector<8x48xf32>
    %70 = arith.addf %69, %68 : vector<8x48xf32>
    %71 = arith.divf %69, %70 : vector<8x48xf32>
    %72 = vector.extract_strided_slice %65 {offsets = [0, 48], sizes = [8, 16], strides = [1, 1]} : vector<8x64xf32> to vector<8x16xf32>
    %73 = math.tanh %72 : vector<8x16xf32>
    %74 = vector.extract_strided_slice %71 {offsets = [0, 0], sizes = [8, 16], strides = [1, 1]} : vector<8x48xf32> to vector<8x16xf32>
    %75 = vector.extract_strided_slice %71 {offsets = [0, 16], sizes = [8, 16], strides = [1, 1]} : vector<8x48xf32> to vector<8x16xf32>
    %76 = vector.extract_strided_slice %71 {offsets = [0, 32], sizes = [8, 16], strides = [1, 1]} : vector<8x48xf32> to vector<8x16xf32>
    %77 = arith.mulf %75, %39 : vector<8x16xf32>
    %78 = arith.mulf %74, %73 : vector<8x16xf32>
    %79 = arith.addf %77, %78 : vector<8x16xf32>
    %80 = math.tanh %79 : vector<8x16xf32>
    %81 = arith.mulf %76, %80 : vector<8x16xf32>
    %82 = tpu.concatenate %81, %40 in 1 : vector<8x16xf32>, vector<8x8xf32> -> vector<8x24xf32>
    %cst_52 = arith.constant dense<0.000000e+00> : vector<8x32xf32>
    %83 = tpu.matmul %82, %3, %cst_52 {dimension_numbers = #tpu.dot_dimension_numbers<[1], [0], [0], [1], [0, 0, 1, 1], [], []>} : vector<8x24xf32>, vector<24x32xf32>, vector<8x32xf32> -> vector<8x32xf32>
    %84 = arith.addf %83, %17 : vector<8x32xf32>
    %85 = vector.extract_strided_slice %84 {offsets = [0, 0], sizes = [8, 24], strides = [1, 1]} : vector<8x32xf32> to vector<8x24xf32>
    %86 = arith.negf %85 : vector<8x24xf32>
    %87 = math.exp %86 : vector<8x24xf32>
    %cst_53 = arith.constant 1.000000e+00 : f32
    %88 = vector.broadcast %cst_53 : f32 to vector<8x24xf32>
    %89 = arith.addf %88, %87 : vector<8x24xf32>
    %90 = arith.divf %88, %89 : vector<8x24xf32>
    %91 = vector.extract_strided_slice %84 {offsets = [0, 24], sizes = [8, 8], strides = [1, 1]} : vector<8x32xf32> to vector<8x8xf32>
    %92 = math.tanh %91 : vector<8x8xf32>
    %93 = vector.extract_strided_slice %90 {offsets = [0, 0], sizes = [8, 8], strides = [1, 1]} : vector<8x24xf32> to vector<8x8xf32>
    %94 = vector.extract_strided_slice %90 {offsets = [0, 8], sizes = [8, 8], strides = [1, 1]} : vector<8x24xf32> to vector<8x8xf32>
    %95 = vector.extract_strided_slice %90 {offsets = [0, 16], sizes = [8, 8], strides = [1, 1]} : vector<8x24xf32> to vector<8x8xf32>
    %96 = arith.mulf %94, %41 : vector<8x8xf32>
    %97 = arith.mulf %93, %92 : vector<8x8xf32>
    %98 = arith.addf %96, %97 : vector<8x8xf32>
    %99 = math.tanh %98 : vector<8x8xf32>
    %100 = arith.mulf %95, %99 : vector<8x8xf32>
    %101 = tpu.concatenate %100, %42 in 1 : vector<8x8xf32>, vector<8x8xf32> -> vector<8x16xf32>
    %cst_54 = arith.constant dense<0.000000e+00> : vector<8x32xf32>
    %102 = tpu.matmul %101, %4, %cst_54 {dimension_numbers = #tpu.dot_dimension_numbers<[1], [0], [0], [1], [0, 0, 1, 1], [], []>} : vector<8x16xf32>, vector<16x32xf32>, vector<8x32xf32> -> vector<8x32xf32>
    %103 = arith.addf %102, %20 : vector<8x32xf32>
    %104 = vector.extract_strided_slice %103 {offsets = [0, 0], sizes = [8, 24], strides = [1, 1]} : vector<8x32xf32> to vector<8x24xf32>
    %105 = arith.negf %104 : vector<8x24xf32>
    %106 = math.exp %105 : vector<8x24xf32>
    %cst_55 = arith.constant 1.000000e+00 : f32
    %107 = vector.broadcast %cst_55 : f32 to vector<8x24xf32>
    %108 = arith.addf %107, %106 : vector<8x24xf32>
    %109 = arith.divf %107, %108 : vector<8x24xf32>
    %110 = vector.extract_strided_slice %103 {offsets = [0, 24], sizes = [8, 8], strides = [1, 1]} : vector<8x32xf32> to vector<8x8xf32>
    %111 = math.tanh %110 : vector<8x8xf32>
    %112 = vector.extract_strided_slice %109 {offsets = [0, 0], sizes = [8, 8], strides = [1, 1]} : vector<8x24xf32> to vector<8x8xf32>
    %113 = vector.extract_strided_slice %109 {offsets = [0, 8], sizes = [8, 8], strides = [1, 1]} : vector<8x24xf32> to vector<8x8xf32>
    %114 = vector.extract_strided_slice %109 {offsets = [0, 16], sizes = [8, 8], strides = [1, 1]} : vector<8x24xf32> to vector<8x8xf32>
    %115 = arith.mulf %113, %43 : vector<8x8xf32>
    %116 = arith.mulf %112, %111 : vector<8x8xf32>
    %117 = arith.addf %115, %116 : vector<8x8xf32>
    %118 = math.tanh %117 : vector<8x8xf32>
    %119 = arith.mulf %114, %118 : vector<8x8xf32>
    %120 = vector.extract_strided_slice %35 {offsets = [8, 0], sizes = [8, 64], strides = [1, 1]} : vector<64x64xf32> to vector<8x64xf32>
    %cst_56 = arith.constant dense<0.000000e+00> : vector<8x64xf32>
    %121 = tpu.matmul %62, %1, %cst_56 {dimension_numbers = #tpu.dot_dimension_numbers<[1], [0], [0], [1], [0, 0, 1, 1], [], []>} : vector<8x16xf32>, vector<16x64xf32>, vector<8x64xf32> -> vector<8x64xf32>
    %122 = arith.addf %120, %121 : vector<8x64xf32>
    %123 = vector.extract_strided_slice %122 {offsets = [0, 0], sizes = [8, 48], strides = [1, 1]} : vector<8x64xf32> to vector<8x48xf32>
    %124 = arith.negf %123 : vector<8x48xf32>
    %125 = math.exp %124 : vector<8x48xf32>
    %cst_57 = arith.constant 1.000000e+00 : f32
    %126 = vector.broadcast %cst_57 : f32 to vector<8x48xf32>
    %127 = arith.addf %126, %125 : vector<8x48xf32>
    %128 = arith.divf %126, %127 : vector<8x48xf32>
    %129 = vector.extract_strided_slice %122 {offsets = [0, 48], sizes = [8, 16], strides = [1, 1]} : vector<8x64xf32> to vector<8x16xf32>
    %130 = math.tanh %129 : vector<8x16xf32>
    %131 = vector.extract_strided_slice %128 {offsets = [0, 0], sizes = [8, 16], strides = [1, 1]} : vector<8x48xf32> to vector<8x16xf32>
    %132 = vector.extract_strided_slice %128 {offsets = [0, 16], sizes = [8, 16], strides = [1, 1]} : vector<8x48xf32> to vector<8x16xf32>
    %133 = vector.extract_strided_slice %128 {offsets = [0, 32], sizes = [8, 16], strides = [1, 1]} : vector<8x48xf32> to vector<8x16xf32>
    %134 = arith.mulf %132, %60 : vector<8x16xf32>
    %135 = arith.mulf %131, %130 : vector<8x16xf32>
    %136 = arith.addf %134, %135 : vector<8x16xf32>
    %137 = math.tanh %136 : vector<8x16xf32>
    %138 = arith.mulf %133, %137 : vector<8x16xf32>
    %139 = tpu.concatenate %138, %81 in 1 : vector<8x16xf32>, vector<8x16xf32> -> vector<8x32xf32>
    %cst_58 = arith.constant dense<0.000000e+00> : vector<8x64xf32>
    %140 = tpu.matmul %139, %2, %cst_58 {dimension_numbers = #tpu.dot_dimension_numbers<[1], [0], [0], [1], [0, 0, 1, 1], [], []>} : vector<8x32xf32>, vector<32x64xf32>, vector<8x64xf32> -> vector<8x64xf32>
    %141 = arith.addf %140, %14 : vector<8x64xf32>
    %142 = vector.extract_strided_slice %141 {offsets = [0, 0], sizes = [8, 48], strides = [1, 1]} : vector<8x64xf32> to vector<8x48xf32>
    %143 = arith.negf %142 : vector<8x48xf32>
    %144 = math.exp %143 : vector<8x48xf32>
    %cst_59 = arith.constant 1.000000e+00 : f32
    %145 = vector.broadcast %cst_59 : f32 to vector<8x48xf32>
    %146 = arith.addf %145, %144 : vector<8x48xf32>
    %147 = arith.divf %145, %146 : vector<8x48xf32>
    %148 = vector.extract_strided_slice %141 {offsets = [0, 48], sizes = [8, 16], strides = [1, 1]} : vector<8x64xf32> to vector<8x16xf32>
    %149 = math.tanh %148 : vector<8x16xf32>
    %150 = vector.extract_strided_slice %147 {offsets = [0, 0], sizes = [8, 16], strides = [1, 1]} : vector<8x48xf32> to vector<8x16xf32>
    %151 = vector.extract_strided_slice %147 {offsets = [0, 16], sizes = [8, 16], strides = [1, 1]} : vector<8x48xf32> to vector<8x16xf32>
    %152 = vector.extract_strided_slice %147 {offsets = [0, 32], sizes = [8, 16], strides = [1, 1]} : vector<8x48xf32> to vector<8x16xf32>
    %153 = arith.mulf %151, %79 : vector<8x16xf32>
    %154 = arith.mulf %150, %149 : vector<8x16xf32>
    %155 = arith.addf %153, %154 : vector<8x16xf32>
    %156 = math.tanh %155 : vector<8x16xf32>
    %157 = arith.mulf %152, %156 : vector<8x16xf32>
    %158 = tpu.concatenate %157, %100 in 1 : vector<8x16xf32>, vector<8x8xf32> -> vector<8x24xf32>
    %cst_60 = arith.constant dense<0.000000e+00> : vector<8x32xf32>
    %159 = tpu.matmul %158, %3, %cst_60 {dimension_numbers = #tpu.dot_dimension_numbers<[1], [0], [0], [1], [0, 0, 1, 1], [], []>} : vector<8x24xf32>, vector<24x32xf32>, vector<8x32xf32> -> vector<8x32xf32>
    %160 = arith.addf %159, %17 : vector<8x32xf32>
    %161 = vector.extract_strided_slice %160 {offsets = [0, 0], sizes = [8, 24], strides = [1, 1]} : vector<8x32xf32> to vector<8x24xf32>
    %162 = arith.negf %161 : vector<8x24xf32>
    %163 = math.exp %162 : vector<8x24xf32>
    %cst_61 = arith.constant 1.000000e+00 : f32
    %164 = vector.broadcast %cst_61 : f32 to vector<8x24xf32>
    %165 = arith.addf %164, %163 : vector<8x24xf32>
    %166 = arith.divf %164, %165 : vector<8x24xf32>
    %167 = vector.extract_strided_slice %160 {offsets = [0, 24], sizes = [8, 8], strides = [1, 1]} : vector<8x32xf32> to vector<8x8xf32>
    %168 = math.tanh %167 : vector<8x8xf32>
    %169 = vector.extract_strided_slice %166 {offsets = [0, 0], sizes = [8, 8], strides = [1, 1]} : vector<8x24xf32> to vector<8x8xf32>
    %170 = vector.extract_strided_slice %166 {offsets = [0, 8], sizes = [8, 8], strides = [1, 1]} : vector<8x24xf32> to vector<8x8xf32>
    %171 = vector.extract_strided_slice %166 {offsets = [0, 16], sizes = [8, 8], strides = [1, 1]} : vector<8x24xf32> to vector<8x8xf32>
    %172 = arith.mulf %170, %98 : vector<8x8xf32>
    %173 = arith.mulf %169, %168 : vector<8x8xf32>
    %174 = arith.addf %172, %173 : vector<8x8xf32>
    %175 = math.tanh %174 : vector<8x8xf32>
    %176 = arith.mulf %171, %175 : vector<8x8xf32>
    %177 = tpu.concatenate %176, %119 in 1 : vector<8x8xf32>, vector<8x8xf32> -> vector<8x16xf32>
    %cst_62 = arith.constant dense<0.000000e+00> : vector<8x32xf32>
    %178 = tpu.matmul %177, %4, %cst_62 {dimension_numbers = #tpu.dot_dimension_numbers<[1], [0], [0], [1], [0, 0, 1, 1], [], []>} : vector<8x16xf32>, vector<16x32xf32>, vector<8x32xf32> -> vector<8x32xf32>
    %179 = arith.addf %178, %20 : vector<8x32xf32>
    %180 = vector.extract_strided_slice %179 {offsets = [0, 0], sizes = [8, 24], strides = [1, 1]} : vector<8x32xf32> to vector<8x24xf32>
    %181 = arith.negf %180 : vector<8x24xf32>
    %182 = math.exp %181 : vector<8x24xf32>
    %cst_63 = arith.constant 1.000000e+00 : f32
    %183 = vector.broadcast %cst_63 : f32 to vector<8x24xf32>
    %184 = arith.addf %183, %182 : vector<8x24xf32>
    %185 = arith.divf %183, %184 : vector<8x24xf32>
    %186 = vector.extract_strided_slice %179 {offsets = [0, 24], sizes = [8, 8], strides = [1, 1]} : vector<8x32xf32> to vector<8x8xf32>
    %187 = math.tanh %186 : vector<8x8xf32>
    %188 = vector.extract_strided_slice %185 {offsets = [0, 0], sizes = [8, 8], strides = [1, 1]} : vector<8x24xf32> to vector<8x8xf32>
    %189 = vector.extract_strided_slice %185 {offsets = [0, 8], sizes = [8, 8], strides = [1, 1]} : vector<8x24xf32> to vector<8x8xf32>
    %190 = vector.extract_strided_slice %185 {offsets = [0, 16], sizes = [8, 8], strides = [1, 1]} : vector<8x24xf32> to vector<8x8xf32>
    %191 = arith.mulf %189, %117 : vector<8x8xf32>
    %192 = arith.mulf %188, %187 : vector<8x8xf32>
    %193 = arith.addf %191, %192 : vector<8x8xf32>
    %194 = math.tanh %193 : vector<8x8xf32>
    %195 = arith.mulf %190, %194 : vector<8x8xf32>
    %196 = vector.extract_strided_slice %35 {offsets = [16, 0], sizes = [8, 64], strides = [1, 1]} : vector<64x64xf32> to vector<8x64xf32>
    %cst_64 = arith.constant dense<0.000000e+00> : vector<8x64xf32>
    %197 = tpu.matmul %138, %1, %cst_64 {dimension_numbers = #tpu.dot_dimension_numbers<[1], [0], [0], [1], [0, 0, 1, 1], [], []>} : vector<8x16xf32>, vector<16x64xf32>, vector<8x64xf32> -> vector<8x64xf32>
    %198 = arith.addf %196, %197 : vector<8x64xf32>
    %199 = vector.extract_strided_slice %198 {offsets = [0, 0], sizes = [8, 48], strides = [1, 1]} : vector<8x64xf32> to vector<8x48xf32>
    %200 = arith.negf %199 : vector<8x48xf32>
    %201 = math.exp %200 : vector<8x48xf32>
    %cst_65 = arith.constant 1.000000e+00 : f32
    %202 = vector.broadcast %cst_65 : f32 to vector<8x48xf32>
    %203 = arith.addf %202, %201 : vector<8x48xf32>
    %204 = arith.divf %202, %203 : vector<8x48xf32>
    %205 = vector.extract_strided_slice %198 {offsets = [0, 48], sizes = [8, 16], strides = [1, 1]} : vector<8x64xf32> to vector<8x16xf32>
    %206 = math.tanh %205 : vector<8x16xf32>
    %207 = vector.extract_strided_slice %204 {offsets = [0, 0], sizes = [8, 16], strides = [1, 1]} : vector<8x48xf32> to vector<8x16xf32>
    %208 = vector.extract_strided_slice %204 {offsets = [0, 16], sizes = [8, 16], strides = [1, 1]} : vector<8x48xf32> to vector<8x16xf32>
    %209 = vector.extract_strided_slice %204 {offsets = [0, 32], sizes = [8, 16], strides = [1, 1]} : vector<8x48xf32> to vector<8x16xf32>
    %210 = arith.mulf %208, %136 : vector<8x16xf32>
    %211 = arith.mulf %207, %206 : vector<8x16xf32>
    %212 = arith.addf %210, %211 : vector<8x16xf32>
    %213 = math.tanh %212 : vector<8x16xf32>
    %214 = arith.mulf %209, %213 : vector<8x16xf32>
    %215 = tpu.concatenate %214, %157 in 1 : vector<8x16xf32>, vector<8x16xf32> -> vector<8x32xf32>
    %cst_66 = arith.constant dense<0.000000e+00> : vector<8x64xf32>
    %216 = tpu.matmul %215, %2, %cst_66 {dimension_numbers = #tpu.dot_dimension_numbers<[1], [0], [0], [1], [0, 0, 1, 1], [], []>} : vector<8x32xf32>, vector<32x64xf32>, vector<8x64xf32> -> vector<8x64xf32>
    %217 = arith.addf %216, %14 : vector<8x64xf32>
    %218 = vector.extract_strided_slice %217 {offsets = [0, 0], sizes = [8, 48], strides = [1, 1]} : vector<8x64xf32> to vector<8x48xf32>
    %219 = arith.negf %218 : vector<8x48xf32>
    %220 = math.exp %219 : vector<8x48xf32>
    %cst_67 = arith.constant 1.000000e+00 : f32
    %221 = vector.broadcast %cst_67 : f32 to vector<8x48xf32>
    %222 = arith.addf %221, %220 : vector<8x48xf32>
    %223 = arith.divf %221, %222 : vector<8x48xf32>
    %224 = vector.extract_strided_slice %217 {offsets = [0, 48], sizes = [8, 16], strides = [1, 1]} : vector<8x64xf32> to vector<8x16xf32>
    %225 = math.tanh %224 : vector<8x16xf32>
    %226 = vector.extract_strided_slice %223 {offsets = [0, 0], sizes = [8, 16], strides = [1, 1]} : vector<8x48xf32> to vector<8x16xf32>
    %227 = vector.extract_strided_slice %223 {offsets = [0, 16], sizes = [8, 16], strides = [1, 1]} : vector<8x48xf32> to vector<8x16xf32>
    %228 = vector.extract_strided_slice %223 {offsets = [0, 32], sizes = [8, 16], strides = [1, 1]} : vector<8x48xf32> to vector<8x16xf32>
    %229 = arith.mulf %227, %155 : vector<8x16xf32>
    %230 = arith.mulf %226, %225 : vector<8x16xf32>
    %231 = arith.addf %229, %230 : vector<8x16xf32>
    %232 = math.tanh %231 : vector<8x16xf32>
    %233 = arith.mulf %228, %232 : vector<8x16xf32>
    %234 = tpu.concatenate %233, %176 in 1 : vector<8x16xf32>, vector<8x8xf32> -> vector<8x24xf32>
    %cst_68 = arith.constant dense<0.000000e+00> : vector<8x32xf32>
    %235 = tpu.matmul %234, %3, %cst_68 {dimension_numbers = #tpu.dot_dimension_numbers<[1], [0], [0], [1], [0, 0, 1, 1], [], []>} : vector<8x24xf32>, vector<24x32xf32>, vector<8x32xf32> -> vector<8x32xf32>
    %236 = arith.addf %235, %17 : vector<8x32xf32>
    %237 = vector.extract_strided_slice %236 {offsets = [0, 0], sizes = [8, 24], strides = [1, 1]} : vector<8x32xf32> to vector<8x24xf32>
    %238 = arith.negf %237 : vector<8x24xf32>
    %239 = math.exp %238 : vector<8x24xf32>
    %cst_69 = arith.constant 1.000000e+00 : f32
    %240 = vector.broadcast %cst_69 : f32 to vector<8x24xf32>
    %241 = arith.addf %240, %239 : vector<8x24xf32>
    %242 = arith.divf %240, %241 : vector<8x24xf32>
    %243 = vector.extract_strided_slice %236 {offsets = [0, 24], sizes = [8, 8], strides = [1, 1]} : vector<8x32xf32> to vector<8x8xf32>
    %244 = math.tanh %243 : vector<8x8xf32>
    %245 = vector.extract_strided_slice %242 {offsets = [0, 0], sizes = [8, 8], strides = [1, 1]} : vector<8x24xf32> to vector<8x8xf32>
    %246 = vector.extract_strided_slice %242 {offsets = [0, 8], sizes = [8, 8], strides = [1, 1]} : vector<8x24xf32> to vector<8x8xf32>
    %247 = vector.extract_strided_slice %242 {offsets = [0, 16], sizes = [8, 8], strides = [1, 1]} : vector<8x24xf32> to vector<8x8xf32>
    %248 = arith.mulf %246, %174 : vector<8x8xf32>
    %249 = arith.mulf %245, %244 : vector<8x8xf32>
    %250 = arith.addf %248, %249 : vector<8x8xf32>
    %251 = math.tanh %250 : vector<8x8xf32>
    %252 = arith.mulf %247, %251 : vector<8x8xf32>
    %253 = tpu.concatenate %252, %195 in 1 : vector<8x8xf32>, vector<8x8xf32> -> vector<8x16xf32>
    %cst_70 = arith.constant dense<0.000000e+00> : vector<8x32xf32>
    %254 = tpu.matmul %253, %4, %cst_70 {dimension_numbers = #tpu.dot_dimension_numbers<[1], [0], [0], [1], [0, 0, 1, 1], [], []>} : vector<8x16xf32>, vector<16x32xf32>, vector<8x32xf32> -> vector<8x32xf32>
    %255 = arith.addf %254, %20 : vector<8x32xf32>
    %256 = vector.extract_strided_slice %255 {offsets = [0, 0], sizes = [8, 24], strides = [1, 1]} : vector<8x32xf32> to vector<8x24xf32>
    %257 = arith.negf %256 : vector<8x24xf32>
    %258 = math.exp %257 : vector<8x24xf32>
    %cst_71 = arith.constant 1.000000e+00 : f32
    %259 = vector.broadcast %cst_71 : f32 to vector<8x24xf32>
    %260 = arith.addf %259, %258 : vector<8x24xf32>
    %261 = arith.divf %259, %260 : vector<8x24xf32>
    %262 = vector.extract_strided_slice %255 {offsets = [0, 24], sizes = [8, 8], strides = [1, 1]} : vector<8x32xf32> to vector<8x8xf32>
    %263 = math.tanh %262 : vector<8x8xf32>
    %264 = vector.extract_strided_slice %261 {offsets = [0, 0], sizes = [8, 8], strides = [1, 1]} : vector<8x24xf32> to vector<8x8xf32>
    %265 = vector.extract_strided_slice %261 {offsets = [0, 8], sizes = [8, 8], strides = [1, 1]} : vector<8x24xf32> to vector<8x8xf32>
    %266 = vector.extract_strided_slice %261 {offsets = [0, 16], sizes = [8, 8], strides = [1, 1]} : vector<8x24xf32> to vector<8x8xf32>
    %267 = arith.mulf %265, %193 : vector<8x8xf32>
    %268 = arith.mulf %264, %263 : vector<8x8xf32>
    %269 = arith.addf %267, %268 : vector<8x8xf32>
    %270 = math.tanh %269 : vector<8x8xf32>
    %271 = arith.mulf %266, %270 : vector<8x8xf32>
    %272 = vector.extract_strided_slice %35 {offsets = [24, 0], sizes = [8, 64], strides = [1, 1]} : vector<64x64xf32> to vector<8x64xf32>
    %cst_72 = arith.constant dense<0.000000e+00> : vector<8x64xf32>
    %273 = tpu.matmul %214, %1, %cst_72 {dimension_numbers = #tpu.dot_dimension_numbers<[1], [0], [0], [1], [0, 0, 1, 1], [], []>} : vector<8x16xf32>, vector<16x64xf32>, vector<8x64xf32> -> vector<8x64xf32>
    %274 = arith.addf %272, %273 : vector<8x64xf32>
    %275 = vector.extract_strided_slice %274 {offsets = [0, 0], sizes = [8, 48], strides = [1, 1]} : vector<8x64xf32> to vector<8x48xf32>
    %276 = arith.negf %275 : vector<8x48xf32>
    %277 = math.exp %276 : vector<8x48xf32>
    %cst_73 = arith.constant 1.000000e+00 : f32
    %278 = vector.broadcast %cst_73 : f32 to vector<8x48xf32>
    %279 = arith.addf %278, %277 : vector<8x48xf32>
    %280 = arith.divf %278, %279 : vector<8x48xf32>
    %281 = vector.extract_strided_slice %274 {offsets = [0, 48], sizes = [8, 16], strides = [1, 1]} : vector<8x64xf32> to vector<8x16xf32>
    %282 = math.tanh %281 : vector<8x16xf32>
    %283 = vector.extract_strided_slice %280 {offsets = [0, 0], sizes = [8, 16], strides = [1, 1]} : vector<8x48xf32> to vector<8x16xf32>
    %284 = vector.extract_strided_slice %280 {offsets = [0, 16], sizes = [8, 16], strides = [1, 1]} : vector<8x48xf32> to vector<8x16xf32>
    %285 = vector.extract_strided_slice %280 {offsets = [0, 32], sizes = [8, 16], strides = [1, 1]} : vector<8x48xf32> to vector<8x16xf32>
    %286 = arith.mulf %284, %212 : vector<8x16xf32>
    %287 = arith.mulf %283, %282 : vector<8x16xf32>
    %288 = arith.addf %286, %287 : vector<8x16xf32>
    %289 = math.tanh %288 : vector<8x16xf32>
    %290 = arith.mulf %285, %289 : vector<8x16xf32>
    %291 = tpu.concatenate %290, %233 in 1 : vector<8x16xf32>, vector<8x16xf32> -> vector<8x32xf32>
    %cst_74 = arith.constant dense<0.000000e+00> : vector<8x64xf32>
    %292 = tpu.matmul %291, %2, %cst_74 {dimension_numbers = #tpu.dot_dimension_numbers<[1], [0], [0], [1], [0, 0, 1, 1], [], []>} : vector<8x32xf32>, vector<32x64xf32>, vector<8x64xf32> -> vector<8x64xf32>
    %293 = arith.addf %292, %14 : vector<8x64xf32>
    %294 = vector.extract_strided_slice %293 {offsets = [0, 0], sizes = [8, 48], strides = [1, 1]} : vector<8x64xf32> to vector<8x48xf32>
    %295 = arith.negf %294 : vector<8x48xf32>
    %296 = math.exp %295 : vector<8x48xf32>
    %cst_75 = arith.constant 1.000000e+00 : f32
    %297 = vector.broadcast %cst_75 : f32 to vector<8x48xf32>
    %298 = arith.addf %297, %296 : vector<8x48xf32>
    %299 = arith.divf %297, %298 : vector<8x48xf32>
    %300 = vector.extract_strided_slice %293 {offsets = [0, 48], sizes = [8, 16], strides = [1, 1]} : vector<8x64xf32> to vector<8x16xf32>
    %301 = math.tanh %300 : vector<8x16xf32>
    %302 = vector.extract_strided_slice %299 {offsets = [0, 0], sizes = [8, 16], strides = [1, 1]} : vector<8x48xf32> to vector<8x16xf32>
    %303 = vector.extract_strided_slice %299 {offsets = [0, 16], sizes = [8, 16], strides = [1, 1]} : vector<8x48xf32> to vector<8x16xf32>
    %304 = vector.extract_strided_slice %299 {offsets = [0, 32], sizes = [8, 16], strides = [1, 1]} : vector<8x48xf32> to vector<8x16xf32>
    %305 = arith.mulf %303, %231 : vector<8x16xf32>
    %306 = arith.mulf %302, %301 : vector<8x16xf32>
    %307 = arith.addf %305, %306 : vector<8x16xf32>
    %308 = math.tanh %307 : vector<8x16xf32>
    %309 = arith.mulf %304, %308 : vector<8x16xf32>
    %310 = tpu.concatenate %309, %252 in 1 : vector<8x16xf32>, vector<8x8xf32> -> vector<8x24xf32>
    %cst_76 = arith.constant dense<0.000000e+00> : vector<8x32xf32>
    %311 = tpu.matmul %310, %3, %cst_76 {dimension_numbers = #tpu.dot_dimension_numbers<[1], [0], [0], [1], [0, 0, 1, 1], [], []>} : vector<8x24xf32>, vector<24x32xf32>, vector<8x32xf32> -> vector<8x32xf32>
    %312 = arith.addf %311, %17 : vector<8x32xf32>
    %313 = vector.extract_strided_slice %312 {offsets = [0, 0], sizes = [8, 24], strides = [1, 1]} : vector<8x32xf32> to vector<8x24xf32>
    %314 = arith.negf %313 : vector<8x24xf32>
    %315 = math.exp %314 : vector<8x24xf32>
    %cst_77 = arith.constant 1.000000e+00 : f32
    %316 = vector.broadcast %cst_77 : f32 to vector<8x24xf32>
    %317 = arith.addf %316, %315 : vector<8x24xf32>
    %318 = arith.divf %316, %317 : vector<8x24xf32>
    %319 = vector.extract_strided_slice %312 {offsets = [0, 24], sizes = [8, 8], strides = [1, 1]} : vector<8x32xf32> to vector<8x8xf32>
    %320 = math.tanh %319 : vector<8x8xf32>
    %321 = vector.extract_strided_slice %318 {offsets = [0, 0], sizes = [8, 8], strides = [1, 1]} : vector<8x24xf32> to vector<8x8xf32>
    %322 = vector.extract_strided_slice %318 {offsets = [0, 8], sizes = [8, 8], strides = [1, 1]} : vector<8x24xf32> to vector<8x8xf32>
    %323 = vector.extract_strided_slice %318 {offsets = [0, 16], sizes = [8, 8], strides = [1, 1]} : vector<8x24xf32> to vector<8x8xf32>
    %324 = arith.mulf %322, %250 : vector<8x8xf32>
    %325 = arith.mulf %321, %320 : vector<8x8xf32>
    %326 = arith.addf %324, %325 : vector<8x8xf32>
    %327 = math.tanh %326 : vector<8x8xf32>
    %328 = arith.mulf %323, %327 : vector<8x8xf32>
    %329 = tpu.concatenate %328, %271 in 1 : vector<8x8xf32>, vector<8x8xf32> -> vector<8x16xf32>
    %cst_78 = arith.constant dense<0.000000e+00> : vector<8x32xf32>
    %330 = tpu.matmul %329, %4, %cst_78 {dimension_numbers = #tpu.dot_dimension_numbers<[1], [0], [0], [1], [0, 0, 1, 1], [], []>} : vector<8x16xf32>, vector<16x32xf32>, vector<8x32xf32> -> vector<8x32xf32>
    %331 = arith.addf %330, %20 : vector<8x32xf32>
    %332 = vector.extract_strided_slice %331 {offsets = [0, 0], sizes = [8, 24], strides = [1, 1]} : vector<8x32xf32> to vector<8x24xf32>
    %333 = arith.negf %332 : vector<8x24xf32>
    %334 = math.exp %333 : vector<8x24xf32>
    %cst_79 = arith.constant 1.000000e+00 : f32
    %335 = vector.broadcast %cst_79 : f32 to vector<8x24xf32>
    %336 = arith.addf %335, %334 : vector<8x24xf32>
    %337 = arith.divf %335, %336 : vector<8x24xf32>
    %338 = vector.extract_strided_slice %331 {offsets = [0, 24], sizes = [8, 8], strides = [1, 1]} : vector<8x32xf32> to vector<8x8xf32>
    %339 = math.tanh %338 : vector<8x8xf32>
    %340 = vector.extract_strided_slice %337 {offsets = [0, 0], sizes = [8, 8], strides = [1, 1]} : vector<8x24xf32> to vector<8x8xf32>
    %341 = vector.extract_strided_slice %337 {offsets = [0, 8], sizes = [8, 8], strides = [1, 1]} : vector<8x24xf32> to vector<8x8xf32>
    %342 = vector.extract_strided_slice %337 {offsets = [0, 16], sizes = [8, 8], strides = [1, 1]} : vector<8x24xf32> to vector<8x8xf32>
    %343 = arith.mulf %341, %269 : vector<8x8xf32>
    %344 = arith.mulf %340, %339 : vector<8x8xf32>
    %345 = arith.addf %343, %344 : vector<8x8xf32>
    %346 = math.tanh %345 : vector<8x8xf32>
    %347 = arith.mulf %342, %346 : vector<8x8xf32>
    %348 = vector.extract_strided_slice %35 {offsets = [32, 0], sizes = [8, 64], strides = [1, 1]} : vector<64x64xf32> to vector<8x64xf32>
    %cst_80 = arith.constant dense<0.000000e+00> : vector<8x64xf32>
    %349 = tpu.matmul %290, %1, %cst_80 {dimension_numbers = #tpu.dot_dimension_numbers<[1], [0], [0], [1], [0, 0, 1, 1], [], []>} : vector<8x16xf32>, vector<16x64xf32>, vector<8x64xf32> -> vector<8x64xf32>
    %350 = arith.addf %348, %349 : vector<8x64xf32>
    %351 = vector.extract_strided_slice %350 {offsets = [0, 0], sizes = [8, 48], strides = [1, 1]} : vector<8x64xf32> to vector<8x48xf32>
    %352 = arith.negf %351 : vector<8x48xf32>
    %353 = math.exp %352 : vector<8x48xf32>
    %cst_81 = arith.constant 1.000000e+00 : f32
    %354 = vector.broadcast %cst_81 : f32 to vector<8x48xf32>
    %355 = arith.addf %354, %353 : vector<8x48xf32>
    %356 = arith.divf %354, %355 : vector<8x48xf32>
    %357 = vector.extract_strided_slice %350 {offsets = [0, 48], sizes = [8, 16], strides = [1, 1]} : vector<8x64xf32> to vector<8x16xf32>
    %358 = math.tanh %357 : vector<8x16xf32>
    %359 = vector.extract_strided_slice %356 {offsets = [0, 0], sizes = [8, 16], strides = [1, 1]} : vector<8x48xf32> to vector<8x16xf32>
    %360 = vector.extract_strided_slice %356 {offsets = [0, 16], sizes = [8, 16], strides = [1, 1]} : vector<8x48xf32> to vector<8x16xf32>
    %361 = vector.extract_strided_slice %356 {offsets = [0, 32], sizes = [8, 16], strides = [1, 1]} : vector<8x48xf32> to vector<8x16xf32>
    %362 = arith.mulf %360, %288 : vector<8x16xf32>
    %363 = arith.mulf %359, %358 : vector<8x16xf32>
    %364 = arith.addf %362, %363 : vector<8x16xf32>
    %365 = math.tanh %364 : vector<8x16xf32>
    %366 = arith.mulf %361, %365 : vector<8x16xf32>
    %367 = tpu.concatenate %366, %309 in 1 : vector<8x16xf32>, vector<8x16xf32> -> vector<8x32xf32>
    %cst_82 = arith.constant dense<0.000000e+00> : vector<8x64xf32>
    %368 = tpu.matmul %367, %2, %cst_82 {dimension_numbers = #tpu.dot_dimension_numbers<[1], [0], [0], [1], [0, 0, 1, 1], [], []>} : vector<8x32xf32>, vector<32x64xf32>, vector<8x64xf32> -> vector<8x64xf32>
    %369 = arith.addf %368, %14 : vector<8x64xf32>
    %370 = vector.extract_strided_slice %369 {offsets = [0, 0], sizes = [8, 48], strides = [1, 1]} : vector<8x64xf32> to vector<8x48xf32>
    %371 = arith.negf %370 : vector<8x48xf32>
    %372 = math.exp %371 : vector<8x48xf32>
    %cst_83 = arith.constant 1.000000e+00 : f32
    %373 = vector.broadcast %cst_83 : f32 to vector<8x48xf32>
    %374 = arith.addf %373, %372 : vector<8x48xf32>
    %375 = arith.divf %373, %374 : vector<8x48xf32>
    %376 = vector.extract_strided_slice %369 {offsets = [0, 48], sizes = [8, 16], strides = [1, 1]} : vector<8x64xf32> to vector<8x16xf32>
    %377 = math.tanh %376 : vector<8x16xf32>
    %378 = vector.extract_strided_slice %375 {offsets = [0, 0], sizes = [8, 16], strides = [1, 1]} : vector<8x48xf32> to vector<8x16xf32>
    %379 = vector.extract_strided_slice %375 {offsets = [0, 16], sizes = [8, 16], strides = [1, 1]} : vector<8x48xf32> to vector<8x16xf32>
    %380 = vector.extract_strided_slice %375 {offsets = [0, 32], sizes = [8, 16], strides = [1, 1]} : vector<8x48xf32> to vector<8x16xf32>
    %381 = arith.mulf %379, %307 : vector<8x16xf32>
    %382 = arith.mulf %378, %377 : vector<8x16xf32>
    %383 = arith.addf %381, %382 : vector<8x16xf32>
    %384 = math.tanh %383 : vector<8x16xf32>
    %385 = arith.mulf %380, %384 : vector<8x16xf32>
    %386 = tpu.concatenate %385, %328 in 1 : vector<8x16xf32>, vector<8x8xf32> -> vector<8x24xf32>
    %cst_84 = arith.constant dense<0.000000e+00> : vector<8x32xf32>
    %387 = tpu.matmul %386, %3, %cst_84 {dimension_numbers = #tpu.dot_dimension_numbers<[1], [0], [0], [1], [0, 0, 1, 1], [], []>} : vector<8x24xf32>, vector<24x32xf32>, vector<8x32xf32> -> vector<8x32xf32>
    %388 = arith.addf %387, %17 : vector<8x32xf32>
    %389 = vector.extract_strided_slice %388 {offsets = [0, 0], sizes = [8, 24], strides = [1, 1]} : vector<8x32xf32> to vector<8x24xf32>
    %390 = arith.negf %389 : vector<8x24xf32>
    %391 = math.exp %390 : vector<8x24xf32>
    %cst_85 = arith.constant 1.000000e+00 : f32
    %392 = vector.broadcast %cst_85 : f32 to vector<8x24xf32>
    %393 = arith.addf %392, %391 : vector<8x24xf32>
    %394 = arith.divf %392, %393 : vector<8x24xf32>
    %395 = vector.extract_strided_slice %388 {offsets = [0, 24], sizes = [8, 8], strides = [1, 1]} : vector<8x32xf32> to vector<8x8xf32>
    %396 = math.tanh %395 : vector<8x8xf32>
    %397 = vector.extract_strided_slice %394 {offsets = [0, 0], sizes = [8, 8], strides = [1, 1]} : vector<8x24xf32> to vector<8x8xf32>
    %398 = vector.extract_strided_slice %394 {offsets = [0, 8], sizes = [8, 8], strides = [1, 1]} : vector<8x24xf32> to vector<8x8xf32>
    %399 = vector.extract_strided_slice %394 {offsets = [0, 16], sizes = [8, 8], strides = [1, 1]} : vector<8x24xf32> to vector<8x8xf32>
    %400 = arith.mulf %398, %326 : vector<8x8xf32>
    %401 = arith.mulf %397, %396 : vector<8x8xf32>
    %402 = arith.addf %400, %401 : vector<8x8xf32>
    %403 = math.tanh %402 : vector<8x8xf32>
    %404 = arith.mulf %399, %403 : vector<8x8xf32>
    %405 = tpu.concatenate %404, %347 in 1 : vector<8x8xf32>, vector<8x8xf32> -> vector<8x16xf32>
    %cst_86 = arith.constant dense<0.000000e+00> : vector<8x32xf32>
    %406 = tpu.matmul %405, %4, %cst_86 {dimension_numbers = #tpu.dot_dimension_numbers<[1], [0], [0], [1], [0, 0, 1, 1], [], []>} : vector<8x16xf32>, vector<16x32xf32>, vector<8x32xf32> -> vector<8x32xf32>
    %407 = arith.addf %406, %20 : vector<8x32xf32>
    %408 = vector.extract_strided_slice %407 {offsets = [0, 0], sizes = [8, 24], strides = [1, 1]} : vector<8x32xf32> to vector<8x24xf32>
    %409 = arith.negf %408 : vector<8x24xf32>
    %410 = math.exp %409 : vector<8x24xf32>
    %cst_87 = arith.constant 1.000000e+00 : f32
    %411 = vector.broadcast %cst_87 : f32 to vector<8x24xf32>
    %412 = arith.addf %411, %410 : vector<8x24xf32>
    %413 = arith.divf %411, %412 : vector<8x24xf32>
    %414 = vector.extract_strided_slice %407 {offsets = [0, 24], sizes = [8, 8], strides = [1, 1]} : vector<8x32xf32> to vector<8x8xf32>
    %415 = math.tanh %414 : vector<8x8xf32>
    %416 = vector.extract_strided_slice %413 {offsets = [0, 0], sizes = [8, 8], strides = [1, 1]} : vector<8x24xf32> to vector<8x8xf32>
    %417 = vector.extract_strided_slice %413 {offsets = [0, 8], sizes = [8, 8], strides = [1, 1]} : vector<8x24xf32> to vector<8x8xf32>
    %418 = vector.extract_strided_slice %413 {offsets = [0, 16], sizes = [8, 8], strides = [1, 1]} : vector<8x24xf32> to vector<8x8xf32>
    %419 = arith.mulf %417, %345 : vector<8x8xf32>
    %420 = arith.mulf %416, %415 : vector<8x8xf32>
    %421 = arith.addf %419, %420 : vector<8x8xf32>
    %422 = math.tanh %421 : vector<8x8xf32>
    %423 = arith.mulf %418, %422 : vector<8x8xf32>
    %424 = vector.extract_strided_slice %35 {offsets = [40, 0], sizes = [8, 64], strides = [1, 1]} : vector<64x64xf32> to vector<8x64xf32>
    %cst_88 = arith.constant dense<0.000000e+00> : vector<8x64xf32>
    %425 = tpu.matmul %366, %1, %cst_88 {dimension_numbers = #tpu.dot_dimension_numbers<[1], [0], [0], [1], [0, 0, 1, 1], [], []>} : vector<8x16xf32>, vector<16x64xf32>, vector<8x64xf32> -> vector<8x64xf32>
    %426 = arith.addf %424, %425 : vector<8x64xf32>
    %427 = vector.extract_strided_slice %426 {offsets = [0, 0], sizes = [8, 48], strides = [1, 1]} : vector<8x64xf32> to vector<8x48xf32>
    %428 = arith.negf %427 : vector<8x48xf32>
    %429 = math.exp %428 : vector<8x48xf32>
    %cst_89 = arith.constant 1.000000e+00 : f32
    %430 = vector.broadcast %cst_89 : f32 to vector<8x48xf32>
    %431 = arith.addf %430, %429 : vector<8x48xf32>
    %432 = arith.divf %430, %431 : vector<8x48xf32>
    %433 = vector.extract_strided_slice %426 {offsets = [0, 48], sizes = [8, 16], strides = [1, 1]} : vector<8x64xf32> to vector<8x16xf32>
    %434 = math.tanh %433 : vector<8x16xf32>
    %435 = vector.extract_strided_slice %432 {offsets = [0, 0], sizes = [8, 16], strides = [1, 1]} : vector<8x48xf32> to vector<8x16xf32>
    %436 = vector.extract_strided_slice %432 {offsets = [0, 16], sizes = [8, 16], strides = [1, 1]} : vector<8x48xf32> to vector<8x16xf32>
    %437 = vector.extract_strided_slice %432 {offsets = [0, 32], sizes = [8, 16], strides = [1, 1]} : vector<8x48xf32> to vector<8x16xf32>
    %438 = arith.mulf %436, %364 : vector<8x16xf32>
    %439 = arith.mulf %435, %434 : vector<8x16xf32>
    %440 = arith.addf %438, %439 : vector<8x16xf32>
    %441 = math.tanh %440 : vector<8x16xf32>
    %442 = arith.mulf %437, %441 : vector<8x16xf32>
    %443 = tpu.concatenate %442, %385 in 1 : vector<8x16xf32>, vector<8x16xf32> -> vector<8x32xf32>
    %cst_90 = arith.constant dense<0.000000e+00> : vector<8x64xf32>
    %444 = tpu.matmul %443, %2, %cst_90 {dimension_numbers = #tpu.dot_dimension_numbers<[1], [0], [0], [1], [0, 0, 1, 1], [], []>} : vector<8x32xf32>, vector<32x64xf32>, vector<8x64xf32> -> vector<8x64xf32>
    %445 = arith.addf %444, %14 : vector<8x64xf32>
    %446 = vector.extract_strided_slice %445 {offsets = [0, 0], sizes = [8, 48], strides = [1, 1]} : vector<8x64xf32> to vector<8x48xf32>
    %447 = arith.negf %446 : vector<8x48xf32>
    %448 = math.exp %447 : vector<8x48xf32>
    %cst_91 = arith.constant 1.000000e+00 : f32
    %449 = vector.broadcast %cst_91 : f32 to vector<8x48xf32>
    %450 = arith.addf %449, %448 : vector<8x48xf32>
    %451 = arith.divf %449, %450 : vector<8x48xf32>
    %452 = vector.extract_strided_slice %445 {offsets = [0, 48], sizes = [8, 16], strides = [1, 1]} : vector<8x64xf32> to vector<8x16xf32>
    %453 = math.tanh %452 : vector<8x16xf32>
    %454 = vector.extract_strided_slice %451 {offsets = [0, 0], sizes = [8, 16], strides = [1, 1]} : vector<8x48xf32> to vector<8x16xf32>
    %455 = vector.extract_strided_slice %451 {offsets = [0, 16], sizes = [8, 16], strides = [1, 1]} : vector<8x48xf32> to vector<8x16xf32>
    %456 = vector.extract_strided_slice %451 {offsets = [0, 32], sizes = [8, 16], strides = [1, 1]} : vector<8x48xf32> to vector<8x16xf32>
    %457 = arith.mulf %455, %383 : vector<8x16xf32>
    %458 = arith.mulf %454, %453 : vector<8x16xf32>
    %459 = arith.addf %457, %458 : vector<8x16xf32>
    %460 = math.tanh %459 : vector<8x16xf32>
    %461 = arith.mulf %456, %460 : vector<8x16xf32>
    %462 = tpu.concatenate %461, %404 in 1 : vector<8x16xf32>, vector<8x8xf32> -> vector<8x24xf32>
    %cst_92 = arith.constant dense<0.000000e+00> : vector<8x32xf32>
    %463 = tpu.matmul %462, %3, %cst_92 {dimension_numbers = #tpu.dot_dimension_numbers<[1], [0], [0], [1], [0, 0, 1, 1], [], []>} : vector<8x24xf32>, vector<24x32xf32>, vector<8x32xf32> -> vector<8x32xf32>
    %464 = arith.addf %463, %17 : vector<8x32xf32>
    %465 = vector.extract_strided_slice %464 {offsets = [0, 0], sizes = [8, 24], strides = [1, 1]} : vector<8x32xf32> to vector<8x24xf32>
    %466 = arith.negf %465 : vector<8x24xf32>
    %467 = math.exp %466 : vector<8x24xf32>
    %cst_93 = arith.constant 1.000000e+00 : f32
    %468 = vector.broadcast %cst_93 : f32 to vector<8x24xf32>
    %469 = arith.addf %468, %467 : vector<8x24xf32>
    %470 = arith.divf %468, %469 : vector<8x24xf32>
    %471 = vector.extract_strided_slice %464 {offsets = [0, 24], sizes = [8, 8], strides = [1, 1]} : vector<8x32xf32> to vector<8x8xf32>
    %472 = math.tanh %471 : vector<8x8xf32>
    %473 = vector.extract_strided_slice %470 {offsets = [0, 0], sizes = [8, 8], strides = [1, 1]} : vector<8x24xf32> to vector<8x8xf32>
    %474 = vector.extract_strided_slice %470 {offsets = [0, 8], sizes = [8, 8], strides = [1, 1]} : vector<8x24xf32> to vector<8x8xf32>
    %475 = vector.extract_strided_slice %470 {offsets = [0, 16], sizes = [8, 8], strides = [1, 1]} : vector<8x24xf32> to vector<8x8xf32>
    %476 = arith.mulf %474, %402 : vector<8x8xf32>
    %477 = arith.mulf %473, %472 : vector<8x8xf32>
    %478 = arith.addf %476, %477 : vector<8x8xf32>
    %479 = math.tanh %478 : vector<8x8xf32>
    %480 = arith.mulf %475, %479 : vector<8x8xf32>
    %481 = tpu.concatenate %480, %423 in 1 : vector<8x8xf32>, vector<8x8xf32> -> vector<8x16xf32>
    %cst_94 = arith.constant dense<0.000000e+00> : vector<8x32xf32>
    %482 = tpu.matmul %481, %4, %cst_94 {dimension_numbers = #tpu.dot_dimension_numbers<[1], [0], [0], [1], [0, 0, 1, 1], [], []>} : vector<8x16xf32>, vector<16x32xf32>, vector<8x32xf32> -> vector<8x32xf32>
    %483 = arith.addf %482, %20 : vector<8x32xf32>
    %484 = vector.extract_strided_slice %483 {offsets = [0, 0], sizes = [8, 24], strides = [1, 1]} : vector<8x32xf32> to vector<8x24xf32>
    %485 = arith.negf %484 : vector<8x24xf32>
    %486 = math.exp %485 : vector<8x24xf32>
    %cst_95 = arith.constant 1.000000e+00 : f32
    %487 = vector.broadcast %cst_95 : f32 to vector<8x24xf32>
    %488 = arith.addf %487, %486 : vector<8x24xf32>
    %489 = arith.divf %487, %488 : vector<8x24xf32>
    %490 = vector.extract_strided_slice %483 {offsets = [0, 24], sizes = [8, 8], strides = [1, 1]} : vector<8x32xf32> to vector<8x8xf32>
    %491 = math.tanh %490 : vector<8x8xf32>
    %492 = vector.extract_strided_slice %489 {offsets = [0, 0], sizes = [8, 8], strides = [1, 1]} : vector<8x24xf32> to vector<8x8xf32>
    %493 = vector.extract_strided_slice %489 {offsets = [0, 8], sizes = [8, 8], strides = [1, 1]} : vector<8x24xf32> to vector<8x8xf32>
    %494 = vector.extract_strided_slice %489 {offsets = [0, 16], sizes = [8, 8], strides = [1, 1]} : vector<8x24xf32> to vector<8x8xf32>
    %495 = arith.mulf %493, %421 : vector<8x8xf32>
    %496 = arith.mulf %492, %491 : vector<8x8xf32>
    %497 = arith.addf %495, %496 : vector<8x8xf32>
    %498 = math.tanh %497 : vector<8x8xf32>
    %499 = arith.mulf %494, %498 : vector<8x8xf32>
    %500 = vector.extract_strided_slice %35 {offsets = [48, 0], sizes = [8, 64], strides = [1, 1]} : vector<64x64xf32> to vector<8x64xf32>
    %cst_96 = arith.constant dense<0.000000e+00> : vector<8x64xf32>
    %501 = tpu.matmul %442, %1, %cst_96 {dimension_numbers = #tpu.dot_dimension_numbers<[1], [0], [0], [1], [0, 0, 1, 1], [], []>} : vector<8x16xf32>, vector<16x64xf32>, vector<8x64xf32> -> vector<8x64xf32>
    %502 = arith.addf %500, %501 : vector<8x64xf32>
    %503 = vector.extract_strided_slice %502 {offsets = [0, 0], sizes = [8, 48], strides = [1, 1]} : vector<8x64xf32> to vector<8x48xf32>
    %504 = arith.negf %503 : vector<8x48xf32>
    %505 = math.exp %504 : vector<8x48xf32>
    %cst_97 = arith.constant 1.000000e+00 : f32
    %506 = vector.broadcast %cst_97 : f32 to vector<8x48xf32>
    %507 = arith.addf %506, %505 : vector<8x48xf32>
    %508 = arith.divf %506, %507 : vector<8x48xf32>
    %509 = vector.extract_strided_slice %502 {offsets = [0, 48], sizes = [8, 16], strides = [1, 1]} : vector<8x64xf32> to vector<8x16xf32>
    %510 = math.tanh %509 : vector<8x16xf32>
    %511 = vector.extract_strided_slice %508 {offsets = [0, 0], sizes = [8, 16], strides = [1, 1]} : vector<8x48xf32> to vector<8x16xf32>
    %512 = vector.extract_strided_slice %508 {offsets = [0, 16], sizes = [8, 16], strides = [1, 1]} : vector<8x48xf32> to vector<8x16xf32>
    %513 = vector.extract_strided_slice %508 {offsets = [0, 32], sizes = [8, 16], strides = [1, 1]} : vector<8x48xf32> to vector<8x16xf32>
    %514 = arith.mulf %512, %440 : vector<8x16xf32>
    %515 = arith.mulf %511, %510 : vector<8x16xf32>
    %516 = arith.addf %514, %515 : vector<8x16xf32>
    %517 = math.tanh %516 : vector<8x16xf32>
    %518 = arith.mulf %513, %517 : vector<8x16xf32>
    %519 = tpu.concatenate %518, %461 in 1 : vector<8x16xf32>, vector<8x16xf32> -> vector<8x32xf32>
    %cst_98 = arith.constant dense<0.000000e+00> : vector<8x64xf32>
    %520 = tpu.matmul %519, %2, %cst_98 {dimension_numbers = #tpu.dot_dimension_numbers<[1], [0], [0], [1], [0, 0, 1, 1], [], []>} : vector<8x32xf32>, vector<32x64xf32>, vector<8x64xf32> -> vector<8x64xf32>
    %521 = arith.addf %520, %14 : vector<8x64xf32>
    %522 = vector.extract_strided_slice %521 {offsets = [0, 0], sizes = [8, 48], strides = [1, 1]} : vector<8x64xf32> to vector<8x48xf32>
    %523 = arith.negf %522 : vector<8x48xf32>
    %524 = math.exp %523 : vector<8x48xf32>
    %cst_99 = arith.constant 1.000000e+00 : f32
    %525 = vector.broadcast %cst_99 : f32 to vector<8x48xf32>
    %526 = arith.addf %525, %524 : vector<8x48xf32>
    %527 = arith.divf %525, %526 : vector<8x48xf32>
    %528 = vector.extract_strided_slice %521 {offsets = [0, 48], sizes = [8, 16], strides = [1, 1]} : vector<8x64xf32> to vector<8x16xf32>
    %529 = math.tanh %528 : vector<8x16xf32>
    %530 = vector.extract_strided_slice %527 {offsets = [0, 0], sizes = [8, 16], strides = [1, 1]} : vector<8x48xf32> to vector<8x16xf32>
    %531 = vector.extract_strided_slice %527 {offsets = [0, 16], sizes = [8, 16], strides = [1, 1]} : vector<8x48xf32> to vector<8x16xf32>
    %532 = vector.extract_strided_slice %527 {offsets = [0, 32], sizes = [8, 16], strides = [1, 1]} : vector<8x48xf32> to vector<8x16xf32>
    %533 = arith.mulf %531, %459 : vector<8x16xf32>
    %534 = arith.mulf %530, %529 : vector<8x16xf32>
    %535 = arith.addf %533, %534 : vector<8x16xf32>
    %536 = math.tanh %535 : vector<8x16xf32>
    %537 = arith.mulf %532, %536 : vector<8x16xf32>
    %538 = tpu.concatenate %537, %480 in 1 : vector<8x16xf32>, vector<8x8xf32> -> vector<8x24xf32>
    %cst_100 = arith.constant dense<0.000000e+00> : vector<8x32xf32>
    %539 = tpu.matmul %538, %3, %cst_100 {dimension_numbers = #tpu.dot_dimension_numbers<[1], [0], [0], [1], [0, 0, 1, 1], [], []>} : vector<8x24xf32>, vector<24x32xf32>, vector<8x32xf32> -> vector<8x32xf32>
    %540 = arith.addf %539, %17 : vector<8x32xf32>
    %541 = vector.extract_strided_slice %540 {offsets = [0, 0], sizes = [8, 24], strides = [1, 1]} : vector<8x32xf32> to vector<8x24xf32>
    %542 = arith.negf %541 : vector<8x24xf32>
    %543 = math.exp %542 : vector<8x24xf32>
    %cst_101 = arith.constant 1.000000e+00 : f32
    %544 = vector.broadcast %cst_101 : f32 to vector<8x24xf32>
    %545 = arith.addf %544, %543 : vector<8x24xf32>
    %546 = arith.divf %544, %545 : vector<8x24xf32>
    %547 = vector.extract_strided_slice %540 {offsets = [0, 24], sizes = [8, 8], strides = [1, 1]} : vector<8x32xf32> to vector<8x8xf32>
    %548 = math.tanh %547 : vector<8x8xf32>
    %549 = vector.extract_strided_slice %546 {offsets = [0, 0], sizes = [8, 8], strides = [1, 1]} : vector<8x24xf32> to vector<8x8xf32>
    %550 = vector.extract_strided_slice %546 {offsets = [0, 8], sizes = [8, 8], strides = [1, 1]} : vector<8x24xf32> to vector<8x8xf32>
    %551 = vector.extract_strided_slice %546 {offsets = [0, 16], sizes = [8, 8], strides = [1, 1]} : vector<8x24xf32> to vector<8x8xf32>
    %552 = arith.mulf %550, %478 : vector<8x8xf32>
    %553 = arith.mulf %549, %548 : vector<8x8xf32>
    %554 = arith.addf %552, %553 : vector<8x8xf32>
    %555 = math.tanh %554 : vector<8x8xf32>
    %556 = arith.mulf %551, %555 : vector<8x8xf32>
    %557 = tpu.concatenate %556, %499 in 1 : vector<8x8xf32>, vector<8x8xf32> -> vector<8x16xf32>
    %cst_102 = arith.constant dense<0.000000e+00> : vector<8x32xf32>
    %558 = tpu.matmul %557, %4, %cst_102 {dimension_numbers = #tpu.dot_dimension_numbers<[1], [0], [0], [1], [0, 0, 1, 1], [], []>} : vector<8x16xf32>, vector<16x32xf32>, vector<8x32xf32> -> vector<8x32xf32>
    %559 = arith.addf %558, %20 : vector<8x32xf32>
    %560 = vector.extract_strided_slice %559 {offsets = [0, 0], sizes = [8, 24], strides = [1, 1]} : vector<8x32xf32> to vector<8x24xf32>
    %561 = arith.negf %560 : vector<8x24xf32>
    %562 = math.exp %561 : vector<8x24xf32>
    %cst_103 = arith.constant 1.000000e+00 : f32
    %563 = vector.broadcast %cst_103 : f32 to vector<8x24xf32>
    %564 = arith.addf %563, %562 : vector<8x24xf32>
    %565 = arith.divf %563, %564 : vector<8x24xf32>
    %566 = vector.extract_strided_slice %559 {offsets = [0, 24], sizes = [8, 8], strides = [1, 1]} : vector<8x32xf32> to vector<8x8xf32>
    %567 = math.tanh %566 : vector<8x8xf32>
    %568 = vector.extract_strided_slice %565 {offsets = [0, 0], sizes = [8, 8], strides = [1, 1]} : vector<8x24xf32> to vector<8x8xf32>
    %569 = vector.extract_strided_slice %565 {offsets = [0, 8], sizes = [8, 8], strides = [1, 1]} : vector<8x24xf32> to vector<8x8xf32>
    %570 = vector.extract_strided_slice %565 {offsets = [0, 16], sizes = [8, 8], strides = [1, 1]} : vector<8x24xf32> to vector<8x8xf32>
    %571 = arith.mulf %569, %497 : vector<8x8xf32>
    %572 = arith.mulf %568, %567 : vector<8x8xf32>
    %573 = arith.addf %571, %572 : vector<8x8xf32>
    %574 = math.tanh %573 : vector<8x8xf32>
    %575 = arith.mulf %570, %574 : vector<8x8xf32>
    %576 = vector.extract_strided_slice %35 {offsets = [56, 0], sizes = [8, 64], strides = [1, 1]} : vector<64x64xf32> to vector<8x64xf32>
    %cst_104 = arith.constant dense<0.000000e+00> : vector<8x64xf32>
    %577 = tpu.matmul %518, %1, %cst_104 {dimension_numbers = #tpu.dot_dimension_numbers<[1], [0], [0], [1], [0, 0, 1, 1], [], []>} : vector<8x16xf32>, vector<16x64xf32>, vector<8x64xf32> -> vector<8x64xf32>
    %578 = arith.addf %576, %577 : vector<8x64xf32>
    %579 = vector.extract_strided_slice %578 {offsets = [0, 0], sizes = [8, 48], strides = [1, 1]} : vector<8x64xf32> to vector<8x48xf32>
    %580 = arith.negf %579 : vector<8x48xf32>
    %581 = math.exp %580 : vector<8x48xf32>
    %cst_105 = arith.constant 1.000000e+00 : f32
    %582 = vector.broadcast %cst_105 : f32 to vector<8x48xf32>
    %583 = arith.addf %582, %581 : vector<8x48xf32>
    %584 = arith.divf %582, %583 : vector<8x48xf32>
    %585 = vector.extract_strided_slice %578 {offsets = [0, 48], sizes = [8, 16], strides = [1, 1]} : vector<8x64xf32> to vector<8x16xf32>
    %586 = math.tanh %585 : vector<8x16xf32>
    %587 = vector.extract_strided_slice %584 {offsets = [0, 0], sizes = [8, 16], strides = [1, 1]} : vector<8x48xf32> to vector<8x16xf32>
    %588 = vector.extract_strided_slice %584 {offsets = [0, 16], sizes = [8, 16], strides = [1, 1]} : vector<8x48xf32> to vector<8x16xf32>
    %589 = vector.extract_strided_slice %584 {offsets = [0, 32], sizes = [8, 16], strides = [1, 1]} : vector<8x48xf32> to vector<8x16xf32>
    %590 = arith.mulf %588, %516 : vector<8x16xf32>
    %591 = arith.mulf %587, %586 : vector<8x16xf32>
    %592 = arith.addf %590, %591 : vector<8x16xf32>
    %593 = math.tanh %592 : vector<8x16xf32>
    %594 = arith.mulf %589, %593 : vector<8x16xf32>
    %595 = tpu.concatenate %594, %537 in 1 : vector<8x16xf32>, vector<8x16xf32> -> vector<8x32xf32>
    %cst_106 = arith.constant dense<0.000000e+00> : vector<8x64xf32>
    %596 = tpu.matmul %595, %2, %cst_106 {dimension_numbers = #tpu.dot_dimension_numbers<[1], [0], [0], [1], [0, 0, 1, 1], [], []>} : vector<8x32xf32>, vector<32x64xf32>, vector<8x64xf32> -> vector<8x64xf32>
    %597 = arith.addf %596, %14 : vector<8x64xf32>
    %598 = vector.extract_strided_slice %597 {offsets = [0, 0], sizes = [8, 48], strides = [1, 1]} : vector<8x64xf32> to vector<8x48xf32>
    %599 = arith.negf %598 : vector<8x48xf32>
    %600 = math.exp %599 : vector<8x48xf32>
    %cst_107 = arith.constant 1.000000e+00 : f32
    %601 = vector.broadcast %cst_107 : f32 to vector<8x48xf32>
    %602 = arith.addf %601, %600 : vector<8x48xf32>
    %603 = arith.divf %601, %602 : vector<8x48xf32>
    %604 = vector.extract_strided_slice %597 {offsets = [0, 48], sizes = [8, 16], strides = [1, 1]} : vector<8x64xf32> to vector<8x16xf32>
    %605 = math.tanh %604 : vector<8x16xf32>
    %606 = vector.extract_strided_slice %603 {offsets = [0, 0], sizes = [8, 16], strides = [1, 1]} : vector<8x48xf32> to vector<8x16xf32>
    %607 = vector.extract_strided_slice %603 {offsets = [0, 16], sizes = [8, 16], strides = [1, 1]} : vector<8x48xf32> to vector<8x16xf32>
    %608 = vector.extract_strided_slice %603 {offsets = [0, 32], sizes = [8, 16], strides = [1, 1]} : vector<8x48xf32> to vector<8x16xf32>
    %609 = arith.mulf %607, %535 : vector<8x16xf32>
    %610 = arith.mulf %606, %605 : vector<8x16xf32>
    %611 = arith.addf %609, %610 : vector<8x16xf32>
    %612 = math.tanh %611 : vector<8x16xf32>
    %613 = arith.mulf %608, %612 : vector<8x16xf32>
    %614 = tpu.concatenate %613, %556 in 1 : vector<8x16xf32>, vector<8x8xf32> -> vector<8x24xf32>
    %cst_108 = arith.constant dense<0.000000e+00> : vector<8x32xf32>
    %615 = tpu.matmul %614, %3, %cst_108 {dimension_numbers = #tpu.dot_dimension_numbers<[1], [0], [0], [1], [0, 0, 1, 1], [], []>} : vector<8x24xf32>, vector<24x32xf32>, vector<8x32xf32> -> vector<8x32xf32>
    %616 = arith.addf %615, %17 : vector<8x32xf32>
    %617 = vector.extract_strided_slice %616 {offsets = [0, 0], sizes = [8, 24], strides = [1, 1]} : vector<8x32xf32> to vector<8x24xf32>
    %618 = arith.negf %617 : vector<8x24xf32>
    %619 = math.exp %618 : vector<8x24xf32>
    %cst_109 = arith.constant 1.000000e+00 : f32
    %620 = vector.broadcast %cst_109 : f32 to vector<8x24xf32>
    %621 = arith.addf %620, %619 : vector<8x24xf32>
    %622 = arith.divf %620, %621 : vector<8x24xf32>
    %623 = vector.extract_strided_slice %616 {offsets = [0, 24], sizes = [8, 8], strides = [1, 1]} : vector<8x32xf32> to vector<8x8xf32>
    %624 = math.tanh %623 : vector<8x8xf32>
    %625 = vector.extract_strided_slice %622 {offsets = [0, 0], sizes = [8, 8], strides = [1, 1]} : vector<8x24xf32> to vector<8x8xf32>
    %626 = vector.extract_strided_slice %622 {offsets = [0, 8], sizes = [8, 8], strides = [1, 1]} : vector<8x24xf32> to vector<8x8xf32>
    %627 = vector.extract_strided_slice %622 {offsets = [0, 16], sizes = [8, 8], strides = [1, 1]} : vector<8x24xf32> to vector<8x8xf32>
    %628 = arith.mulf %626, %554 : vector<8x8xf32>
    %629 = arith.mulf %625, %624 : vector<8x8xf32>
    %630 = arith.addf %628, %629 : vector<8x8xf32>
    %631 = math.tanh %630 : vector<8x8xf32>
    %632 = arith.mulf %627, %631 : vector<8x8xf32>
    %633 = tpu.concatenate %632, %575 in 1 : vector<8x8xf32>, vector<8x8xf32> -> vector<8x16xf32>
    %cst_110 = arith.constant dense<0.000000e+00> : vector<8x32xf32>
    %634 = tpu.matmul %633, %4, %cst_110 {dimension_numbers = #tpu.dot_dimension_numbers<[1], [0], [0], [1], [0, 0, 1, 1], [], []>} : vector<8x16xf32>, vector<16x32xf32>, vector<8x32xf32> -> vector<8x32xf32>
    %635 = arith.addf %634, %20 : vector<8x32xf32>
    %636 = vector.extract_strided_slice %635 {offsets = [0, 0], sizes = [8, 24], strides = [1, 1]} : vector<8x32xf32> to vector<8x24xf32>
    %637 = arith.negf %636 : vector<8x24xf32>
    %638 = math.exp %637 : vector<8x24xf32>
    %cst_111 = arith.constant 1.000000e+00 : f32
    %639 = vector.broadcast %cst_111 : f32 to vector<8x24xf32>
    %640 = arith.addf %639, %638 : vector<8x24xf32>
    %641 = arith.divf %639, %640 : vector<8x24xf32>
    %642 = vector.extract_strided_slice %635 {offsets = [0, 24], sizes = [8, 8], strides = [1, 1]} : vector<8x32xf32> to vector<8x8xf32>
    %643 = math.tanh %642 : vector<8x8xf32>
    %644 = vector.extract_strided_slice %641 {offsets = [0, 0], sizes = [8, 8], strides = [1, 1]} : vector<8x24xf32> to vector<8x8xf32>
    %645 = vector.extract_strided_slice %641 {offsets = [0, 8], sizes = [8, 8], strides = [1, 1]} : vector<8x24xf32> to vector<8x8xf32>
    %646 = vector.extract_strided_slice %641 {offsets = [0, 16], sizes = [8, 8], strides = [1, 1]} : vector<8x24xf32> to vector<8x8xf32>
    %647 = arith.mulf %645, %573 : vector<8x8xf32>
    %648 = arith.mulf %644, %643 : vector<8x8xf32>
    %649 = arith.addf %647, %648 : vector<8x8xf32>
    %650 = math.tanh %649 : vector<8x8xf32>
    %651 = arith.mulf %646, %650 : vector<8x8xf32>
    %652 = tpu.concatenate %632, %651 in 0 : vector<8x8xf32>, vector<8x8xf32> -> vector<16x8xf32>
    %653 = vector.shape_cast %652 : vector<16x8xf32> to vector<2x8x8xf32>
    %c0_112 = arith.constant 0 : index
    %c0_113 = arith.constant 0 : index
    %c0_114 = arith.constant 0 : index
    %654 = vector.load %arg22[%c0_112, %c0_113, %c0_114] : memref<2x8x8xf32, #tpu.memory_space<vmem>>, vector<2x8x8xf32>
    tpu.vector_store %arg22[%c0_112, %c0_113, %c0_114], %653 {strides = array<i32>} : memref<2x8x8xf32, #tpu.memory_space<vmem>>, vector<2x8x8xf32>,
    %cst_115 = arith.constant dense<0.000000e+00> : vector<16x32xf32>
    %655 = tpu.matmul %652, %5, %cst_115 {dimension_numbers = #tpu.dot_dimension_numbers<[1], [0], [0], [1], [0, 0, 1, 1], [], []>} : vector<16x8xf32>, vector<8x32xf32>, vector<16x32xf32> -> vector<16x32xf32>
    %c0_116 = arith.constant 0 : index
    %c0_117 = arith.constant 0 : index
    %656 = vector.load %arg13[%c0_116, %c0_117] : memref<1x32xf32, #tpu.memory_space<vmem>>, vector<1x32xf32>
    %657 = vector.broadcast %656 : vector<1x32xf32> to vector<16x32xf32>
    %658 = arith.addf %655, %657 : vector<16x32xf32>
    %cst_118 = arith.constant 0.000000e+00 : f32
    %659 = vector.broadcast %cst_118 : f32 to vector<16x8xf32>
    %cst_119 = arith.constant 0.000000e+00 : f32
    %660 = vector.broadcast %cst_119 : f32 to vector<16x8xf32>
    %cst_120 = arith.constant 0.000000e+00 : f32
    %661 = vector.broadcast %cst_120 : f32 to vector<16x8xf32>
    %cst_121 = arith.constant 0.000000e+00 : f32
    %662 = vector.broadcast %cst_121 : f32 to vector<16x8xf32>
    %cst_122 = arith.constant 0.000000e+00 : f32
    %663 = vector.broadcast %cst_122 : f32 to vector<16x16xf32>
    %cst_123 = arith.constant 0.000000e+00 : f32
    %664 = vector.broadcast %cst_123 : f32 to vector<16x16xf32>
    %cst_124 = arith.constant 0.000000e+00 : f32
    %665 = vector.broadcast %cst_124 : f32 to vector<16x16xf32>
    %cst_125 = arith.constant 0.000000e+00 : f32
    %666 = vector.broadcast %cst_125 : f32 to vector<16x16xf32>
    %cst_126 = arith.constant dense<0.000000e+00> : vector<16x32xf32>
    %667 = tpu.matmul %659, %6, %cst_126 {dimension_numbers = #tpu.dot_dimension_numbers<[1], [0], [0], [1], [0, 0, 1, 1], [], []>} : vector<16x8xf32>, vector<8x32xf32>, vector<16x32xf32> -> vector<16x32xf32>
    %668 = arith.addf %658, %667 : vector<16x32xf32>
    %669 = vector.extract_strided_slice %668 {offsets = [0, 0], sizes = [16, 24], strides = [1, 1]} : vector<16x32xf32> to vector<16x24xf32>
    %670 = arith.negf %669 : vector<16x24xf32>
    %671 = math.exp %670 : vector<16x24xf32>
    %cst_127 = arith.constant 1.000000e+00 : f32
    %672 = vector.broadcast %cst_127 : f32 to vector<16x24xf32>
    %673 = arith.addf %672, %671 : vector<16x24xf32>
    %674 = arith.divf %672, %673 : vector<16x24xf32>
    %675 = vector.extract_strided_slice %668 {offsets = [0, 24], sizes = [16, 8], strides = [1, 1]} : vector<16x32xf32> to vector<16x8xf32>
    %676 = math.tanh %675 : vector<16x8xf32>
    %677 = vector.extract_strided_slice %674 {offsets = [0, 0], sizes = [16, 8], strides = [1, 1]} : vector<16x24xf32> to vector<16x8xf32>
    %678 = vector.extract_strided_slice %674 {offsets = [0, 8], sizes = [16, 8], strides = [1, 1]} : vector<16x24xf32> to vector<16x8xf32>
    %679 = vector.extract_strided_slice %674 {offsets = [0, 16], sizes = [16, 8], strides = [1, 1]} : vector<16x24xf32> to vector<16x8xf32>
    %680 = arith.mulf %678, %660 : vector<16x8xf32>
    %681 = arith.mulf %677, %676 : vector<16x8xf32>
    %682 = arith.addf %680, %681 : vector<16x8xf32>
    %683 = math.tanh %682 : vector<16x8xf32>
    %684 = arith.mulf %679, %683 : vector<16x8xf32>
    %685 = tpu.concatenate %684, %661 in 1 : vector<16x8xf32>, vector<16x8xf32> -> vector<16x16xf32>
    %cst_128 = arith.constant dense<0.000000e+00> : vector<16x32xf32>
    %686 = tpu.matmul %685, %7, %cst_128 {dimension_numbers = #tpu.dot_dimension_numbers<[1], [0], [0], [1], [0, 0, 1, 1], [], []>} : vector<16x16xf32>, vector<16x32xf32>, vector<16x32xf32> -> vector<16x32xf32>
    %687 = arith.addf %686, %23 : vector<16x32xf32>
    %688 = vector.extract_strided_slice %687 {offsets = [0, 0], sizes = [16, 24], strides = [1, 1]} : vector<16x32xf32> to vector<16x24xf32>
    %689 = arith.negf %688 : vector<16x24xf32>
    %690 = math.exp %689 : vector<16x24xf32>
    %cst_129 = arith.constant 1.000000e+00 : f32
    %691 = vector.broadcast %cst_129 : f32 to vector<16x24xf32>
    %692 = arith.addf %691, %690 : vector<16x24xf32>
    %693 = arith.divf %691, %692 : vector<16x24xf32>
    %694 = vector.extract_strided_slice %687 {offsets = [0, 24], sizes = [16, 8], strides = [1, 1]} : vector<16x32xf32> to vector<16x8xf32>
    %695 = math.tanh %694 : vector<16x8xf32>
    %696 = vector.extract_strided_slice %693 {offsets = [0, 0], sizes = [16, 8], strides = [1, 1]} : vector<16x24xf32> to vector<16x8xf32>
    %697 = vector.extract_strided_slice %693 {offsets = [0, 8], sizes = [16, 8], strides = [1, 1]} : vector<16x24xf32> to vector<16x8xf32>
    %698 = vector.extract_strided_slice %693 {offsets = [0, 16], sizes = [16, 8], strides = [1, 1]} : vector<16x24xf32> to vector<16x8xf32>
    %699 = arith.mulf %697, %662 : vector<16x8xf32>
    %700 = arith.mulf %696, %695 : vector<16x8xf32>
    %701 = arith.addf %699, %700 : vector<16x8xf32>
    %702 = math.tanh %701 : vector<16x8xf32>
    %703 = arith.mulf %698, %702 : vector<16x8xf32>
    %704 = tpu.concatenate %703, %663 in 1 : vector<16x8xf32>, vector<16x16xf32> -> vector<16x24xf32>
    %cst_130 = arith.constant dense<0.000000e+00> : vector<16x64xf32>
    %705 = tpu.matmul %704, %8, %cst_130 {dimension_numbers = #tpu.dot_dimension_numbers<[1], [0], [0], [1], [0, 0, 1, 1], [], []>} : vector<16x24xf32>, vector<24x64xf32>, vector<16x64xf32> -> vector<16x64xf32>
    %706 = arith.addf %705, %26 : vector<16x64xf32>
    %707 = vector.extract_strided_slice %706 {offsets = [0, 0], sizes = [16, 48], strides = [1, 1]} : vector<16x64xf32> to vector<16x48xf32>
    %708 = arith.negf %707 : vector<16x48xf32>
    %709 = math.exp %708 : vector<16x48xf32>
    %cst_131 = arith.constant 1.000000e+00 : f32
    %710 = vector.broadcast %cst_131 : f32 to vector<16x48xf32>
    %711 = arith.addf %710, %709 : vector<16x48xf32>
    %712 = arith.divf %710, %711 : vector<16x48xf32>
    %713 = vector.extract_strided_slice %706 {offsets = [0, 48], sizes = [16, 16], strides = [1, 1]} : vector<16x64xf32> to vector<16x16xf32>
    %714 = math.tanh %713 : vector<16x16xf32>
    %715 = vector.extract_strided_slice %712 {offsets = [0, 0], sizes = [16, 16], strides = [1, 1]} : vector<16x48xf32> to vector<16x16xf32>
    %716 = vector.extract_strided_slice %712 {offsets = [0, 16], sizes = [16, 16], strides = [1, 1]} : vector<16x48xf32> to vector<16x16xf32>
    %717 = vector.extract_strided_slice %712 {offsets = [0, 32], sizes = [16, 16], strides = [1, 1]} : vector<16x48xf32> to vector<16x16xf32>
    %718 = arith.mulf %716, %664 : vector<16x16xf32>
    %719 = arith.mulf %715, %714 : vector<16x16xf32>
    %720 = arith.addf %718, %719 : vector<16x16xf32>
    %721 = math.tanh %720 : vector<16x16xf32>
    %722 = arith.mulf %717, %721 : vector<16x16xf32>
    %723 = tpu.concatenate %722, %665 in 1 : vector<16x16xf32>, vector<16x16xf32> -> vector<16x32xf32>
    %cst_132 = arith.constant dense<0.000000e+00> : vector<16x64xf32>
    %724 = tpu.matmul %723, %9, %cst_132 {dimension_numbers = #tpu.dot_dimension_numbers<[1], [0], [0], [1], [0, 0, 1, 1], [], []>} : vector<16x32xf32>, vector<32x64xf32>, vector<16x64xf32> -> vector<16x64xf32>
    %725 = arith.addf %724, %29 : vector<16x64xf32>
    %726 = vector.extract_strided_slice %725 {offsets = [0, 0], sizes = [16, 48], strides = [1, 1]} : vector<16x64xf32> to vector<16x48xf32>
    %727 = arith.negf %726 : vector<16x48xf32>
    %728 = math.exp %727 : vector<16x48xf32>
    %cst_133 = arith.constant 1.000000e+00 : f32
    %729 = vector.broadcast %cst_133 : f32 to vector<16x48xf32>
    %730 = arith.addf %729, %728 : vector<16x48xf32>
    %731 = arith.divf %729, %730 : vector<16x48xf32>
    %732 = vector.extract_strided_slice %725 {offsets = [0, 48], sizes = [16, 16], strides = [1, 1]} : vector<16x64xf32> to vector<16x16xf32>
    %733 = math.tanh %732 : vector<16x16xf32>
    %734 = vector.extract_strided_slice %731 {offsets = [0, 0], sizes = [16, 16], strides = [1, 1]} : vector<16x48xf32> to vector<16x16xf32>
    %735 = vector.extract_strided_slice %731 {offsets = [0, 16], sizes = [16, 16], strides = [1, 1]} : vector<16x48xf32> to vector<16x16xf32>
    %736 = vector.extract_strided_slice %731 {offsets = [0, 32], sizes = [16, 16], strides = [1, 1]} : vector<16x48xf32> to vector<16x16xf32>
    %737 = arith.mulf %735, %666 : vector<16x16xf32>
    %738 = arith.mulf %734, %733 : vector<16x16xf32>
    %739 = arith.addf %737, %738 : vector<16x16xf32>
    %740 = math.tanh %739 : vector<16x16xf32>
    %741 = arith.mulf %736, %740 : vector<16x16xf32>
    %cst_134 = arith.constant dense<0.000000e+00> : vector<16x32xf32>
    %742 = tpu.matmul %684, %6, %cst_134 {dimension_numbers = #tpu.dot_dimension_numbers<[1], [0], [0], [1], [0, 0, 1, 1], [], []>} : vector<16x8xf32>, vector<8x32xf32>, vector<16x32xf32> -> vector<16x32xf32>
    %743 = arith.addf %658, %742 : vector<16x32xf32>
    %744 = vector.extract_strided_slice %743 {offsets = [0, 0], sizes = [16, 24], strides = [1, 1]} : vector<16x32xf32> to vector<16x24xf32>
    %745 = arith.negf %744 : vector<16x24xf32>
    %746 = math.exp %745 : vector<16x24xf32>
    %cst_135 = arith.constant 1.000000e+00 : f32
    %747 = vector.broadcast %cst_135 : f32 to vector<16x24xf32>
    %748 = arith.addf %747, %746 : vector<16x24xf32>
    %749 = arith.divf %747, %748 : vector<16x24xf32>
    %750 = vector.extract_strided_slice %743 {offsets = [0, 24], sizes = [16, 8], strides = [1, 1]} : vector<16x32xf32> to vector<16x8xf32>
    %751 = math.tanh %750 : vector<16x8xf32>
    %752 = vector.extract_strided_slice %749 {offsets = [0, 0], sizes = [16, 8], strides = [1, 1]} : vector<16x24xf32> to vector<16x8xf32>
    %753 = vector.extract_strided_slice %749 {offsets = [0, 8], sizes = [16, 8], strides = [1, 1]} : vector<16x24xf32> to vector<16x8xf32>
    %754 = vector.extract_strided_slice %749 {offsets = [0, 16], sizes = [16, 8], strides = [1, 1]} : vector<16x24xf32> to vector<16x8xf32>
    %755 = arith.mulf %753, %682 : vector<16x8xf32>
    %756 = arith.mulf %752, %751 : vector<16x8xf32>
    %757 = arith.addf %755, %756 : vector<16x8xf32>
    %758 = math.tanh %757 : vector<16x8xf32>
    %759 = arith.mulf %754, %758 : vector<16x8xf32>
    %760 = tpu.concatenate %759, %703 in 1 : vector<16x8xf32>, vector<16x8xf32> -> vector<16x16xf32>
    %cst_136 = arith.constant dense<0.000000e+00> : vector<16x32xf32>
    %761 = tpu.matmul %760, %7, %cst_136 {dimension_numbers = #tpu.dot_dimension_numbers<[1], [0], [0], [1], [0, 0, 1, 1], [], []>} : vector<16x16xf32>, vector<16x32xf32>, vector<16x32xf32> -> vector<16x32xf32>
    %762 = arith.addf %761, %23 : vector<16x32xf32>
    %763 = vector.extract_strided_slice %762 {offsets = [0, 0], sizes = [16, 24], strides = [1, 1]} : vector<16x32xf32> to vector<16x24xf32>
    %764 = arith.negf %763 : vector<16x24xf32>
    %765 = math.exp %764 : vector<16x24xf32>
    %cst_137 = arith.constant 1.000000e+00 : f32
    %766 = vector.broadcast %cst_137 : f32 to vector<16x24xf32>
    %767 = arith.addf %766, %765 : vector<16x24xf32>
    %768 = arith.divf %766, %767 : vector<16x24xf32>
    %769 = vector.extract_strided_slice %762 {offsets = [0, 24], sizes = [16, 8], strides = [1, 1]} : vector<16x32xf32> to vector<16x8xf32>
    %770 = math.tanh %769 : vector<16x8xf32>
    %771 = vector.extract_strided_slice %768 {offsets = [0, 0], sizes = [16, 8], strides = [1, 1]} : vector<16x24xf32> to vector<16x8xf32>
    %772 = vector.extract_strided_slice %768 {offsets = [0, 8], sizes = [16, 8], strides = [1, 1]} : vector<16x24xf32> to vector<16x8xf32>
    %773 = vector.extract_strided_slice %768 {offsets = [0, 16], sizes = [16, 8], strides = [1, 1]} : vector<16x24xf32> to vector<16x8xf32>
    %774 = arith.mulf %772, %701 : vector<16x8xf32>
    %775 = arith.mulf %771, %770 : vector<16x8xf32>
    %776 = arith.addf %774, %775 : vector<16x8xf32>
    %777 = math.tanh %776 : vector<16x8xf32>
    %778 = arith.mulf %773, %777 : vector<16x8xf32>
    %779 = tpu.concatenate %778, %722 in 1 : vector<16x8xf32>, vector<16x16xf32> -> vector<16x24xf32>
    %cst_138 = arith.constant dense<0.000000e+00> : vector<16x64xf32>
    %780 = tpu.matmul %779, %8, %cst_138 {dimension_numbers = #tpu.dot_dimension_numbers<[1], [0], [0], [1], [0, 0, 1, 1], [], []>} : vector<16x24xf32>, vector<24x64xf32>, vector<16x64xf32> -> vector<16x64xf32>
    %781 = arith.addf %780, %26 : vector<16x64xf32>
    %782 = vector.extract_strided_slice %781 {offsets = [0, 0], sizes = [16, 48], strides = [1, 1]} : vector<16x64xf32> to vector<16x48xf32>
    %783 = arith.negf %782 : vector<16x48xf32>
    %784 = math.exp %783 : vector<16x48xf32>
    %cst_139 = arith.constant 1.000000e+00 : f32
    %785 = vector.broadcast %cst_139 : f32 to vector<16x48xf32>
    %786 = arith.addf %785, %784 : vector<16x48xf32>
    %787 = arith.divf %785, %786 : vector<16x48xf32>
    %788 = vector.extract_strided_slice %781 {offsets = [0, 48], sizes = [16, 16], strides = [1, 1]} : vector<16x64xf32> to vector<16x16xf32>
    %789 = math.tanh %788 : vector<16x16xf32>
    %790 = vector.extract_strided_slice %787 {offsets = [0, 0], sizes = [16, 16], strides = [1, 1]} : vector<16x48xf32> to vector<16x16xf32>
    %791 = vector.extract_strided_slice %787 {offsets = [0, 16], sizes = [16, 16], strides = [1, 1]} : vector<16x48xf32> to vector<16x16xf32>
    %792 = vector.extract_strided_slice %787 {offsets = [0, 32], sizes = [16, 16], strides = [1, 1]} : vector<16x48xf32> to vector<16x16xf32>
    %793 = arith.mulf %791, %720 : vector<16x16xf32>
    %794 = arith.mulf %790, %789 : vector<16x16xf32>
    %795 = arith.addf %793, %794 : vector<16x16xf32>
    %796 = math.tanh %795 : vector<16x16xf32>
    %797 = arith.mulf %792, %796 : vector<16x16xf32>
    %798 = tpu.concatenate %797, %741 in 1 : vector<16x16xf32>, vector<16x16xf32> -> vector<16x32xf32>
    %cst_140 = arith.constant dense<0.000000e+00> : vector<16x64xf32>
    %799 = tpu.matmul %798, %9, %cst_140 {dimension_numbers = #tpu.dot_dimension_numbers<[1], [0], [0], [1], [0, 0, 1, 1], [], []>} : vector<16x32xf32>, vector<32x64xf32>, vector<16x64xf32> -> vector<16x64xf32>
    %800 = arith.addf %799, %29 : vector<16x64xf32>
    %801 = vector.extract_strided_slice %800 {offsets = [0, 0], sizes = [16, 48], strides = [1, 1]} : vector<16x64xf32> to vector<16x48xf32>
    %802 = arith.negf %801 : vector<16x48xf32>
    %803 = math.exp %802 : vector<16x48xf32>
    %cst_141 = arith.constant 1.000000e+00 : f32
    %804 = vector.broadcast %cst_141 : f32 to vector<16x48xf32>
    %805 = arith.addf %804, %803 : vector<16x48xf32>
    %806 = arith.divf %804, %805 : vector<16x48xf32>
    %807 = vector.extract_strided_slice %800 {offsets = [0, 48], sizes = [16, 16], strides = [1, 1]} : vector<16x64xf32> to vector<16x16xf32>
    %808 = math.tanh %807 : vector<16x16xf32>
    %809 = vector.extract_strided_slice %806 {offsets = [0, 0], sizes = [16, 16], strides = [1, 1]} : vector<16x48xf32> to vector<16x16xf32>
    %810 = vector.extract_strided_slice %806 {offsets = [0, 16], sizes = [16, 16], strides = [1, 1]} : vector<16x48xf32> to vector<16x16xf32>
    %811 = vector.extract_strided_slice %806 {offsets = [0, 32], sizes = [16, 16], strides = [1, 1]} : vector<16x48xf32> to vector<16x16xf32>
    %812 = arith.mulf %810, %739 : vector<16x16xf32>
    %813 = arith.mulf %809, %808 : vector<16x16xf32>
    %814 = arith.addf %812, %813 : vector<16x16xf32>
    %815 = math.tanh %814 : vector<16x16xf32>
    %816 = arith.mulf %811, %815 : vector<16x16xf32>
    %cst_142 = arith.constant dense<0.000000e+00> : vector<16x32xf32>
    %817 = tpu.matmul %759, %6, %cst_142 {dimension_numbers = #tpu.dot_dimension_numbers<[1], [0], [0], [1], [0, 0, 1, 1], [], []>} : vector<16x8xf32>, vector<8x32xf32>, vector<16x32xf32> -> vector<16x32xf32>
    %818 = arith.addf %658, %817 : vector<16x32xf32>
    %819 = vector.extract_strided_slice %818 {offsets = [0, 0], sizes = [16, 24], strides = [1, 1]} : vector<16x32xf32> to vector<16x24xf32>
    %820 = arith.negf %819 : vector<16x24xf32>
    %821 = math.exp %820 : vector<16x24xf32>
    %cst_143 = arith.constant 1.000000e+00 : f32
    %822 = vector.broadcast %cst_143 : f32 to vector<16x24xf32>
    %823 = arith.addf %822, %821 : vector<16x24xf32>
    %824 = arith.divf %822, %823 : vector<16x24xf32>
    %825 = vector.extract_strided_slice %818 {offsets = [0, 24], sizes = [16, 8], strides = [1, 1]} : vector<16x32xf32> to vector<16x8xf32>
    %826 = math.tanh %825 : vector<16x8xf32>
    %827 = vector.extract_strided_slice %824 {offsets = [0, 0], sizes = [16, 8], strides = [1, 1]} : vector<16x24xf32> to vector<16x8xf32>
    %828 = vector.extract_strided_slice %824 {offsets = [0, 8], sizes = [16, 8], strides = [1, 1]} : vector<16x24xf32> to vector<16x8xf32>
    %829 = vector.extract_strided_slice %824 {offsets = [0, 16], sizes = [16, 8], strides = [1, 1]} : vector<16x24xf32> to vector<16x8xf32>
    %830 = arith.mulf %828, %757 : vector<16x8xf32>
    %831 = arith.mulf %827, %826 : vector<16x8xf32>
    %832 = arith.addf %830, %831 : vector<16x8xf32>
    %833 = math.tanh %832 : vector<16x8xf32>
    %834 = arith.mulf %829, %833 : vector<16x8xf32>
    %835 = tpu.concatenate %834, %778 in 1 : vector<16x8xf32>, vector<16x8xf32> -> vector<16x16xf32>
    %cst_144 = arith.constant dense<0.000000e+00> : vector<16x32xf32>
    %836 = tpu.matmul %835, %7, %cst_144 {dimension_numbers = #tpu.dot_dimension_numbers<[1], [0], [0], [1], [0, 0, 1, 1], [], []>} : vector<16x16xf32>, vector<16x32xf32>, vector<16x32xf32> -> vector<16x32xf32>
    %837 = arith.addf %836, %23 : vector<16x32xf32>
    %838 = vector.extract_strided_slice %837 {offsets = [0, 0], sizes = [16, 24], strides = [1, 1]} : vector<16x32xf32> to vector<16x24xf32>
    %839 = arith.negf %838 : vector<16x24xf32>
    %840 = math.exp %839 : vector<16x24xf32>
    %cst_145 = arith.constant 1.000000e+00 : f32
    %841 = vector.broadcast %cst_145 : f32 to vector<16x24xf32>
    %842 = arith.addf %841, %840 : vector<16x24xf32>
    %843 = arith.divf %841, %842 : vector<16x24xf32>
    %844 = vector.extract_strided_slice %837 {offsets = [0, 24], sizes = [16, 8], strides = [1, 1]} : vector<16x32xf32> to vector<16x8xf32>
    %845 = math.tanh %844 : vector<16x8xf32>
    %846 = vector.extract_strided_slice %843 {offsets = [0, 0], sizes = [16, 8], strides = [1, 1]} : vector<16x24xf32> to vector<16x8xf32>
    %847 = vector.extract_strided_slice %843 {offsets = [0, 8], sizes = [16, 8], strides = [1, 1]} : vector<16x24xf32> to vector<16x8xf32>
    %848 = vector.extract_strided_slice %843 {offsets = [0, 16], sizes = [16, 8], strides = [1, 1]} : vector<16x24xf32> to vector<16x8xf32>
    %849 = arith.mulf %847, %776 : vector<16x8xf32>
    %850 = arith.mulf %846, %845 : vector<16x8xf32>
    %851 = arith.addf %849, %850 : vector<16x8xf32>
    %852 = math.tanh %851 : vector<16x8xf32>
    %853 = arith.mulf %848, %852 : vector<16x8xf32>
    %854 = tpu.concatenate %853, %797 in 1 : vector<16x8xf32>, vector<16x16xf32> -> vector<16x24xf32>
    %cst_146 = arith.constant dense<0.000000e+00> : vector<16x64xf32>
    %855 = tpu.matmul %854, %8, %cst_146 {dimension_numbers = #tpu.dot_dimension_numbers<[1], [0], [0], [1], [0, 0, 1, 1], [], []>} : vector<16x24xf32>, vector<24x64xf32>, vector<16x64xf32> -> vector<16x64xf32>
    %856 = arith.addf %855, %26 : vector<16x64xf32>
    %857 = vector.extract_strided_slice %856 {offsets = [0, 0], sizes = [16, 48], strides = [1, 1]} : vector<16x64xf32> to vector<16x48xf32>
    %858 = arith.negf %857 : vector<16x48xf32>
    %859 = math.exp %858 : vector<16x48xf32>
    %cst_147 = arith.constant 1.000000e+00 : f32
    %860 = vector.broadcast %cst_147 : f32 to vector<16x48xf32>
    %861 = arith.addf %860, %859 : vector<16x48xf32>
    %862 = arith.divf %860, %861 : vector<16x48xf32>
    %863 = vector.extract_strided_slice %856 {offsets = [0, 48], sizes = [16, 16], strides = [1, 1]} : vector<16x64xf32> to vector<16x16xf32>
    %864 = math.tanh %863 : vector<16x16xf32>
    %865 = vector.extract_strided_slice %862 {offsets = [0, 0], sizes = [16, 16], strides = [1, 1]} : vector<16x48xf32> to vector<16x16xf32>
    %866 = vector.extract_strided_slice %862 {offsets = [0, 16], sizes = [16, 16], strides = [1, 1]} : vector<16x48xf32> to vector<16x16xf32>
    %867 = vector.extract_strided_slice %862 {offsets = [0, 32], sizes = [16, 16], strides = [1, 1]} : vector<16x48xf32> to vector<16x16xf32>
    %868 = arith.mulf %866, %795 : vector<16x16xf32>
    %869 = arith.mulf %865, %864 : vector<16x16xf32>
    %870 = arith.addf %868, %869 : vector<16x16xf32>
    %871 = math.tanh %870 : vector<16x16xf32>
    %872 = arith.mulf %867, %871 : vector<16x16xf32>
    %873 = tpu.concatenate %872, %816 in 1 : vector<16x16xf32>, vector<16x16xf32> -> vector<16x32xf32>
    %cst_148 = arith.constant dense<0.000000e+00> : vector<16x64xf32>
    %874 = tpu.matmul %873, %9, %cst_148 {dimension_numbers = #tpu.dot_dimension_numbers<[1], [0], [0], [1], [0, 0, 1, 1], [], []>} : vector<16x32xf32>, vector<32x64xf32>, vector<16x64xf32> -> vector<16x64xf32>
    %875 = arith.addf %874, %29 : vector<16x64xf32>
    %876 = vector.extract_strided_slice %875 {offsets = [0, 0], sizes = [16, 48], strides = [1, 1]} : vector<16x64xf32> to vector<16x48xf32>
    %877 = arith.negf %876 : vector<16x48xf32>
    %878 = math.exp %877 : vector<16x48xf32>
    %cst_149 = arith.constant 1.000000e+00 : f32
    %879 = vector.broadcast %cst_149 : f32 to vector<16x48xf32>
    %880 = arith.addf %879, %878 : vector<16x48xf32>
    %881 = arith.divf %879, %880 : vector<16x48xf32>
    %882 = vector.extract_strided_slice %875 {offsets = [0, 48], sizes = [16, 16], strides = [1, 1]} : vector<16x64xf32> to vector<16x16xf32>
    %883 = math.tanh %882 : vector<16x16xf32>
    %884 = vector.extract_strided_slice %881 {offsets = [0, 0], sizes = [16, 16], strides = [1, 1]} : vector<16x48xf32> to vector<16x16xf32>
    %885 = vector.extract_strided_slice %881 {offsets = [0, 16], sizes = [16, 16], strides = [1, 1]} : vector<16x48xf32> to vector<16x16xf32>
    %886 = vector.extract_strided_slice %881 {offsets = [0, 32], sizes = [16, 16], strides = [1, 1]} : vector<16x48xf32> to vector<16x16xf32>
    %887 = arith.mulf %885, %814 : vector<16x16xf32>
    %888 = arith.mulf %884, %883 : vector<16x16xf32>
    %889 = arith.addf %887, %888 : vector<16x16xf32>
    %890 = math.tanh %889 : vector<16x16xf32>
    %891 = arith.mulf %886, %890 : vector<16x16xf32>
    %cst_150 = arith.constant dense<0.000000e+00> : vector<16x32xf32>
    %892 = tpu.matmul %834, %6, %cst_150 {dimension_numbers = #tpu.dot_dimension_numbers<[1], [0], [0], [1], [0, 0, 1, 1], [], []>} : vector<16x8xf32>, vector<8x32xf32>, vector<16x32xf32> -> vector<16x32xf32>
    %893 = arith.addf %658, %892 : vector<16x32xf32>
    %894 = vector.extract_strided_slice %893 {offsets = [0, 0], sizes = [16, 24], strides = [1, 1]} : vector<16x32xf32> to vector<16x24xf32>
    %895 = arith.negf %894 : vector<16x24xf32>
    %896 = math.exp %895 : vector<16x24xf32>
    %cst_151 = arith.constant 1.000000e+00 : f32
    %897 = vector.broadcast %cst_151 : f32 to vector<16x24xf32>
    %898 = arith.addf %897, %896 : vector<16x24xf32>
    %899 = arith.divf %897, %898 : vector<16x24xf32>
    %900 = vector.extract_strided_slice %893 {offsets = [0, 24], sizes = [16, 8], strides = [1, 1]} : vector<16x32xf32> to vector<16x8xf32>
    %901 = math.tanh %900 : vector<16x8xf32>
    %902 = vector.extract_strided_slice %899 {offsets = [0, 0], sizes = [16, 8], strides = [1, 1]} : vector<16x24xf32> to vector<16x8xf32>
    %903 = vector.extract_strided_slice %899 {offsets = [0, 8], sizes = [16, 8], strides = [1, 1]} : vector<16x24xf32> to vector<16x8xf32>
    %904 = vector.extract_strided_slice %899 {offsets = [0, 16], sizes = [16, 8], strides = [1, 1]} : vector<16x24xf32> to vector<16x8xf32>
    %905 = arith.mulf %903, %832 : vector<16x8xf32>
    %906 = arith.mulf %902, %901 : vector<16x8xf32>
    %907 = arith.addf %905, %906 : vector<16x8xf32>
    %908 = math.tanh %907 : vector<16x8xf32>
    %909 = arith.mulf %904, %908 : vector<16x8xf32>
    %910 = tpu.concatenate %909, %853 in 1 : vector<16x8xf32>, vector<16x8xf32> -> vector<16x16xf32>
    %cst_152 = arith.constant dense<0.000000e+00> : vector<16x32xf32>
    %911 = tpu.matmul %910, %7, %cst_152 {dimension_numbers = #tpu.dot_dimension_numbers<[1], [0], [0], [1], [0, 0, 1, 1], [], []>} : vector<16x16xf32>, vector<16x32xf32>, vector<16x32xf32> -> vector<16x32xf32>
    %912 = arith.addf %911, %23 : vector<16x32xf32>
    %913 = vector.extract_strided_slice %912 {offsets = [0, 0], sizes = [16, 24], strides = [1, 1]} : vector<16x32xf32> to vector<16x24xf32>
    %914 = arith.negf %913 : vector<16x24xf32>
    %915 = math.exp %914 : vector<16x24xf32>
    %cst_153 = arith.constant 1.000000e+00 : f32
    %916 = vector.broadcast %cst_153 : f32 to vector<16x24xf32>
    %917 = arith.addf %916, %915 : vector<16x24xf32>
    %918 = arith.divf %916, %917 : vector<16x24xf32>
    %919 = vector.extract_strided_slice %912 {offsets = [0, 24], sizes = [16, 8], strides = [1, 1]} : vector<16x32xf32> to vector<16x8xf32>
    %920 = math.tanh %919 : vector<16x8xf32>
    %921 = vector.extract_strided_slice %918 {offsets = [0, 0], sizes = [16, 8], strides = [1, 1]} : vector<16x24xf32> to vector<16x8xf32>
    %922 = vector.extract_strided_slice %918 {offsets = [0, 8], sizes = [16, 8], strides = [1, 1]} : vector<16x24xf32> to vector<16x8xf32>
    %923 = vector.extract_strided_slice %918 {offsets = [0, 16], sizes = [16, 8], strides = [1, 1]} : vector<16x24xf32> to vector<16x8xf32>
    %924 = arith.mulf %922, %851 : vector<16x8xf32>
    %925 = arith.mulf %921, %920 : vector<16x8xf32>
    %926 = arith.addf %924, %925 : vector<16x8xf32>
    %927 = math.tanh %926 : vector<16x8xf32>
    %928 = arith.mulf %923, %927 : vector<16x8xf32>
    %929 = tpu.concatenate %928, %872 in 1 : vector<16x8xf32>, vector<16x16xf32> -> vector<16x24xf32>
    %cst_154 = arith.constant dense<0.000000e+00> : vector<16x64xf32>
    %930 = tpu.matmul %929, %8, %cst_154 {dimension_numbers = #tpu.dot_dimension_numbers<[1], [0], [0], [1], [0, 0, 1, 1], [], []>} : vector<16x24xf32>, vector<24x64xf32>, vector<16x64xf32> -> vector<16x64xf32>
    %931 = arith.addf %930, %26 : vector<16x64xf32>
    %932 = vector.extract_strided_slice %931 {offsets = [0, 0], sizes = [16, 48], strides = [1, 1]} : vector<16x64xf32> to vector<16x48xf32>
    %933 = arith.negf %932 : vector<16x48xf32>
    %934 = math.exp %933 : vector<16x48xf32>
    %cst_155 = arith.constant 1.000000e+00 : f32
    %935 = vector.broadcast %cst_155 : f32 to vector<16x48xf32>
    %936 = arith.addf %935, %934 : vector<16x48xf32>
    %937 = arith.divf %935, %936 : vector<16x48xf32>
    %938 = vector.extract_strided_slice %931 {offsets = [0, 48], sizes = [16, 16], strides = [1, 1]} : vector<16x64xf32> to vector<16x16xf32>
    %939 = math.tanh %938 : vector<16x16xf32>
    %940 = vector.extract_strided_slice %937 {offsets = [0, 0], sizes = [16, 16], strides = [1, 1]} : vector<16x48xf32> to vector<16x16xf32>
    %941 = vector.extract_strided_slice %937 {offsets = [0, 16], sizes = [16, 16], strides = [1, 1]} : vector<16x48xf32> to vector<16x16xf32>
    %942 = vector.extract_strided_slice %937 {offsets = [0, 32], sizes = [16, 16], strides = [1, 1]} : vector<16x48xf32> to vector<16x16xf32>
    %943 = arith.mulf %941, %870 : vector<16x16xf32>
    %944 = arith.mulf %940, %939 : vector<16x16xf32>
    %945 = arith.addf %943, %944 : vector<16x16xf32>
    %946 = math.tanh %945 : vector<16x16xf32>
    %947 = arith.mulf %942, %946 : vector<16x16xf32>
    %948 = tpu.concatenate %947, %891 in 1 : vector<16x16xf32>, vector<16x16xf32> -> vector<16x32xf32>
    %cst_156 = arith.constant dense<0.000000e+00> : vector<16x64xf32>
    %949 = tpu.matmul %948, %9, %cst_156 {dimension_numbers = #tpu.dot_dimension_numbers<[1], [0], [0], [1], [0, 0, 1, 1], [], []>} : vector<16x32xf32>, vector<32x64xf32>, vector<16x64xf32> -> vector<16x64xf32>
    %950 = arith.addf %949, %29 : vector<16x64xf32>
    %951 = vector.extract_strided_slice %950 {offsets = [0, 0], sizes = [16, 48], strides = [1, 1]} : vector<16x64xf32> to vector<16x48xf32>
    %952 = arith.negf %951 : vector<16x48xf32>
    %953 = math.exp %952 : vector<16x48xf32>
    %cst_157 = arith.constant 1.000000e+00 : f32
    %954 = vector.broadcast %cst_157 : f32 to vector<16x48xf32>
    %955 = arith.addf %954, %953 : vector<16x48xf32>
    %956 = arith.divf %954, %955 : vector<16x48xf32>
    %957 = vector.extract_strided_slice %950 {offsets = [0, 48], sizes = [16, 16], strides = [1, 1]} : vector<16x64xf32> to vector<16x16xf32>
    %958 = math.tanh %957 : vector<16x16xf32>
    %959 = vector.extract_strided_slice %956 {offsets = [0, 0], sizes = [16, 16], strides = [1, 1]} : vector<16x48xf32> to vector<16x16xf32>
    %960 = vector.extract_strided_slice %956 {offsets = [0, 16], sizes = [16, 16], strides = [1, 1]} : vector<16x48xf32> to vector<16x16xf32>
    %961 = vector.extract_strided_slice %956 {offsets = [0, 32], sizes = [16, 16], strides = [1, 1]} : vector<16x48xf32> to vector<16x16xf32>
    %962 = arith.mulf %960, %889 : vector<16x16xf32>
    %963 = arith.mulf %959, %958 : vector<16x16xf32>
    %964 = arith.addf %962, %963 : vector<16x16xf32>
    %965 = math.tanh %964 : vector<16x16xf32>
    %966 = arith.mulf %961, %965 : vector<16x16xf32>
    %cst_158 = arith.constant dense<0.000000e+00> : vector<16x32xf32>
    %967 = tpu.matmul %909, %6, %cst_158 {dimension_numbers = #tpu.dot_dimension_numbers<[1], [0], [0], [1], [0, 0, 1, 1], [], []>} : vector<16x8xf32>, vector<8x32xf32>, vector<16x32xf32> -> vector<16x32xf32>
    %968 = arith.addf %658, %967 : vector<16x32xf32>
    %969 = vector.extract_strided_slice %968 {offsets = [0, 0], sizes = [16, 24], strides = [1, 1]} : vector<16x32xf32> to vector<16x24xf32>
    %970 = arith.negf %969 : vector<16x24xf32>
    %971 = math.exp %970 : vector<16x24xf32>
    %cst_159 = arith.constant 1.000000e+00 : f32
    %972 = vector.broadcast %cst_159 : f32 to vector<16x24xf32>
    %973 = arith.addf %972, %971 : vector<16x24xf32>
    %974 = arith.divf %972, %973 : vector<16x24xf32>
    %975 = vector.extract_strided_slice %968 {offsets = [0, 24], sizes = [16, 8], strides = [1, 1]} : vector<16x32xf32> to vector<16x8xf32>
    %976 = math.tanh %975 : vector<16x8xf32>
    %977 = vector.extract_strided_slice %974 {offsets = [0, 0], sizes = [16, 8], strides = [1, 1]} : vector<16x24xf32> to vector<16x8xf32>
    %978 = vector.extract_strided_slice %974 {offsets = [0, 8], sizes = [16, 8], strides = [1, 1]} : vector<16x24xf32> to vector<16x8xf32>
    %979 = vector.extract_strided_slice %974 {offsets = [0, 16], sizes = [16, 8], strides = [1, 1]} : vector<16x24xf32> to vector<16x8xf32>
    %980 = arith.mulf %978, %907 : vector<16x8xf32>
    %981 = arith.mulf %977, %976 : vector<16x8xf32>
    %982 = arith.addf %980, %981 : vector<16x8xf32>
    %983 = math.tanh %982 : vector<16x8xf32>
    %984 = arith.mulf %979, %983 : vector<16x8xf32>
    %985 = tpu.concatenate %984, %928 in 1 : vector<16x8xf32>, vector<16x8xf32> -> vector<16x16xf32>
    %cst_160 = arith.constant dense<0.000000e+00> : vector<16x32xf32>
    %986 = tpu.matmul %985, %7, %cst_160 {dimension_numbers = #tpu.dot_dimension_numbers<[1], [0], [0], [1], [0, 0, 1, 1], [], []>} : vector<16x16xf32>, vector<16x32xf32>, vector<16x32xf32> -> vector<16x32xf32>
    %987 = arith.addf %986, %23 : vector<16x32xf32>
    %988 = vector.extract_strided_slice %987 {offsets = [0, 0], sizes = [16, 24], strides = [1, 1]} : vector<16x32xf32> to vector<16x24xf32>
    %989 = arith.negf %988 : vector<16x24xf32>
    %990 = math.exp %989 : vector<16x24xf32>
    %cst_161 = arith.constant 1.000000e+00 : f32
    %991 = vector.broadcast %cst_161 : f32 to vector<16x24xf32>
    %992 = arith.addf %991, %990 : vector<16x24xf32>
    %993 = arith.divf %991, %992 : vector<16x24xf32>
    %994 = vector.extract_strided_slice %987 {offsets = [0, 24], sizes = [16, 8], strides = [1, 1]} : vector<16x32xf32> to vector<16x8xf32>
    %995 = math.tanh %994 : vector<16x8xf32>
    %996 = vector.extract_strided_slice %993 {offsets = [0, 0], sizes = [16, 8], strides = [1, 1]} : vector<16x24xf32> to vector<16x8xf32>
    %997 = vector.extract_strided_slice %993 {offsets = [0, 8], sizes = [16, 8], strides = [1, 1]} : vector<16x24xf32> to vector<16x8xf32>
    %998 = vector.extract_strided_slice %993 {offsets = [0, 16], sizes = [16, 8], strides = [1, 1]} : vector<16x24xf32> to vector<16x8xf32>
    %999 = arith.mulf %997, %926 : vector<16x8xf32>
    %1000 = arith.mulf %996, %995 : vector<16x8xf32>
    %1001 = arith.addf %999, %1000 : vector<16x8xf32>
    %1002 = math.tanh %1001 : vector<16x8xf32>
    %1003 = arith.mulf %998, %1002 : vector<16x8xf32>
    %1004 = tpu.concatenate %1003, %947 in 1 : vector<16x8xf32>, vector<16x16xf32> -> vector<16x24xf32>
    %cst_162 = arith.constant dense<0.000000e+00> : vector<16x64xf32>
    %1005 = tpu.matmul %1004, %8, %cst_162 {dimension_numbers = #tpu.dot_dimension_numbers<[1], [0], [0], [1], [0, 0, 1, 1], [], []>} : vector<16x24xf32>, vector<24x64xf32>, vector<16x64xf32> -> vector<16x64xf32>
    %1006 = arith.addf %1005, %26 : vector<16x64xf32>
    %1007 = vector.extract_strided_slice %1006 {offsets = [0, 0], sizes = [16, 48], strides = [1, 1]} : vector<16x64xf32> to vector<16x48xf32>
    %1008 = arith.negf %1007 : vector<16x48xf32>
    %1009 = math.exp %1008 : vector<16x48xf32>
    %cst_163 = arith.constant 1.000000e+00 : f32
    %1010 = vector.broadcast %cst_163 : f32 to vector<16x48xf32>
    %1011 = arith.addf %1010, %1009 : vector<16x48xf32>
    %1012 = arith.divf %1010, %1011 : vector<16x48xf32>
    %1013 = vector.extract_strided_slice %1006 {offsets = [0, 48], sizes = [16, 16], strides = [1, 1]} : vector<16x64xf32> to vector<16x16xf32>
    %1014 = math.tanh %1013 : vector<16x16xf32>
    %1015 = vector.extract_strided_slice %1012 {offsets = [0, 0], sizes = [16, 16], strides = [1, 1]} : vector<16x48xf32> to vector<16x16xf32>
    %1016 = vector.extract_strided_slice %1012 {offsets = [0, 16], sizes = [16, 16], strides = [1, 1]} : vector<16x48xf32> to vector<16x16xf32>
    %1017 = vector.extract_strided_slice %1012 {offsets = [0, 32], sizes = [16, 16], strides = [1, 1]} : vector<16x48xf32> to vector<16x16xf32>
    %1018 = arith.mulf %1016, %945 : vector<16x16xf32>
    %1019 = arith.mulf %1015, %1014 : vector<16x16xf32>
    %1020 = arith.addf %1018, %1019 : vector<16x16xf32>
    %1021 = math.tanh %1020 : vector<16x16xf32>
    %1022 = arith.mulf %1017, %1021 : vector<16x16xf32>
    %1023 = tpu.concatenate %1022, %966 in 1 : vector<16x16xf32>, vector<16x16xf32> -> vector<16x32xf32>
    %cst_164 = arith.constant dense<0.000000e+00> : vector<16x64xf32>
    %1024 = tpu.matmul %1023, %9, %cst_164 {dimension_numbers = #tpu.dot_dimension_numbers<[1], [0], [0], [1], [0, 0, 1, 1], [], []>} : vector<16x32xf32>, vector<32x64xf32>, vector<16x64xf32> -> vector<16x64xf32>
    %1025 = arith.addf %1024, %29 : vector<16x64xf32>
    %1026 = vector.extract_strided_slice %1025 {offsets = [0, 0], sizes = [16, 48], strides = [1, 1]} : vector<16x64xf32> to vector<16x48xf32>
    %1027 = arith.negf %1026 : vector<16x48xf32>
    %1028 = math.exp %1027 : vector<16x48xf32>
    %cst_165 = arith.constant 1.000000e+00 : f32
    %1029 = vector.broadcast %cst_165 : f32 to vector<16x48xf32>
    %1030 = arith.addf %1029, %1028 : vector<16x48xf32>
    %1031 = arith.divf %1029, %1030 : vector<16x48xf32>
    %1032 = vector.extract_strided_slice %1025 {offsets = [0, 48], sizes = [16, 16], strides = [1, 1]} : vector<16x64xf32> to vector<16x16xf32>
    %1033 = math.tanh %1032 : vector<16x16xf32>
    %1034 = vector.extract_strided_slice %1031 {offsets = [0, 0], sizes = [16, 16], strides = [1, 1]} : vector<16x48xf32> to vector<16x16xf32>
    %1035 = vector.extract_strided_slice %1031 {offsets = [0, 16], sizes = [16, 16], strides = [1, 1]} : vector<16x48xf32> to vector<16x16xf32>
    %1036 = vector.extract_strided_slice %1031 {offsets = [0, 32], sizes = [16, 16], strides = [1, 1]} : vector<16x48xf32> to vector<16x16xf32>
    %1037 = arith.mulf %1035, %964 : vector<16x16xf32>
    %1038 = arith.mulf %1034, %1033 : vector<16x16xf32>
    %1039 = arith.addf %1037, %1038 : vector<16x16xf32>
    %1040 = math.tanh %1039 : vector<16x16xf32>
    %1041 = arith.mulf %1036, %1040 : vector<16x16xf32>
    %cst_166 = arith.constant dense<0.000000e+00> : vector<16x32xf32>
    %1042 = tpu.matmul %984, %6, %cst_166 {dimension_numbers = #tpu.dot_dimension_numbers<[1], [0], [0], [1], [0, 0, 1, 1], [], []>} : vector<16x8xf32>, vector<8x32xf32>, vector<16x32xf32> -> vector<16x32xf32>
    %1043 = arith.addf %658, %1042 : vector<16x32xf32>
    %1044 = vector.extract_strided_slice %1043 {offsets = [0, 0], sizes = [16, 24], strides = [1, 1]} : vector<16x32xf32> to vector<16x24xf32>
    %1045 = arith.negf %1044 : vector<16x24xf32>
    %1046 = math.exp %1045 : vector<16x24xf32>
    %cst_167 = arith.constant 1.000000e+00 : f32
    %1047 = vector.broadcast %cst_167 : f32 to vector<16x24xf32>
    %1048 = arith.addf %1047, %1046 : vector<16x24xf32>
    %1049 = arith.divf %1047, %1048 : vector<16x24xf32>
    %1050 = vector.extract_strided_slice %1043 {offsets = [0, 24], sizes = [16, 8], strides = [1, 1]} : vector<16x32xf32> to vector<16x8xf32>
    %1051 = math.tanh %1050 : vector<16x8xf32>
    %1052 = vector.extract_strided_slice %1049 {offsets = [0, 0], sizes = [16, 8], strides = [1, 1]} : vector<16x24xf32> to vector<16x8xf32>
    %1053 = vector.extract_strided_slice %1049 {offsets = [0, 8], sizes = [16, 8], strides = [1, 1]} : vector<16x24xf32> to vector<16x8xf32>
    %1054 = vector.extract_strided_slice %1049 {offsets = [0, 16], sizes = [16, 8], strides = [1, 1]} : vector<16x24xf32> to vector<16x8xf32>
    %1055 = arith.mulf %1053, %982 : vector<16x8xf32>
    %1056 = arith.mulf %1052, %1051 : vector<16x8xf32>
    %1057 = arith.addf %1055, %1056 : vector<16x8xf32>
    %1058 = math.tanh %1057 : vector<16x8xf32>
    %1059 = arith.mulf %1054, %1058 : vector<16x8xf32>
    %1060 = tpu.concatenate %1059, %1003 in 1 : vector<16x8xf32>, vector<16x8xf32> -> vector<16x16xf32>
    %cst_168 = arith.constant dense<0.000000e+00> : vector<16x32xf32>
    %1061 = tpu.matmul %1060, %7, %cst_168 {dimension_numbers = #tpu.dot_dimension_numbers<[1], [0], [0], [1], [0, 0, 1, 1], [], []>} : vector<16x16xf32>, vector<16x32xf32>, vector<16x32xf32> -> vector<16x32xf32>
    %1062 = arith.addf %1061, %23 : vector<16x32xf32>
    %1063 = vector.extract_strided_slice %1062 {offsets = [0, 0], sizes = [16, 24], strides = [1, 1]} : vector<16x32xf32> to vector<16x24xf32>
    %1064 = arith.negf %1063 : vector<16x24xf32>
    %1065 = math.exp %1064 : vector<16x24xf32>
    %cst_169 = arith.constant 1.000000e+00 : f32
    %1066 = vector.broadcast %cst_169 : f32 to vector<16x24xf32>
    %1067 = arith.addf %1066, %1065 : vector<16x24xf32>
    %1068 = arith.divf %1066, %1067 : vector<16x24xf32>
    %1069 = vector.extract_strided_slice %1062 {offsets = [0, 24], sizes = [16, 8], strides = [1, 1]} : vector<16x32xf32> to vector<16x8xf32>
    %1070 = math.tanh %1069 : vector<16x8xf32>
    %1071 = vector.extract_strided_slice %1068 {offsets = [0, 0], sizes = [16, 8], strides = [1, 1]} : vector<16x24xf32> to vector<16x8xf32>
    %1072 = vector.extract_strided_slice %1068 {offsets = [0, 8], sizes = [16, 8], strides = [1, 1]} : vector<16x24xf32> to vector<16x8xf32>
    %1073 = vector.extract_strided_slice %1068 {offsets = [0, 16], sizes = [16, 8], strides = [1, 1]} : vector<16x24xf32> to vector<16x8xf32>
    %1074 = arith.mulf %1072, %1001 : vector<16x8xf32>
    %1075 = arith.mulf %1071, %1070 : vector<16x8xf32>
    %1076 = arith.addf %1074, %1075 : vector<16x8xf32>
    %1077 = math.tanh %1076 : vector<16x8xf32>
    %1078 = arith.mulf %1073, %1077 : vector<16x8xf32>
    %1079 = tpu.concatenate %1078, %1022 in 1 : vector<16x8xf32>, vector<16x16xf32> -> vector<16x24xf32>
    %cst_170 = arith.constant dense<0.000000e+00> : vector<16x64xf32>
    %1080 = tpu.matmul %1079, %8, %cst_170 {dimension_numbers = #tpu.dot_dimension_numbers<[1], [0], [0], [1], [0, 0, 1, 1], [], []>} : vector<16x24xf32>, vector<24x64xf32>, vector<16x64xf32> -> vector<16x64xf32>
    %1081 = arith.addf %1080, %26 : vector<16x64xf32>
    %1082 = vector.extract_strided_slice %1081 {offsets = [0, 0], sizes = [16, 48], strides = [1, 1]} : vector<16x64xf32> to vector<16x48xf32>
    %1083 = arith.negf %1082 : vector<16x48xf32>
    %1084 = math.exp %1083 : vector<16x48xf32>
    %cst_171 = arith.constant 1.000000e+00 : f32
    %1085 = vector.broadcast %cst_171 : f32 to vector<16x48xf32>
    %1086 = arith.addf %1085, %1084 : vector<16x48xf32>
    %1087 = arith.divf %1085, %1086 : vector<16x48xf32>
    %1088 = vector.extract_strided_slice %1081 {offsets = [0, 48], sizes = [16, 16], strides = [1, 1]} : vector<16x64xf32> to vector<16x16xf32>
    %1089 = math.tanh %1088 : vector<16x16xf32>
    %1090 = vector.extract_strided_slice %1087 {offsets = [0, 0], sizes = [16, 16], strides = [1, 1]} : vector<16x48xf32> to vector<16x16xf32>
    %1091 = vector.extract_strided_slice %1087 {offsets = [0, 16], sizes = [16, 16], strides = [1, 1]} : vector<16x48xf32> to vector<16x16xf32>
    %1092 = vector.extract_strided_slice %1087 {offsets = [0, 32], sizes = [16, 16], strides = [1, 1]} : vector<16x48xf32> to vector<16x16xf32>
    %1093 = arith.mulf %1091, %1020 : vector<16x16xf32>
    %1094 = arith.mulf %1090, %1089 : vector<16x16xf32>
    %1095 = arith.addf %1093, %1094 : vector<16x16xf32>
    %1096 = math.tanh %1095 : vector<16x16xf32>
    %1097 = arith.mulf %1092, %1096 : vector<16x16xf32>
    %1098 = tpu.concatenate %1097, %1041 in 1 : vector<16x16xf32>, vector<16x16xf32> -> vector<16x32xf32>
    %cst_172 = arith.constant dense<0.000000e+00> : vector<16x64xf32>
    %1099 = tpu.matmul %1098, %9, %cst_172 {dimension_numbers = #tpu.dot_dimension_numbers<[1], [0], [0], [1], [0, 0, 1, 1], [], []>} : vector<16x32xf32>, vector<32x64xf32>, vector<16x64xf32> -> vector<16x64xf32>
    %1100 = arith.addf %1099, %29 : vector<16x64xf32>
    %1101 = vector.extract_strided_slice %1100 {offsets = [0, 0], sizes = [16, 48], strides = [1, 1]} : vector<16x64xf32> to vector<16x48xf32>
    %1102 = arith.negf %1101 : vector<16x48xf32>
    %1103 = math.exp %1102 : vector<16x48xf32>
    %cst_173 = arith.constant 1.000000e+00 : f32
    %1104 = vector.broadcast %cst_173 : f32 to vector<16x48xf32>
    %1105 = arith.addf %1104, %1103 : vector<16x48xf32>
    %1106 = arith.divf %1104, %1105 : vector<16x48xf32>
    %1107 = vector.extract_strided_slice %1100 {offsets = [0, 48], sizes = [16, 16], strides = [1, 1]} : vector<16x64xf32> to vector<16x16xf32>
    %1108 = math.tanh %1107 : vector<16x16xf32>
    %1109 = vector.extract_strided_slice %1106 {offsets = [0, 0], sizes = [16, 16], strides = [1, 1]} : vector<16x48xf32> to vector<16x16xf32>
    %1110 = vector.extract_strided_slice %1106 {offsets = [0, 16], sizes = [16, 16], strides = [1, 1]} : vector<16x48xf32> to vector<16x16xf32>
    %1111 = vector.extract_strided_slice %1106 {offsets = [0, 32], sizes = [16, 16], strides = [1, 1]} : vector<16x48xf32> to vector<16x16xf32>
    %1112 = arith.mulf %1110, %1039 : vector<16x16xf32>
    %1113 = arith.mulf %1109, %1108 : vector<16x16xf32>
    %1114 = arith.addf %1112, %1113 : vector<16x16xf32>
    %1115 = math.tanh %1114 : vector<16x16xf32>
    %1116 = arith.mulf %1111, %1115 : vector<16x16xf32>
    %cst_174 = arith.constant dense<0.000000e+00> : vector<16x32xf32>
    %1117 = tpu.matmul %1059, %6, %cst_174 {dimension_numbers = #tpu.dot_dimension_numbers<[1], [0], [0], [1], [0, 0, 1, 1], [], []>} : vector<16x8xf32>, vector<8x32xf32>, vector<16x32xf32> -> vector<16x32xf32>
    %1118 = arith.addf %658, %1117 : vector<16x32xf32>
    %1119 = vector.extract_strided_slice %1118 {offsets = [0, 0], sizes = [16, 24], strides = [1, 1]} : vector<16x32xf32> to vector<16x24xf32>
    %1120 = arith.negf %1119 : vector<16x24xf32>
    %1121 = math.exp %1120 : vector<16x24xf32>
    %cst_175 = arith.constant 1.000000e+00 : f32
    %1122 = vector.broadcast %cst_175 : f32 to vector<16x24xf32>
    %1123 = arith.addf %1122, %1121 : vector<16x24xf32>
    %1124 = arith.divf %1122, %1123 : vector<16x24xf32>
    %1125 = vector.extract_strided_slice %1118 {offsets = [0, 24], sizes = [16, 8], strides = [1, 1]} : vector<16x32xf32> to vector<16x8xf32>
    %1126 = math.tanh %1125 : vector<16x8xf32>
    %1127 = vector.extract_strided_slice %1124 {offsets = [0, 0], sizes = [16, 8], strides = [1, 1]} : vector<16x24xf32> to vector<16x8xf32>
    %1128 = vector.extract_strided_slice %1124 {offsets = [0, 8], sizes = [16, 8], strides = [1, 1]} : vector<16x24xf32> to vector<16x8xf32>
    %1129 = vector.extract_strided_slice %1124 {offsets = [0, 16], sizes = [16, 8], strides = [1, 1]} : vector<16x24xf32> to vector<16x8xf32>
    %1130 = arith.mulf %1128, %1057 : vector<16x8xf32>
    %1131 = arith.mulf %1127, %1126 : vector<16x8xf32>
    %1132 = arith.addf %1130, %1131 : vector<16x8xf32>
    %1133 = math.tanh %1132 : vector<16x8xf32>
    %1134 = arith.mulf %1129, %1133 : vector<16x8xf32>
    %1135 = tpu.concatenate %1134, %1078 in 1 : vector<16x8xf32>, vector<16x8xf32> -> vector<16x16xf32>
    %cst_176 = arith.constant dense<0.000000e+00> : vector<16x32xf32>
    %1136 = tpu.matmul %1135, %7, %cst_176 {dimension_numbers = #tpu.dot_dimension_numbers<[1], [0], [0], [1], [0, 0, 1, 1], [], []>} : vector<16x16xf32>, vector<16x32xf32>, vector<16x32xf32> -> vector<16x32xf32>
    %1137 = arith.addf %1136, %23 : vector<16x32xf32>
    %1138 = vector.extract_strided_slice %1137 {offsets = [0, 0], sizes = [16, 24], strides = [1, 1]} : vector<16x32xf32> to vector<16x24xf32>
    %1139 = arith.negf %1138 : vector<16x24xf32>
    %1140 = math.exp %1139 : vector<16x24xf32>
    %cst_177 = arith.constant 1.000000e+00 : f32
    %1141 = vector.broadcast %cst_177 : f32 to vector<16x24xf32>
    %1142 = arith.addf %1141, %1140 : vector<16x24xf32>
    %1143 = arith.divf %1141, %1142 : vector<16x24xf32>
    %1144 = vector.extract_strided_slice %1137 {offsets = [0, 24], sizes = [16, 8], strides = [1, 1]} : vector<16x32xf32> to vector<16x8xf32>
    %1145 = math.tanh %1144 : vector<16x8xf32>
    %1146 = vector.extract_strided_slice %1143 {offsets = [0, 0], sizes = [16, 8], strides = [1, 1]} : vector<16x24xf32> to vector<16x8xf32>
    %1147 = vector.extract_strided_slice %1143 {offsets = [0, 8], sizes = [16, 8], strides = [1, 1]} : vector<16x24xf32> to vector<16x8xf32>
    %1148 = vector.extract_strided_slice %1143 {offsets = [0, 16], sizes = [16, 8], strides = [1, 1]} : vector<16x24xf32> to vector<16x8xf32>
    %1149 = arith.mulf %1147, %1076 : vector<16x8xf32>
    %1150 = arith.mulf %1146, %1145 : vector<16x8xf32>
    %1151 = arith.addf %1149, %1150 : vector<16x8xf32>
    %1152 = math.tanh %1151 : vector<16x8xf32>
    %1153 = arith.mulf %1148, %1152 : vector<16x8xf32>
    %1154 = tpu.concatenate %1153, %1097 in 1 : vector<16x8xf32>, vector<16x16xf32> -> vector<16x24xf32>
    %cst_178 = arith.constant dense<0.000000e+00> : vector<16x64xf32>
    %1155 = tpu.matmul %1154, %8, %cst_178 {dimension_numbers = #tpu.dot_dimension_numbers<[1], [0], [0], [1], [0, 0, 1, 1], [], []>} : vector<16x24xf32>, vector<24x64xf32>, vector<16x64xf32> -> vector<16x64xf32>
    %1156 = arith.addf %1155, %26 : vector<16x64xf32>
    %1157 = vector.extract_strided_slice %1156 {offsets = [0, 0], sizes = [16, 48], strides = [1, 1]} : vector<16x64xf32> to vector<16x48xf32>
    %1158 = arith.negf %1157 : vector<16x48xf32>
    %1159 = math.exp %1158 : vector<16x48xf32>
    %cst_179 = arith.constant 1.000000e+00 : f32
    %1160 = vector.broadcast %cst_179 : f32 to vector<16x48xf32>
    %1161 = arith.addf %1160, %1159 : vector<16x48xf32>
    %1162 = arith.divf %1160, %1161 : vector<16x48xf32>
    %1163 = vector.extract_strided_slice %1156 {offsets = [0, 48], sizes = [16, 16], strides = [1, 1]} : vector<16x64xf32> to vector<16x16xf32>
    %1164 = math.tanh %1163 : vector<16x16xf32>
    %1165 = vector.extract_strided_slice %1162 {offsets = [0, 0], sizes = [16, 16], strides = [1, 1]} : vector<16x48xf32> to vector<16x16xf32>
    %1166 = vector.extract_strided_slice %1162 {offsets = [0, 16], sizes = [16, 16], strides = [1, 1]} : vector<16x48xf32> to vector<16x16xf32>
    %1167 = vector.extract_strided_slice %1162 {offsets = [0, 32], sizes = [16, 16], strides = [1, 1]} : vector<16x48xf32> to vector<16x16xf32>
    %1168 = arith.mulf %1166, %1095 : vector<16x16xf32>
    %1169 = arith.mulf %1165, %1164 : vector<16x16xf32>
    %1170 = arith.addf %1168, %1169 : vector<16x16xf32>
    %1171 = math.tanh %1170 : vector<16x16xf32>
    %1172 = arith.mulf %1167, %1171 : vector<16x16xf32>
    %1173 = tpu.concatenate %1172, %1116 in 1 : vector<16x16xf32>, vector<16x16xf32> -> vector<16x32xf32>
    %cst_180 = arith.constant dense<0.000000e+00> : vector<16x64xf32>
    %1174 = tpu.matmul %1173, %9, %cst_180 {dimension_numbers = #tpu.dot_dimension_numbers<[1], [0], [0], [1], [0, 0, 1, 1], [], []>} : vector<16x32xf32>, vector<32x64xf32>, vector<16x64xf32> -> vector<16x64xf32>
    %1175 = arith.addf %1174, %29 : vector<16x64xf32>
    %1176 = vector.extract_strided_slice %1175 {offsets = [0, 0], sizes = [16, 48], strides = [1, 1]} : vector<16x64xf32> to vector<16x48xf32>
    %1177 = arith.negf %1176 : vector<16x48xf32>
    %1178 = math.exp %1177 : vector<16x48xf32>
    %cst_181 = arith.constant 1.000000e+00 : f32
    %1179 = vector.broadcast %cst_181 : f32 to vector<16x48xf32>
    %1180 = arith.addf %1179, %1178 : vector<16x48xf32>
    %1181 = arith.divf %1179, %1180 : vector<16x48xf32>
    %1182 = vector.extract_strided_slice %1175 {offsets = [0, 48], sizes = [16, 16], strides = [1, 1]} : vector<16x64xf32> to vector<16x16xf32>
    %1183 = math.tanh %1182 : vector<16x16xf32>
    %1184 = vector.extract_strided_slice %1181 {offsets = [0, 0], sizes = [16, 16], strides = [1, 1]} : vector<16x48xf32> to vector<16x16xf32>
    %1185 = vector.extract_strided_slice %1181 {offsets = [0, 16], sizes = [16, 16], strides = [1, 1]} : vector<16x48xf32> to vector<16x16xf32>
    %1186 = vector.extract_strided_slice %1181 {offsets = [0, 32], sizes = [16, 16], strides = [1, 1]} : vector<16x48xf32> to vector<16x16xf32>
    %1187 = arith.mulf %1185, %1114 : vector<16x16xf32>
    %1188 = arith.mulf %1184, %1183 : vector<16x16xf32>
    %1189 = arith.addf %1187, %1188 : vector<16x16xf32>
    %1190 = math.tanh %1189 : vector<16x16xf32>
    %1191 = arith.mulf %1186, %1190 : vector<16x16xf32>
    %cst_182 = arith.constant dense<0.000000e+00> : vector<16x32xf32>
    %1192 = tpu.matmul %1134, %6, %cst_182 {dimension_numbers = #tpu.dot_dimension_numbers<[1], [0], [0], [1], [0, 0, 1, 1], [], []>} : vector<16x8xf32>, vector<8x32xf32>, vector<16x32xf32> -> vector<16x32xf32>
    %1193 = arith.addf %658, %1192 : vector<16x32xf32>
    %1194 = vector.extract_strided_slice %1193 {offsets = [0, 0], sizes = [16, 24], strides = [1, 1]} : vector<16x32xf32> to vector<16x24xf32>
    %1195 = arith.negf %1194 : vector<16x24xf32>
    %1196 = math.exp %1195 : vector<16x24xf32>
    %cst_183 = arith.constant 1.000000e+00 : f32
    %1197 = vector.broadcast %cst_183 : f32 to vector<16x24xf32>
    %1198 = arith.addf %1197, %1196 : vector<16x24xf32>
    %1199 = arith.divf %1197, %1198 : vector<16x24xf32>
    %1200 = vector.extract_strided_slice %1193 {offsets = [0, 24], sizes = [16, 8], strides = [1, 1]} : vector<16x32xf32> to vector<16x8xf32>
    %1201 = math.tanh %1200 : vector<16x8xf32>
    %1202 = vector.extract_strided_slice %1199 {offsets = [0, 0], sizes = [16, 8], strides = [1, 1]} : vector<16x24xf32> to vector<16x8xf32>
    %1203 = vector.extract_strided_slice %1199 {offsets = [0, 8], sizes = [16, 8], strides = [1, 1]} : vector<16x24xf32> to vector<16x8xf32>
    %1204 = vector.extract_strided_slice %1199 {offsets = [0, 16], sizes = [16, 8], strides = [1, 1]} : vector<16x24xf32> to vector<16x8xf32>
    %1205 = arith.mulf %1203, %1132 : vector<16x8xf32>
    %1206 = arith.mulf %1202, %1201 : vector<16x8xf32>
    %1207 = arith.addf %1205, %1206 : vector<16x8xf32>
    %1208 = math.tanh %1207 : vector<16x8xf32>
    %1209 = arith.mulf %1204, %1208 : vector<16x8xf32>
    %1210 = tpu.concatenate %1209, %1153 in 1 : vector<16x8xf32>, vector<16x8xf32> -> vector<16x16xf32>
    %cst_184 = arith.constant dense<0.000000e+00> : vector<16x32xf32>
    %1211 = tpu.matmul %1210, %7, %cst_184 {dimension_numbers = #tpu.dot_dimension_numbers<[1], [0], [0], [1], [0, 0, 1, 1], [], []>} : vector<16x16xf32>, vector<16x32xf32>, vector<16x32xf32> -> vector<16x32xf32>
    %1212 = arith.addf %1211, %23 : vector<16x32xf32>
    %1213 = vector.extract_strided_slice %1212 {offsets = [0, 0], sizes = [16, 24], strides = [1, 1]} : vector<16x32xf32> to vector<16x24xf32>
    %1214 = arith.negf %1213 : vector<16x24xf32>
    %1215 = math.exp %1214 : vector<16x24xf32>
    %cst_185 = arith.constant 1.000000e+00 : f32
    %1216 = vector.broadcast %cst_185 : f32 to vector<16x24xf32>
    %1217 = arith.addf %1216, %1215 : vector<16x24xf32>
    %1218 = arith.divf %1216, %1217 : vector<16x24xf32>
    %1219 = vector.extract_strided_slice %1212 {offsets = [0, 24], sizes = [16, 8], strides = [1, 1]} : vector<16x32xf32> to vector<16x8xf32>
    %1220 = math.tanh %1219 : vector<16x8xf32>
    %1221 = vector.extract_strided_slice %1218 {offsets = [0, 0], sizes = [16, 8], strides = [1, 1]} : vector<16x24xf32> to vector<16x8xf32>
    %1222 = vector.extract_strided_slice %1218 {offsets = [0, 8], sizes = [16, 8], strides = [1, 1]} : vector<16x24xf32> to vector<16x8xf32>
    %1223 = vector.extract_strided_slice %1218 {offsets = [0, 16], sizes = [16, 8], strides = [1, 1]} : vector<16x24xf32> to vector<16x8xf32>
    %1224 = arith.mulf %1222, %1151 : vector<16x8xf32>
    %1225 = arith.mulf %1221, %1220 : vector<16x8xf32>
    %1226 = arith.addf %1224, %1225 : vector<16x8xf32>
    %1227 = math.tanh %1226 : vector<16x8xf32>
    %1228 = arith.mulf %1223, %1227 : vector<16x8xf32>
    %1229 = tpu.concatenate %1228, %1172 in 1 : vector<16x8xf32>, vector<16x16xf32> -> vector<16x24xf32>
    %cst_186 = arith.constant dense<0.000000e+00> : vector<16x64xf32>
    %1230 = tpu.matmul %1229, %8, %cst_186 {dimension_numbers = #tpu.dot_dimension_numbers<[1], [0], [0], [1], [0, 0, 1, 1], [], []>} : vector<16x24xf32>, vector<24x64xf32>, vector<16x64xf32> -> vector<16x64xf32>
    %1231 = arith.addf %1230, %26 : vector<16x64xf32>
    %1232 = vector.extract_strided_slice %1231 {offsets = [0, 0], sizes = [16, 48], strides = [1, 1]} : vector<16x64xf32> to vector<16x48xf32>
    %1233 = arith.negf %1232 : vector<16x48xf32>
    %1234 = math.exp %1233 : vector<16x48xf32>
    %cst_187 = arith.constant 1.000000e+00 : f32
    %1235 = vector.broadcast %cst_187 : f32 to vector<16x48xf32>
    %1236 = arith.addf %1235, %1234 : vector<16x48xf32>
    %1237 = arith.divf %1235, %1236 : vector<16x48xf32>
    %1238 = vector.extract_strided_slice %1231 {offsets = [0, 48], sizes = [16, 16], strides = [1, 1]} : vector<16x64xf32> to vector<16x16xf32>
    %1239 = math.tanh %1238 : vector<16x16xf32>
    %1240 = vector.extract_strided_slice %1237 {offsets = [0, 0], sizes = [16, 16], strides = [1, 1]} : vector<16x48xf32> to vector<16x16xf32>
    %1241 = vector.extract_strided_slice %1237 {offsets = [0, 16], sizes = [16, 16], strides = [1, 1]} : vector<16x48xf32> to vector<16x16xf32>
    %1242 = vector.extract_strided_slice %1237 {offsets = [0, 32], sizes = [16, 16], strides = [1, 1]} : vector<16x48xf32> to vector<16x16xf32>
    %1243 = arith.mulf %1241, %1170 : vector<16x16xf32>
    %1244 = arith.mulf %1240, %1239 : vector<16x16xf32>
    %1245 = arith.addf %1243, %1244 : vector<16x16xf32>
    %1246 = math.tanh %1245 : vector<16x16xf32>
    %1247 = arith.mulf %1242, %1246 : vector<16x16xf32>
    %1248 = tpu.concatenate %1247, %1191 in 1 : vector<16x16xf32>, vector<16x16xf32> -> vector<16x32xf32>
    %cst_188 = arith.constant dense<0.000000e+00> : vector<16x64xf32>
    %1249 = tpu.matmul %1248, %9, %cst_188 {dimension_numbers = #tpu.dot_dimension_numbers<[1], [0], [0], [1], [0, 0, 1, 1], [], []>} : vector<16x32xf32>, vector<32x64xf32>, vector<16x64xf32> -> vector<16x64xf32>
    %1250 = arith.addf %1249, %29 : vector<16x64xf32>
    %1251 = vector.extract_strided_slice %1250 {offsets = [0, 0], sizes = [16, 48], strides = [1, 1]} : vector<16x64xf32> to vector<16x48xf32>
    %1252 = arith.negf %1251 : vector<16x48xf32>
    %1253 = math.exp %1252 : vector<16x48xf32>
    %cst_189 = arith.constant 1.000000e+00 : f32
    %1254 = vector.broadcast %cst_189 : f32 to vector<16x48xf32>
    %1255 = arith.addf %1254, %1253 : vector<16x48xf32>
    %1256 = arith.divf %1254, %1255 : vector<16x48xf32>
    %1257 = vector.extract_strided_slice %1250 {offsets = [0, 48], sizes = [16, 16], strides = [1, 1]} : vector<16x64xf32> to vector<16x16xf32>
    %1258 = math.tanh %1257 : vector<16x16xf32>
    %1259 = vector.extract_strided_slice %1256 {offsets = [0, 0], sizes = [16, 16], strides = [1, 1]} : vector<16x48xf32> to vector<16x16xf32>
    %1260 = vector.extract_strided_slice %1256 {offsets = [0, 16], sizes = [16, 16], strides = [1, 1]} : vector<16x48xf32> to vector<16x16xf32>
    %1261 = vector.extract_strided_slice %1256 {offsets = [0, 32], sizes = [16, 16], strides = [1, 1]} : vector<16x48xf32> to vector<16x16xf32>
    %1262 = arith.mulf %1260, %1189 : vector<16x16xf32>
    %1263 = arith.mulf %1259, %1258 : vector<16x16xf32>
    %1264 = arith.addf %1262, %1263 : vector<16x16xf32>
    %1265 = math.tanh %1264 : vector<16x16xf32>
    %1266 = arith.mulf %1261, %1265 : vector<16x16xf32>
    %1267 = tpu.concatenate %741, %816, %891, %966, %1041, %1116, %1191, %1266 in 0 : vector<16x16xf32>, vector<16x16xf32>, vector<16x16xf32>, vector<16x16xf32>, vector<16x16xf32>, vector<16x16xf32>, vector<16x16xf32>, vector<16x16xf32> -> vector<128x16xf32>
    %cst_190 = arith.constant dense<0.000000e+00> : vector<128x4xf32>
    %1268 = tpu.matmul %1267, %10, %cst_190 {dimension_numbers = #tpu.dot_dimension_numbers<[1], [0], [0], [1], [0, 0, 1, 1], [], []>} : vector<128x16xf32>, vector<16x4xf32>, vector<128x4xf32> -> vector<128x4xf32>
    %1269 = vector.broadcast %11 : vector<1x4xf32> to vector<128x4xf32>
    %1270 = arith.addf %1268, %1269 : vector<128x4xf32>
    %1271 = vector.shape_cast %1270 : vector<128x4xf32> to vector<8x2x8x4xf32>
    %c0_191 = arith.constant 0 : index
    %c0_192 = arith.constant 0 : index
    %c0_193 = arith.constant 0 : index
    %c0_194 = arith.constant 0 : index
    %1272 = vector.load %arg23[%c0_191, %c0_192, %c0_193, %c0_194] : memref<8x2x8x4xf32, #tpu.memory_space<vmem>>, vector<8x2x8x4xf32>
    tpu.vector_store %arg23[%c0_191, %c0_192, %c0_193, %c0_194], %1271 {strides = array<i32>} : memref<8x2x8x4xf32, #tpu.memory_space<vmem>>, vector<8x2x8x4xf32>,
    return
  }
  func.func @transform_0(%arg0: i32) -> (i32, i32, i32) {
    %c0_i32 = arith.constant 0 : i32
    %c0_i32_0 = arith.constant 0 : i32
    %c0_i32_1 = arith.constant 0 : i32
    return %c0_i32, %arg0, %c0_i32_0 : i32, i32, i32
  }
  func.func @transform_1(%arg0: i32) -> (i32, i32) {
    %c0_i32 = arith.constant 0 : i32
    %c0_i32_0 = arith.constant 0 : i32
    %c0_i32_1 = arith.constant 0 : i32
    return %c0_i32, %c0_i32_0 : i32, i32
  }
  func.func @transform_2(%arg0: i32) -> (i32, i32) {
    %c0_i32 = arith.constant 0 : i32
    %c0_i32_0 = arith.constant 0 : i32
    %c0_i32_1 = arith.constant 0 : i32
    return %c0_i32, %c0_i32_0 : i32, i32
  }
  func.func @transform_3(%arg0: i32) -> (i32, i32) {
    %c0_i32 = arith.constant 0 : i32
    %c0_i32_0 = arith.constant 0 : i32
    %c0_i32_1 = arith.constant 0 : i32
    return %c0_i32, %c0_i32_0 : i32, i32
  }
  func.func @transform_4(%arg0: i32) -> (i32, i32) {
    %c0_i32 = arith.constant 0 : i32
    %c0_i32_0 = arith.constant 0 : i32
    %c0_i32_1 = arith.constant 0 : i32
    return %c0_i32, %c0_i32_0 : i32, i32
  }
  func.func @transform_5(%arg0: i32) -> (i32, i32) {
    %c0_i32 = arith.constant 0 : i32
    %c0_i32_0 = arith.constant 0 : i32
    %c0_i32_1 = arith.constant 0 : i32
    return %c0_i32, %c0_i32_0 : i32, i32
  }
  func.func @transform_6(%arg0: i32) -> (i32, i32) {
    %c0_i32 = arith.constant 0 : i32
    %c0_i32_0 = arith.constant 0 : i32
    %c0_i32_1 = arith.constant 0 : i32
    return %c0_i32, %c0_i32_0 : i32, i32
  }
  func.func @transform_7(%arg0: i32) -> (i32, i32) {
    %c0_i32 = arith.constant 0 : i32
    %c0_i32_0 = arith.constant 0 : i32
    %c0_i32_1 = arith.constant 0 : i32
    return %c0_i32, %c0_i32_0 : i32, i32
  }
  func.func @transform_8(%arg0: i32) -> (i32, i32) {
    %c0_i32 = arith.constant 0 : i32
    %c0_i32_0 = arith.constant 0 : i32
    %c0_i32_1 = arith.constant 0 : i32
    return %c0_i32, %c0_i32_0 : i32, i32
  }
  func.func @transform_9(%arg0: i32) -> (i32, i32) {
    %c0_i32 = arith.constant 0 : i32
    %c0_i32_0 = arith.constant 0 : i32
    %c0_i32_1 = arith.constant 0 : i32
    return %c0_i32, %c0_i32_0 : i32, i32
  }
  func.func @transform_10(%arg0: i32) -> (i32, i32) {
    %c0_i32 = arith.constant 0 : i32
    %c0_i32_0 = arith.constant 0 : i32
    %c0_i32_1 = arith.constant 0 : i32
    return %c0_i32, %c0_i32_0 : i32, i32
  }
  func.func @transform_11(%arg0: i32) -> (i32, i32) {
    %c0_i32 = arith.constant 0 : i32
    %c0_i32_0 = arith.constant 0 : i32
    %c0_i32_1 = arith.constant 0 : i32
    return %c0_i32, %c0_i32_0 : i32, i32
  }
  func.func @transform_12(%arg0: i32) -> (i32, i32) {
    %c0_i32 = arith.constant 0 : i32
    %c0_i32_0 = arith.constant 0 : i32
    %c0_i32_1 = arith.constant 0 : i32
    return %c0_i32, %c0_i32_0 : i32, i32
  }
  func.func @transform_13(%arg0: i32) -> (i32, i32) {
    %c0_i32 = arith.constant 0 : i32
    %c0_i32_0 = arith.constant 0 : i32
    %c0_i32_1 = arith.constant 0 : i32
    return %c0_i32, %c0_i32_0 : i32, i32
  }
  func.func @transform_14(%arg0: i32) -> (i32, i32) {
    %c0_i32 = arith.constant 0 : i32
    %c0_i32_0 = arith.constant 0 : i32
    %c0_i32_1 = arith.constant 0 : i32
    return %c0_i32, %c0_i32_0 : i32, i32
  }
  func.func @transform_15(%arg0: i32) -> (i32, i32) {
    %c0_i32 = arith.constant 0 : i32
    %c0_i32_0 = arith.constant 0 : i32
    %c0_i32_1 = arith.constant 0 : i32
    return %c0_i32, %c0_i32_0 : i32, i32
  }
  func.func @transform_16(%arg0: i32) -> (i32, i32) {
    %c0_i32 = arith.constant 0 : i32
    %c0_i32_0 = arith.constant 0 : i32
    %c0_i32_1 = arith.constant 0 : i32
    return %c0_i32, %c0_i32_0 : i32, i32
  }
  func.func @transform_17(%arg0: i32) -> (i32, i32) {
    %c0_i32 = arith.constant 0 : i32
    %c0_i32_0 = arith.constant 0 : i32
    %c0_i32_1 = arith.constant 0 : i32
    return %c0_i32, %c0_i32_0 : i32, i32
  }
  func.func @transform_18(%arg0: i32) -> (i32, i32) {
    %c0_i32 = arith.constant 0 : i32
    %c0_i32_0 = arith.constant 0 : i32
    %c0_i32_1 = arith.constant 0 : i32
    return %c0_i32, %c0_i32_0 : i32, i32
  }
  func.func @transform_19(%arg0: i32) -> (i32, i32) {
    %c0_i32 = arith.constant 0 : i32
    %c0_i32_0 = arith.constant 0 : i32
    %c0_i32_1 = arith.constant 0 : i32
    return %c0_i32, %c0_i32_0 : i32, i32
  }
  func.func @transform_20(%arg0: i32) -> (i32, i32) {
    %c0_i32 = arith.constant 0 : i32
    %c0_i32_0 = arith.constant 0 : i32
    %c0_i32_1 = arith.constant 0 : i32
    return %c0_i32, %c0_i32_0 : i32, i32
  }
  func.func @transform_21(%arg0: i32) -> (i32, i32, i32) {
    %c0_i32 = arith.constant 0 : i32
    %c0_i32_0 = arith.constant 0 : i32
    %c0_i32_1 = arith.constant 0 : i32
    return %c0_i32, %arg0, %c0_i32_0 : i32, i32, i32
  }
  func.func @transform_22(%arg0: i32) -> (i32, i32, i32, i32) {
    %c0_i32 = arith.constant 0 : i32
    %c0_i32_0 = arith.constant 0 : i32
    %c0_i32_1 = arith.constant 0 : i32
    %c0_i32_2 = arith.constant 0 : i32
    return %c0_i32, %c0_i32_0, %arg0, %c0_i32_1 : i32, i32, i32, i32
  }
}

</mosaic_0001>

<bundles_post_ra>
// kernel: fwd32.1
= control target key start
LH: loop header
LB: loop body
LE: loop exit
PB: predicated region body
PF: predicated region fallthrough
CT: control target
= control target key end

     0   :  { %s13659_s0 = inlined_call_operand.vmem [shape: f32[8,16,4], index: 0, kind: input, shape index: {}]   ;;  %s13660_s1 = inlined_call_operand.vmem [shape: f32[4,64], index: 1, kind: input, shape index: {}]   ;;  %s13661_s2 = inlined_call_operand.vmem [shape: f32[16,64], index: 2, kind: input, shape index: {}]   ;;  %s13662_s3 = inlined_call_operand.vmem [shape: f32[1,64], index: 3, kind: input, shape index: {}]   ;;  %s13663_s4 = inlined_call_operand.vmem [shape: f32[32,64], index: 4, kind: input, shape index: {}]   ;;  %s13664_s5 = inlined_call_operand.vmem [shape: f32[1,64], index: 5, kind: input, shape index: {}]   ;;  %s13665_s6 = inlined_call_operand.vmem [shape: f32[24,32], index: 6, kind: input, shape index: {}]   ;;  %s13666_s7 = inlined_call_operand.vmem [shape: f32[1,32], index: 7, kind: input, shape index: {}]   ;;  %s13667_s8 = inlined_call_operand.vmem [shape: f32[16,32], index: 8, kind: input, shape index: {}]   ;;  %s13668_s9 = inlined_call_operand.vmem [shape: f32[1,32], index: 9, kind: input, shape index: {}]   ;;  %s13669_s10 = inlined_call_operand.vmem [shape: f32[8,32], index: 10, kind: input, shape index: {}]   ;;  %s13670_s11 = inlined_call_operand.vmem [shape: f32[8,32], index: 11, kind: input, shape index: {}]   ;;  %s13671_s12 = inlined_call_operand.vmem [shape: f32[1,32], index: 12, kind: input, shape index: {}]   ;;  %s13672_s13 = inlined_call_operand.vmem [shape: f32[16,32], index: 13, kind: input, shape index: {}]   ;;  %s13673_s14 = inlined_call_operand.vmem [shape: f32[1,32], index: 14, kind: input, shape index: {}]   ;;  %s13674_s15 = inlined_call_operand.vmem [shape: f32[24,64], index: 15, kind: input, shape index: {}]   ;;  %s13675_s16 = inlined_call_operand.vmem [shape: f32[1,64], index: 16, kind: input, shape index: {}]   ;;  %s13676_s17 = inlined_call_operand.vmem [shape: f32[32,64], index: 17, kind: input, shape index: {}]   ;;  %s13677_s18 = inlined_call_operand.vmem [shape: f32[1,64], index: 18, kind: input, shape index: {}]   ;;  %s13678_s19 = inlined_call_operand.vmem [shape: f32[16,4], index: 19, kind: input, shape index: {}]   ;;  %s13679_s20 = inlined_call_operand.vmem [shape: f32[1,4], index: 20, kind: input, shape index: {}]   ;;  %s13680_s21 = inlined_call_operand.vmem [shape: f32[2,16,8], index: 21, kind: output, shape index: {0}]   ;;  %s13681_s22 = inlined_call_operand.vmem [shape: f32[8,2,16,4], index: 22, kind: output, shape index: {1}]  }
   0x1   :  { %13705 = sst [smem:[#allocation7_spill]] %s13659_s0 }
   0x2   :  { %13706 = sst [smem:[#allocation8_spill]] %s13660_s1 }
   0x3   :  { %13707 = sst [smem:[#allocation9_spill]] %s13661_s2 }
   0x4   :  { %13708 = sst [smem:[#allocation10_spill]] %s13662_s3 }
   0x5   :  { %13709 = sst [smem:[#allocation11_spill]] %s13663_s4 }
   0x6   :  { %13710 = sst [smem:[#allocation12_spill]] %s13664_s5 }
   0x7   :  { %13711 = sst [smem:[#allocation13_spill]] %s13665_s6 }
   0x8   :  { %13712 = sst [smem:[#allocation14_spill]] %s13666_s7 }
   0x9   :  { %13713 = sst [smem:[#allocation15_spill]] %s13667_s8 }
   0xa   :  { %13714 = sst [smem:[#allocation16_spill]] %s13668_s9 }
   0xb   :  { %13715 = sst [smem:[#allocation17_spill]] %s13669_s10 }
   0xc   :  { %s11630_s3 = smov 0   ;;  %s11632_s28 = smov 0  }
   0xd   :  { %s11634_s29 = smov 0  }
   0xe LB: > { %13716 = sst [smem:[#allocation5_spill]] %s11499_s28  ;;  %s11646_s30 = sadd.s32 4294967295, %s11503_s29   ;;  %s11503_s29 = sphi %s11634_s29, %s13740_s29   ;;  %s11499_s28 = sphi %s11632_s28, %s13739_s28   ;;  %s11495_s3 = sphi %s11630_s3, %s13738_s3  }
   0xf   : > { %s11649_s4 = sadd.s32 1, %s11503_s29   ;;  %s40_s23 = sadd.s32 1, %s11499_s28 }
  0x10   : > { %s37_s0 = ssub.s32 %s11503_s29, %s11649_s4  ;;  %p47_p1 = scmp.ne.s32.totalorder %s11499_s28, %s11495_s3 }
  0x11   : > { %p38_p0 = scmp.eq.s32.totalorder %s37_s0, 0  ;;  %p48_p2 = scmp.eq.s32.totalorder %s11503_s29, 0 }
  0x12   : > { %p497_p3 = scmp.eq.s32.totalorder %s11646_s30, 1  ;;  %p9306_p6 = scmp.ge.s32.totalorder %s11503_s29, 2 }
  0x13   : > { %s11659_s1 = scalar_select %p38_p0, %s11499_s28, %s40_s23  }
  0x14   : > { %p49_p4 = por %p48_p2, %p47_p1  ;;  %p11661_p5 = por %p497_p3, %p47_p1 }
  0x15   : > { %13717 = sst [smem:[#allocation6_spill]] %s11659_s1  ;;  %605 = sbr.rel (%p9306_p6) target bundleno = 42 (0x2a), region = 96 }
  0x1c   : > { %608 = sbr.rel (!%p49_p4) target bundleno = 42 (0x2a), region = 100  ;;  %s610_s24 = sand.u32 (%p49_p4), 1, %s11499_s28  }
  0x1d   : > { %s9308_s6 = sshll.u32 (%p49_p4), %s11503_s29, 3  ;;  %s9307_s25 = sshll.u32 (%p49_p4), %s610_s24, 6 }
  0x1e   : > { %s13719_s27 = sld [smem:[#allocation7_spill]] (%p49_p4)  ;;  %s612_s23 = scalar_lea.vmem (%p49_p4), [#allocation2], %s9307_s25 }
  0x24   : > { %s614_s0 = scalar_lea.vmem %s13719_s27, %s9308_s6 }
  0x25   : > { %v656_v0 = vld [vmem:[%s614_s0] sm:$0xff]  ;;  %v658_v1 = vld [vmem:[%s614_s0 + $0x10] sm:$0xff] }
  0x26   : > { %v660_v2 = vld [vmem:[%s614_s0 + $0x20] sm:$0xff]  ;;  %657 = vst [vmem:[%s612_s23] sm:$0xff] %v656_v0  ;;  %659 = vst [vmem:[%s612_s23 + $0x8] sm:$0xff] %v658_v1  ;;  %v662_v3 = vld [vmem:[%s614_s0 + $0x30] sm:$0xff] }
  0x27   : > { %661 = vst [vmem:[%s612_s23 + $0x10] sm:$0xff] %v660_v2  ;;  %v664_v4 = vld [vmem:[%s614_s0 + $0x40] sm:$0xff]  ;;  %v666_v5 = vld [vmem:[%s614_s0 + $0x50] sm:$0xff]  ;;  %663 = vst [vmem:[%s612_s23 + $0x18] sm:$0xff] %v662_v3 }
  0x28   : > { %665 = vst [vmem:[%s612_s23 + $0x20] sm:$0xff] %v664_v4  ;;  %667 = vst [vmem:[%s612_s23 + $0x28] sm:$0xff] %v666_v5  ;;  %v668_v6 = vld [vmem:[%s614_s0 + $0x60] sm:$0xff]  ;;  %v670_v7 = vld [vmem:[%s614_s0 + $0x70] sm:$0xff] }
  0x29   : > { %669 = vst [vmem:[%s612_s23 + $0x30] sm:$0xff] %v668_v6  ;;  %671 = vst [vmem:[%s612_s23 + $0x38] sm:$0xff] %v670_v7 }
  0x2a PF: > { %p9309_p7 = scmp.ge.s32.totalorder %s11503_s29, 1  ;;  %p676_p8 = scmp.lt.s32.totalorder %s11503_s29, 3 }
  0x2c   : > { %p677_p9 = pnand %p9309_p7, %p676_p8 }
  0x2d   : > { %s13720_s25 = sld [smem:[#allocation8_spill]] (!%p677_p9)  ;;  %vm855_vm0 = vcmask (!%p677_p9), 1043456   ;;  %s11677_s26 = sand.u32 (!%p677_p9), 1, %s11495_s3   ;;  %vm830_vm1 = vcmask (!%p677_p9), 31744   ;;  %v11505_v11 = vmov (!%p677_p9), 0.0|0.0   ;;  %vm11506_vm2 = vmmov (!%p677_p9), 0  }
  0x2e   : > { %680 = sbr.rel (%p677_p9) target bundleno = 26468 (0x6764), region = 138  ;;  %s9310_s2 = sshll.u32 (!%p677_p9), %s11677_s26, 6  ;;  %10422 = vmatprep.subr.bf16.mxu0 (!%p677_p9), %v11505_v11  ;;  %v11507_v13 = vmov (!%p677_p9), 0.0   ;;  %vm964_vm3 = vcmask (!%p677_p9), 130048   ;;  %vm1068_vm4 = vcmask (!%p677_p9), 261120   ;;  %vm1171_vm5 = vcmask (!%p677_p9), 195584  }
  0x2f   : > { %s13721_s23 = sld [smem:[#allocation9_spill]] (!%p677_p9)  ;;  %9876 = vmatprep.mubr.msk.f32.mxu0 (!%p677_p9), %vm11506_vm2, %v11507_v13  ;;  %s685_s3 = scalar_lea.vmem (!%p677_p9), [#allocation2], %s9310_s2  ;;  %vm1273_vm6 = vcmask (!%p677_p9), 64512  }
  0x30   : > { %v815_v14 = vld [vmem:[%s685_s3] sm:$0xff] (!%p677_p9)  ;;  %v816_v15 = vld [vmem:[%s685_s3 + $0x8] sm:$0xff] (!%p677_p9)  ;;  %v817_v16 = vld [vmem:[%s685_s3 + $0x10] sm:$0xff] (!%p677_p9)  ;;  %s13722_s6 = sld [smem:[#allocation10_spill]] (!%p677_p9)  ;;  %s13688_s2 = smov (!%p677_p9), 16  }
  0x31   : > { %9840 = vmatprep.mubr.msk.f32.mxu1 (!%p677_p9), %vm830_vm1, %v815_v14  ;;  %v818_v17 = vld [vmem:[%s685_s3 + $0x18] sm:$0xff] (!%p677_p9)  ;;  %v819_v18 = vld [vmem:[%s685_s3 + $0x20] sm:$0xff] (!%p677_p9)  ;;  %v820_v19 = vld [vmem:[%s685_s3 + $0x28] sm:$0xff] (!%p677_p9)  ;;  %s13723_s29 = sld [smem:[#allocation11_spill]] (!%p677_p9)  ;;  %s13725_s27 = smov (!%p677_p9), 16  }
  0x32   : > { %v821_v20 = vld [vmem:[%s685_s3 + $0x30] sm:$0xff] (!%p677_p9)  ;;  %v822_v21 = vld [vmem:[%s685_s3 + $0x38] sm:$0xff] (!%p677_p9)  ;;  %s13726_s0 = sld [smem:[#allocation12_spill]] (!%p677_p9)  ;;  %s13729_s3 = smov (!%p677_p9), 96  }
  0x33   : > { %v747_v8 = vld [vmem:[%s13720_s25] sm:$0xf] (!%p677_p9)  ;;  %s13686_s25 = smov (!%p677_p9), 80   ;;  %s13730_s7 = sld [smem:[#allocation14_spill]] (!%p677_p9) }
  0x34   : > { %9838 = vmatprep.subr.msk.mxu1 (!%p677_p9), %vm855_vm0, %v747_v8  ;;  %s13694_s24 = smov (!%p677_p9), 104   ;;  %s13731_s8 = sld [smem:[#allocation15_spill]] (!%p677_p9) }
  0x35   : > { %v748_v9 = vld [vmem:[%s13721_s23] sm:$0xff]  ;;  %v749_v10 = vld [vmem:[%s13721_s23 + $0x8] sm:$0xff]  ;;  %9839 = vmatpush3.msk.msra.mxu1 %vm855_vm0, %v747_v8  ;;  %s13703_s23 = smov 8   ;;  %s13697_s28 = smov 112  }
  0x36   : > { %v11687_v12 = vpack.c.bf16 %v749_v10, %v748_v9  ;;  %10413 = vmatprep.subr.bf16.mxu1 %v11505_v11  ;;  %9841 = vmatmul.mubr.msk.f32.vlgmr.msra.gmra.mrb[0].mxu1 %vm830_vm1, %v816_v15  ;;  %v9319_v22 = vld [vmem:[%s13722_s6] ss:$0 sm:$0xff]  ;;  %s13728_s6 = sld [smem:[#allocation13_spill]]  ;;  %s13732_s9 = sld [smem:[#allocation16_spill]] }
  0x37   : > { %9843 = vmatprep.mubr.msk.f32.mxu1 %vm830_vm1, %v817_v16  ;;  %s13724_s1 = smov %s13723_s29  ;;  %v750_v52 = vld [vmem:[%s13723_s29] sm:$0xff]  ;;  %s13727_s29 = smov 80  }
  0x38   : > { %10415 = vmatpush3.bf16.msra.mxu1 %v11687_v12  ;;  %v751_v53 = vld [vmem:[%s13724_s1 + $0x8] sm:$0xff]  ;;  %v752_v54 = vld [vmem:[%s13724_s1 + $0x10] sm:$0xff]  ;;  %v753_v56 = vld [vmem:[%s13724_s1 + $0x18] sm:$0xff]  ;;  %s13733_s1 = smov 104   ;;  %s13736_s10 = sld [smem:[#allocation17_spill]] }
  0x39   : > { %10416 = vmatprep.subr.bf16.mxu1 %v11505_v11  ;;  %v11738_v55 = vpack.c.bf16 %v751_v53, %v750_v52  ;;  %v11744_v57 = vpack.c.bf16 %v753_v56, %v752_v54  ;;  %v11761_v63 = vld [vmem:[%s13726_s0] ss:$0 sm:$0xff] }
  0x3a   : > { %9844 = vmatmul.mubr.msk.f32.gmra.mrb[2].mxu1 %vm830_vm1, %v818_v17 }
  0x3b   : > { %9846 = vmatprep.mubr.msk.f32.mxu1 %vm830_vm1, %v819_v18 }
  0x3c   : > { %v754_v16 = vld [vmem:[%s13728_s6] sm:$0xff]  ;;  %v755_v17 = vld [vmem:[%s13728_s6 + $0x8] sm:$0xff] }
  0x3d   : > { %v11775_v18 = vpack.c.bf16 %v755_v17, %v754_v16 }
  0x3e   : > { %9847 = vmatmul.mubr.msk.f32.gmra.mrb[4].mxu1 %vm830_vm1, %v820_v19 }
  0x3f   : > { %9849 = vmatprep.mubr.msk.f32.mxu1 %vm830_vm1, %v821_v20  ;;  %10424 = vmatpush3.bf16.msra.mxu0 %v11775_v18  ;;  %v11783_v20 = vld [vmem:[%s13728_s6 + $0x10] sm:$0xff] }
  0x40   : > { %9874 = vmatprep.subr.mxu0 %v11507_v13 }
  0x42   : > { %9850 = vmatmul.mubr.msk.f32.gmra.mrb[6].mxu1 %vm830_vm1, %v822_v21 }
  0x43   : > { %9856 = vmatprep.mubr.msk.f32.mxu1 %vm11506_vm2, %v11507_v13  ;;  %9875 = vmatpush3.msra.mxu0 %v11783_v20 }
  0x44   : > { %10431 = vmatprep.subr.bf16.mxu0 %v11505_v11 }
  0x46   : > { %9857 = vmatmul.mubr.f32.vlgmr.msra.gmra.mrb[8].mxu1 %v11507_v13 }
  0x47   : > { %9867 = vmatprep.mubr.msk.f32.mxu1 %vm11506_vm2, %v11507_v13  ;;  %10418 = vmatpush3.bf16.msra.mxu1 %v11738_v55 }
  0x48   : > { %10419 = vmatprep.subr.bf16.mxu1 %v11505_v11 }
  0x4b   : > { %10421 = vmatpush3.bf16.msra.mxu1 %v11744_v57 }
  0x4c   : > { %10425 = vmatprep.subr.bf16.mxu1 %v11505_v11 }
 0x109   : > { %v9842_v23 = vpop.f32.mrb[0].mxu1 }
 0x10a   : > { %v11710_v24 = vadd.f32 %v9842_v23, %v9319_v22  ;;  %v925_v25 = vpop.f32.mrb[1].mxu1 }
 0x10b   : > { %v926_v38 = vadd.f32 %v9319_v22, %v925_v25 }
 0x10d   : > { %v9845_v26 = vpop.f32.mrb[2].mxu1 }
 0x10e   : > { %v11712_v27 = vadd.f32 %v9845_v26, %v9319_v22  ;;  %v935_v28 = vpop.f32.mrb[3].mxu1  ;;  %v11802_v26 = vld [vmem:[%s13730_s7] ss:$0 sm:$0xff] }
 0x10f   : > { %v11714_v29 = vadd.f32 %v9319_v22, %v935_v28 }
 0x111   : > { %v9848_v30 = vpop.f32.mrb[4].mxu1 }
 0x112   : > { %v11716_v31 = vadd.f32 %v9848_v30, %v9319_v22  ;;  %v945_v32 = vpop.f32.mrb[5].mxu1 }
 0x113   : > { %v11718_v33 = vadd.f32 %v9319_v22, %v945_v32 }
 0x115   : > { %v9851_v34 = vpop.f32.mrb[6].mxu1 }
 0x116   : > { %v11720_v35 = vadd.f32 %v9851_v34, %v9319_v22  ;;  %v955_v36 = vpop.f32.mrb[7].mxu1 }
 0x117   : > { %v11722_v37 = vadd.f32 %v9319_v22, %v955_v36 }
 0x119   : > { %v1034_v39 = vpop.f32.mrb[8].mxu1 }
 0x11a   : > { %v1038_v40 = vadd.f32 %v1034_v39, %v926_v38  ;;  %v9858_v41 = vpop.f32.mrb[9].mxu1 }
 0x11c   : > { %10699 = vtanh.f32 %v1038_v40  ;;  %v9329_v43 = vmul.f32 -1.442695, %v1038_v40 }
 0x11e   : > { %10701 = vpow2.f32 %v9329_v43 }
 0x126   : > { %v10700_v42 = vpop.eup %10699 }
 0x127   : > { %1048 = vrot.lane.b32.xlu0 %v10700_v42, %s13686_s25  ;;  %s13691_s25 = smov 96  }
 0x128   : > { %v10702_v44 = vpop.eup %10701 }
 0x129   : > { %v1042_v45 = vadd.f32 1.0, %v10702_v44 }
 0x12b   : > { %10703 = vrcp.f32 %v1042_v45 }
 0x135   : > { %v10704_v46 = vpop.eup %10703 }
 0x136   : > { %v1046_v49 = vmul.f32 0.0, %v10704_v46 }
 0x199   : > { %v1049_v47 = vpop.permute.xlu0 %1048 }
 0x19a   : > { %v1051_v48 = vmul.f32 %v10704_v46, %v1049_v47  ;;  %v758_v47 = vld [vmem:[%s13731_s8 + $0x8] sm:$0xff] }
 0x19c   : > { %1053 = vrot.lane.b32.xlu0 %v1051_v48, %s13688_s2 }
 0x20e   : > { %v1054_v50 = vpop.permute.xlu0 %1053 }
 0x20f   : > { %v11726_v51 = vadd.f32 %v1054_v50, %v1046_v49 }
 0x211   : > { %10705 = vtanh.f32 %v11726_v51 }
 0x21b   : > { %v10706_v58 = vpop.eup %10705 }
 0x21c   : > { %1059 = vrot.lane.b32.xlu1 %v10706_v58, %s13725_s27 }
 0x28e   : > { %v1060_v59 = vpop.permute.xlu1 %1059 }
 0x28f   : > { %v1062_v60 = vmul.f32 %v10704_v46, %v1060_v59  ;;  %v757_v46 = vld [vmem:[%s13731_s8] sm:$0xff] }
 0x290   : > { %v11816_v48 = vpack.c.bf16 %v758_v47, %v757_v46 }
 0x291   : > { %1064 = vrot.lane.b32.xlu1 %v1062_v60, %s13691_s25  ;;  %s13699_s25 = smov 120  }
 0x303   : > { %v11751_v61 = vpop.permute.xlu1 %1064 }
 0x304   : > { %v1067_v62 = vsel %vm964_vm3, %v11751_v61, 0.0 }
 0x305   : > { %9868 = vmatmul.mubr.msk.f32.vlgmr.msra.gmra.mrb[10].mxu1 %vm1068_vm4, %v1067_v62 }
 0x306   : > { %9883 = vmatprep.mubr.msk.f32.mxu1 %vm11506_vm2, %v11507_v13  ;;  %10427 = vmatpush3.bf16.msra.mxu1 %v11816_v48 }
 0x307   : > { %10428 = vmatprep.subr.bf16.mxu1 %v11505_v11 }
 0x3d8   : > { %v1138_v0 = vpop.f32.mrb[10].mxu1 }
 0x3d9   : > { %v1139_v1 = vadd.f32 %v11761_v63, %v1138_v0  ;;  %v9869_v2 = vpop.f32.mrb[11].mxu1 }
 0x3db   : > { %10707 = vtanh.f32 %v1139_v1  ;;  %v9331_v4 = vmul.f32 -1.442695, %v1139_v1 }
 0x3dd   : > { %10709 = vpow2.f32 %v9331_v4 }
 0x3e5   : > { %v10708_v3 = vpop.eup %10707 }
 0x3e6   : > { %1151 = vrot.lane.b32.xlu0 %v10708_v3, %s13727_s29 }
 0x3e7   : > { %v10710_v5 = vpop.eup %10709 }
 0x3e8   : > { %v1145_v6 = vadd.f32 1.0, %v10710_v5 }
 0x3ea   : > { %10711 = vrcp.f32 %v1145_v6 }
 0x3f4   : > { %v10712_v7 = vpop.eup %10711 }
 0x3f5   : > { %v1149_v10 = vmul.f32 0.0, %v10712_v7 }
 0x458   : > { %v1152_v8 = vpop.permute.xlu0 %1151 }
 0x459   : > { %v1154_v9 = vmul.f32 %v10712_v7, %v1152_v8 }
 0x45b   : > { %1156 = vrot.lane.b32.xlu1 %v1154_v9, %s13725_s27 }
 0x4cd   : > { %v1157_v14 = vpop.permute.xlu1 %1156 }
 0x4ce   : > { %v11766_v15 = vadd.f32 %v1157_v14, %v1149_v10 }
 0x4d0   : > { %10713 = vtanh.f32 %v11766_v15 }
 0x4da   : > { %v10714_v19 = vpop.eup %10713 }
 0x4db   : > { %1162 = vrot.lane.b32.xlu0 %v10714_v19, %s13725_s27 }
 0x54d   : > { %v1163_v21 = vpop.permute.xlu0 %1162 }
 0x54e   : > { %v11787_v22 = vmul.f32 %v10712_v7, %v1163_v21 }
 0x550   : > { %1167 = vrot.lane.b32.xlu1 %v11787_v22, %s13729_s3 }
 0x5c2   : > { %v1168_v23 = vpop.permute.xlu1 %1167 }
 0x5c3   : > { %v1170_v25 = vsel %vm964_vm3, %v1168_v23, 0.0 }
 0x5c4   : > { %9877 = vmatmul.mubr.msk.f32.vlgmr.msra.gmra.mrb[0].mxu0 %vm1171_vm5, %v1170_v25 }
 0x5c5   : > { %10433 = vmatpush3.bf16.msra.mxu0 %v11738_v55  ;;  %9901 = vmatprep.mubr.msk.f32.mxu0 %vm11506_vm2, %v11507_v13 }
 0x5c6   : > { %10434 = vmatprep.subr.bf16.mxu0 %v11505_v11 }
 0x5c9   : > { %10436 = vmatpush3.bf16.msra.mxu0 %v11744_v57 }
 0x5ca   : > { %10440 = vmatprep.subr.bf16.mxu0 %v11505_v11 }
 0x697   : > { %v1241_v28 = vpop.f32.mrb[0].mxu0 }
 0x698   : > { %v1242_v30 = vadd.f32 %v11802_v26, %v1241_v28  ;;  %v9878_v32 = vpop.f32.mrb[1].mxu0 }
 0x69a   : > { %10715 = vtanh.f32 %v1242_v30  ;;  %v9333_v36 = vmul.f32 -1.442695, %v1242_v30 }
 0x69c   : > { %10717 = vpow2.f32 %v9333_v36 }
 0x6a4   : > { %v10716_v34 = vpop.eup %10715 }
 0x6a5   : > { %1254 = vrot.lane.b32.xlu0 %v10716_v34, %s13694_s24  ;;  %s9311_s24 = sshll.u32 %s11677_s26, 4 }
 0x6a6   : > { %v10718_v38 = vpop.eup %10717  ;;  %s12305_s2 = scalar_lea.vmem [#allocation3], %s9311_s24 }
 0x6a7   : > { %v1248_v39 = vadd.f32 1.0, %v10718_v38  ;;  %v11863_v38 = vld [vmem:[%s13732_s9] ss:$0 sm:$0xff] }
 0x6a9   : > { %10719 = vrcp.f32 %v1248_v39 }
 0x6b3   : > { %v10720_v40 = vpop.eup %10719 }
 0x6b4   : > { %v1252_v43 = vmul.f32 0.0, %v10720_v40 }
 0x717   : > { %v1255_v41 = vpop.permute.xlu0 %1254 }
 0x718   : > { %v1257_v42 = vmul.f32 %v10720_v40, %v1255_v41 }
 0x71a   : > { %1259 = vrot.lane.b32.xlu1 %v1257_v42, %s13703_s23 }
 0x78c   : > { %v1260_v44 = vpop.permute.xlu1 %1259 }
 0x78d   : > { %v11807_v45 = vadd.f32 %v1260_v44, %v1252_v43 }
 0x78f   : > { %10721 = vtanh.f32 %v11807_v45 }
 0x799   : > { %v10722_v49 = vpop.eup %10721 }
 0x79a   : > { %1265 = vrot.lane.b32.xlu0 %v10722_v49, %s13703_s23 }
 0x80c   : > { %v1266_v50 = vpop.permute.xlu0 %1265 }
 0x80d   : > { %v11821_v52 = vmul.f32 %v10720_v40, %v1266_v50 }
 0x80f   : > { %1270 = vrot.lane.b32.xlu1 %v11821_v52, %s13697_s28 }
 0x881   : > { %v1271_v53 = vpop.permute.xlu1 %1270 }
 0x882   : > { %v1274_v54 = vsel %vm1273_vm6, %v1271_v53, 0.0 }
 0x883   : > { %9884 = vmatmul.mubr.msk.f32.vlgmr.msra.gmra.mrb[12].mxu1 %vm964_vm3, %v1274_v54 }
 0x884   : > { %10430 = vmatpush3.bf16.msra.mxu1 %v11687_v12  ;;  %9890 = vmatprep.mubr.msk.f32.mxu1 %vm11506_vm2, %v11507_v13 }
 0x885   : > { %10437 = vmatprep.subr.bf16.mxu1 %v11505_v11 }
 0x887   : > { %9891 = vmatmul.mubr.msk.f32.vlgmr.msra.gmra.mrb[14].mxu1 %vm964_vm3, %v11751_v61 }
 0x888   : > { %10439 = vmatpush3.bf16.msra.mxu1 %v11775_v18  ;;  %9910 = vmatprep.mubr.msk.f32.mxu1 %vm11506_vm2, %v11507_v13 }
 0x889   : > { %9908 = vmatprep.subr.mxu1 %v11507_v13 }
 0x88c   : > { %9909 = vmatpush3.msra.mxu1 %v11783_v20 }
 0x88d   : > { %10443 = vmatprep.subr.bf16.mxu1 %v11505_v11 }
 0x956   : > { %v1344_v56 = vpop.f32.mrb[12].mxu1 }
 0x957   : > { %v9885_v58 = vpop.f32.mrb[13].mxu1  ;;  %v1345_v41 = vadd.f32 %v11863_v38, %v1344_v56 }
 0x959   : > { %v9335_v49 = vmul.f32 -1.442695, %v1345_v41 }
 0x95a   : > { %v1440_v59 = vpop.f32.mrb[14].mxu1 }
 0x95b   : > { %v1444_v60 = vadd.f32 %v1440_v59, %v11710_v24  ;;  %v9892_v62 = vpop.f32.mrb[15].mxu1 }
 0x95d   : > { %10723 = vtanh.f32 %v1444_v60  ;;  %v9337_v61 = vmul.f32 -1.442695, %v1444_v60 }
 0x95f   : > { %10725 = vpow2.f32 %v9337_v61 }
 0x967   : > { %v10724_v0 = vpop.eup %10723 }
 0x968   : > { %1454 = vrot.lane.b32.xlu0 %v10724_v0, %s13727_s29 }
 0x969   : > { %v10726_v1 = vpop.eup %10725 }
 0x96a   : > { %v1448_v2 = vadd.f32 1.0, %v10726_v1 }
 0x96c   : > { %10727 = vrcp.f32 %v1448_v2 }
 0x976   : > { %v10728_v3 = vpop.eup %10727 }
 0x977   : > { %v1452_v6 = vmul.f32 %v10728_v3, %v11726_v51 }
 0x9da   : > { %v1455_v4 = vpop.permute.xlu0 %1454 }
 0x9db   : > { %v1457_v5 = vmul.f32 %v10728_v3, %v1455_v4 }
 0x9dd   : > { %1459 = vrot.lane.b32.xlu1 %v1457_v5, %s13725_s27 }
 0xa4f   : > { %v1460_v7 = vpop.permute.xlu1 %1459 }
 0xa50   : > { %v11843_v8 = vadd.f32 %v1460_v7, %v1452_v6 }
 0xa52   : > { %10729 = vtanh.f32 %v11843_v8 }
 0xa5c   : > { %v10730_v24 = vpop.eup %10729 }
 0xa5d   : > { %1465 = vrot.lane.b32.xlu0 %v10730_v24, %s13725_s27 }
 0xa61   : > { %1473 = vrot.lane.b32.xlu0 %v11787_v22, %s13697_s28 }
 0xacf   : > { %v1466_v9 = vpop.permute.xlu0 %1465 }
 0xad0   : > { %v1468_v10 = vmul.f32 %v10728_v3, %v1466_v9 }
 0xad2   : > { %1470 = vrot.lane.b32.xlu1 %v1468_v10, %s13729_s3 }
 0xad3   : > { %v1474_v14 = vpop.permute.xlu0 %1473 }
 0xb44   : > { %v1471_v16 = vpop.permute.xlu1 %1470 }
 0xb45   : > { %v1476_v17 = vsel %vm964_vm3, %v1471_v16, %v1474_v14 }
 0xb46   : > { %9902 = vmatmul.mubr.msk.f32.vlgmr.msra.gmra.mrb[2].mxu0 %vm1068_vm4, %v1476_v17 }
 0xb47   : > { %10442 = vmatpush3.bf16.msra.mxu0 %v11816_v48  ;;  %9917 = vmatprep.mubr.msk.f32.mxu0 %vm11506_vm2, %v11507_v13 }
 0xb48   : > { %10446 = vmatprep.subr.bf16.mxu0 %v11505_v11 }
 0xc19   : > { %v1546_v51 = vpop.f32.mrb[2].mxu0 }
 0xc1a   : > { %v1547_v19 = vadd.f32 %v11761_v63, %v1546_v51  ;;  %v9903_v21 = vpop.f32.mrb[3].mxu0 }
 0xc1c   : > { %10731 = vtanh.f32 %v1547_v19  ;;  %v9339_v23 = vmul.f32 -1.442695, %v1547_v19 }
 0xc1e   : > { %10733 = vpow2.f32 %v9339_v23 }
 0xc26   : > { %v10732_v22 = vpop.eup %10731 }
 0xc27   : > { %1559 = vrot.lane.b32.xlu1 %v10732_v22, %s13727_s29 }
 0xc28   : > { %v10734_v25 = vpop.eup %10733 }
 0xc29   : > { %v1553_v28 = vadd.f32 1.0, %v10734_v25 }
 0xc2b   : > { %10735 = vrcp.f32 %v1553_v28 }
 0xc35   : > { %v10736_v30 = vpop.eup %10735 }
 0xc36   : > { %v1557_v36 = vmul.f32 %v10736_v30, %v11766_v15 }
 0xc99   : > { %v1560_v32 = vpop.permute.xlu1 %1559 }
 0xc9a   : > { %v1562_v34 = vmul.f32 %v10736_v30, %v1560_v32 }
 0xc9c   : > { %1564 = vrot.lane.b32.xlu0 %v1562_v34, %s13725_s27 }
 0xd0e   : > { %v1565_v39 = vpop.permute.xlu0 %1564 }
 0xd0f   : > { %v11865_v40 = vadd.f32 %v1565_v39, %v1557_v36 }
 0xd11   : > { %10737 = vtanh.f32 %v11865_v40 }
 0xd12   : > { %10739 = vtanh.f32 %v1345_v41 }
 0xd13   : > { %10741 = vpow2.f32 %v9335_v49 }
 0xd1b   : > { %v10738_v42 = vpop.eup %10737 }
 0xd1c   : > { %1570 = vrot.lane.b32.xlu1 %v10738_v42, %s13725_s27  ;;  %v10740_v43 = vpop.eup %10739 }
 0xd1d   : > { %v10742_v50 = vpop.eup %10741 }
 0xd1e   : > { %v1351_v53 = vadd.f32 1.0, %v10742_v50 }
 0xd20   : > { %1357 = vrot.lane.b32.xlu1 %v10740_v43, %s13733_s1 }
 0xd8e   : > { %v1571_v15 = vpop.permute.xlu1 %1570 }
 0xd8f   : > { %v11871_v44 = vmul.f32 %v10736_v30, %v1571_v15 }
 0xd91   : > { %1575 = vrot.lane.b32.xlu0 %v11871_v44, %s13729_s3 }
 0xd92   : > { %v1358_v0 = vpop.permute.xlu1 %1357 }
 0xe03   : > { %v1576_v46 = vpop.permute.xlu0 %1575 }
 0xe04   : > { %v1578_v47 = vsel %vm964_vm3, %v1576_v46, %v11821_v52 }
 0xe05   : > { %9911 = vmatmul.mubr.msk.f32.vlgmr.msra.gmra.mrb[16].mxu1 %vm1171_vm5, %v1578_v47 }
 0xe06   : > { %10445 = vmatpush3.bf16.msra.mxu1 %v11687_v12  ;;  %9924 = vmatprep.mubr.msk.f32.mxu1 %vm11506_vm2, %v11507_v13 }
 0xe07   : > { %10452 = vmatprep.subr.bf16.mxu1 %v11505_v11 }
 0xe09   : > { %9925 = vmatmul.mubr.msk.f32.vlgmr.msra.gmra.mrb[18].mxu1 %vm964_vm3, %v1471_v16 }
 0xe0a   : > { %10454 = vmatpush3.bf16.msra.mxu1 %v11775_v18  ;;  %9944 = vmatprep.mubr.msk.f32.mxu1 %vm11506_vm2, %v11507_v13 }
 0xe0b   : > { %9942 = vmatprep.subr.mxu1 %v11507_v13 }
 0xe0e   : > { %9943 = vmatpush3.msra.mxu1 %v11783_v20 }
 0xe0f   : > { %10455 = vmatprep.subr.bf16.mxu1 %v11505_v11 }
 0xed8   : > { %v1648_v52 = vpop.f32.mrb[16].mxu1 }
 0xed9   : > { %v1649_v54 = vadd.f32 %v11802_v26, %v1648_v52  ;;  %v9912_v56 = vpop.f32.mrb[17].mxu1 }
 0xedb   : > { %10743 = vtanh.f32 %v1649_v54  ;;  %v9341_v3 = vmul.f32 -1.442695, %v1649_v54 }
 0xedc   : > { %v1850_v58 = vpop.f32.mrb[18].mxu1  ;;  %10745 = vrcp.f32 %v1351_v53 }
 0xedd   : > { %v1854_v59 = vadd.f32 %v1850_v58, %v11714_v29  ;;  %v9926_v60 = vpop.f32.mrb[19].mxu1 }
 0xedf   : > { %10747 = vtanh.f32 %v1854_v59  ;;  %v9345_v4 = vmul.f32 -1.442695, %v1854_v59 }
 0xee0   : > { %10749 = vpow2.f32 %v9341_v3 }
 0xee1   : > { %10751 = vpow2.f32 %v9345_v4 }
 0xee5   : > { %v10744_v62 = vpop.eup %10743 }
 0xee6   : > { %1661 = vrot.lane.b32.xlu0 %v10744_v62, %s13733_s1  ;;  %v10746_v61 = vpop.eup %10745 }
 0xee7   : > { %v1360_v1 = vmul.f32 %v10746_v61, %v1358_v0  ;;  %v1355_v14 = vmul.f32 0.0, %v10746_v61 }
 0xee9   : > { %v10748_v2 = vpop.eup %10747 }
 0xeea   : > { %1362 = vrot.lane.b32.xlu0 %v1360_v1, %s13703_s23  ;;  %1864 = vrot.lane.b32.xlu1 %v10748_v2, %s13727_s29  ;;  %v10750_v5 = vpop.eup %10749 }
 0xeeb   : > { %v1655_v6 = vadd.f32 1.0, %v10750_v5  ;;  %v10752_v29 = vpop.eup %10751 }
 0xeec   : > { %v1858_v7 = vadd.f32 1.0, %v10752_v29 }
 0xeed   : > { %10753 = vrcp.f32 %v1655_v6 }
 0xeee   : > { %10755 = vrcp.f32 %v1858_v7 }
 0xef7   : > { %v10754_v24 = vpop.eup %10753 }
 0xef8   : > { %v10756_v16 = vpop.eup %10755  ;;  %v1659_v23 = vmul.f32 %v10754_v24, %v11807_v45 }
 0xef9   : > { %v1862_v30 = vmul.f32 %v10756_v16, %v11843_v8 }
 0xf58   : > { %v1662_v9 = vpop.permute.xlu0 %1661 }
 0xf59   : > { %v1664_v10 = vmul.f32 %v10754_v24, %v1662_v9 }
 0xf5b   : > { %1666 = vrot.lane.b32.xlu1 %v1664_v10, %s13703_s23 }
 0xf5c   : > { %v1363_v17 = vpop.permute.xlu0 %1362  ;;  %v1865_v51 = vpop.permute.xlu1 %1864 }
 0xf5d   : > { %v11895_v19 = vadd.f32 %v1363_v17, %v1355_v14  ;;  %v1867_v21 = vmul.f32 %v10756_v16, %v1865_v51 }
 0xf5f   : > { %10757 = vtanh.f32 %v11895_v19  ;;  %1869 = vrot.lane.b32.xlu0 %v1867_v21, %s13725_s27 }
 0xf69   : > { %v10758_v22 = vpop.eup %10757 }
 0xf6a   : > { %1368 = vrot.lane.b32.xlu1 %v10758_v22, %s13703_s23 }
 0xfcd   : > { %v1667_v25 = vpop.permute.xlu1 %1666 }
 0xfce   : > { %v11901_v28 = vadd.f32 %v1667_v25, %v1659_v23 }
 0xfd0   : > { %10759 = vtanh.f32 %v11901_v28 }
 0xfd1   : > { %v1870_v32 = vpop.permute.xlu0 %1869 }
 0xfd2   : > { %v11905_v34 = vadd.f32 %v1870_v32, %v1862_v30 }
 0xfd4   : > { %10761 = vtanh.f32 %v11905_v34 }
 0xfda   : > { %v10760_v36 = vpop.eup %10759 }
 0xfdb   : > { %1672 = vrot.lane.b32.xlu0 %v10760_v36, %s13703_s23 }
 0xfdc   : > { %v1369_v41 = vpop.permute.xlu1 %1368 }
 0xfdd   : > { %v1371_v45 = vmul.f32 %v10746_v61, %v1369_v41 }
 0xfde   : > { %v10762_v39 = vpop.eup %10761 }
 0xfdf   : > { %1875 = vrot.lane.b32.xlu1 %v10762_v39, %s13725_s27 }
 0xfe3   : > { %1681 = vrot.lane.b32.xlu1 %v1371_v45, %s13699_s25 }
 0xfe7   : > { %1883 = vrot.lane.b32.xlu1 %v11871_v44, %s13697_s28 }
0x104d   : > { %v1673_v8 = vpop.permute.xlu0 %1672 }
0x104e   : > { %v11913_v42 = vmul.f32 %v10754_v24, %v1673_v8 }
0x1050   : > { %1677 = vrot.lane.b32.xlu0 %v11913_v42, %s13697_s28 }
0x1051   : > { %v1876_v43 = vpop.permute.xlu1 %1875 }
0x1052   : > { %v1878_v15 = vmul.f32 %v10756_v16, %v1876_v43 }
0x1054   : > { %1880 = vrot.lane.b32.xlu0 %v1878_v15, %s13729_s3 }
0x1055   : > { %v1682_v46 = vpop.permute.xlu1 %1681 }
0x1059   : > { %v1884_v50 = vpop.permute.xlu1 %1883 }
0x10c2   : > { %v1678_v47 = vpop.permute.xlu0 %1677 }
0x10c3   : > { %v1684_v49 = vsel %vm1273_vm6, %v1678_v47, %v1682_v46 }
0x10c4   : > { %9918 = vmatmul.mubr.msk.f32.vlgmr.msra.gmra.mrb[4].mxu0 %vm964_vm3, %v1684_v49 }
0x10c5   : > { %10448 = vmatpush3.bf16.msra.mxu0 %v11738_v55  ;;  %9935 = vmatprep.mubr.msk.f32.mxu0 %vm11506_vm2, %v11507_v13 }
0x10c6   : > { %10449 = vmatprep.subr.bf16.mxu0 %v11505_v11  ;;  %v1881_v44 = vpop.permute.xlu0 %1880 }
0x10c7   : > { %v1886_v52 = vsel %vm964_vm3, %v1881_v44, %v1884_v50 }
0x10c9   : > { %10451 = vmatpush3.bf16.msra.mxu0 %v11744_v57 }
0x10ca   : > { %10458 = vmatprep.subr.bf16.mxu0 %v11505_v11 }
0x10cc   : > { %9936 = vmatmul.mubr.msk.f32.vlgmr.msra.gmra.mrb[6].mxu0 %vm1068_vm4, %v1886_v52 }
0x10cd   : > { %10460 = vmatpush3.bf16.msra.mxu0 %v11687_v12  ;;  %9958 = vmatprep.mubr.msk.f32.mxu0 %vm11506_vm2, %v11507_v13 }
0x10ce   : > { %10467 = vmatprep.subr.bf16.mxu0 %v11505_v11 }
0x10d0   : > { %9959 = vmatmul.mubr.msk.f32.vlgmr.msra.gmra.mrb[8].mxu0 %vm964_vm3, %v1881_v44 }
0x10d1   : > { %10469 = vmatpush3.bf16.msra.mxu0 %v11775_v18  ;;  %9978 = vmatprep.mubr.msk.f32.mxu0 %vm11506_vm2, %v11507_v13 }
0x10d2   : > { %9976 = vmatprep.subr.mxu0 %v11507_v13 }
0x10d5   : > { %9977 = vmatpush3.msra.mxu0 %v11783_v20 }
0x10d6   : > { %10470 = vmatprep.subr.bf16.mxu0 %v11505_v11 }
0x1197   : > { %v1754_v53 = vpop.f32.mrb[4].mxu0 }
0x1198   : > { %v9919_v54 = vpop.f32.mrb[5].mxu0 }
0x119f   : > { %v1956_v56 = vpop.f32.mrb[6].mxu0 }
0x11a0   : > { %v1957_v58 = vadd.f32 %v11761_v63, %v1956_v56  ;;  %v9937_v59 = vpop.f32.mrb[7].mxu0 }
0x11a2   : > { %10763 = vtanh.f32 %v1957_v58  ;;  %v9347_v1 = vmul.f32 -1.442695, %v1957_v58 }
0x11a3   : > { %v2260_v60 = vpop.f32.mrb[8].mxu0 }
0x11a4   : > { %v2264_v62 = vadd.f32 %v2260_v60, %v11712_v27  ;;  %v9960_v0 = vpop.f32.mrb[9].mxu0  ;;  %10765 = vpow2.f32 %v9347_v1  ;;  %v1755_v27 = vadd.f32 %v11863_v38, %v1754_v53 }
0x11a6   : > { %v9343_v21 = vmul.f32 -1.442695, %v1755_v27  ;;  %v9353_v22 = vmul.f32 -1.442695, %v2264_v62 }
0x11ac   : > { %v10764_v61 = vpop.eup %10763 }
0x11ad   : > { %1969 = vrot.lane.b32.xlu0 %v10764_v61, %s13727_s29 }
0x11ae   : > { %v10766_v2 = vpop.eup %10765 }
0x11af   : > { %v1963_v3 = vadd.f32 1.0, %v10766_v2 }
0x11b1   : > { %10767 = vrcp.f32 %v1963_v3 }
0x11bb   : > { %v10768_v4 = vpop.eup %10767 }
0x11bc   : > { %v1967_v29 = vmul.f32 %v10768_v4, %v11865_v40 }
0x121f   : > { %v1970_v5 = vpop.permute.xlu0 %1969 }
0x1220   : > { %v1972_v6 = vmul.f32 %v10768_v4, %v1970_v5 }
0x1222   : > { %1974 = vrot.lane.b32.xlu1 %v1972_v6, %s13725_s27 }
0x1294   : > { %v1975_v7 = vpop.permute.xlu1 %1974 }
0x1295   : > { %v11944_v24 = vadd.f32 %v1975_v7, %v1967_v29 }
0x1297   : > { %10769 = vtanh.f32 %v11944_v24 }
0x1298   : > { %10771 = vtanh.f32 %v1755_v27 }
0x1299   : > { %10773 = vtanh.f32 %v2264_v62 }
0x129a   : > { %10775 = vpow2.f32 %v9343_v21 }
0x129b   : > { %10777 = vpow2.f32 %v9353_v22 }
0x12a1   : > { %v10770_v9 = vpop.eup %10769 }
0x12a2   : > { %1980 = vrot.lane.b32.xlu0 %v10770_v9, %s13725_s27  ;;  %v10772_v10 = vpop.eup %10771 }
0x12a3   : > { %v10774_v14 = vpop.eup %10773 }
0x12a4   : > { %v10776_v23 = vpop.eup %10775 }
0x12a5   : > { %v1761_v30 = vadd.f32 1.0, %v10776_v23  ;;  %v10778_v39 = vpop.eup %10777 }
0x12a6   : > { %1767 = vrot.lane.b32.xlu0 %v10772_v10, %s13733_s1  ;;  %v2268_v41 = vadd.f32 1.0, %v10778_v39 }
0x12aa   : > { %2274 = vrot.lane.b32.xlu0 %v10774_v14, %s13727_s29 }
0x1314   : > { %v1981_v16 = vpop.permute.xlu0 %1980 }
0x1315   : > { %v1983_v40 = vmul.f32 %v10768_v4, %v1981_v16 }
0x1317   : > { %1985 = vrot.lane.b32.xlu1 %v1983_v40, %s13729_s3 }
0x1318   : > { %v1768_v45 = vpop.permute.xlu0 %1767 }
0x131c   : > { %v2275_v15 = vpop.permute.xlu0 %2274 }
0x1389   : > { %v1986_v17 = vpop.permute.xlu1 %1985 }
0x138a   : > { %v1988_v51 = vsel %vm964_vm3, %v1986_v17, %v11913_v42 }
0x138b   : > { %9945 = vmatmul.mubr.msk.f32.vlgmr.msra.gmra.mrb[20].mxu1 %vm1171_vm5, %v1988_v51 }
0x138c   : > { %10457 = vmatpush3.bf16.msra.mxu1 %v11816_v48  ;;  %9951 = vmatprep.mubr.msk.f32.mxu1 %vm11506_vm2, %v11507_v13 }
0x138d   : > { %10461 = vmatprep.subr.bf16.mxu1 %v11505_v11 }
0x145e   : > { %v2058_v25 = vpop.f32.mrb[20].mxu1 }
0x145f   : > { %v2059_v32 = vadd.f32 %v11802_v26, %v2058_v25  ;;  %v9946_v36 = vpop.f32.mrb[21].mxu1 }
0x1461   : > { %10779 = vtanh.f32 %v2059_v32  ;;  %v9349_v49 = vmul.f32 -1.442695, %v2059_v32 }
0x1462   : > { %10781 = vrcp.f32 %v1761_v30 }
0x1463   : > { %10783 = vrcp.f32 %v2268_v41 }
0x1464   : > { %10785 = vpow2.f32 %v9349_v49 }
0x146b   : > { %v10780_v8 = vpop.eup %10779 }
0x146c   : > { %2071 = vrot.lane.b32.xlu1 %v10780_v8, %s13733_s1  ;;  %v10782_v42 = vpop.eup %10781 }
0x146d   : > { %v1770_v43 = vmul.f32 %v10782_v42, %v1768_v45  ;;  %v10784_v46 = vpop.eup %10783  ;;  %v1765_v56 = vmul.f32 %v10782_v42, %v11895_v19 }
0x146e   : > { %v2277_v47 = vmul.f32 %v10784_v46, %v2275_v15  ;;  %v10786_v44 = vpop.eup %10785  ;;  %v2272_v60 = vmul.f32 %v10784_v46, %v11905_v34 }
0x146f   : > { %v2065_v50 = vadd.f32 1.0, %v10786_v44 }
0x1470   : > { %1772 = vrot.lane.b32.xlu1 %v1770_v43, %s13703_s23 }
0x1471   : > { %10787 = vrcp.f32 %v2065_v50 }
0x1474   : > { %2279 = vrot.lane.b32.xlu1 %v2277_v47, %s13725_s27 }
0x147b   : > { %v10788_v52 = vpop.eup %10787 }
0x147c   : > { %v2069_v19 = vmul.f32 %v10788_v52, %v11901_v28 }
0x14de   : > { %v2072_v53 = vpop.permute.xlu1 %2071 }
0x14df   : > { %v2074_v54 = vmul.f32 %v10788_v52, %v2072_v53 }
0x14e1   : > { %2076 = vrot.lane.b32.xlu0 %v2074_v54, %s13703_s23 }
0x14e2   : > { %v1773_v58 = vpop.permute.xlu1 %1772 }
0x14e3   : > { %v11965_v59 = vadd.f32 %v1773_v58, %v1765_v56 }
0x14e5   : > { %10789 = vtanh.f32 %v11965_v59 }
0x14e6   : > { %v2280_v62 = vpop.permute.xlu1 %2279 }
0x14e7   : > { %v11969_v0 = vadd.f32 %v2280_v62, %v2272_v60 }
0x14e9   : > { %10791 = vtanh.f32 %v11969_v0 }
0x14ef   : > { %v10790_v61 = vpop.eup %10789 }
0x14f0   : > { %1778 = vrot.lane.b32.xlu0 %v10790_v61, %s13703_s23 }
0x14f3   : > { %v10792_v1 = vpop.eup %10791 }
0x14f4   : > { %2285 = vrot.lane.b32.xlu0 %v10792_v1, %s13725_s27 }
0x1553   : > { %v2077_v2 = vpop.permute.xlu0 %2076 }
0x1554   : > { %v11975_v3 = vadd.f32 %v2077_v2, %v2069_v19 }
0x1556   : > { %10793 = vtanh.f32 %v11975_v3 }
0x1560   : > { %v10794_v4 = vpop.eup %10793 }
0x1561   : > { %2082 = vrot.lane.b32.xlu1 %v10794_v4, %s13703_s23 }
0x1562   : > { %v1779_v34 = vpop.permute.xlu0 %1778 }
0x1563   : > { %v1781_v5 = vmul.f32 %v10782_v42, %v1779_v34 }
0x1565   : > { %2091 = vrot.lane.b32.xlu0 %v1781_v5, %s13699_s25 }
0x1566   : > { %v2286_v7 = vpop.permute.xlu0 %2285 }
0x1567   : > { %v2288_v28 = vmul.f32 %v10784_v46, %v2286_v7 }
0x1569   : > { %2293 = vrot.lane.b32.xlu0 %v1983_v40, %s13697_s28 }
0x15d3   : > { %v2083_v6 = vpop.permute.xlu1 %2082 }
0x15d4   : > { %v11981_v29 = vmul.f32 %v10788_v52, %v2083_v6 }
0x15d6   : > { %2087 = vrot.lane.b32.xlu1 %v11981_v29, %s13697_s28 }
0x15d7   : > { %v2092_v27 = vpop.permute.xlu0 %2091 }
0x15da   : > { %2290 = vrot.lane.b32.xlu1 %v2288_v28, %s13729_s3 }
0x15db   : > { %v2294_v16 = vpop.permute.xlu0 %2293 }
0x1648   : > { %v2088_v9 = vpop.permute.xlu1 %2087 }
0x1649   : > { %v2094_v10 = vsel %vm1273_vm6, %v2088_v9, %v2092_v27 }
0x164a   : > { %9952 = vmatmul.mubr.msk.f32.vlgmr.msra.gmra.mrb[22].mxu1 %vm964_vm3, %v2094_v10 }
0x164b   : > { %10463 = vmatpush3.bf16.msra.mxu1 %v11738_v55  ;;  %9969 = vmatprep.mubr.msk.f32.mxu1 %vm11506_vm2, %v11507_v13 }
0x164c   : > { %10464 = vmatprep.subr.bf16.mxu1 %v11505_v11  ;;  %v2291_v14 = vpop.permute.xlu1 %2290 }
0x164d   : > { %v2296_v40 = vsel %vm964_vm3, %v2291_v14, %v2294_v16 }
0x164f   : > { %10466 = vmatpush3.bf16.msra.mxu1 %v11744_v57 }
0x1650   : > { %10473 = vmatprep.subr.bf16.mxu1 %v11505_v11 }
0x1652   : > { %9970 = vmatmul.mubr.msk.f32.vlgmr.msra.gmra.mrb[24].mxu1 %vm1068_vm4, %v2296_v40 }
0x1653   : > { %10475 = vmatpush3.bf16.msra.mxu1 %v11687_v12  ;;  %9992 = vmatprep.mubr.msk.f32.mxu1 %vm11506_vm2, %v11507_v13 }
0x1654   : > { %10482 = vmatprep.subr.bf16.mxu1 %v11505_v11 }
0x1656   : > { %9993 = vmatmul.mubr.msk.f32.vlgmr.msra.gmra.mrb[26].mxu1 %vm964_vm3, %v2291_v14 }
0x1657   : > { %10484 = vmatpush3.bf16.msra.mxu1 %v11775_v18  ;;  %10012 = vmatprep.mubr.msk.f32.mxu1 %vm11506_vm2, %v11507_v13 }
0x1658   : > { %10010 = vmatprep.subr.mxu1 %v11507_v13 }
0x165b   : > { %10011 = vmatpush3.msra.mxu1 %v11783_v20 }
0x165c   : > { %10485 = vmatprep.subr.bf16.mxu1 %v11505_v11 }
0x171d   : > { %v2164_v17 = vpop.f32.mrb[22].mxu1 }
0x171e   : > { %v9953_v51 = vpop.f32.mrb[23].mxu1 }
0x1725   : > { %v2366_v21 = vpop.f32.mrb[24].mxu1 }
0x1726   : > { %v2367_v22 = vadd.f32 %v11761_v63, %v2366_v21  ;;  %v9971_v23 = vpop.f32.mrb[25].mxu1 }
0x1728   : > { %10795 = vtanh.f32 %v2367_v22  ;;  %v9355_v39 = vmul.f32 -1.442695, %v2367_v22 }
0x1729   : > { %v2670_v25 = vpop.f32.mrb[26].mxu1 }
0x172a   : > { %v2674_v30 = vadd.f32 %v2670_v25, %v11718_v33  ;;  %v9994_v32 = vpop.f32.mrb[27].mxu1  ;;  %10797 = vpow2.f32 %v9355_v39  ;;  %v2165_v33 = vadd.f32 %v11863_v38, %v2164_v17 }
0x172c   : > { %v9351_v56 = vmul.f32 -1.442695, %v2165_v33  ;;  %v9361_v58 = vmul.f32 -1.442695, %v2674_v30 }
0x1732   : > { %v10796_v36 = vpop.eup %10795 }
0x1733   : > { %2379 = vrot.lane.b32.xlu1 %v10796_v36, %s13727_s29 }
0x1734   : > { %v10798_v41 = vpop.eup %10797 }
0x1735   : > { %v2373_v45 = vadd.f32 1.0, %v10798_v41 }
0x1737   : > { %10799 = vrcp.f32 %v2373_v45 }
0x1741   : > { %v10800_v8 = vpop.eup %10799 }
0x1742   : > { %v2377_v15 = vmul.f32 %v10800_v8, %v11944_v24 }
0x17a5   : > { %v2380_v42 = vpop.permute.xlu1 %2379 }
0x17a6   : > { %v2382_v43 = vmul.f32 %v10800_v8, %v2380_v42 }
0x17a8   : > { %2384 = vrot.lane.b32.xlu0 %v2382_v43, %s13725_s27 }
0x181a   : > { %v2385_v46 = vpop.permute.xlu0 %2384 }
0x181b   : > { %v12012_v47 = vadd.f32 %v2385_v46, %v2377_v15 }
0x181d   : > { %10801 = vtanh.f32 %v12012_v47 }
0x181e   : > { %10803 = vtanh.f32 %v2165_v33 }
0x181f   : > { %10805 = vtanh.f32 %v2674_v30 }
0x1820   : > { %10807 = vpow2.f32 %v9351_v56 }
0x1821   : > { %10809 = vpow2.f32 %v9361_v58 }
0x1827   : > { %v10802_v49 = vpop.eup %10801 }
0x1828   : > { %2390 = vrot.lane.b32.xlu1 %v10802_v49, %s13725_s27  ;;  %v10804_v44 = vpop.eup %10803 }
0x1829   : > { %v10806_v50 = vpop.eup %10805 }
0x182a   : > { %v10808_v60 = vpop.eup %10807 }
0x182b   : > { %v2171_v61 = vadd.f32 1.0, %v10808_v60  ;;  %v10810_v2 = vpop.eup %10809 }
0x182c   : > { %2177 = vrot.lane.b32.xlu1 %v10804_v44, %s13733_s1  ;;  %v2678_v4 = vadd.f32 1.0, %v10810_v2 }
0x1830   : > { %2684 = vrot.lane.b32.xlu1 %v10806_v50, %s13727_s29 }
0x189a   : > { %v2391_v52 = vpop.permute.xlu1 %2390 }
0x189b   : > { %v2393_v24 = vmul.f32 %v10800_v8, %v2391_v52 }
0x189d   : > { %2395 = vrot.lane.b32.xlu0 %v2393_v24, %s13729_s3 }
0x189e   : > { %v2178_v34 = vpop.permute.xlu1 %2177 }
0x18a2   : > { %v2685_v7 = vpop.permute.xlu1 %2684 }
0x190f   : > { %v2396_v53 = vpop.permute.xlu0 %2395 }
0x1910   : > { %v2398_v54 = vsel %vm964_vm3, %v2396_v53, %v11981_v29 }
0x1911   : > { %9979 = vmatmul.mubr.msk.f32.vlgmr.msra.gmra.mrb[10].mxu0 %vm1171_vm5, %v2398_v54 }
0x1912   : > { %10472 = vmatpush3.bf16.msra.mxu0 %v11816_v48  ;;  %9985 = vmatprep.mubr.msk.f32.mxu0 %vm11506_vm2, %v11507_v13 }
0x1913   : > { %10476 = vmatprep.subr.bf16.mxu0 %v11505_v11 }
0x19e4   : > { %v2468_v62 = vpop.f32.mrb[10].mxu0 }
0x19e5   : > { %v2469_v1 = vadd.f32 %v11802_v26, %v2468_v62  ;;  %v9980_v19 = vpop.f32.mrb[11].mxu0 }
0x19e7   : > { %10811 = vtanh.f32 %v2469_v1  ;;  %v9357_v9 = vmul.f32 -1.442695, %v2469_v1 }
0x19e8   : > { %10813 = vrcp.f32 %v2171_v61 }
0x19e9   : > { %10815 = vrcp.f32 %v2678_v4 }
0x19ea   : > { %10817 = vpow2.f32 %v9357_v9 }
0x19f1   : > { %v10812_v5 = vpop.eup %10811 }
0x19f2   : > { %2481 = vrot.lane.b32.xlu0 %v10812_v5, %s13733_s1  ;;  %v10814_v6 = vpop.eup %10813 }
0x19f3   : > { %v2180_v29 = vmul.f32 %v10814_v6, %v2178_v34  ;;  %v10816_v28 = vpop.eup %10815  ;;  %v2175_v51 = vmul.f32 %v10814_v6, %v11965_v59 }
0x19f4   : > { %v2687_v27 = vmul.f32 %v10816_v28, %v2685_v7  ;;  %v10818_v10 = vpop.eup %10817  ;;  %v2682_v23 = vmul.f32 %v10816_v28, %v11969_v0 }
0x19f5   : > { %v2475_v14 = vadd.f32 1.0, %v10818_v10 }
0x19f6   : > { %2182 = vrot.lane.b32.xlu0 %v2180_v29, %s13703_s23 }
0x19f7   : > { %10819 = vrcp.f32 %v2475_v14 }
0x19fa   : > { %2689 = vrot.lane.b32.xlu0 %v2687_v27, %s13725_s27 }
0x1a01   : > { %v10820_v16 = vpop.eup %10819 }
0x1a02   : > { %v2479_v59 = vmul.f32 %v10820_v16, %v11975_v3 }
0x1a64   : > { %v2482_v40 = vpop.permute.xlu0 %2481 }
0x1a65   : > { %v2484_v17 = vmul.f32 %v10820_v16, %v2482_v40 }
0x1a67   : > { %2486 = vrot.lane.b32.xlu1 %v2484_v17, %s13703_s23 }
0x1a68   : > { %v2183_v21 = vpop.permute.xlu0 %2182 }
0x1a69   : > { %v12033_v22 = vadd.f32 %v2183_v21, %v2175_v51 }
0x1a6b   : > { %10821 = vtanh.f32 %v12033_v22 }
0x1a6c   : > { %v2690_v25 = vpop.permute.xlu0 %2689 }
0x1a6d   : > { %v12037_v30 = vadd.f32 %v2690_v25, %v2682_v23 }
0x1a6f   : > { %10823 = vtanh.f32 %v12037_v30 }
0x1a75   : > { %v10822_v32 = vpop.eup %10821 }
0x1a76   : > { %2188 = vrot.lane.b32.xlu1 %v10822_v32, %s13703_s23 }
0x1a79   : > { %v10824_v36 = vpop.eup %10823 }
0x1a7a   : > { %2695 = vrot.lane.b32.xlu1 %v10824_v36, %s13725_s27 }
0x1ad9   : > { %v2487_v39 = vpop.permute.xlu1 %2486 }
0x1ada   : > { %v12043_v41 = vadd.f32 %v2487_v39, %v2479_v59 }
0x1adc   : > { %10825 = vtanh.f32 %v12043_v41 }
0x1ae6   : > { %v10826_v45 = vpop.eup %10825 }
0x1ae7   : > { %2492 = vrot.lane.b32.xlu0 %v10826_v45, %s13703_s23 }
0x1ae8   : > { %v2189_v0 = vpop.permute.xlu1 %2188 }
0x1ae9   : > { %v2191_v8 = vmul.f32 %v10814_v6, %v2189_v0 }
0x1aeb   : > { %2501 = vrot.lane.b32.xlu1 %v2191_v8, %s13699_s25 }
0x1aec   : > { %v2696_v15 = vpop.permute.xlu1 %2695 }
0x1aed   : > { %v2698_v3 = vmul.f32 %v10816_v28, %v2696_v15 }
0x1aef   : > { %2703 = vrot.lane.b32.xlu1 %v2393_v24, %s13697_s28 }
0x1b59   : > { %v2493_v42 = vpop.permute.xlu0 %2492 }
0x1b5a   : > { %v12049_v43 = vmul.f32 %v10820_v16, %v2493_v42 }
0x1b5c   : > { %2497 = vrot.lane.b32.xlu0 %v12049_v43, %s13697_s28 }
0x1b5d   : > { %v2502_v46 = vpop.permute.xlu1 %2501 }
0x1b60   : > { %2700 = vrot.lane.b32.xlu0 %v2698_v3, %s13729_s3 }
0x1b61   : > { %v2704_v50 = vpop.permute.xlu1 %2703 }
0x1bce   : > { %v2498_v33 = vpop.permute.xlu0 %2497 }
0x1bcf   : > { %v2504_v49 = vsel %vm1273_vm6, %v2498_v33, %v2502_v46 }
0x1bd0   : > { %9986 = vmatmul.mubr.msk.f32.vlgmr.msra.gmra.mrb[12].mxu0 %vm964_vm3, %v2504_v49 }
0x1bd1   : > { %10478 = vmatpush3.bf16.msra.mxu0 %v11738_v55  ;;  %10003 = vmatprep.mubr.msk.f32.mxu0 %vm11506_vm2, %v11507_v13 }
0x1bd2   : > { %10479 = vmatprep.subr.bf16.mxu0 %v11505_v11  ;;  %v2701_v44 = vpop.permute.xlu0 %2700 }
0x1bd3   : > { %v2706_v52 = vsel %vm964_vm3, %v2701_v44, %v2704_v50 }
0x1bd5   : > { %10481 = vmatpush3.bf16.msra.mxu0 %v11744_v57 }
0x1bd6   : > { %10488 = vmatprep.subr.bf16.mxu0 %v11505_v11 }
0x1bd8   : > { %10004 = vmatmul.mubr.msk.f32.vlgmr.msra.gmra.mrb[14].mxu0 %vm1068_vm4, %v2706_v52 }
0x1bd9   : > { %10490 = vmatpush3.bf16.msra.mxu0 %v11687_v12  ;;  %10026 = vmatprep.mubr.msk.f32.mxu0 %vm11506_vm2, %v11507_v13 }
0x1bda   : > { %10497 = vmatprep.subr.bf16.mxu0 %v11505_v11 }
0x1bdc   : > { %10027 = vmatmul.mubr.msk.f32.vlgmr.msra.gmra.mrb[16].mxu0 %vm964_vm3, %v2701_v44 }
0x1bdd   : > { %10499 = vmatpush3.bf16.msra.mxu0 %v11775_v18  ;;  %10046 = vmatprep.mubr.msk.f32.mxu0 %vm11506_vm2, %v11507_v13 }
0x1bde   : > { %10044 = vmatprep.subr.mxu0 %v11507_v13 }
0x1be1   : > { %10045 = vmatpush3.msra.mxu0 %v11783_v20 }
0x1be2   : > { %10500 = vmatprep.subr.bf16.mxu0 %v11505_v11 }
0x1ca3   : > { %v2574_v24 = vpop.f32.mrb[12].mxu0 }
0x1ca4   : > { %v9987_v53 = vpop.f32.mrb[13].mxu0 }
0x1cab   : > { %v2776_v54 = vpop.f32.mrb[14].mxu0 }
0x1cac   : > { %v2777_v56 = vadd.f32 %v11761_v63, %v2776_v54  ;;  %v10005_v58 = vpop.f32.mrb[15].mxu0 }
0x1cae   : > { %10827 = vtanh.f32 %v2777_v56  ;;  %v9363_v19 = vmul.f32 -1.442695, %v2777_v56 }
0x1caf   : > { %v3080_v60 = vpop.f32.mrb[16].mxu0 }
0x1cb0   : > { %v3084_v62 = vadd.f32 %v3080_v60, %v11716_v31  ;;  %v10028_v61 = vpop.f32.mrb[17].mxu0  ;;  %10829 = vpow2.f32 %v9363_v19  ;;  %v2575_v31 = vadd.f32 %v11863_v38, %v2574_v24 }
0x1cb2   : > { %v9359_v14 = vmul.f32 -1.442695, %v2575_v31  ;;  %v9369_v16 = vmul.f32 -1.442695, %v3084_v62 }
0x1cb8   : > { %v10828_v1 = vpop.eup %10827 }
0x1cb9   : > { %2789 = vrot.lane.b32.xlu0 %v10828_v1, %s13727_s29 }
0x1cba   : > { %v10830_v2 = vpop.eup %10829 }
0x1cbb   : > { %v2783_v20 = vadd.f32 1.0, %v10830_v2 }
0x1cbd   : > { %10831 = vrcp.f32 %v2783_v20 }
0x1cc7   : > { %v10832_v4 = vpop.eup %10831 }
0x1cc8   : > { %v2787_v63 = vmul.f32 %v10832_v4, %v12012_v47 }
0x1d2b   : > { %v2790_v34 = vpop.permute.xlu0 %2789 }
0x1d2c   : > { %v2792_v5 = vmul.f32 %v10832_v4, %v2790_v34 }
0x1d2e   : > { %2794 = vrot.lane.b32.xlu1 %v2792_v5, %s13725_s27 }
0x1da0   : > { %v2795_v6 = vpop.permute.xlu1 %2794 }
0x1da1   : > { %v12080_v29 = vadd.f32 %v2795_v6, %v2787_v63 }
0x1da3   : > { %10833 = vtanh.f32 %v12080_v29 }
0x1da4   : > { %10835 = vtanh.f32 %v2575_v31  ;;  %v12144_v31 = vld [vmem:[%s13728_s6 + $0x10] sm:$0xff] }
0x1da5   : > { %10837 = vtanh.f32 %v3084_v62 }
0x1da6   : > { %10839 = vpow2.f32 %v9359_v14 }
0x1da7   : > { %10841 = vpow2.f32 %v9369_v16 }
0x1dad   : > { %v10834_v7 = vpop.eup %10833 }
0x1dae   : > { %2800 = vrot.lane.b32.xlu0 %v10834_v7, %s13725_s27  ;;  %v10836_v28 = vpop.eup %10835 }
0x1daf   : > { %v10838_v27 = vpop.eup %10837 }
0x1db0   : > { %v10840_v40 = vpop.eup %10839 }
0x1db1   : > { %v2581_v51 = vadd.f32 1.0, %v10840_v40  ;;  %v10842_v25 = vpop.eup %10841 }
0x1db2   : > { %2587 = vrot.lane.b32.xlu0 %v10836_v28, %s13733_s1  ;;  %v3088_v32 = vadd.f32 1.0, %v10842_v25 }
0x1db6   : > { %3094 = vrot.lane.b32.xlu0 %v10838_v27, %s13727_s29 }
0x1e20   : > { %v2801_v9 = vpop.permute.xlu0 %2800 }
0x1e21   : > { %v2803_v47 = vmul.f32 %v10832_v4, %v2801_v9  ;;  %v12151_v9 = vld [vmem:[%s13726_s0] ss:$0 sm:$0xff] }
0x1e23   : > { %2805 = vrot.lane.b32.xlu1 %v2803_v47, %s13729_s3 }
0x1e24   : > { %v2588_v36 = vpop.permute.xlu0 %2587 }
0x1e28   : > { %v3095_v0 = vpop.permute.xlu0 %3094 }
0x1e95   : > { %v2806_v10 = vpop.permute.xlu1 %2805 }
0x1e96   : > { %v2808_v38 = vsel %vm964_vm3, %v2806_v10, %v12049_v43 }
0x1e97   : > { %10013 = vmatmul.mubr.msk.f32.vlgmr.msra.gmra.mrb[28].mxu1 %vm1171_vm5, %v2808_v38 }
0x1e98   : > { %10487 = vmatpush3.bf16.msra.mxu1 %v11816_v48  ;;  %10019 = vmatprep.mubr.msk.f32.mxu1 %vm11506_vm2, %v11507_v13 }
0x1e99   : > { %10491 = vmatprep.subr.bf16.mxu1 %v11505_v11 }
0x1f6a   : > { %v2878_v17 = vpop.f32.mrb[28].mxu1 }
0x1f6b   : > { %v2879_v21 = vadd.f32 %v11802_v26, %v2878_v17  ;;  %v10014_v23 = vpop.f32.mrb[29].mxu1 }
0x1f6d   : > { %10843 = vtanh.f32 %v2879_v21  ;;  %v9365_v26 = vmul.f32 -1.442695, %v2879_v21 }
0x1f6e   : > { %10845 = vrcp.f32 %v2581_v51 }
0x1f6f   : > { %10847 = vrcp.f32 %v3088_v32 }
0x1f70   : > { %10849 = vpow2.f32 %v9365_v26 }
0x1f77   : > { %v10844_v59 = vpop.eup %10843 }
0x1f78   : > { %2891 = vrot.lane.b32.xlu1 %v10844_v59, %s13733_s1  ;;  %v10846_v39 = vpop.eup %10845 }
0x1f79   : > { %v2590_v45 = vmul.f32 %v10846_v39, %v2588_v36  ;;  %v10848_v8 = vpop.eup %10847  ;;  %v2585_v49 = vmul.f32 %v10846_v39, %v12033_v22 }
0x1f7a   : > { %v3097_v42 = vmul.f32 %v10848_v8, %v3095_v0  ;;  %v10850_v43 = vpop.eup %10849  ;;  %v3092_v52 = vmul.f32 %v10848_v8, %v12037_v30 }
0x1f7b   : > { %v2885_v15 = vadd.f32 1.0, %v10850_v43 }
0x1f7c   : > { %2592 = vrot.lane.b32.xlu1 %v2590_v45, %s13703_s23 }
0x1f7d   : > { %10851 = vrcp.f32 %v2885_v15 }
0x1f80   : > { %3099 = vrot.lane.b32.xlu1 %v3097_v42, %s13725_s27 }
0x1f87   : > { %v10852_v3 = vpop.eup %10851 }
0x1f88   : > { %v2889_v22 = vmul.f32 %v10852_v3, %v12043_v41 }
0x1fea   : > { %v2892_v46 = vpop.permute.xlu1 %2891 }
0x1feb   : > { %v2894_v33 = vmul.f32 %v10852_v3, %v2892_v46 }
0x1fed   : > { %2896 = vrot.lane.b32.xlu0 %v2894_v33, %s13703_s23 }
0x1fee   : > { %v2593_v44 = vpop.permute.xlu1 %2592 }
0x1fef   : > { %v12101_v50 = vadd.f32 %v2593_v44, %v2585_v49 }
0x1ff1   : > { %10853 = vtanh.f32 %v12101_v50 }
0x1ff2   : > { %v3100_v24 = vpop.permute.xlu1 %3099 }
0x1ff3   : > { %v12105_v53 = vadd.f32 %v3100_v24, %v3092_v52  ;;  %v12181_v52 = vld [vmem:[%s13730_s7] ss:$0 sm:$0xff]  ;;  %s13737_s7 = smov 8  }
0x1ff5   : > { %10855 = vtanh.f32 %v12105_v53 }
0x1ffb   : > { %v10854_v54 = vpop.eup %10853 }
0x1ffc   : > { %2598 = vrot.lane.b32.xlu0 %v10854_v54, %s13703_s23 }
0x1fff   : > { %v10856_v56 = vpop.eup %10855 }
0x2000   : > { %3105 = vrot.lane.b32.xlu0 %v10856_v56, %s13725_s27 }
0x205f   : > { %v2897_v58 = vpop.permute.xlu0 %2896 }
0x2060   : > { %v12111_v60 = vadd.f32 %v2897_v58, %v2889_v22 }
0x2062   : > { %10857 = vtanh.f32 %v12111_v60 }
0x206c   : > { %v10858_v62 = vpop.eup %10857 }
0x206d   : > { %2902 = vrot.lane.b32.xlu1 %v10858_v62, %s13703_s23 }
0x206e   : > { %v2599_v30 = vpop.permute.xlu0 %2598 }
0x206f   : > { %v2601_v61 = vmul.f32 %v10846_v39, %v2599_v30 }
0x2071   : > { %2911 = vrot.lane.b32.xlu0 %v2601_v61, %s13699_s25  ;;  %s13735_s25 = smov 112  }
0x2072   : > { %v3106_v2 = vpop.permute.xlu0 %3105 }
0x2073   : > { %v3108_v41 = vmul.f32 %v10848_v8, %v3106_v2 }
0x2075   : > { %3113 = vrot.lane.b32.xlu0 %v2803_v47, %s13697_s28 }
0x20df   : > { %v2903_v1 = vpop.permute.xlu1 %2902 }
0x20e0   : > { %v12117_v19 = vmul.f32 %v10852_v3, %v2903_v1 }
0x20e2   : > { %2907 = vrot.lane.b32.xlu1 %v12117_v19, %s13697_s28  ;;  %s13734_s28 = smov 120  }
0x20e3   : > { %v2912_v20 = vpop.permute.xlu0 %2911 }
0x20e6   : > { %3110 = vrot.lane.b32.xlu1 %v3108_v41, %s13729_s3 }
0x20e7   : > { %v3114_v63 = vpop.permute.xlu0 %3113 }
0x2154   : > { %v2908_v4 = vpop.permute.xlu1 %2907 }
0x2155   : > { %v2914_v34 = vsel %vm1273_vm6, %v2908_v4, %v2912_v20 }
0x2156   : > { %10020 = vmatmul.mubr.msk.f32.vlgmr.msra.gmra.mrb[30].mxu1 %vm964_vm3, %v2914_v34 }
0x2157   : > { %10493 = vmatpush3.bf16.msra.mxu1 %v11738_v55  ;;  %10037 = vmatprep.mubr.msk.f32.mxu1 %vm11506_vm2, %v11507_v13 }
0x2158   : > { %10494 = vmatprep.subr.bf16.mxu1 %v11505_v11  ;;  %v3111_v5 = vpop.permute.xlu1 %3110 }
0x2159   : > { %v3116_v6 = vsel %vm964_vm3, %v3111_v5, %v3114_v63 }
0x215b   : > { %10496 = vmatpush3.bf16.msra.mxu1 %v11744_v57 }
0x215c   : > { %10503 = vmatprep.subr.bf16.mxu1 %v11505_v11 }
0x215e   : > { %10038 = vmatmul.mubr.msk.f32.vlgmr.msra.gmra.mrb[32].mxu1 %vm1068_vm4, %v3116_v6 }
0x215f   : > { %10505 = vmatpush3.bf16.msra.mxu1 %v11687_v12  ;;  %10060 = vmatprep.mubr.msk.f32.mxu1 %vm11506_vm2, %v11507_v13 }
0x2160   : > { %10512 = vmatprep.subr.bf16.mxu1 %v11505_v11 }
0x2162   : > { %10061 = vmatmul.mubr.msk.f32.vlgmr.msra.gmra.mrb[34].mxu1 %vm964_vm3, %v3111_v5 }
0x2163   : > { %10514 = vmatpush3.bf16.msra.mxu1 %v11775_v18  ;;  %10080 = vmatprep.mubr.msk.f32.mxu1 %vm11506_vm2, %v11507_v13 }
0x2164   : > { %10078 = vmatprep.subr.mxu1 %v11507_v13 }
0x2167   : > { %10079 = vmatpush3.msra.mxu1 %v12144_v31 }
0x2168   : > { %10515 = vmatprep.subr.bf16.mxu1 %v11505_v11 }
0x2229   : > { %v2984_v7 = vpop.f32.mrb[30].mxu1 }
0x222a   : > { %v10021_v28 = vpop.f32.mrb[31].mxu1 }
0x2231   : > { %v3186_v27 = vpop.f32.mrb[32].mxu1 }
0x2232   : > { %v3187_v47 = vadd.f32 %v12151_v9, %v3186_v27  ;;  %v10039_v10 = vpop.f32.mrb[33].mxu1 }
0x2234   : > { %10859 = vtanh.f32 %v3187_v47  ;;  %v9371_v17 = vmul.f32 -1.442695, %v3187_v47 }
0x2235   : > { %v3490_v38 = vpop.f32.mrb[34].mxu1 }
0x2236   : > { %v3494_v14 = vadd.f32 %v3490_v38, %v11722_v37  ;;  %v10062_v16 = vpop.f32.mrb[35].mxu1  ;;  %10861 = vpow2.f32 %v9371_v17  ;;  %v12163_v37 = vld [vmem:[%s13732_s9] ss:$0 sm:$0xff] }
0x2237   : > { %v2985_v45 = vadd.f32 %v12163_v37, %v2984_v7 }
0x2238   : > { %v9377_v46 = vmul.f32 -1.442695, %v3494_v14 }
0x2239   : > { %v9367_v3 = vmul.f32 -1.442695, %v2985_v45 }
0x223e   : > { %v10860_v40 = vpop.eup %10859 }
0x223f   : > { %3199 = vrot.lane.b32.xlu1 %v10860_v40, %s13727_s29 }
0x2240   : > { %v10862_v51 = vpop.eup %10861 }
0x2241   : > { %v3193_v21 = vadd.f32 1.0, %v10862_v51 }
0x2243   : > { %10863 = vrcp.f32 %v3193_v21 }
0x224d   : > { %v10864_v23 = vpop.eup %10863 }
0x224e   : > { %v3197_v36 = vmul.f32 %v10864_v23, %v12080_v29 }
0x22b1   : > { %v3200_v25 = vpop.permute.xlu1 %3199 }
0x22b2   : > { %v3202_v32 = vmul.f32 %v10864_v23, %v3200_v25 }
0x22b4   : > { %3204 = vrot.lane.b32.xlu0 %v3202_v32, %s13725_s27 }
0x2326   : > { %v3205_v59 = vpop.permute.xlu0 %3204 }
0x2327   : > { %v12158_v39 = vadd.f32 %v3205_v59, %v3197_v36 }
0x2329   : > { %10865 = vtanh.f32 %v12158_v39 }
0x232a   : > { %10867 = vtanh.f32 %v2985_v45 }
0x232b   : > { %10869 = vtanh.f32 %v3494_v14 }
0x232c   : > { %10871 = vpow2.f32 %v9367_v3 }
0x232d   : > { %10873 = vpow2.f32 %v9377_v46 }
0x2333   : > { %v10866_v0 = vpop.eup %10865 }
0x2334   : > { %3210 = vrot.lane.b32.xlu1 %v10866_v0, %s13725_s27  ;;  %v10868_v8 = vpop.eup %10867 }
0x2335   : > { %v10870_v29 = vpop.eup %10869 }
0x2336   : > { %v10872_v33 = vpop.eup %10871 }
0x2337   : > { %v2991_v44 = vadd.f32 1.0, %v10872_v33  ;;  %v10874_v56 = vpop.eup %10873 }
0x2338   : > { %2997 = vrot.lane.b32.xlu1 %v10868_v8, %s13733_s1  ;;  %v3498_v22 = vadd.f32 1.0, %v10874_v56 }
0x233c   : > { %3504 = vrot.lane.b32.xlu1 %v10870_v29, %s13727_s29 }
0x23a6   : > { %v3211_v42 = vpop.permute.xlu1 %3210 }
0x23a7   : > { %v3213_v26 = vmul.f32 %v10864_v23, %v3211_v42 }
0x23a9   : > { %3215 = vrot.lane.b32.xlu0 %v3213_v26, %s13729_s3 }
0x23aa   : > { %v2998_v58 = vpop.permute.xlu1 %2997 }
0x23ae   : > { %v3505_v1 = vpop.permute.xlu1 %3504 }
0x241b   : > { %v3216_v43 = vpop.permute.xlu0 %3215 }
0x241c   : > { %v3218_v15 = vsel %vm964_vm3, %v3216_v43, %v12117_v19 }
0x241d   : > { %10047 = vmatmul.mubr.msk.f32.vlgmr.msra.gmra.mrb[18].mxu0 %vm1171_vm5, %v3218_v15 }
0x241e   : > { %10502 = vmatpush3.bf16.msra.mxu0 %v11816_v48  ;;  %10053 = vmatprep.mubr.msk.f32.mxu0 %vm11506_vm2, %v11507_v13 }
0x241f   : > { %10506 = vmatprep.subr.bf16.mxu0 %v11505_v11 }
0x24f0   : > { %v3288_v49 = vpop.f32.mrb[18].mxu0 }
0x24f1   : > { %v3289_v24 = vadd.f32 %v12181_v52, %v3288_v49  ;;  %v10048_v54 = vpop.f32.mrb[19].mxu0 }
0x24f3   : > { %10875 = vtanh.f32 %v3289_v24  ;;  %v9373_v41 = vmul.f32 -1.442695, %v3289_v24 }
0x24f4   : > { %10877 = vrcp.f32 %v2991_v44 }
0x24f5   : > { %10879 = vrcp.f32 %v3498_v22 }
0x24f6   : > { %10881 = vpow2.f32 %v9373_v41 }
0x24fd   : > { %v10876_v62 = vpop.eup %10875 }
0x24fe   : > { %3301 = vrot.lane.b32.xlu0 %v10876_v62, %s13733_s1  ;;  %v10878_v30 = vpop.eup %10877 }
0x24ff   : > { %v3000_v61 = vmul.f32 %v10878_v30, %v2998_v58  ;;  %v10880_v19 = vpop.eup %10879  ;;  %v2995_v6 = vmul.f32 %v10878_v30, %v12101_v50 }
0x2500   : > { %v3507_v2 = vmul.f32 %v10880_v19, %v3505_v1  ;;  %v10882_v20 = vpop.eup %10881  ;;  %v3502_v27 = vmul.f32 %v10880_v19, %v12105_v53 }
0x2501   : > { %v3295_v4 = vadd.f32 1.0, %v10882_v20 }
0x2502   : > { %3002 = vrot.lane.b32.xlu0 %v3000_v61, %s13703_s23 }
0x2503   : > { %10883 = vrcp.f32 %v3295_v4 }
0x2506   : > { %3509 = vrot.lane.b32.xlu0 %v3507_v2, %s13725_s27 }
0x250d   : > { %v10884_v34 = vpop.eup %10883 }
0x250e   : > { %v3299_v50 = vmul.f32 %v10884_v34, %v12111_v60 }
0x2570   : > { %v3302_v5 = vpop.permute.xlu0 %3301 }
0x2571   : > { %v3304_v63 = vmul.f32 %v10884_v34, %v3302_v5 }
0x2573   : > { %3306 = vrot.lane.b32.xlu1 %v3304_v63, %s13703_s23 }
0x2574   : > { %v3003_v7 = vpop.permute.xlu0 %3002 }
0x2575   : > { %v12189_v28 = vadd.f32 %v3003_v7, %v2995_v6 }
0x2577   : > { %10885 = vtanh.f32 %v12189_v28 }
0x2578   : > { %v3510_v47 = vpop.permute.xlu0 %3509 }
0x2579   : > { %v12193_v10 = vadd.f32 %v3510_v47, %v3502_v27 }
0x257b   : > { %10887 = vtanh.f32 %v12193_v10 }
0x2581   : > { %v10886_v38 = vpop.eup %10885 }
0x2582   : > { %3008 = vrot.lane.b32.xlu1 %v10886_v38, %s13703_s23 }
0x2585   : > { %v10888_v14 = vpop.eup %10887 }
0x2586   : > { %3515 = vrot.lane.b32.xlu1 %v10888_v14, %s13725_s27 }
0x25e5   : > { %v3307_v16 = vpop.permute.xlu1 %3306 }
0x25e6   : > { %v12199_v40 = vadd.f32 %v3307_v16, %v3299_v50 }
0x25e8   : > { %10889 = vtanh.f32 %v12199_v40 }
0x25f2   : > { %v10890_v17 = vpop.eup %10889 }
0x25f3   : > { %3312 = vrot.lane.b32.xlu0 %v10890_v17, %s13703_s23 }
0x25f4   : > { %v3009_v53 = vpop.permute.xlu1 %3008 }
0x25f5   : > { %v3011_v51 = vmul.f32 %v10878_v30, %v3009_v53 }
0x25f7   : > { %3321 = vrot.lane.b32.xlu1 %v3011_v51, %s13734_s28 }
0x25f8   : > { %v3516_v25 = vpop.permute.xlu1 %3515 }
0x25f9   : > { %v3518_v60 = vmul.f32 %v10880_v19, %v3516_v25 }
0x25fb   : > { %3523 = vrot.lane.b32.xlu1 %v3213_v26, %s13735_s25 }
0x2665   : > { %v3313_v21 = vpop.permute.xlu0 %3312 }
0x2666   : > { %v12205_v23 = vmul.f32 %v10884_v34, %v3313_v21 }
0x2668   : > { %3317 = vrot.lane.b32.xlu0 %v12205_v23, %s13735_s25 }
0x2669   : > { %v3322_v32 = vpop.permute.xlu1 %3321 }
0x266c   : > { %3520 = vrot.lane.b32.xlu0 %v3518_v60, %s13729_s3 }
0x266d   : > { %v3524_v0 = vpop.permute.xlu1 %3523 }
0x26da   : > { %v3318_v36 = vpop.permute.xlu0 %3317 }
0x26db   : > { %v3324_v59 = vsel %vm1273_vm6, %v3318_v36, %v3322_v32 }
0x26dc   : > { %10054 = vmatmul.mubr.msk.f32.vlgmr.msra.gmra.mrb[20].mxu0 %vm964_vm3, %v3324_v59 }
0x26dd   : > { %10508 = vmatpush3.bf16.msra.mxu0 %v11738_v55  ;;  %10071 = vmatprep.mubr.msk.f32.mxu0 %vm11506_vm2, %v11507_v13 }
0x26de   : > { %10509 = vmatprep.subr.bf16.mxu0 %v11505_v11  ;;  %v3521_v45 = vpop.permute.xlu0 %3520 }
0x26df   : > { %v3526_v8 = vsel %vm964_vm3, %v3521_v45, %v3524_v0 }
0x26e1   : > { %10511 = vmatpush3.bf16.msra.mxu0 %v11744_v57 }
0x26e2   : > { %10518 = vmatprep.subr.bf16.mxu0 %v11505_v11 }
0x26e4   : > { %10072 = vmatmul.mubr.msk.f32.vlgmr.msra.gmra.mrb[22].mxu0 %vm1068_vm4, %v3526_v8 }
0x26e5   : > { %10520 = vmatpush3.bf16.msra.mxu0 %v11687_v12  ;;  %10094 = vmatprep.mubr.msk.f32.mxu0 %vm11506_vm2, %v11507_v13 }
0x26e6   : > { %10527 = vmatprep.subr.bf16.mxu0 %v11505_v11 }
0x26e8   : > { %10095 = vmatmul.mubr.msk.f32.vlgmr.msra.gmra.mrb[24].mxu0 %vm964_vm3, %v3521_v45 }
0x26e9   : > { %10529 = vmatpush3.bf16.msra.mxu0 %v11775_v18  ;;  %10114 = vmatprep.mubr.msk.f32.mxu0 %vm11506_vm2, %v11507_v13 }
0x26ea   : > { %10112 = vmatprep.subr.mxu0 %v11507_v13 }
0x26ed   : > { %10113 = vmatpush3.msra.mxu0 %v12144_v31 }
0x26ee   : > { %10530 = vmatprep.subr.bf16.mxu0 %v11505_v11 }
0x27af   : > { %v3394_v29 = vpop.f32.mrb[20].mxu0 }
0x27b0   : > { %v10055_v12 = vpop.f32.mrb[21].mxu0 }
0x27b7   : > { %v3596_v42 = vpop.f32.mrb[22].mxu0 }
0x27b8   : > { %v3597_v26 = vadd.f32 %v12151_v9, %v3596_v42  ;;  %v10073_v43 = vpop.f32.mrb[23].mxu0 }
0x27ba   : > { %10891 = vtanh.f32 %v3597_v26  ;;  %v9379_v33 = vmul.f32 -1.442695, %v3597_v26 }
0x27bb   : > { %v3900_v15 = vpop.f32.mrb[24].mxu0 }
0x27bc   : > { %v3904_v3 = vadd.f32 %v3900_v15, %v11720_v35  ;;  %v10096_v18 = vpop.f32.mrb[25].mxu0  ;;  %10893 = vpow2.f32 %v9379_v33  ;;  %v3395_v35 = vadd.f32 %v12163_v37, %v3394_v29 }
0x27be   : > { %v9375_v41 = vmul.f32 -1.442695, %v3395_v35  ;;  %v9385_v20 = vmul.f32 -1.442695, %v3904_v3 }
0x27c4   : > { %v10892_v46 = vpop.eup %10891 }
0x27c5   : > { %3609 = vrot.lane.b32.xlu0 %v10892_v46, %s13727_s29 }
0x27c6   : > { %v10894_v49 = vpop.eup %10893 }
0x27c7   : > { %v3603_v31 = vadd.f32 1.0, %v10894_v49 }
0x27c9   : > { %10895 = vrcp.f32 %v3603_v31 }
0x27d3   : > { %v10896_v44 = vpop.eup %10895 }
0x27d4   : > { %v3607_v56 = vmul.f32 %v10896_v44, %v12158_v39 }
0x2837   : > { %v3610_v24 = vpop.permute.xlu0 %3609 }
0x2838   : > { %v3612_v54 = vmul.f32 %v10896_v44, %v3610_v24 }
0x283a   : > { %3614 = vrot.lane.b32.xlu1 %v3612_v54, %s13725_s27 }
0x28ac   : > { %v3615_v22 = vpop.permute.xlu1 %3614 }
0x28ad   : > { %v12236_v58 = vadd.f32 %v3615_v22, %v3607_v56 }
0x28af   : > { %10897 = vtanh.f32 %v12236_v58 }
0x28b0   : > { %10899 = vtanh.f32 %v3395_v35 }
0x28b1   : > { %10901 = vtanh.f32 %v3904_v3 }
0x28b2   : > { %10903 = vpow2.f32 %v9375_v41 }
0x28b3   : > { %10905 = vpow2.f32 %v9385_v20 }
0x28b9   : > { %v10898_v62 = vpop.eup %10897 }
0x28ba   : > { %3620 = vrot.lane.b32.xlu0 %v10898_v62, %s13725_s27  ;;  %v10900_v30 = vpop.eup %10899 }
0x28bb   : > { %v10902_v61 = vpop.eup %10901 }
0x28bc   : > { %v10904_v4 = vpop.eup %10903 }
0x28bd   : > { %v3401_v5 = vadd.f32 1.0, %v10904_v4  ;;  %v10906_v7 = vpop.eup %10905 }
0x28be   : > { %3407 = vrot.lane.b32.xlu0 %v10900_v30, %s13733_s1  ;;  %v3908_v27 = vadd.f32 1.0, %v10906_v7 }
0x28c2   : > { %3914 = vrot.lane.b32.xlu0 %v10902_v61, %s13727_s29 }
0x292c   : > { %v3621_v1 = vpop.permute.xlu0 %3620 }
0x292d   : > { %v3623_v39 = vmul.f32 %v10896_v44, %v3621_v1 }
0x292f   : > { %3625 = vrot.lane.b32.xlu1 %v3623_v39, %s13729_s3 }
0x2930   : > { %v3408_v47 = vpop.permute.xlu0 %3407 }
0x2934   : > { %v3915_v16 = vpop.permute.xlu0 %3914 }
0x29a1   : > { %v3626_v19 = vpop.permute.xlu1 %3625 }
0x29a2   : > { %v3628_v2 = vsel %vm964_vm3, %v3626_v19, %v12205_v23 }
0x29a3   : > { %10081 = vmatmul.mubr.msk.f32.vlgmr.msra.gmra.mrb[36].mxu1 %vm1171_vm5, %v3628_v2 }
0x29a4   : > { %10517 = vmatpush3.bf16.msra.mxu1 %v11816_v48  ;;  %10087 = vmatprep.mubr.msk.f32.mxu1 %vm11506_vm2, %v11507_v13 }
0x29a5   : > { %10521 = vmatprep.subr.bf16.mxu1 %v11505_v11 }
0x2a76   : > { %v3698_v34 = vpop.f32.mrb[36].mxu1 }
0x2a77   : > { %v3699_v63 = vadd.f32 %v12181_v52, %v3698_v34  ;;  %v10082_v6 = vpop.f32.mrb[37].mxu1 }
0x2a79   : > { %10907 = vtanh.f32 %v3699_v63  ;;  %v9381_v51 = vmul.f32 -1.442695, %v3699_v63 }
0x2a7a   : > { %10909 = vrcp.f32 %v3401_v5 }
0x2a7b   : > { %10911 = vrcp.f32 %v3908_v27 }
0x2a7c   : > { %10913 = vpow2.f32 %v9381_v51 }
0x2a83   : > { %v10908_v38 = vpop.eup %10907 }
0x2a84   : > { %3711 = vrot.lane.b32.xlu1 %v10908_v38, %s13733_s1  ;;  %v10910_v14 = vpop.eup %10909 }
0x2a85   : > { %v3410_v50 = vmul.f32 %v10910_v14, %v3408_v47  ;;  %v10912_v17 = vpop.eup %10911  ;;  %v3405_v36 = vmul.f32 %v10910_v14, %v12189_v28 }
0x2a86   : > { %v3917_v53 = vmul.f32 %v10912_v17, %v3915_v16  ;;  %v10914_v21 = vpop.eup %10913  ;;  %v3912_v0 = vmul.f32 %v10912_v17, %v12193_v10 }
0x2a87   : > { %v3705_v23 = vadd.f32 1.0, %v10914_v21 }
0x2a88   : > { %3412 = vrot.lane.b32.xlu1 %v3410_v50, %s13703_s23 }
0x2a89   : > { %10915 = vrcp.f32 %v3705_v23 }
0x2a8c   : > { %3919 = vrot.lane.b32.xlu1 %v3917_v53, %s13725_s27 }
0x2a93   : > { %v10916_v25 = vpop.eup %10915 }
0x2a94   : > { %v3709_v26 = vmul.f32 %v10916_v25, %v12199_v40 }
0x2af6   : > { %v3712_v60 = vpop.permute.xlu1 %3711 }
0x2af7   : > { %v3714_v32 = vmul.f32 %v10916_v25, %v3712_v60 }
0x2af9   : > { %3716 = vrot.lane.b32.xlu0 %v3714_v32, %s13703_s23 }
0x2afa   : > { %v3413_v59 = vpop.permute.xlu1 %3412 }
0x2afb   : > { %v12257_v45 = vadd.f32 %v3413_v59, %v3405_v36 }
0x2afd   : > { %10917 = vtanh.f32 %v12257_v45 }
0x2afe   : > { %v3920_v8 = vpop.permute.xlu1 %3919 }
0x2aff   : > { %v3922_v29 = vadd.f32 %v3920_v8, %v3912_v0 }
0x2b01   : > { %10919 = vtanh.f32 %v3922_v29 }
0x2b07   : > { %v10918_v12 = vpop.eup %10917 }
0x2b08   : > { %3418 = vrot.lane.b32.xlu0 %v10918_v12, %s13703_s23 }
0x2b0b   : > { %v10920_v42 = vpop.eup %10919 }
0x2b0c   : > { %3925 = vrot.lane.b32.xlu0 %v10920_v42, %s13725_s27 }
0x2b6b   : > { %v3717_v43 = vpop.permute.xlu0 %3716 }
0x2b6c   : > { %v12264_v28 = vadd.f32 %v3717_v43, %v3709_v26 }
0x2b6e   : > { %10921 = vtanh.f32 %v12264_v28 }
0x2b78   : > { %v10922_v15 = vpop.eup %10921 }
0x2b79   : > { %3722 = vrot.lane.b32.xlu1 %v10922_v15, %s13703_s23 }
0x2b7a   : > { %v3419_v10 = vpop.permute.xlu0 %3418 }
0x2b7b   : > { %v3421_v3 = vmul.f32 %v10910_v14, %v3419_v10 }
0x2b7d   : > { %3731 = vrot.lane.b32.xlu0 %v3421_v3, %s13734_s28 }
0x2b7e   : > { %v3926_v33 = vpop.permute.xlu0 %3925 }
0x2b7f   : > { %v3928_v40 = vmul.f32 %v10912_v17, %v3926_v33 }
0x2b81   : > { %3933 = vrot.lane.b32.xlu0 %v3623_v39, %s13735_s25 }
0x2beb   : > { %v3723_v18 = vpop.permute.xlu1 %3722 }
0x2bec   : > { %v3725_v46 = vmul.f32 %v10916_v25, %v3723_v18 }
0x2bee   : > { %3727 = vrot.lane.b32.xlu1 %v3725_v46, %s13735_s25 }
0x2bef   : > { %v3732_v49 = vpop.permute.xlu0 %3731 }
0x2bf2   : > { %3930 = vrot.lane.b32.xlu1 %v3928_v40, %s13729_s3 }
0x2bf3   : > { %v3934_v54 = vpop.permute.xlu0 %3933 }
0x2c60   : > { %v3728_v31 = vpop.permute.xlu1 %3727 }
0x2c61   : > { %v3734_v44 = vsel %vm1273_vm6, %v3728_v31, %v3732_v49 }
0x2c62   : > { %10088 = vmatmul.mubr.msk.f32.vlgmr.msra.gmra.mrb[38].mxu1 %vm964_vm3, %v3734_v44 }
0x2c63   : > { %10523 = vmatpush3.bf16.msra.mxu1 %v11738_v55  ;;  %10105 = vmatprep.mubr.msk.f32.mxu1 %vm11506_vm2, %v11507_v13 }
0x2c64   : > { %10524 = vmatprep.subr.bf16.mxu1 %v11505_v11  ;;  %v3931_v24 = vpop.permute.xlu1 %3930 }
0x2c65   : > { %v3936_v56 = vsel %vm964_vm3, %v3931_v24, %v3934_v54 }
0x2c67   : > { %10526 = vmatpush3.bf16.msra.mxu1 %v11744_v57 }
0x2c6a   : > { %10106 = vmatmul.mubr.msk.f32.vlgmr.msra.gmra.mrb[40].mxu1 %vm1068_vm4, %v3936_v56 }
0x2d35   : > { %v3804_v22 = vpop.f32.mrb[38].mxu1 }
0x2d36   : > { %v10089_v35 = vpop.f32.mrb[39].mxu1 }
0x2d3d   : > { %v4006_v62 = vpop.f32.mrb[40].mxu1 }
0x2d3e   : > { %v4007_v30 = vadd.f32 %v12151_v9, %v4006_v62  ;;  %v10107_v61 = vpop.f32.mrb[41].mxu1  ;;  %v3805_v9 = vadd.f32 %v12163_v37, %v3804_v22 }
0x2d3f   : > { %v12322_v61 = vld [vmem:[%s13670_s11] sm:$0xff] }
0x2d40   : > { %10923 = vtanh.f32 %v4007_v30  ;;  %v9387_v1 = vmul.f32 -1.442695, %v4007_v30  ;;  %v9383_v63 = vmul.f32 -1.442695, %v3805_v9 }
0x2d42   : > { %10925 = vpow2.f32 %v9387_v1 }
0x2d4a   : > { %v10924_v55 = vpop.eup %10923 }
0x2d4b   : > { %4019 = vrot.lane.b32.xlu1 %v10924_v55, %s13727_s29 }
0x2d4c   : > { %v10926_v11 = vpop.eup %10925 }
0x2d4d   : > { %v4013_v39 = vadd.f32 1.0, %v10926_v11 }
0x2d4f   : > { %10927 = vrcp.f32 %v4013_v39 }
0x2d59   : > { %v10928_v57 = vpop.eup %10927 }
0x2d5a   : > { %v4017_v41 = vmul.f32 %v10928_v57, %v12236_v58 }
0x2dbd   : > { %v4020_v19 = vpop.permute.xlu1 %4019 }
0x2dbe   : > { %v4022_v2 = vmul.f32 %v10928_v57, %v4020_v19 }
0x2dc0   : > { %4024 = vrot.lane.b32.xlu0 %v4022_v2, %s13725_s27  ;;  %v9392_v2 = vld [vmem:[%s13671_s12] ss:$0 sm:$0xff] }
0x2e32   : > { %v4025_v20 = vpop.permute.xlu0 %4024 }
0x2e33   : > { %v4027_v4 = vadd.f32 %v4025_v20, %v4017_v41 }
0x2e35   : > { %10929 = vtanh.f32 %v4027_v4 }
0x2e36   : > { %10931 = vtanh.f32 %v3805_v9 }
0x2e37   : > { %10933 = vpow2.f32 %v9383_v63 }
0x2e3f   : > { %v10930_v34 = vpop.eup %10929 }
0x2e40   : > { %4030 = vrot.lane.b32.xlu1 %v10930_v34, %s13725_s27  ;;  %v10932_v5 = vpop.eup %10931 }
0x2e41   : > { %v10934_v6 = vpop.eup %10933 }
0x2e42   : > { %v3811_v7 = vadd.f32 1.0, %v10934_v6 }
0x2e44   : > { %3817 = vrot.lane.b32.xlu1 %v10932_v5, %s13733_s1  ;;  %10935 = vrcp.f32 %v3811_v7 }
0x2e4e   : > { %v10936_v58 = vpop.eup %10935 }
0x2e4f   : > { %v3815_v17 = vmul.f32 %v10936_v58, %v12257_v45 }
0x2eb2   : > { %v4031_v27 = vpop.permute.xlu1 %4030 }
0x2eb3   : > { %v4033_v47 = vmul.f32 %v10928_v57, %v4031_v27 }
0x2eb5   : > { %4035 = vrot.lane.b32.xlu0 %v4033_v47, %s13729_s3 }
0x2eb6   : > { %v3818_v38 = vpop.permute.xlu1 %3817 }
0x2eb7   : > { %v3820_v14 = vmul.f32 %v10936_v58, %v3818_v38 }
0x2eb9   : > { %3822 = vrot.lane.b32.xlu1 %v3820_v14, %s13703_s23 }
0x2f27   : > { %v4036_v50 = vpop.permute.xlu0 %4035 }
0x2f28   : > { %v4038_v16 = vsel %vm964_vm3, %v4036_v50, %v3725_v46 }
0x2f29   : > { %10115 = vmatmul.mubr.msk.f32.vlgmr.msra.gmra.mrb[26].mxu0 %vm1171_vm5, %v4038_v16 }
0x2f2a   : > { %10532 = vmatpush3.bf16.msra.mxu0 %v11816_v48  ;;  %10121 = vmatprep.mubr.msk.f32.mxu0 %vm11506_vm2, %v11507_v13 }
0x2f2b   : > { %v3823_v53 = vpop.permute.xlu1 %3822  ;;  %10129 = vmatprep.subr.mxu0 %v12322_v61 }
0x2f2c   : > { %v3825_v51 = vadd.f32 %v3823_v53, %v3815_v17 }
0x2f2e   : > { %10937 = vtanh.f32 %v3825_v51 }
0x2f38   : > { %v10938_v21 = vpop.eup %10937 }
0x2f39   : > { %3828 = vrot.lane.b32.xlu1 %v10938_v21, %s13703_s23 }
0x2fab   : > { %v3829_v26 = vpop.permute.xlu1 %3828 }
0x2fac   : > { %v3831_v43 = vmul.f32 %v10936_v58, %v3829_v26 }
0x2ffc   : > { %v4108_v23 = vpop.f32.mrb[26].mxu0 }
0x2ffd   : > { %v4109_v25 = vadd.f32 %v12181_v52, %v4108_v23  ;;  %v10116_v60 = vpop.f32.mrb[27].mxu0 }
0x2fff   : > { %10939 = vtanh.f32 %v4109_v25  ;;  %v9389_v36 = vmul.f32 -1.442695, %v4109_v25 }
0x3001   : > { %10941 = vpow2.f32 %v9389_v36 }
0x3009   : > { %v10940_v32 = vpop.eup %10939 }
0x300a   : > { %4121 = vrot.lane.b32.xlu0 %v10940_v32, %s13733_s1 }
0x300b   : > { %v10942_v48 = vpop.eup %10941 }
0x300c   : > { %v4115_v59 = vadd.f32 1.0, %v10942_v48  ;;  %v761_v48 = vld [vmem:[%s13672_s13] sm:$0xff] }
0x300e   : > { %10943 = vrcp.f32 %v4115_v59  ;;  %v762_v59 = vld [vmem:[%s13672_s13 + $0x8] sm:$0xff] }
0x3018   : > { %v10944_v45 = vpop.eup %10943 }
0x3019   : > { %v4119_v29 = vmul.f32 %v10944_v45, %v12264_v28 }
0x307c   : > { %v4122_v0 = vpop.permute.xlu0 %4121 }
0x307d   : > { %v4124_v8 = vmul.f32 %v10944_v45, %v4122_v0 }
0x307f   : > { %4126 = vrot.lane.b32.xlu0 %v4124_v8, %s13703_s23 }
0x30f1   : > { %v4127_v12 = vpop.permute.xlu0 %4126 }
0x30f2   : > { %v4129_v52 = vadd.f32 %v4127_v12, %v4119_v29 }
0x30f4   : > { %10945 = vtanh.f32 %v4129_v52 }
0x30fe   : > { %v10946_v42 = vpop.eup %10945 }
0x30ff   : > { %4132 = vrot.lane.b32.xlu0 %v10946_v42, %s13703_s23 }
0x3103   : > { %4141 = vrot.lane.b32.xlu0 %v3831_v43, %s13734_s28 }
0x3171   : > { %v4133_v15 = vpop.permute.xlu0 %4132 }
0x3172   : > { %v4135_v10 = vmul.f32 %v10944_v45, %v4133_v15  ;;  %v12357_v45 = vpack.c.bf16 %v762_v59, %v761_v48 }
0x3174   : > { %4137 = vrot.lane.b32.xlu1 %v4135_v10, %s13735_s25 }
0x3175   : > { %v4142_v3 = vpop.permute.xlu0 %4141 }
0x31e6   : > { %v4138_v18 = vpop.permute.xlu1 %4137 }
0x31e7   : > { %4246 = vst.msk [vmem:[%s12305_s2] sm:$0xff] %vm1273_vm6, %v4138_v18  ;;  %10126 = vmatprep.mubr.msk.f32.mxu1 %vm1273_vm6, %v4138_v18  ;;  %v4144_v28 = vsel %vm1273_vm6, %v4138_v18, %v4142_v3  ;;  %v12378_v3 = vld [vmem:[%s13673_s14] ss:$0 sm:$0xff] }
0x31e8   : > { %10122 = vmatmul.mubr.msk.f32.vlgmr.msra.gmra.mrb[28].mxu0 %vm964_vm3, %v4144_v28 }
0x31e9   : > { %10131 = vmatprep.mubr.f32.mxu0 %v11507_v13  ;;  %10130 = vmatpush3.msra.mxu0 %v12322_v61 }
0x31ec   : > { %10132 = vmatmul.mubr.f32.vlgmr.msra.gmra.mrb[30].mxu0 %v11507_v13 }
0x32bb   : > { %v4214_v46 = vpop.f32.mrb[28].mxu0 }
0x32bc   : > { %v4215_v33 = vadd.f32 %v12163_v37, %v4214_v46  ;;  %v10123_v40 = vpop.f32.mrb[29].mxu0  ;;  %v759_v37 = vld [vmem:[%s13736_s10] sm:$0xff] }
0x32bd   : > { %10124 = vmatprep.subr.mxu1 %v759_v37 }
0x32be   : > { %10947 = vtanh.f32 %v4215_v33  ;;  %v9391_v31 = vmul.f32 -1.442695, %v4215_v33  ;;  %10125 = vmatpush3.msra.mxu1 %v759_v37 }
0x32bf   : > { %v10133_v57 = vpop.f32.mrb[30].mxu0  ;;  %10534 = vmatprep.subr.bf16.mxu1 %v12357_v45 }
0x32c0   : > { %10949 = vpow2.f32 %v9391_v31  ;;  %v4402_v19 = vpop.f32.mrb[31].mxu0 }
0x32c8   : > { %v10948_v49 = vpop.eup %10947 }
0x32c9   : > { %4227 = vrot.lane.b32.xlu1 %v10948_v49, %s13733_s1 }
0x32ca   : > { %v10950_v44 = vpop.eup %10949 }
0x32cb   : > { %v4221_v24 = vadd.f32 1.0, %v10950_v44 }
0x32cd   : > { %10951 = vrcp.f32 %v4221_v24 }
0x32d7   : > { %v10952_v54 = vpop.eup %10951 }
0x32d8   : > { %v4225_v35 = vmul.f32 %v10952_v54, %v3825_v51 }
0x333b   : > { %v4228_v56 = vpop.permute.xlu1 %4227 }
0x333c   : > { %v4230_v22 = vmul.f32 %v10952_v54, %v4228_v56 }
0x333e   : > { %4232 = vrot.lane.b32.xlu0 %v4230_v22, %s13703_s23 }
0x33b0   : > { %v4233_v62 = vpop.permute.xlu0 %4232 }
0x33b1   : > { %v4235_v30 = vadd.f32 %v4233_v62, %v4225_v35 }
0x33b3   : > { %10953 = vtanh.f32 %v4235_v30 }
0x33bd   : > { %v10954_v55 = vpop.eup %10953 }
0x33be   : > { %4238 = vrot.lane.b32.xlu1 %v10954_v55, %s13703_s23 }
0x3430   : > { %v4239_v1 = vpop.permute.xlu1 %4238 }
0x3431   : > { %v4241_v11 = vmul.f32 %v10952_v54, %v4239_v1 }
0x3433   : > { %4243 = vrot.lane.b32.xlu0 %v4241_v11, %s13735_s25 }
0x34a5   : > { %v4244_v39 = vpop.permute.xlu0 %4243 }
0x34a6   : > { %4247 = vst.msk [vmem:[%s12305_s2 + $0x8] sm:$0xff] %vm1273_vm6, %v4244_v39  ;;  %10127 = vmatmul.mubr.msk.f32.vlgmr.msra.gmra.mrb[42].mxu1 %vm1273_vm6, %v4244_v39 }
0x34a7   : > { %10536 = vmatpush3.bf16.msra.mxu1 %v12357_v45 }
0x3579   : > { %v10128_v41 = vpop.f32.mrb[42].mxu1 }
0x357a   : > { %v12335_v13 = vadd.f32 %v10128_v41, %v9392_v2  ;;  %v4325_v20 = vpop.f32.mrb[43].mxu1 }
0x357b   : > { %v12337_v4 = vadd.f32 %v9392_v2, %v4325_v20  ;;  %v763_v20 = vld [vmem:[%s13674_s15] sm:$0xff] }
0x357c   : > { %v4412_v9 = vadd.f32 %v10133_v57, %v12335_v13 }
0x357d   : > { %v4411_v34 = vadd.f32 %v4402_v19, %v12337_v4 }
0x357e   : > { %10955 = vtanh.f32 %v4412_v9  ;;  %v9396_v6 = vmul.f32 -1.442695, %v4412_v9  ;;  %v764_v9 = vld [vmem:[%s13674_s15 + $0x8] sm:$0xff] }
0x357f   : > { %10957 = vtanh.f32 %v4411_v34  ;;  %v9395_v7 = vmul.f32 -1.442695, %v4411_v34  ;;  %v12398_v34 = vpack.c.bf16 %v764_v9, %v763_v20 }
0x3580   : > { %10959 = vpow2.f32 %v9396_v6  ;;  %v12407_v6 = vld [vmem:[%s13674_s15 + $0x10] sm:$0xff] }
0x3581   : > { %10961 = vpow2.f32 %v9395_v7  ;;  %10538 = vmatprep.subr.bf16.mxu0 %v12398_v34 }
0x3582   : > { %10540 = vmatpush3.bf16.msra.mxu0 %v12398_v34 }
0x3583   : > { %10145 = vmatprep.subr.mxu0 %v12407_v6 }
0x3586   : > { %10146 = vmatpush3.msra.mxu0 %v12407_v6 }
0x3587   : > { %10161 = vmatprep.subr.mxu0 %v12322_v61 }
0x3588   : > { %v10956_v5 = vpop.eup %10955 }
0x3589   : > { %v10958_v63 = vpop.eup %10957  ;;  %4433 = vrot.lane.b32.xlu0 %v10956_v5, %s13733_s1 }
0x358a   : > { %4431 = vrot.lane.b32.xlu1 %v10958_v63, %s13733_s1  ;;  %v10960_v27 = vpop.eup %10959 }
0x358b   : > { %v10962_v47 = vpop.eup %10961  ;;  %v4420_v58 = vadd.f32 1.0, %v10960_v27 }
0x358c   : > { %v4419_v38 = vadd.f32 1.0, %v10962_v47 }
0x358d   : > { %10963 = vrcp.f32 %v4420_v58 }
0x358e   : > { %10965 = vrcp.f32 %v4419_v38 }
0x3597   : > { %v10964_v14 = vpop.eup %10963 }
0x3598   : > { %v10966_v16 = vpop.eup %10965  ;;  %v4428_v21 = vmul.f32 0.0, %v10964_v14 }
0x3599   : > { %v4427_v25 = vmul.f32 0.0, %v10966_v16 }
0x35fb   : > { %v4434_v50 = vpop.permute.xlu0 %4433 }
0x35fc   : > { %v4438_v17 = vmul.f32 %v10964_v14, %v4434_v50  ;;  %v4432_v53 = vpop.permute.xlu1 %4431 }
0x35fd   : > { %v4437_v51 = vmul.f32 %v10966_v16, %v4432_v53 }
0x35fe   : > { %4443 = vrot.lane.b32.xlu0 %v4438_v17, %s13703_s23  ;;  %v12437_v17 = vld [vmem:[%s13675_s16] ss:$0 sm:$0xff] }
0x35ff   : > { %4441 = vrot.lane.b32.xlu1 %v4437_v51, %s13703_s23 }
0x3670   : > { %v4444_v23 = vpop.permute.xlu0 %4443 }
0x3671   : > { %v12345_v60 = vadd.f32 %v4444_v23, %v4428_v21  ;;  %v4442_v32 = vpop.permute.xlu1 %4441 }
0x3672   : > { %v12347_v36 = vadd.f32 %v4442_v32, %v4427_v25 }
0x3673   : > { %10967 = vtanh.f32 %v12345_v60 }
0x3674   : > { %10969 = vtanh.f32 %v12347_v36 }
0x367d   : > { %v10968_v0 = vpop.eup %10967 }
0x367e   : > { %v10970_v8 = vpop.eup %10969  ;;  %4455 = vrot.lane.b32.xlu0 %v10968_v0, %s13703_s23 }
0x367f   : > { %4453 = vrot.lane.b32.xlu1 %v10970_v8, %s13703_s23 }
0x36f0   : > { %v4456_v29 = vpop.permute.xlu0 %4455 }
0x36f1   : > { %v4460_v12 = vmul.f32 %v10964_v14, %v4456_v29  ;;  %v4454_v52 = vpop.permute.xlu1 %4453 }
0x36f2   : > { %v4459_v42 = vmul.f32 %v10966_v16, %v4454_v52 }
0x36f3   : > { %4465 = vrot.lane.b32.xlu0 %v4460_v12, %s13735_s25 }
0x36f4   : > { %4463 = vrot.lane.b32.xlu1 %v4459_v42, %s13735_s25 }
0x3765   : > { %v12365_v26 = vpop.permute.xlu0 %4465 }
0x3766   : > { %v12367_v43 = vpop.permute.xlu1 %4463  ;;  %v4470_v10 = vsel %vm1273_vm6, %v12365_v26, 0.0 }
0x3767   : > { %v4469_v15 = vsel %vm1273_vm6, %v12367_v43, 0.0 }
0x3768   : > { %10138 = vmatprep.mubr.msk.f32.mxu1 %vm964_vm3, %v4469_v15 }
0x3769   : > { %10139 = vmatmul.mubr.msk.f32.vlgmr.msra.gmra.mrb[44].mxu1 %vm964_vm3, %v4470_v10 }
0x383c   : > { %v10140_v18 = vpop.f32.mrb[44].mxu1 }
0x383d   : > { %v4549_v28 = vadd.f32 %v10140_v18, %v12378_v3  ;;  %v4543_v46 = vpop.f32.mrb[45].mxu1 }
0x383e   : > { %v4544_v33 = vadd.f32 %v12378_v3, %v4543_v46 }
0x383f   : > { %10971 = vtanh.f32 %v4549_v28  ;;  %v9400_v31 = vmul.f32 -1.442695, %v4549_v28 }
0x3840   : > { %10973 = vtanh.f32 %v4544_v33  ;;  %v9399_v44 = vmul.f32 -1.442695, %v4544_v33 }
0x3841   : > { %10975 = vpow2.f32 %v9400_v31 }
0x3842   : > { %10977 = vpow2.f32 %v9399_v44 }
0x3849   : > { %v10972_v40 = vpop.eup %10971 }
0x384a   : > { %v10974_v49 = vpop.eup %10973  ;;  %4572 = vrot.lane.b32.xlu0 %v10972_v40, %s13733_s1 }
0x384b   : > { %4570 = vrot.lane.b32.xlu1 %v10974_v49, %s13733_s1  ;;  %v10976_v24 = vpop.eup %10975 }
0x384c   : > { %v10978_v54 = vpop.eup %10977  ;;  %v4559_v56 = vadd.f32 1.0, %v10976_v24 }
0x384d   : > { %v4558_v22 = vadd.f32 1.0, %v10978_v54 }
0x384e   : > { %10979 = vrcp.f32 %v4559_v56 }
0x384f   : > { %10981 = vrcp.f32 %v4558_v22 }
0x3858   : > { %v10980_v35 = vpop.eup %10979 }
0x3859   : > { %v10982_v30 = vpop.eup %10981  ;;  %v4567_v11 = vmul.f32 0.0, %v10980_v35 }
0x385a   : > { %v4566_v57 = vmul.f32 0.0, %v10982_v30 }
0x38bc   : > { %v4573_v62 = vpop.permute.xlu0 %4572 }
0x38bd   : > { %v4577_v37 = vmul.f32 %v10980_v35, %v4573_v62  ;;  %v4571_v55 = vpop.permute.xlu1 %4570 }
0x38be   : > { %v4576_v1 = vmul.f32 %v10982_v30, %v4571_v55 }
0x38bf   : > { %4582 = vrot.lane.b32.xlu0 %v4577_v37, %s13703_s23 }
0x38c0   : > { %4580 = vrot.lane.b32.xlu1 %v4576_v1, %s13703_s23 }
0x3931   : > { %v4583_v39 = vpop.permute.xlu0 %4582 }
0x3932   : > { %v12386_v19 = vadd.f32 %v4583_v39, %v4567_v11  ;;  %v4581_v2 = vpop.permute.xlu1 %4580 }
0x3933   : > { %v12388_v41 = vadd.f32 %v4581_v2, %v4566_v57 }
0x3934   : > { %10983 = vtanh.f32 %v12386_v19 }
0x3935   : > { %10985 = vtanh.f32 %v12388_v41 }
0x393e   : > { %v10984_v5 = vpop.eup %10983 }
0x393f   : > { %v10986_v63 = vpop.eup %10985  ;;  %4594 = vrot.lane.b32.xlu0 %v10984_v5, %s13703_s23 }
0x3940   : > { %4592 = vrot.lane.b32.xlu1 %v10986_v63, %s13703_s23 }
0x39b1   : > { %v4595_v7 = vpop.permute.xlu0 %4594 }
0x39b2   : > { %v12412_v27 = vmul.f32 %v10980_v35, %v4595_v7  ;;  %v4593_v47 = vpop.permute.xlu1 %4592 }
0x39b3   : > { %v12414_v58 = vmul.f32 %v10982_v30, %v4593_v47 }
0x39b4   : > { %4604 = vrot.lane.b32.xlu0 %v12412_v27, %s13735_s25 }
0x39b5   : > { %4602 = vrot.lane.b32.xlu1 %v12414_v58, %s13735_s25 }
0x3a26   : > { %v4605_v38 = vpop.permute.xlu0 %4604 }
0x3a27   : > { %v4603_v14 = vpop.permute.xlu1 %4602  ;;  %v4609_v16 = vsel %vm1273_vm6, %v4605_v38, 0.0 }
0x3a28   : > { %v4608_v50 = vsel %vm1273_vm6, %v4603_v14, 0.0 }
0x3a29   : > { %10147 = vmatprep.mubr.msk.f32.mxu0 %vm1171_vm5, %v4608_v50  ;;  %v766_v50 = vld [vmem:[%s13676_s17] sm:$0xff] }
0x3a2a   : > { %10148 = vmatmul.mubr.msk.f32.vlgmr.msra.gmra.mrb[32].mxu0 %vm1171_vm5, %v4609_v16 }
0x3a2b   : > { %10162 = vmatpush3.msra.mxu0 %v12322_v61  ;;  %10163 = vmatprep.mubr.msk.f32.mxu0 %vm1273_vm6, %v12367_v43 }
0x3a2c   : > { %10554 = vmatprep.subr.bf16.mxu0 %v12398_v34 }
0x3a2e   : > { %10164 = vmatmul.mubr.msk.f32.vlgmr.msra.gmra.mrb[34].mxu0 %vm1273_vm6, %v12365_v26 }
0x3a2f   : > { %10556 = vmatpush3.bf16.msra.mxu0 %v12398_v34 }
0x3a30   : > { %10177 = vmatprep.subr.mxu0 %v12407_v6 }
0x3a33   : > { %10178 = vmatpush3.msra.mxu0 %v12407_v6 }
0x3a34   : > { %10193 = vmatprep.subr.mxu0 %v12322_v61 }
0x3afd   : > { %v10149_v53 = vpop.f32.mrb[32].mxu0 }
0x3afe   : > { %v4688_v51 = vadd.f32 %v10149_v53, %v12437_v17  ;;  %v4682_v21 = vpop.f32.mrb[33].mxu0 }
0x3aff   : > { %v4683_v23 = vadd.f32 %v12437_v17, %v4682_v21 }
0x3b00   : > { %10987 = vtanh.f32 %v4688_v51  ;;  %v9404_v52 = vmul.f32 -1.442695, %v4688_v51  ;;  %v769_v51 = vld [vmem:[%s13676_s17 + $0x18] sm:$0xff] }
0x3b01   : > { %10989 = vtanh.f32 %v4683_v23  ;;  %v10165_v25 = vpop.f32.mrb[34].mxu0  ;;  %v9403_v42 = vmul.f32 -1.442695, %v4683_v23 }
0x3b02   : > { %v4958_v32 = vadd.f32 %v10165_v25, %v12335_v13  ;;  %v4948_v48 = vpop.f32.mrb[35].mxu0 }
0x3b03   : > { %v4957_v59 = vadd.f32 %v4948_v48, %v12337_v4 }
0x3b04   : > { %10991 = vtanh.f32 %v4958_v32  ;;  %v9412_v26 = vmul.f32 -1.442695, %v4958_v32 }
0x3b05   : > { %10993 = vtanh.f32 %v4957_v59  ;;  %v9411_v43 = vmul.f32 -1.442695, %v4957_v59 }
0x3b06   : > { %10995 = vpow2.f32 %v9404_v52 }
0x3b07   : > { %10997 = vpow2.f32 %v9403_v42 }
0x3b08   : > { %10999 = vpow2.f32 %v9412_v26 }
0x3b09   : > { %11001 = vpow2.f32 %v9411_v43 }
0x3b0a   : > { %v10988_v0 = vpop.eup %10987 }
0x3b0b   : > { %v10990_v8 = vpop.eup %10989  ;;  %4711 = vrot.lane.b32.xlu0 %v10988_v0, %s13727_s29 }
0x3b0c   : > { %4709 = vrot.lane.b32.xlu1 %v10990_v8, %s13727_s29 }
0x3b0e   : > { %v10992_v29 = vpop.eup %10991 }
0x3b0f   : > { %v10994_v12 = vpop.eup %10993  ;;  %4979 = vrot.lane.b32.xlu0 %v10992_v29, %s13733_s1 }
0x3b10   : > { %4977 = vrot.lane.b32.xlu1 %v10994_v12, %s13733_s1  ;;  %v10996_v15 = vpop.eup %10995 }
0x3b11   : > { %v10998_v10 = vpop.eup %10997  ;;  %v4698_v18 = vadd.f32 1.0, %v10996_v15 }
0x3b12   : > { %v11000_v28 = vpop.eup %10999  ;;  %v4697_v46 = vadd.f32 1.0, %v10998_v10 }
0x3b13   : > { %v11002_v33 = vpop.eup %11001  ;;  %11003 = vrcp.f32 %v4698_v18  ;;  %v4966_v40 = vadd.f32 1.0, %v11000_v28 }
0x3b14   : > { %11005 = vrcp.f32 %v4697_v46  ;;  %v4965_v49 = vadd.f32 1.0, %v11002_v33 }
0x3b15   : > { %11007 = vrcp.f32 %v4966_v40 }
0x3b16   : > { %11009 = vrcp.f32 %v4965_v49 }
0x3b1d   : > { %v11004_v31 = vpop.eup %11003 }
0x3b1e   : > { %v11006_v24 = vpop.eup %11005  ;;  %v4706_v11 = vmul.f32 0.0, %v11004_v31 }
0x3b1f   : > { %v11008_v35 = vpop.eup %11007  ;;  %v4705_v57 = vmul.f32 0.0, %v11006_v24 }
0x3b20   : > { %v11010_v30 = vpop.eup %11009  ;;  %v4974_v5 = vmul.f32 %v11008_v35, %v12345_v60  ;;  %v767_v60 = vld [vmem:[%s13676_s17 + $0x8] sm:$0xff] }
0x3b21   : > { %v4973_v7 = vmul.f32 %v11010_v30, %v12347_v36  ;;  %v768_v36 = vld [vmem:[%s13676_s17 + $0x10] sm:$0xff]  ;;  %v12474_v53 = vpack.c.bf16 %v767_v60, %v766_v50 }
0x3b22   : > { %v12480_v23 = vpack.c.bf16 %v769_v51, %v768_v36 }
0x3b23   : > { %10542 = vmatprep.subr.bf16.mxu1 %v12474_v53 }
0x3b24   : > { %10544 = vmatpush3.bf16.msra.mxu1 %v12474_v53 }
0x3b25   : > { %10546 = vmatprep.subr.bf16.mxu1 %v12480_v23 }
0x3b28   : > { %10548 = vmatpush3.bf16.msra.mxu1 %v12480_v23 }
0x3b29   : > { %10550 = vmatprep.subr.bf16.mxu1 %v12357_v45 }
0x3b7d   : > { %v4712_v44 = vpop.permute.xlu0 %4711 }
0x3b7e   : > { %v4716_v54 = vmul.f32 %v11004_v31, %v4712_v44  ;;  %v4710_v56 = vpop.permute.xlu1 %4709 }
0x3b7f   : > { %v4715_v22 = vmul.f32 %v11006_v24, %v4710_v56 }
0x3b80   : > { %4721 = vrot.lane.b32.xlu0 %v4716_v54, %s13725_s27 }
0x3b81   : > { %v4980_v62 = vpop.permute.xlu0 %4979  ;;  %4719 = vrot.lane.b32.xlu1 %v4715_v22, %s13725_s27 }
0x3b82   : > { %v4984_v37 = vmul.f32 %v11008_v35, %v4980_v62  ;;  %v4978_v55 = vpop.permute.xlu1 %4977 }
0x3b83   : > { %v4983_v1 = vmul.f32 %v11010_v30, %v4978_v55 }
0x3b84   : > { %4989 = vrot.lane.b32.xlu0 %v4984_v37, %s13703_s23 }
0x3b85   : > { %4987 = vrot.lane.b32.xlu1 %v4983_v1, %s13703_s23 }
0x3bf2   : > { %v4722_v39 = vpop.permute.xlu0 %4721 }
0x3bf3   : > { %v12451_v2 = vadd.f32 %v4722_v39, %v4706_v11  ;;  %v4720_v20 = vpop.permute.xlu1 %4719 }
0x3bf4   : > { %v12453_v9 = vadd.f32 %v4720_v20, %v4705_v57 }
0x3bf5   : > { %11011 = vtanh.f32 %v12451_v2 }
0x3bf6   : > { %11013 = vtanh.f32 %v12453_v9  ;;  %v4990_v63 = vpop.permute.xlu0 %4989 }
0x3bf7   : > { %v12459_v47 = vadd.f32 %v4990_v63, %v4974_v5  ;;  %v4988_v38 = vpop.permute.xlu1 %4987 }
0x3bf8   : > { %v12461_v14 = vadd.f32 %v4988_v38, %v4973_v7 }
0x3bf9   : > { %11015 = vtanh.f32 %v12459_v47 }
0x3bfa   : > { %11017 = vtanh.f32 %v12461_v14 }
0x3bff   : > { %v11012_v16 = vpop.eup %11011 }
0x3c00   : > { %v11014_v21 = vpop.eup %11013  ;;  %4733 = vrot.lane.b32.xlu0 %v11012_v16, %s13725_s27 }
0x3c01   : > { %4731 = vrot.lane.b32.xlu1 %v11014_v21, %s13725_s27 }
0x3c03   : > { %v11016_v25 = vpop.eup %11015 }
0x3c04   : > { %v11018_v32 = vpop.eup %11017  ;;  %5001 = vrot.lane.b32.xlu0 %v11016_v25, %s13737_s7 }
0x3c05   : > { %4999 = vrot.lane.b32.xlu1 %v11018_v32, %s13737_s7 }
0x3c08   : > { %5015 = vrot.lane.b32.xlu0 %v12414_v58, %s13734_s28 }
0x3c72   : > { %v4734_v48 = vpop.permute.xlu0 %4733 }
0x3c73   : > { %v12492_v59 = vmul.f32 %v11004_v31, %v4734_v48  ;;  %v4732_v0 = vpop.permute.xlu1 %4731 }
0x3c74   : > { %v12494_v8 = vmul.f32 %v11006_v24, %v4732_v0 }
0x3c75   : > { %4743 = vrot.lane.b32.xlu0 %v12492_v59, %s13729_s3 }
0x3c76   : > { %4741 = vrot.lane.b32.xlu1 %v12494_v8, %s13729_s3  ;;  %v5002_v52 = vpop.permute.xlu0 %5001 }
0x3c77   : > { %v5000_v29 = vpop.permute.xlu1 %4999  ;;  %v5006_v58 = vmul.f32 %v11008_v35, %v5002_v52 }
0x3c78   : > { %v5005_v12 = vmul.f32 %v11010_v30, %v5000_v29 }
0x3c79   : > { %5017 = vrot.lane.b32.xlu0 %v12412_v27, %s13734_s28 }
0x3c7a   : > { %5009 = vrot.lane.b32.xlu1 %v5005_v12, %s13735_s25  ;;  %v5016_v42 = vpop.permute.xlu0 %5015 }
0x3c7e   : > { %5011 = vrot.lane.b32.xlu1 %v5006_v58, %s13735_s25 }
0x3ce7   : > { %v4744_v26 = vpop.permute.xlu0 %4743 }
0x3ce8   : > { %v4742_v43 = vpop.permute.xlu1 %4741  ;;  %v4748_v10 = vsel %vm964_vm3, %v4744_v26, 0.0 }
0x3ce9   : > { %v4747_v15 = vsel %vm964_vm3, %v4742_v43, 0.0 }
0x3cea   : > { %10158 = vmatprep.mubr.msk.f32.mxu1 %vm1068_vm4, %v4747_v15 }
0x3ceb   : > { %10159 = vmatmul.mubr.msk.f32.vlgmr.msra.gmra.mrb[46].mxu1 %vm1068_vm4, %v4748_v10  ;;  %v5018_v28 = vpop.permute.xlu0 %5017 }
0x3cec   : > { %v12508_v18 = vpop.permute.xlu1 %5009  ;;  %10552 = vmatpush3.bf16.msra.mxu1 %v12357_v45 }
0x3ced   : > { %v5021_v27 = vsel %vm1273_vm6, %v12508_v18, %v5016_v42  ;;  %10558 = vmatprep.subr.bf16.mxu1 %v12474_v53 }
0x3cee   : > { %10170 = vmatprep.mubr.msk.f32.mxu1 %vm964_vm3, %v5021_v27 }
0x3cf0   : > { %v12515_v46 = vpop.permute.xlu1 %5011 }
0x3cf1   : > { %v5022_v33 = vsel %vm1273_vm6, %v12515_v46, %v5018_v28 }
0x3cf2   : > { %10171 = vmatmul.mubr.msk.f32.vlgmr.msra.gmra.mrb[48].mxu1 %vm964_vm3, %v5022_v33 }
0x3cf3   : > { %10560 = vmatpush3.bf16.msra.mxu1 %v12474_v53 }
0x3cf4   : > { %10562 = vmatprep.subr.bf16.mxu1 %v12480_v23 }
0x3cf7   : > { %10564 = vmatpush3.bf16.msra.mxu1 %v12480_v23 }
0x3cf8   : > { %10570 = vmatprep.subr.bf16.mxu1 %v12398_v34 }
0x3dbe   : > { %v12524_v40 = vpop.f32.mrb[46].mxu1 }
0x3dbf   : > { %v12526_v49 = vpop.f32.mrb[47].mxu1 }
0x3dc5   : > { %v10172_v31 = vpop.f32.mrb[48].mxu1 }
0x3dc6   : > { %v5101_v44 = vadd.f32 %v10172_v31, %v12378_v3  ;;  %v5095_v24 = vpop.f32.mrb[49].mxu1 }
0x3dc7   : > { %v5096_v54 = vadd.f32 %v12378_v3, %v5095_v24 }
0x3dc8   : > { %11019 = vtanh.f32 %v5101_v44  ;;  %v9416_v35 = vmul.f32 -1.442695, %v5101_v44 }
0x3dc9   : > { %11021 = vtanh.f32 %v5096_v54  ;;  %v9415_v62 = vmul.f32 -1.442695, %v5096_v54 }
0x3dca   : > { %11023 = vpow2.f32 %v9416_v35 }
0x3dcb   : > { %11025 = vpow2.f32 %v9415_v62 }
0x3dd2   : > { %v11020_v56 = vpop.eup %11019 }
0x3dd3   : > { %v11022_v22 = vpop.eup %11021  ;;  %5124 = vrot.lane.b32.xlu0 %v11020_v56, %s13733_s1 }
0x3dd4   : > { %5122 = vrot.lane.b32.xlu1 %v11022_v22, %s13733_s1  ;;  %v11024_v30 = vpop.eup %11023 }
0x3dd5   : > { %v11026_v37 = vpop.eup %11025  ;;  %v5111_v55 = vadd.f32 1.0, %v11024_v30 }
0x3dd6   : > { %v5110_v1 = vadd.f32 1.0, %v11026_v37 }
0x3dd7   : > { %11027 = vrcp.f32 %v5111_v55 }
0x3dd8   : > { %11029 = vrcp.f32 %v5110_v1 }
0x3de1   : > { %v11028_v11 = vpop.eup %11027 }
0x3de2   : > { %v11030_v57 = vpop.eup %11029  ;;  %v5119_v7 = vmul.f32 %v11028_v11, %v12386_v19 }
0x3de3   : > { %v5118_v50 = vmul.f32 %v11030_v57, %v12388_v41 }
0x3e45   : > { %v5125_v39 = vpop.permute.xlu0 %5124 }
0x3e46   : > { %v5129_v20 = vmul.f32 %v11028_v11, %v5125_v39  ;;  %v5123_v5 = vpop.permute.xlu1 %5122 }
0x3e47   : > { %v5128_v63 = vmul.f32 %v11030_v57, %v5123_v5 }
0x3e48   : > { %5134 = vrot.lane.b32.xlu0 %v5129_v20, %s13737_s7 }
0x3e49   : > { %5132 = vrot.lane.b32.xlu1 %v5128_v63, %s13737_s7  ;;  %v12591_v63 = vld [vmem:[%s13677_s18] ss:$0 sm:$0xff] }
0x3eba   : > { %v5135_v38 = vpop.permute.xlu0 %5134 }
0x3ebb   : > { %v12536_v60 = vadd.f32 %v5135_v38, %v5119_v7  ;;  %v5133_v36 = vpop.permute.xlu1 %5132  ;;  %v4822_v7 = vadd.f32 %v12591_v63, %v12526_v49  ;;  %v4827_v38 = vadd.f32 %v12524_v40, %v12591_v63 }
0x3ebc   : > { %v12538_v16 = vadd.f32 %v5133_v36, %v5118_v50 }
0x3ebd   : > { %11031 = vtanh.f32 %v12536_v60 }
0x3ebe   : > { %11033 = vtanh.f32 %v12538_v16 }
0x3ec7   : > { %v11032_v51 = vpop.eup %11031 }
0x3ec8   : > { %v11034_v21 = vpop.eup %11033  ;;  %5146 = vrot.lane.b32.xlu0 %v11032_v51, %s13737_s7 }
0x3ec9   : > { %5144 = vrot.lane.b32.xlu1 %v11034_v21, %s13737_s7 }
0x3ecc   : > { %5160 = vrot.lane.b32.xlu0 %v12494_v8, %s13733_s1 }
0x3ed0   : > { %5162 = vrot.lane.b32.xlu0 %v12492_v59, %s13733_s1 }
0x3f3a   : > { %v5147_v25 = vpop.permute.xlu0 %5146 }
0x3f3b   : > { %v5145_v19 = vpop.permute.xlu1 %5144  ;;  %v5151_v32 = vmul.f32 %v11028_v11, %v5147_v25 }
0x3f3c   : > { %v12548_v41 = vmul.f32 %v11030_v57, %v5145_v19 }
0x3f3e   : > { %5154 = vrot.lane.b32.xlu1 %v12548_v41, %s13735_s25  ;;  %v5161_v48 = vpop.permute.xlu0 %5160 }
0x3f42   : > { %5156 = vrot.lane.b32.xlu1 %v5151_v32, %s13735_s25  ;;  %v5163_v8 = vpop.permute.xlu0 %5162 }
0x3fb0   : > { %v5155_v0 = vpop.permute.xlu1 %5154 }
0x3fb1   : > { %v5166_v29 = vsel %vm1273_vm6, %v5155_v0, %v5161_v48 }
0x3fb2   : > { %10179 = vmatprep.mubr.msk.f32.mxu0 %vm1171_vm5, %v5166_v29 }
0x3fb4   : > { %v5157_v12 = vpop.permute.xlu1 %5156 }
0x3fb5   : > { %v5167_v59 = vsel %vm1273_vm6, %v5157_v12, %v5163_v8  ;;  %v9407_v8 = vmul.f32 -1.442695, %v4822_v7 }
0x3fb6   : > { %10180 = vmatmul.mubr.msk.f32.vlgmr.msra.gmra.mrb[36].mxu0 %vm1171_vm5, %v5167_v59  ;;  %v9408_v59 = vmul.f32 -1.442695, %v4827_v38 }
0x3fb7   : > { %10194 = vmatpush3.msra.mxu0 %v12322_v61  ;;  %10195 = vmatprep.mubr.msk.f32.mxu0 %vm1273_vm6, %v12508_v18 }
0x3fb8   : > { %10566 = vmatprep.subr.bf16.mxu0 %v12357_v45 }
0x3fba   : > { %10196 = vmatmul.mubr.msk.f32.vlgmr.msra.gmra.mrb[38].mxu0 %vm1273_vm6, %v12515_v46 }
0x3fbb   : > { %10568 = vmatpush3.bf16.msra.mxu0 %v12357_v45 }
0x3fbc   : > { %10574 = vmatprep.subr.bf16.mxu0 %v12474_v53 }
0x4089   : > { %v10181_v52 = vpop.f32.mrb[36].mxu0 }
0x408a   : > { %v5240_v58 = vpop.f32.mrb[37].mxu0 }
0x408b   : > { %v5241_v39 = vadd.f32 %v12437_v17, %v5240_v58 }
0x408d   : > { %v10197_v42 = vpop.f32.mrb[38].mxu0  ;;  %v9419_v29 = vmul.f32 -1.442695, %v5241_v39 }
0x408e   : > { %v5524_v26 = vadd.f32 %v10197_v42, %v12335_v13  ;;  %v5514_v43 = vpop.f32.mrb[39].mxu0 }
0x408f   : > { %v5523_v61 = vadd.f32 %v5514_v43, %v12337_v4 }
0x4090   : > { %11035 = vtanh.f32 %v5524_v26  ;;  %v9428_v18 = vmul.f32 -1.442695, %v5524_v26 }
0x4091   : > { %11037 = vtanh.f32 %v5523_v61  ;;  %v9427_v27 = vmul.f32 -1.442695, %v5523_v61 }
0x4092   : > { %11039 = vpow2.f32 %v9428_v18 }
0x4093   : > { %11041 = vpow2.f32 %v9427_v27 }
0x409a   : > { %v11036_v15 = vpop.eup %11035 }
0x409b   : > { %v11038_v10 = vpop.eup %11037  ;;  %5545 = vrot.lane.b32.xlu0 %v11036_v15, %s13733_s1 }
0x409c   : > { %5543 = vrot.lane.b32.xlu1 %v11038_v10, %s13733_s1  ;;  %v11040_v28 = vpop.eup %11039 }
0x409d   : > { %v11042_v46 = vpop.eup %11041  ;;  %v5532_v33 = vadd.f32 1.0, %v11040_v28 }
0x409e   : > { %v5531_v31 = vadd.f32 1.0, %v11042_v46 }
0x409f   : > { %11043 = vrcp.f32 %v5532_v33 }
0x40a0   : > { %11045 = vrcp.f32 %v5531_v31 }
0x40a9   : > { %v11044_v44 = vpop.eup %11043 }
0x40aa   : > { %v11046_v54 = vpop.eup %11045  ;;  %v5540_v62 = vmul.f32 %v11044_v44, %v12459_v47  ;;  %v5246_v47 = vadd.f32 %v10181_v52, %v12437_v17 }
0x40ab   : > { %v5539_v37 = vmul.f32 %v11046_v54, %v12461_v14 }
0x40ac   : > { %v9420_v12 = vmul.f32 -1.442695, %v5246_v47 }
0x410d   : > { %v5546_v24 = vpop.permute.xlu0 %5545 }
0x410e   : > { %v5550_v56 = vmul.f32 %v11044_v44, %v5546_v24  ;;  %v5544_v22 = vpop.permute.xlu1 %5543 }
0x410f   : > { %v5549_v35 = vmul.f32 %v11046_v54, %v5544_v22 }
0x4110   : > { %5555 = vrot.lane.b32.xlu0 %v5550_v56, %s13737_s7 }
0x4111   : > { %5553 = vrot.lane.b32.xlu1 %v5549_v35, %s13737_s7 }
0x4182   : > { %v5556_v30 = vpop.permute.xlu0 %5555 }
0x4183   : > { %v12573_v55 = vadd.f32 %v5556_v30, %v5540_v62  ;;  %v5554_v1 = vpop.permute.xlu1 %5553 }
0x4184   : > { %v12575_v11 = vadd.f32 %v5554_v1, %v5539_v37 }
0x4185   : > { %11047 = vtanh.f32 %v12573_v55 }
0x4186   : > { %11049 = vtanh.f32 %v12575_v11 }
0x4187   : > { %11051 = vtanh.f32 %v5241_v39 }
0x4188   : > { %11053 = vtanh.f32 %v5246_v47 }
0x4189   : > { %11055 = vtanh.f32 %v4822_v7 }
0x418a   : > { %11057 = vtanh.f32 %v4827_v38 }
0x418b   : > { %11059 = vpow2.f32 %v9419_v29 }
0x418c   : > { %11061 = vpow2.f32 %v9407_v8 }
0x418d   : > { %11063 = vpow2.f32 %v9420_v12 }
0x418e   : > { %11065 = vpow2.f32 %v9408_v59 }
0x418f   : > { %v11048_v57 = vpop.eup %11047 }
0x4190   : > { %v11050_v20 = vpop.eup %11049  ;;  %5567 = vrot.lane.b32.xlu0 %v11048_v57, %s13737_s7 }
0x4191   : > { %5565 = vrot.lane.b32.xlu1 %v11050_v20, %s13737_s7  ;;  %v11052_v14 = vpop.eup %11051 }
0x4192   : > { %v11054_v5 = vpop.eup %11053 }
0x4193   : > { %v11056_v19 = vpop.eup %11055 }
0x4194   : > { %5581 = vrot.lane.b32.xlu0 %v12548_v41, %s13734_s28  ;;  %v11058_v41 = vpop.eup %11057 }
0x4195   : > { %v11060_v52 = vpop.eup %11059 }
0x4196   : > { %v11062_v58 = vpop.eup %11061  ;;  %v5255_v26 = vadd.f32 1.0, %v11060_v52 }
0x4197   : > { %v11064_v15 = vpop.eup %11063  ;;  %v4836_v10 = vadd.f32 1.0, %v11062_v58 }
0x4198   : > { %5583 = vrot.lane.b32.xlu0 %v5151_v32, %s13734_s28  ;;  %v11066_v27 = vpop.eup %11065  ;;  %v5256_v28 = vadd.f32 1.0, %v11064_v15 }
0x4199   : > { %v4837_v46 = vadd.f32 1.0, %v11066_v27 }
0x419c   : > { %5267 = vrot.lane.b32.xlu0 %v11052_v14, %s13727_s29 }
0x41a0   : > { %5269 = vrot.lane.b32.xlu0 %v11054_v5, %s13727_s29 }
0x4202   : > { %v5568_v51 = vpop.permute.xlu0 %5567 }
0x4203   : > { %v5566_v50 = vpop.permute.xlu1 %5565  ;;  %v5572_v21 = vmul.f32 %v11044_v44, %v5568_v51 }
0x4204   : > { %v5571_v36 = vmul.f32 %v11046_v54, %v5566_v50 }
0x4206   : > { %5575 = vrot.lane.b32.xlu1 %v5571_v36, %s13735_s25  ;;  %v5582_v49 = vpop.permute.xlu0 %5581 }
0x420a   : > { %5577 = vrot.lane.b32.xlu1 %v5572_v21, %s13735_s25  ;;  %v5584_v32 = vpop.permute.xlu0 %5583 }
0x420e   : > { %4848 = vrot.lane.b32.xlu1 %v11056_v19, %s13727_s29  ;;  %v5268_v33 = vpop.permute.xlu0 %5267 }
0x4212   : > { %4850 = vrot.lane.b32.xlu1 %v11058_v41, %s13727_s29  ;;  %v5270_v22 = vpop.permute.xlu0 %5269 }
0x4278   : > { %v12601_v25 = vpop.permute.xlu1 %5575 }
0x4279   : > { %v5587_v40 = vsel %vm1273_vm6, %v12601_v25, %v5582_v49 }
0x427a   : > { %10202 = vmatprep.mubr.msk.f32.mxu0 %vm964_vm3, %v5587_v40 }
0x427c   : > { %v12606_v48 = vpop.permute.xlu1 %5577 }
0x427d   : > { %v5588_v0 = vsel %vm1273_vm6, %v12606_v48, %v5584_v32 }
0x427e   : > { %10203 = vmatmul.mubr.msk.f32.vlgmr.msra.gmra.mrb[40].mxu0 %vm964_vm3, %v5588_v0 }
0x427f   : > { %10576 = vmatpush3.bf16.msra.mxu0 %v12474_v53 }
0x4280   : > { %10578 = vmatprep.subr.bf16.mxu0 %v12480_v23  ;;  %v4849_v31 = vpop.permute.xlu1 %4848 }
0x4283   : > { %10580 = vmatpush3.bf16.msra.mxu0 %v12480_v23 }
0x4284   : > { %10586 = vmatprep.subr.bf16.mxu0 %v12398_v34  ;;  %v4851_v62 = vpop.permute.xlu1 %4850 }
0x4351   : > { %v10204_v42 = vpop.f32.mrb[40].mxu0 }
0x4352   : > { %v5667_v43 = vadd.f32 %v10204_v42, %v12378_v3  ;;  %v5661_v61 = vpop.f32.mrb[41].mxu0 }
0x4353   : > { %v5662_v18 = vadd.f32 %v12378_v3, %v5661_v61 }
0x4354   : > { %11067 = vtanh.f32 %v5667_v43  ;;  %v9432_v57 = vmul.f32 -1.442695, %v5667_v43 }
0x4355   : > { %11069 = vtanh.f32 %v5662_v18  ;;  %v9431_v20 = vmul.f32 -1.442695, %v5662_v18 }
0x4356   : > { %11071 = vrcp.f32 %v5255_v26 }
0x4357   : > { %11073 = vrcp.f32 %v4836_v10 }
0x4358   : > { %11075 = vrcp.f32 %v5256_v28 }
0x4359   : > { %11077 = vrcp.f32 %v4837_v46 }
0x435a   : > { %11079 = vpow2.f32 %v9432_v57 }
0x435b   : > { %11081 = vpow2.f32 %v9431_v20 }
0x435e   : > { %v11068_v44 = vpop.eup %11067 }
0x435f   : > { %v11070_v24 = vpop.eup %11069  ;;  %5690 = vrot.lane.b32.xlu0 %v11068_v44, %s13733_s1 }
0x4360   : > { %v12618_v54 = vpop.eup %11071  ;;  %5688 = vrot.lane.b32.xlu1 %v11070_v24, %s13733_s1 }
0x4361   : > { %v12621_v3 = vpop.eup %11073  ;;  %v5273_v56 = vmul.f32 %v12618_v54, %v5268_v33  ;;  %v5263_v41 = vmul.f32 %v12618_v54, %v12453_v9 }
0x4362   : > { %v4854_v35 = vmul.f32 %v12621_v3, %v4849_v31  ;;  %v12626_v30 = vpop.eup %11075  ;;  %v4844_v40 = vmul.f32 0.0, %v12621_v3 }
0x4363   : > { %5277 = vrot.lane.b32.xlu0 %v5273_v56, %s13725_s27  ;;  %v12629_v37 = vpop.eup %11077  ;;  %v5274_v1 = vmul.f32 %v12626_v30, %v5270_v22  ;;  %v5264_v8 = vmul.f32 %v12626_v30, %v12451_v2 }
0x4364   : > { %4858 = vrot.lane.b32.xlu1 %v4854_v35, %s13725_s27  ;;  %v4855_v39 = vmul.f32 %v12629_v37, %v4851_v62  ;;  %v11080_v47 = vpop.eup %11079  ;;  %v4845_v9 = vmul.f32 0.0, %v12629_v37 }
0x4365   : > { %v11082_v14 = vpop.eup %11081  ;;  %v5677_v5 = vadd.f32 1.0, %v11080_v47 }
0x4366   : > { %v5676_v7 = vadd.f32 1.0, %v11082_v14  ;;  %v12708_v14 = vld [vmem:[%s13670_s11] sm:$0xff] }
0x4367   : > { %5279 = vrot.lane.b32.xlu0 %v5274_v1, %s13725_s27  ;;  %11083 = vrcp.f32 %v5677_v5 }
0x4368   : > { %4860 = vrot.lane.b32.xlu1 %v4855_v39, %s13725_s27  ;;  %11085 = vrcp.f32 %v5676_v7 }
0x4371   : > { %v12635_v38 = vpop.eup %11083 }
0x4372   : > { %v11086_v36 = vpop.eup %11085  ;;  %v5685_v61 = vmul.f32 %v12635_v38, %v12536_v60 }
0x4373   : > { %v5684_v10 = vmul.f32 %v11086_v36, %v12538_v16 }
0x43d1   : > { %v5691_v50 = vpop.permute.xlu0 %5690 }
0x43d2   : > { %v5695_v51 = vmul.f32 %v12635_v38, %v5691_v50  ;;  %v5689_v21 = vpop.permute.xlu1 %5688 }
0x43d3   : > { %v5694_v19 = vmul.f32 %v11086_v36, %v5689_v21 }
0x43d4   : > { %5700 = vrot.lane.b32.xlu0 %v5695_v51, %s13737_s7 }
0x43d5   : > { %5698 = vrot.lane.b32.xlu1 %v5694_v19, %s13737_s7  ;;  %v5278_v49 = vpop.permute.xlu0 %5277 }
0x43d6   : > { %v12643_v32 = vadd.f32 %v5278_v49, %v5263_v41  ;;  %v4859_v0 = vpop.permute.xlu1 %4858 }
0x43d7   : > { %v12645_v29 = vadd.f32 %v4859_v0, %v4844_v40 }
0x43d8   : > { %11087 = vtanh.f32 %v12643_v32 }
0x43d9   : > { %11089 = vtanh.f32 %v12645_v29  ;;  %v5280_v12 = vpop.permute.xlu0 %5279 }
0x43da   : > { %v12652_v59 = vadd.f32 %v5280_v12, %v5264_v8  ;;  %v4861_v52 = vpop.permute.xlu1 %4860 }
0x43db   : > { %v12654_v58 = vadd.f32 %v4861_v52, %v4845_v9 }
0x43dc   : > { %11091 = vtanh.f32 %v12652_v59 }
0x43dd   : > { %11093 = vtanh.f32 %v12654_v58 }
0x43e2   : > { %v11088_v42 = vpop.eup %11087 }
0x43e3   : > { %v11090_v26 = vpop.eup %11089  ;;  %5289 = vrot.lane.b32.xlu0 %v11088_v42, %s13725_s27 }
0x43e4   : > { %4870 = vrot.lane.b32.xlu1 %v11090_v26, %s13725_s27 }
0x43e6   : > { %v11092_v2 = vpop.eup %11091 }
0x43e7   : > { %v11094_v43 = vpop.eup %11093  ;;  %5291 = vrot.lane.b32.xlu0 %v11092_v2, %s13725_s27 }
0x43e8   : > { %4872 = vrot.lane.b32.xlu1 %v11094_v43, %s13725_s27 }
0x4446   : > { %v5701_v15 = vpop.permute.xlu0 %5700 }
0x4447   : > { %v12665_v18 = vadd.f32 %v5701_v15, %v5685_v61  ;;  %v5699_v27 = vpop.permute.xlu1 %5698 }
0x4448   : > { %v12667_v28 = vadd.f32 %v5699_v27, %v5684_v10 }
0x4449   : > { %11095 = vtanh.f32 %v12665_v18 }
0x444a   : > { %11097 = vtanh.f32 %v12667_v28 }
0x4453   : > { %v11096_v46 = vpop.eup %11095 }
0x4454   : > { %v11098_v33 = vpop.eup %11097  ;;  %5712 = vrot.lane.b32.xlu0 %v11096_v46, %s13737_s7 }
0x4455   : > { %5710 = vrot.lane.b32.xlu1 %v11098_v33, %s13737_s7  ;;  %v5290_v31 = vpop.permute.xlu0 %5289 }
0x4456   : > { %v5295_v60 = vmul.f32 %v12618_v54, %v5290_v31  ;;  %v4871_v44 = vpop.permute.xlu1 %4870 }
0x4457   : > { %v12675_v16 = vmul.f32 %v12621_v3, %v4871_v44 }
0x4459   : > { %5307 = vrot.lane.b32.xlu0 %v12675_v16, %s13735_s25  ;;  %5299 = vrot.lane.b32.xlu1 %v5295_v60, %s13729_s3  ;;  %v5292_v24 = vpop.permute.xlu0 %5291 }
0x445a   : > { %v5296_v56 = vmul.f32 %v12626_v30, %v5292_v24  ;;  %v4873_v22 = vpop.permute.xlu1 %4872 }
0x445b   : > { %v12682_v35 = vmul.f32 %v12629_v37, %v4873_v22 }
0x445d   : > { %5309 = vrot.lane.b32.xlu0 %v12682_v35, %s13735_s25  ;;  %5301 = vrot.lane.b32.xlu1 %v5296_v56, %s13729_s3 }
0x4461   : > { %5726 = vrot.lane.b32.xlu0 %v5295_v60, %s13733_s1 }
0x4465   : > { %5728 = vrot.lane.b32.xlu0 %v5296_v56, %s13733_s1 }
0x44c6   : > { %v5713_v54 = vpop.permute.xlu0 %5712 }
0x44c7   : > { %v5711_v3 = vpop.permute.xlu1 %5710  ;;  %v12694_v37 = vmul.f32 %v12635_v38, %v5713_v54 }
0x44c8   : > { %v12689_v62 = vmul.f32 %v11086_v36, %v5711_v3 }
0x44ca   : > { %5720 = vrot.lane.b32.xlu1 %v12689_v62, %s13735_s25 }
0x44cb   : > { %v5300_v30 = vpop.permute.xlu1 %5299  ;;  %v5308_v1 = vpop.permute.xlu0 %5307 }
0x44cc   : > { %v5313_v39 = vsel %vm964_vm3, %v5300_v30, %v5308_v1 }
0x44cd   : > { %10190 = vmatprep.mubr.msk.f32.mxu1 %vm1068_vm4, %v5313_v39 }
0x44ce   : > { %5722 = vrot.lane.b32.xlu1 %v12694_v37, %s13735_s25 }
0x44cf   : > { %v5302_v57 = vpop.permute.xlu1 %5301  ;;  %v5310_v20 = vpop.permute.xlu0 %5309 }
0x44d0   : > { %v5314_v47 = vsel %vm964_vm3, %v5302_v57, %v5310_v20 }
0x44d1   : > { %10191 = vmatmul.mubr.msk.f32.vlgmr.msra.gmra.mrb[50].mxu1 %vm1068_vm4, %v5314_v47 }
0x44d2   : > { %10572 = vmatpush3.bf16.msra.mxu1 %v12398_v34 }
0x44d3   : > { %10209 = vmatprep.subr.mxu1 %v12407_v6  ;;  %v5727_v5 = vpop.permute.xlu0 %5726 }
0x44d6   : > { %10210 = vmatpush3.msra.mxu1 %v12407_v6 }
0x44d7   : > { %10225 = vmatprep.subr.mxu1 %v12708_v14  ;;  %v5729_v50 = vpop.permute.xlu0 %5728 }
0x453c   : > { %v5721_v7 = vpop.permute.xlu1 %5720 }
0x453d   : > { %v5732_v38 = vsel %vm1273_vm6, %v5721_v7, %v5727_v5 }
0x453e   : > { %10211 = vmatprep.mubr.msk.f32.mxu1 %vm1171_vm5, %v5732_v38 }
0x4540   : > { %v5723_v36 = vpop.permute.xlu1 %5722 }
0x4541   : > { %v5733_v51 = vsel %vm1273_vm6, %v5723_v36, %v5729_v50 }
0x4542   : > { %10212 = vmatmul.mubr.msk.f32.vlgmr.msra.gmra.mrb[52].mxu1 %vm1171_vm5, %v5733_v51 }
0x4543   : > { %10226 = vmatpush3.msra.mxu1 %v12708_v14  ;;  %10227 = vmatprep.mubr.msk.f32.mxu1 %vm1273_vm6, %v12601_v25 }
0x4544   : > { %10582 = vmatprep.subr.bf16.mxu1 %v12357_v45 }
0x4546   : > { %10228 = vmatmul.mubr.msk.f32.vlgmr.msra.gmra.mrb[54].mxu1 %vm1273_vm6, %v12606_v48 }
0x4547   : > { %10584 = vmatpush3.bf16.msra.mxu1 %v12357_v45 }
0x4548   : > { %10590 = vmatprep.subr.bf16.mxu1 %v12474_v53 }
0x45a4   : > { %v10192_v6 = vpop.f32.mrb[50].mxu1 }
0x45a5   : > { %v5387_v21 = vpop.f32.mrb[51].mxu1 }
0x45a6   : > { %v5388_v1 = vadd.f32 %v12591_v63, %v5387_v21 }
0x45a8   : > { %v9423_v21 = vmul.f32 -1.442695, %v5388_v1 }
0x4615   : > { %v10213_v19 = vpop.f32.mrb[52].mxu1 }
0x4616   : > { %v5806_v41 = vpop.f32.mrb[53].mxu1 }
0x4617   : > { %v5807_v22 = vadd.f32 %v12437_v17, %v5806_v41 }
0x4619   : > { %v10229_v49 = vpop.f32.mrb[54].mxu1 }
0x461a   : > { %v6090_v40 = vadd.f32 %v10229_v49, %v12335_v13  ;;  %v6080_v0 = vpop.f32.mrb[55].mxu1 }
0x461b   : > { %v6089_v8 = vadd.f32 %v6080_v0, %v12337_v4 }
0x461c   : > { %11099 = vtanh.f32 %v6090_v40  ;;  %v9444_v48 = vmul.f32 -1.442695, %v6090_v40 }
0x461d   : > { %11101 = vtanh.f32 %v6089_v8  ;;  %v9443_v9 = vmul.f32 -1.442695, %v6089_v8 }
0x461e   : > { %11103 = vpow2.f32 %v9444_v48 }
0x461f   : > { %11105 = vpow2.f32 %v9443_v9 }
0x4626   : > { %v11100_v25 = vpop.eup %11099 }
0x4627   : > { %v11102_v12 = vpop.eup %11101  ;;  %6111 = vrot.lane.b32.xlu0 %v11100_v25, %s13733_s1  ;;  %v12770_v25 = vld [vmem:[%s13673_s14] ss:$0 sm:$0xff] }
0x4628   : > { %6109 = vrot.lane.b32.xlu1 %v11102_v12, %s13733_s1  ;;  %v11104_v52 = vpop.eup %11103 }
0x4629   : > { %v11106_v42 = vpop.eup %11105  ;;  %v6098_v26 = vadd.f32 1.0, %v11104_v52 }
0x462a   : > { %v6097_v2 = vadd.f32 1.0, %v11106_v42 }
0x462b   : > { %11107 = vrcp.f32 %v6098_v26 }
0x462c   : > { %11109 = vrcp.f32 %v6097_v2 }
0x4635   : > { %v11108_v43 = vpop.eup %11107 }
0x4636   : > { %v11110_v15 = vpop.eup %11109  ;;  %v6106_v33 = vmul.f32 %v11108_v43, %v12573_v55  ;;  %v5812_v55 = vadd.f32 %v10213_v19, %v12437_v17  ;;  %v5393_v17 = vadd.f32 %v10192_v6, %v12591_v63  ;;  %v9435_v6 = vmul.f32 -1.442695, %v5807_v22 }
0x4637   : > { %v6105_v60 = vmul.f32 %v11110_v15, %v12575_v11 }
0x4638   : > { %v9436_v19 = vmul.f32 -1.442695, %v5812_v55  ;;  %v9424_v41 = vmul.f32 -1.442695, %v5393_v17 }
0x4699   : > { %v6112_v61 = vpop.permute.xlu0 %6111 }
0x469a   : > { %v6116_v10 = vmul.f32 %v11108_v43, %v6112_v61  ;;  %v6110_v27 = vpop.permute.xlu1 %6109 }
0x469b   : > { %v6115_v46 = vmul.f32 %v11110_v15, %v6110_v27 }
0x469c   : > { %6121 = vrot.lane.b32.xlu0 %v6116_v10, %s13737_s7 }
0x469d   : > { %6119 = vrot.lane.b32.xlu1 %v6115_v46, %s13737_s7 }
0x470e   : > { %v6122_v31 = vpop.permute.xlu0 %6121 }
0x470f   : > { %v12731_v44 = vadd.f32 %v6122_v31, %v6106_v33  ;;  %v6120_v24 = vpop.permute.xlu1 %6119 }
0x4710   : > { %v12733_v56 = vadd.f32 %v6120_v24, %v6105_v60 }
0x4711   : > { %11111 = vtanh.f32 %v12731_v44 }
0x4712   : > { %11113 = vtanh.f32 %v12733_v56 }
0x4713   : > { %11115 = vtanh.f32 %v5807_v22 }
0x4714   : > { %11117 = vtanh.f32 %v5812_v55 }
0x4715   : > { %11119 = vtanh.f32 %v5388_v1 }
0x4716   : > { %11121 = vtanh.f32 %v5393_v17 }
0x4717   : > { %11123 = vpow2.f32 %v9435_v6 }
0x4718   : > { %11125 = vpow2.f32 %v9423_v21 }
0x4719   : > { %11127 = vpow2.f32 %v9436_v19 }
0x471a   : > { %11129 = vpow2.f32 %v9424_v41 }
0x471b   : > { %v11112_v54 = vpop.eup %11111 }
0x471c   : > { %v11114_v3 = vpop.eup %11113  ;;  %6133 = vrot.lane.b32.xlu0 %v11112_v54, %s13737_s7 }
0x471d   : > { %6131 = vrot.lane.b32.xlu1 %v11114_v3, %s13737_s7  ;;  %v11116_v11 = vpop.eup %11115 }
0x471e   : > { %v11118_v30 = vpop.eup %11117 }
0x4720   : > { %6147 = vrot.lane.b32.xlu0 %v12689_v62, %s13734_s28 }
0x4724   : > { %6149 = vrot.lane.b32.xlu0 %v12694_v37, %s13734_s28  ;;  %v11120_v37 = vpop.eup %11119 }
0x4725   : > { %v11122_v47 = vpop.eup %11121 }
0x4726   : > { %v11124_v49 = vpop.eup %11123 }
0x4727   : > { %v11126_v40 = vpop.eup %11125  ;;  %v5821_v8 = vadd.f32 1.0, %v11124_v49 }
0x4728   : > { %5833 = vrot.lane.b32.xlu0 %v11116_v11, %s13727_s29  ;;  %v11128_v9 = vpop.eup %11127  ;;  %v5402_v52 = vadd.f32 1.0, %v11126_v40 }
0x4729   : > { %v11130_v26 = vpop.eup %11129  ;;  %v5822_v2 = vadd.f32 1.0, %v11128_v9 }
0x472c   : > { %5835 = vrot.lane.b32.xlu0 %v11118_v30, %s13727_s29 }
0x478e   : > { %v6134_v20 = vpop.permute.xlu0 %6133 }
0x478f   : > { %v6132_v39 = vpop.permute.xlu1 %6131  ;;  %v6138_v62 = vmul.f32 %v11108_v43, %v6134_v20  ;;  %v5403_v43 = vadd.f32 1.0, %v11130_v26 }
0x4790   : > { %v6137_v57 = vmul.f32 %v11110_v15, %v6132_v39 }
0x4792   : > { %6141 = vrot.lane.b32.xlu1 %v6137_v57, %s13735_s25  ;;  %v6148_v5 = vpop.permute.xlu0 %6147 }
0x4796   : > { %6143 = vrot.lane.b32.xlu1 %v6138_v62, %s13735_s25  ;;  %v6150_v50 = vpop.permute.xlu0 %6149 }
0x479a   : > { %5414 = vrot.lane.b32.xlu1 %v11120_v37, %s13727_s29  ;;  %v5834_v61 = vpop.permute.xlu0 %5833 }
0x479e   : > { %5416 = vrot.lane.b32.xlu1 %v11122_v47, %s13727_s29  ;;  %v5836_v60 = vpop.permute.xlu0 %5835 }
0x4804   : > { %v12753_v7 = vpop.permute.xlu1 %6141 }
0x4805   : > { %v6153_v38 = vsel %vm1273_vm6, %v12753_v7, %v6148_v5 }
0x4806   : > { %10234 = vmatprep.mubr.msk.f32.mxu1 %vm964_vm3, %v6153_v38 }
0x4808   : > { %v12758_v36 = vpop.permute.xlu1 %6143 }
0x4809   : > { %v6154_v51 = vsel %vm1273_vm6, %v12758_v36, %v6150_v50 }
0x480a   : > { %10235 = vmatmul.mubr.msk.f32.vlgmr.msra.gmra.mrb[56].mxu1 %vm964_vm3, %v6154_v51 }
0x480b   : > { %10592 = vmatpush3.bf16.msra.mxu1 %v12474_v53 }
0x480c   : > { %10594 = vmatprep.subr.bf16.mxu1 %v12480_v23  ;;  %v5415_v15 = vpop.permute.xlu1 %5414 }
0x480f   : > { %10596 = vmatpush3.bf16.msra.mxu1 %v12480_v23 }
0x4810   : > { %10602 = vmatprep.subr.bf16.mxu1 %v12398_v34  ;;  %v5417_v22 = vpop.permute.xlu1 %5416 }
0x48dd   : > { %v10236_v0 = vpop.f32.mrb[56].mxu1 }
0x48de   : > { %v6233_v12 = vadd.f32 %v12770_v25, %v10236_v0  ;;  %v6227_v48 = vpop.f32.mrb[57].mxu1 }
0x48df   : > { %v6228_v42 = vadd.f32 %v12770_v25, %v6227_v48 }
0x48e0   : > { %11131 = vtanh.f32 %v6233_v12  ;;  %v9448_v30 = vmul.f32 -1.442695, %v6233_v12 }
0x48e1   : > { %11133 = vtanh.f32 %v6228_v42  ;;  %v9447_v1 = vmul.f32 -1.442695, %v6228_v42 }
0x48e2   : > { %11135 = vrcp.f32 %v5821_v8 }
0x48e3   : > { %11137 = vrcp.f32 %v5402_v52 }
0x48e4   : > { %11139 = vrcp.f32 %v5822_v2 }
0x48e5   : > { %11141 = vrcp.f32 %v5403_v43 }
0x48e6   : > { %11143 = vpow2.f32 %v9448_v30 }
0x48e7   : > { %11145 = vpow2.f32 %v9447_v1 }
0x48ea   : > { %v11132_v10 = vpop.eup %11131 }
0x48eb   : > { %v11134_v27 = vpop.eup %11133  ;;  %6256 = vrot.lane.b32.xlu0 %v11132_v10, %s13733_s1 }
0x48ec   : > { %v12775_v46 = vpop.eup %11135  ;;  %6254 = vrot.lane.b32.xlu1 %v11134_v27, %s13733_s1 }
0x48ed   : > { %v12778_v33 = vpop.eup %11137  ;;  %v5839_v31 = vmul.f32 %v12775_v46, %v5834_v61  ;;  %v5829_v51 = vmul.f32 %v12775_v46, %v12643_v32 }
0x48ee   : > { %v5420_v24 = vmul.f32 %v12778_v33, %v5415_v15  ;;  %v12783_v54 = vpop.eup %11139  ;;  %v5410_v21 = vmul.f32 %v12778_v33, %v12645_v29 }
0x48ef   : > { %5843 = vrot.lane.b32.xlu0 %v5839_v31, %s13725_s27  ;;  %v12786_v3 = vpop.eup %11141  ;;  %v5840_v55 = vmul.f32 %v12783_v54, %v5836_v60  ;;  %v5830_v40 = vmul.f32 %v12783_v54, %v12652_v59 }
0x48f0   : > { %5424 = vrot.lane.b32.xlu1 %v5420_v24, %s13725_s27  ;;  %v5421_v11 = vmul.f32 %v12786_v3, %v5417_v22  ;;  %v11144_v17 = vpop.eup %11143  ;;  %v5411_v32 = vmul.f32 %v12786_v3, %v12654_v58 }
0x48f1   : > { %v11146_v39 = vpop.eup %11145  ;;  %v6243_v57 = vadd.f32 1.0, %v11144_v17 }
0x48f2   : > { %v6242_v20 = vadd.f32 1.0, %v11146_v39 }
0x48f3   : > { %5845 = vrot.lane.b32.xlu0 %v5840_v55, %s13725_s27  ;;  %11147 = vrcp.f32 %v6243_v57 }
0x48f4   : > { %5426 = vrot.lane.b32.xlu1 %v5421_v11, %s13725_s27  ;;  %11149 = vrcp.f32 %v6242_v20  ;;  %v12865_v20 = vld [vmem:[%s13674_s15 + $0x10] sm:$0xff] }
0x48fd   : > { %v12792_v62 = vpop.eup %11147 }
0x48fe   : > { %v11150_v47 = vpop.eup %11149  ;;  %v6251_v58 = vmul.f32 %v12792_v62, %v12665_v18 }
0x48ff   : > { %v6250_v26 = vmul.f32 %v11150_v47, %v12667_v28 }
0x495d   : > { %v6257_v37 = vpop.permute.xlu0 %6256 }
0x495e   : > { %v6261_v5 = vmul.f32 %v12792_v62, %v6257_v37  ;;  %v6255_v38 = vpop.permute.xlu1 %6254 }
0x495f   : > { %v6260_v50 = vmul.f32 %v11150_v47, %v6255_v38 }
0x4960   : > { %6266 = vrot.lane.b32.xlu0 %v6261_v5, %s13737_s7 }
0x4961   : > { %6264 = vrot.lane.b32.xlu1 %v6260_v50, %s13737_s7  ;;  %v5844_v6 = vpop.permute.xlu0 %5843 }
0x4962   : > { %v12801_v19 = vadd.f32 %v5844_v6, %v5829_v51  ;;  %v5425_v41 = vpop.permute.xlu1 %5424 }
0x4963   : > { %v12803_v49 = vadd.f32 %v5425_v41, %v5410_v21 }
0x4964   : > { %11151 = vtanh.f32 %v12801_v19 }
0x4965   : > { %11153 = vtanh.f32 %v12803_v49  ;;  %v5846_v0 = vpop.permute.xlu0 %5845 }
0x4966   : > { %v12811_v8 = vadd.f32 %v5846_v0, %v5830_v40  ;;  %v5427_v12 = vpop.permute.xlu1 %5426 }
0x4967   : > { %v12813_v29 = vadd.f32 %v5427_v12, %v5411_v32 }
0x4968   : > { %11155 = vtanh.f32 %v12811_v8 }
0x4969   : > { %11157 = vtanh.f32 %v12813_v29 }
0x496e   : > { %v11152_v48 = vpop.eup %11151 }
0x496f   : > { %v11154_v9 = vpop.eup %11153  ;;  %5855 = vrot.lane.b32.xlu0 %v11152_v48, %s13725_s27 }
0x4970   : > { %5436 = vrot.lane.b32.xlu1 %v11154_v9, %s13725_s27 }
0x4972   : > { %v11156_v59 = vpop.eup %11155 }
0x4973   : > { %v11158_v52 = vpop.eup %11157  ;;  %5857 = vrot.lane.b32.xlu0 %v11156_v59, %s13725_s27 }
0x4974   : > { %5438 = vrot.lane.b32.xlu1 %v11158_v52, %s13725_s27 }
0x49d2   : > { %v6267_v42 = vpop.permute.xlu0 %6266 }
0x49d3   : > { %v12824_v2 = vadd.f32 %v6267_v42, %v6251_v58  ;;  %v6265_v43 = vpop.permute.xlu1 %6264 }
0x49d4   : > { %v12826_v61 = vadd.f32 %v6265_v43, %v6250_v26 }
0x49d5   : > { %11159 = vtanh.f32 %v12824_v2 }
0x49d6   : > { %11161 = vtanh.f32 %v12826_v61 }
0x49df   : > { %v11160_v15 = vpop.eup %11159 }
0x49e0   : > { %v11162_v10 = vpop.eup %11161  ;;  %6278 = vrot.lane.b32.xlu0 %v11160_v15, %s13737_s7 }
0x49e1   : > { %6276 = vrot.lane.b32.xlu1 %v11162_v10, %s13737_s7  ;;  %v5856_v27 = vpop.permute.xlu0 %5855 }
0x49e2   : > { %v5861_v18 = vmul.f32 %v12775_v46, %v5856_v27  ;;  %v5437_v31 = vpop.permute.xlu1 %5436 }
0x49e3   : > { %v12834_v28 = vmul.f32 %v12778_v33, %v5437_v31 }
0x49e5   : > { %5873 = vrot.lane.b32.xlu0 %v12834_v28, %s13735_s25  ;;  %5865 = vrot.lane.b32.xlu1 %v5861_v18, %s13729_s3  ;;  %v5858_v60 = vpop.permute.xlu0 %5857 }
0x49e6   : > { %v5862_v24 = vmul.f32 %v12783_v54, %v5858_v60  ;;  %v5439_v22 = vpop.permute.xlu1 %5438 }
0x49e7   : > { %v12841_v55 = vmul.f32 %v12786_v3, %v5439_v22 }
0x49e9   : > { %5875 = vrot.lane.b32.xlu0 %v12841_v55, %s13735_s25  ;;  %5867 = vrot.lane.b32.xlu1 %v5862_v24, %s13729_s3 }
0x49ed   : > { %6292 = vrot.lane.b32.xlu0 %v5861_v18, %s13733_s1 }
0x49f1   : > { %6294 = vrot.lane.b32.xlu0 %v5862_v24, %s13733_s1 }
0x4a52   : > { %v6279_v46 = vpop.permute.xlu0 %6278 }
0x4a53   : > { %v6277_v33 = vpop.permute.xlu1 %6276  ;;  %v12853_v3 = vmul.f32 %v12792_v62, %v6279_v46 }
0x4a54   : > { %v12848_v11 = vmul.f32 %v11150_v47, %v6277_v33 }
0x4a56   : > { %6286 = vrot.lane.b32.xlu1 %v12848_v11, %s13735_s25 }
0x4a57   : > { %v5866_v54 = vpop.permute.xlu1 %5865  ;;  %v5874_v30 = vpop.permute.xlu0 %5873 }
0x4a58   : > { %v5879_v1 = vsel %vm964_vm3, %v5866_v54, %v5874_v30  ;;  %v12899_v54 = vld [vmem:[%s13675_s16] ss:$0 sm:$0xff] }
0x4a59   : > { %10222 = vmatprep.mubr.msk.f32.mxu0 %vm1068_vm4, %v5879_v1 }
0x4a5a   : > { %6288 = vrot.lane.b32.xlu1 %v12853_v3, %s13735_s25 }
0x4a5b   : > { %v5868_v17 = vpop.permute.xlu1 %5867  ;;  %v5876_v39 = vpop.permute.xlu0 %5875 }
0x4a5c   : > { %v5880_v57 = vsel %vm964_vm3, %v5868_v17, %v5876_v39 }
0x4a5d   : > { %10223 = vmatmul.mubr.msk.f32.vlgmr.msra.gmra.mrb[42].mxu0 %vm1068_vm4, %v5880_v57 }
0x4a5e   : > { %10588 = vmatpush3.bf16.msra.mxu0 %v12398_v34 }
0x4a5f   : > { %10241 = vmatprep.subr.mxu0 %v12865_v20  ;;  %v6293_v62 = vpop.permute.xlu0 %6292 }
0x4a62   : > { %10242 = vmatpush3.msra.mxu0 %v12865_v20 }
0x4a63   : > { %10257 = vmatprep.subr.mxu0 %v12708_v14  ;;  %v6295_v5 = vpop.permute.xlu0 %6294 }
0x4ac8   : > { %v6287_v37 = vpop.permute.xlu1 %6286 }
0x4ac9   : > { %v6298_v47 = vsel %vm1273_vm6, %v6287_v37, %v6293_v62 }
0x4aca   : > { %10243 = vmatprep.mubr.msk.f32.mxu0 %vm1171_vm5, %v6298_v47 }
0x4acc   : > { %v6289_v38 = vpop.permute.xlu1 %6288 }
0x4acd   : > { %v6299_v50 = vsel %vm1273_vm6, %v6289_v38, %v6295_v5 }
0x4ace   : > { %10244 = vmatmul.mubr.msk.f32.vlgmr.msra.gmra.mrb[44].mxu0 %vm1171_vm5, %v6299_v50 }
0x4acf   : > { %10258 = vmatpush3.msra.mxu0 %v12708_v14  ;;  %10259 = vmatprep.mubr.msk.f32.mxu0 %vm1273_vm6, %v12753_v7 }
0x4ad0   : > { %10598 = vmatprep.subr.bf16.mxu0 %v12357_v45 }
0x4ad2   : > { %10260 = vmatmul.mubr.msk.f32.vlgmr.msra.gmra.mrb[46].mxu0 %vm1273_vm6, %v12758_v36 }
0x4ad3   : > { %10600 = vmatpush3.bf16.msra.mxu0 %v12357_v45 }
0x4ad4   : > { %10606 = vmatprep.subr.bf16.mxu0 %v12474_v53 }
0x4b30   : > { %v10224_v51 = vpop.f32.mrb[42].mxu0 }
0x4b31   : > { %v5953_v6 = vpop.f32.mrb[43].mxu0  ;;  %v5959_v62 = vadd.f32 %v10224_v51, %v12591_v63 }
0x4b32   : > { %v5954_v57 = vadd.f32 %v12591_v63, %v5953_v6 }
0x4ba1   : > { %v10245_v21 = vpop.f32.mrb[44].mxu0 }
0x4ba2   : > { %v6372_v41 = vpop.f32.mrb[45].mxu0 }
0x4ba3   : > { %v6373_v30 = vadd.f32 %v12899_v54, %v6372_v41 }
0x4ba5   : > { %v10261_v40 = vpop.f32.mrb[46].mxu0 }
0x4ba6   : > { %v6656_v0 = vadd.f32 %v10261_v40, %v12335_v13  ;;  %v6646_v32 = vpop.f32.mrb[47].mxu0  ;;  %v9451_v40 = vmul.f32 -1.442695, %v6373_v30 }
0x4ba7   : > { %v6655_v12 = vadd.f32 %v6646_v32, %v12337_v4 }
0x4ba8   : > { %11163 = vtanh.f32 %v6656_v0  ;;  %v9460_v36 = vmul.f32 -1.442695, %v6656_v0  ;;  %v9439_v0 = vmul.f32 -1.442695, %v5954_v57 }
0x4ba9   : > { %11165 = vtanh.f32 %v6655_v12  ;;  %v9459_v9 = vmul.f32 -1.442695, %v6655_v12  ;;  %v9440_v12 = vmul.f32 -1.442695, %v5959_v62 }
0x4baa   : > { %11167 = vpow2.f32 %v9460_v36 }
0x4bab   : > { %11169 = vpow2.f32 %v9459_v9 }
0x4bb2   : > { %v11164_v7 = vpop.eup %11163 }
0x4bb3   : > { %v11166_v48 = vpop.eup %11165  ;;  %6677 = vrot.lane.b32.xlu0 %v11164_v7, %s13733_s1 }
0x4bb4   : > { %6675 = vrot.lane.b32.xlu1 %v11166_v48, %s13733_s1  ;;  %v11168_v59 = vpop.eup %11167 }
0x4bb5   : > { %v11170_v52 = vpop.eup %11169  ;;  %v6664_v58 = vadd.f32 1.0, %v11168_v59 }
0x4bb6   : > { %v6663_v42 = vadd.f32 1.0, %v11170_v52 }
0x4bb7   : > { %11171 = vrcp.f32 %v6664_v58 }
0x4bb8   : > { %11173 = vrcp.f32 %v6663_v42 }
0x4bc1   : > { %v11172_v26 = vpop.eup %11171 }
0x4bc2   : > { %v11174_v15 = vpop.eup %11173  ;;  %v6672_v31 = vmul.f32 %v11172_v26, %v12731_v44 }
0x4bc3   : > { %v6671_v24 = vmul.f32 %v11174_v15, %v12733_v56  ;;  %v6378_v56 = vadd.f32 %v12899_v54, %v10245_v21 }
0x4bc5   : > { %v9452_v32 = vmul.f32 -1.442695, %v6378_v56 }
0x4c25   : > { %v6678_v43 = vpop.permute.xlu0 %6677 }
0x4c26   : > { %v6682_v10 = vmul.f32 %v11172_v26, %v6678_v43  ;;  %v6676_v27 = vpop.permute.xlu1 %6675 }
0x4c27   : > { %v6681_v18 = vmul.f32 %v11174_v15, %v6676_v27 }
0x4c28   : > { %6687 = vrot.lane.b32.xlu0 %v6682_v10, %s13737_s7 }
0x4c29   : > { %6685 = vrot.lane.b32.xlu1 %v6681_v18, %s13737_s7 }
0x4c9a   : > { %v6688_v60 = vpop.permute.xlu0 %6687 }
0x4c9b   : > { %v12890_v22 = vadd.f32 %v6688_v60, %v6672_v31  ;;  %v6686_v46 = vpop.permute.xlu1 %6685 }
0x4c9c   : > { %v12892_v33 = vadd.f32 %v6686_v46, %v6671_v24 }
0x4c9d   : > { %11175 = vtanh.f32 %v12890_v22 }
0x4c9e   : > { %11177 = vtanh.f32 %v12892_v33 }
0x4c9f   : > { %11179 = vtanh.f32 %v6373_v30 }
0x4ca0   : > { %11181 = vtanh.f32 %v6378_v56 }
0x4ca1   : > { %11183 = vtanh.f32 %v5954_v57 }
0x4ca2   : > { %11185 = vtanh.f32 %v5959_v62 }
0x4ca3   : > { %11187 = vpow2.f32 %v9451_v40 }
0x4ca4   : > { %11189 = vpow2.f32 %v9439_v0 }
0x4ca5   : > { %11191 = vpow2.f32 %v9452_v32 }
0x4ca6   : > { %11193 = vpow2.f32 %v9440_v12 }
0x4ca7   : > { %v11176_v44 = vpop.eup %11175 }
0x4ca8   : > { %v11178_v1 = vpop.eup %11177  ;;  %6699 = vrot.lane.b32.xlu0 %v11176_v44, %s13737_s7 }
0x4ca9   : > { %6697 = vrot.lane.b32.xlu1 %v11178_v1, %s13737_s7  ;;  %v11180_v17 = vpop.eup %11179 }
0x4caa   : > { %v11182_v39 = vpop.eup %11181 }
0x4cac   : > { %6713 = vrot.lane.b32.xlu0 %v12848_v11, %s13734_s28 }
0x4cb0   : > { %6715 = vrot.lane.b32.xlu0 %v12853_v3, %s13734_s28  ;;  %v11184_v3 = vpop.eup %11183 }
0x4cb1   : > { %v11186_v38 = vpop.eup %11185 }
0x4cb2   : > { %v11188_v7 = vpop.eup %11187 }
0x4cb3   : > { %v11190_v48 = vpop.eup %11189  ;;  %v6387_v9 = vadd.f32 1.0, %v11188_v7 }
0x4cb4   : > { %6399 = vrot.lane.b32.xlu0 %v11180_v17, %s13727_s29  ;;  %v11192_v58 = vpop.eup %11191  ;;  %v5968_v42 = vadd.f32 1.0, %v11190_v48 }
0x4cb5   : > { %v11194_v43 = vpop.eup %11193 }
0x4cb6   : > { %v5969_v10 = vadd.f32 1.0, %v11194_v43 }
0x4cb8   : > { %6401 = vrot.lane.b32.xlu0 %v11182_v39, %s13727_s29 }
0x4d1a   : > { %v6700_v5 = vpop.permute.xlu0 %6699 }
0x4d1b   : > { %v6698_v37 = vpop.permute.xlu1 %6697  ;;  %v6704_v11 = vmul.f32 %v11172_v26, %v6700_v5 }
0x4d1c   : > { %v6703_v47 = vmul.f32 %v11174_v15, %v6698_v37  ;;  %v6388_v15 = vadd.f32 1.0, %v11192_v58 }
0x4d1e   : > { %6707 = vrot.lane.b32.xlu1 %v6703_v47, %s13735_s25  ;;  %v6714_v50 = vpop.permute.xlu0 %6713 }
0x4d22   : > { %6709 = vrot.lane.b32.xlu1 %v6704_v11, %s13735_s25  ;;  %v6716_v51 = vpop.permute.xlu0 %6715 }
0x4d26   : > { %5980 = vrot.lane.b32.xlu1 %v11184_v3, %s13727_s29  ;;  %v6400_v27 = vpop.permute.xlu0 %6399 }
0x4d2a   : > { %5982 = vrot.lane.b32.xlu1 %v11186_v38, %s13727_s29  ;;  %v6402_v44 = vpop.permute.xlu0 %6401 }
0x4d90   : > { %v12917_v6 = vpop.permute.xlu1 %6707 }
0x4d91   : > { %v6719_v63 = vsel %vm1273_vm6, %v12917_v6, %v6714_v50 }
0x4d92   : > { %10266 = vmatprep.mubr.msk.f32.mxu0 %vm964_vm3, %v6719_v63 }
0x4d94   : > { %v12922_v21 = vpop.permute.xlu1 %6709 }
0x4d95   : > { %v6720_v41 = vsel %vm1273_vm6, %v12922_v21, %v6716_v51 }
0x4d96   : > { %10267 = vmatmul.mubr.msk.f32.vlgmr.msra.gmra.mrb[48].mxu0 %vm964_vm3, %v6720_v41 }
0x4d97   : > { %10608 = vmatpush3.bf16.msra.mxu0 %v12474_v53 }
0x4d98   : > { %10610 = vmatprep.subr.bf16.mxu0 %v12480_v23  ;;  %v5981_v18 = vpop.permute.xlu1 %5980 }
0x4d9b   : > { %10612 = vmatpush3.bf16.msra.mxu0 %v12480_v23 }
0x4d9c   : > { %10618 = vmatprep.subr.bf16.mxu0 %v12398_v34  ;;  %v5983_v56 = vpop.permute.xlu1 %5982 }
0x4e69   : > { %v10268_v36 = vpop.f32.mrb[48].mxu0 }
0x4e6a   : > { %v6799_v59 = vadd.f32 %v12770_v25, %v10268_v36  ;;  %v6793_v52 = vpop.f32.mrb[49].mxu0 }
0x4e6b   : > { %v6794_v26 = vadd.f32 %v12770_v25, %v6793_v52 }
0x4e6c   : > { %11195 = vtanh.f32 %v6799_v59  ;;  %v9464_v37 = vmul.f32 -1.442695, %v6799_v59 }
0x4e6d   : > { %11197 = vtanh.f32 %v6794_v26  ;;  %v9463_v47 = vmul.f32 -1.442695, %v6794_v26 }
0x4e6e   : > { %11199 = vrcp.f32 %v6387_v9 }
0x4e6f   : > { %11201 = vrcp.f32 %v5968_v42 }
0x4e70   : > { %11203 = vrcp.f32 %v6388_v15 }
0x4e71   : > { %11205 = vrcp.f32 %v5969_v10 }
0x4e72   : > { %11207 = vpow2.f32 %v9464_v37 }
0x4e73   : > { %11209 = vpow2.f32 %v9463_v47 }
0x4e76   : > { %v11196_v31 = vpop.eup %11195 }
0x4e77   : > { %v11198_v60 = vpop.eup %11197  ;;  %6822 = vrot.lane.b32.xlu0 %v11196_v31, %s13733_s1 }
0x4e78   : > { %v12934_v24 = vpop.eup %11199  ;;  %6820 = vrot.lane.b32.xlu1 %v11198_v60, %s13733_s1 }
0x4e79   : > { %v12937_v46 = vpop.eup %11201  ;;  %v6405_v30 = vmul.f32 %v12934_v24, %v6400_v27  ;;  %v6395_v32 = vmul.f32 %v12934_v24, %v12801_v19 }
0x4e7a   : > { %v5986_v1 = vmul.f32 %v12937_v46, %v5981_v18  ;;  %v12942_v17 = vpop.eup %11203  ;;  %v5976_v7 = vmul.f32 %v12937_v46, %v12803_v49 }
0x4e7b   : > { %6409 = vrot.lane.b32.xlu0 %v6405_v30, %s13725_s27  ;;  %v12945_v39 = vpop.eup %11205  ;;  %v6406_v57 = vmul.f32 %v12942_v17, %v6402_v44  ;;  %v6396_v59 = vmul.f32 %v12942_v17, %v12811_v8 }
0x4e7c   : > { %5990 = vrot.lane.b32.xlu1 %v5986_v1, %s13725_s27  ;;  %v5987_v62 = vmul.f32 %v12945_v39, %v5983_v56  ;;  %v11208_v5 = vpop.eup %11207  ;;  %v5977_v19 = vmul.f32 %v12945_v39, %v12813_v29 }
0x4e7d   : > { %v11210_v11 = vpop.eup %11209  ;;  %v6809_v3 = vadd.f32 1.0, %v11208_v5 }
0x4e7e   : > { %v6808_v38 = vadd.f32 1.0, %v11210_v11 }
0x4e7f   : > { %6411 = vrot.lane.b32.xlu0 %v6406_v57, %s13725_s27  ;;  %11211 = vrcp.f32 %v6809_v3 }
0x4e80   : > { %5992 = vrot.lane.b32.xlu1 %v5987_v62, %s13725_s27  ;;  %11213 = vrcp.f32 %v6808_v38 }
0x4e89   : > { %v12951_v50 = vpop.eup %11211 }
0x4e8a   : > { %v11214_v51 = vpop.eup %11213  ;;  %v6817_v29 = vmul.f32 %v12951_v50, %v12824_v2 }
0x4e8b   : > { %v6816_v27 = vmul.f32 %v11214_v51, %v12826_v61 }
0x4ee9   : > { %v6823_v63 = vpop.permute.xlu0 %6822 }
0x4eea   : > { %v6827_v41 = vmul.f32 %v12951_v50, %v6823_v63  ;;  %v6821_v40 = vpop.permute.xlu1 %6820 }
0x4eeb   : > { %v6826_v0 = vmul.f32 %v11214_v51, %v6821_v40 }
0x4eec   : > { %6832 = vrot.lane.b32.xlu0 %v6827_v41, %s13737_s7 }
0x4eed   : > { %6830 = vrot.lane.b32.xlu1 %v6826_v0, %s13737_s7  ;;  %v6410_v12 = vpop.permute.xlu0 %6409 }
0x4eee   : > { %v12960_v48 = vadd.f32 %v6410_v12, %v6395_v32  ;;  %v5991_v36 = vpop.permute.xlu1 %5990 }
0x4eef   : > { %v12962_v9 = vadd.f32 %v5991_v36, %v5976_v7 }
0x4ef0   : > { %11215 = vtanh.f32 %v12960_v48 }
0x4ef1   : > { %11217 = vtanh.f32 %v12962_v9  ;;  %v6412_v52 = vpop.permute.xlu0 %6411 }
0x4ef2   : > { %v12970_v58 = vadd.f32 %v6412_v52, %v6396_v59  ;;  %v5993_v42 = vpop.permute.xlu1 %5992 }
0x4ef3   : > { %v12972_v49 = vadd.f32 %v5993_v42, %v5977_v19 }
0x4ef4   : > { %11219 = vtanh.f32 %v12970_v58 }
0x4ef5   : > { %11221 = vtanh.f32 %v12972_v49 }
0x4efa   : > { %v11216_v26 = vpop.eup %11215 }
0x4efb   : > { %v11218_v43 = vpop.eup %11217  ;;  %6421 = vrot.lane.b32.xlu0 %v11216_v26, %s13725_s27 }
0x4efc   : > { %6002 = vrot.lane.b32.xlu1 %v11218_v43, %s13725_s27 }
0x4efe   : > { %v11220_v8 = vpop.eup %11219 }
0x4eff   : > { %v11222_v15 = vpop.eup %11221  ;;  %6423 = vrot.lane.b32.xlu0 %v11220_v8, %s13725_s27 }
0x4f00   : > { %6004 = vrot.lane.b32.xlu1 %v11222_v15, %s13725_s27 }
0x4f5e   : > { %v6833_v10 = vpop.permute.xlu0 %6832 }
0x4f5f   : > { %v12983_v18 = vadd.f32 %v6833_v10, %v6817_v29  ;;  %v6831_v31 = vpop.permute.xlu1 %6830 }
0x4f60   : > { %v12985_v60 = vadd.f32 %v6831_v31, %v6816_v27 }
0x4f61   : > { %11223 = vtanh.f32 %v12983_v18 }
0x4f62   : > { %11225 = vtanh.f32 %v12985_v60 }
0x4f6b   : > { %v11224_v30 = vpop.eup %11223 }
0x4f6c   : > { %v11226_v44 = vpop.eup %11225  ;;  %6844 = vrot.lane.b32.xlu0 %v11224_v30, %s13737_s7 }
0x4f6d   : > { %6842 = vrot.lane.b32.xlu1 %v11226_v44, %s13737_s7  ;;  %v6422_v1 = vpop.permute.xlu0 %6421 }
0x4f6e   : > { %v6427_v2 = vmul.f32 %v12934_v24, %v6422_v1  ;;  %v6003_v56 = vpop.permute.xlu1 %6002 }
0x4f6f   : > { %v12993_v61 = vmul.f32 %v12937_v46, %v6003_v56 }
0x4f71   : > { %6439 = vrot.lane.b32.xlu0 %v12993_v61, %s13735_s25  ;;  %6431 = vrot.lane.b32.xlu1 %v6427_v2, %s13729_s3  ;;  %v6424_v57 = vpop.permute.xlu0 %6423 }
0x4f72   : > { %v6428_v62 = vmul.f32 %v12942_v17, %v6424_v57  ;;  %v6005_v37 = vpop.permute.xlu1 %6004 }
0x4f73   : > { %v13000_v47 = vmul.f32 %v12945_v39, %v6005_v37 }
0x4f75   : > { %6441 = vrot.lane.b32.xlu0 %v13000_v47, %s13735_s25  ;;  %6433 = vrot.lane.b32.xlu1 %v6428_v62, %s13729_s3 }
0x4f79   : > { %6858 = vrot.lane.b32.xlu0 %v6427_v2, %s13733_s1 }
0x4f7d   : > { %6860 = vrot.lane.b32.xlu0 %v6428_v62, %s13733_s1 }
0x4fde   : > { %v6845_v24 = vpop.permute.xlu0 %6844 }
0x4fdf   : > { %v6843_v46 = vpop.permute.xlu1 %6842  ;;  %v13012_v39 = vmul.f32 %v12951_v50, %v6845_v24 }
0x4fe0   : > { %v13007_v5 = vmul.f32 %v11214_v51, %v6843_v46 }
0x4fe2   : > { %6852 = vrot.lane.b32.xlu1 %v13007_v5, %s13735_s25 }
0x4fe3   : > { %v6432_v17 = vpop.permute.xlu1 %6431  ;;  %v6440_v11 = vpop.permute.xlu0 %6439 }
0x4fe4   : > { %v6445_v3 = vsel %vm964_vm3, %v6432_v17, %v6440_v11 }
0x4fe5   : > { %10254 = vmatprep.mubr.msk.f32.mxu1 %vm1068_vm4, %v6445_v3 }
0x4fe6   : > { %6854 = vrot.lane.b32.xlu1 %v13012_v39, %s13735_s25 }
0x4fe7   : > { %v6434_v38 = vpop.permute.xlu1 %6433  ;;  %v6442_v63 = vpop.permute.xlu0 %6441 }
0x4fe8   : > { %v6446_v51 = vsel %vm964_vm3, %v6434_v38, %v6442_v63 }
0x4fe9   : > { %10255 = vmatmul.mubr.msk.f32.vlgmr.msra.gmra.mrb[58].mxu1 %vm1068_vm4, %v6446_v51  ;;  %v13063_v51 = vld [vmem:[%s13677_s18] ss:$0 sm:$0xff] }
0x4fea   : > { %10604 = vmatpush3.bf16.msra.mxu1 %v12398_v34 }
0x4feb   : > { %10273 = vmatprep.subr.mxu1 %v12865_v20  ;;  %v6859_v50 = vpop.permute.xlu0 %6858 }
0x4fee   : > { %10274 = vmatpush3.msra.mxu1 %v12865_v20 }
0x4fef   : > { %10289 = vmatprep.subr.mxu1 %v12708_v14  ;;  %v6861_v0 = vpop.permute.xlu0 %6860 }
0x5054   : > { %v6853_v41 = vpop.permute.xlu1 %6852 }
0x5055   : > { %v6864_v40 = vsel %vm1273_vm6, %v6853_v41, %v6859_v50 }
0x5056   : > { %10275 = vmatprep.mubr.msk.f32.mxu1 %vm1171_vm5, %v6864_v40 }
0x5058   : > { %v6855_v32 = vpop.permute.xlu1 %6854 }
0x5059   : > { %v6865_v12 = vsel %vm1273_vm6, %v6855_v32, %v6861_v0 }
0x505a   : > { %10276 = vmatmul.mubr.msk.f32.vlgmr.msra.gmra.mrb[60].mxu1 %vm1171_vm5, %v6865_v12 }
0x505b   : > { %10290 = vmatpush3.msra.mxu1 %v12708_v14  ;;  %10291 = vmatprep.mubr.msk.f32.mxu1 %vm1273_vm6, %v12917_v6 }
0x505c   : > { %10614 = vmatprep.subr.bf16.mxu1 %v12357_v45 }
0x505e   : > { %10292 = vmatmul.mubr.msk.f32.vlgmr.msra.gmra.mrb[62].mxu1 %vm1273_vm6, %v12922_v21 }
0x505f   : > { %10616 = vmatpush3.bf16.msra.mxu1 %v12357_v45 }
0x5060   : > { %10622 = vmatprep.subr.bf16.mxu1 %v12474_v53 }
0x50bc   : > { %v10256_v7 = vpop.f32.mrb[58].mxu1 }
0x50bd   : > { %v6519_v36 = vpop.f32.mrb[59].mxu1  ;;  %v6525_v41 = vadd.f32 %v13063_v51, %v10256_v7 }
0x50be   : > { %v6520_v50 = vadd.f32 %v13063_v51, %v6519_v36 }
0x512d   : > { %v10277_v59 = vpop.f32.mrb[60].mxu1 }
0x512e   : > { %v6938_v52 = vpop.f32.mrb[61].mxu1 }
0x512f   : > { %v6939_v11 = vadd.f32 %v12899_v54, %v6938_v52 }
0x5131   : > { %v10293_v19 = vpop.f32.mrb[62].mxu1 }
0x5132   : > { %v7222_v42 = vadd.f32 %v10293_v19, %v12335_v13  ;;  %v7212_v14 = vpop.f32.mrb[63].mxu1 }
0x5133   : > { %v7221_v26 = vadd.f32 %v7212_v14, %v12337_v4  ;;  %v9467_v14 = vmul.f32 -1.442695, %v6939_v11 }
0x5134   : > { %11227 = vtanh.f32 %v7222_v42  ;;  %v9476_v21 = vmul.f32 -1.442695, %v7222_v42 }
0x5135   : > { %11229 = vtanh.f32 %v7221_v26  ;;  %v9475_v8 = vmul.f32 -1.442695, %v7221_v26  ;;  %v9455_v26 = vmul.f32 -1.442695, %v6520_v50 }
0x5136   : > { %11231 = vpow2.f32 %v9476_v21 }
0x5137   : > { %11233 = vpow2.f32 %v9475_v8 }
0x513e   : > { %v11228_v6 = vpop.eup %11227 }
0x513f   : > { %v11230_v43 = vpop.eup %11229  ;;  %7243 = vrot.lane.b32.xlu0 %v11228_v6, %s13733_s1 }
0x5140   : > { %7241 = vrot.lane.b32.xlu1 %v11230_v43, %s13733_s1  ;;  %v11232_v15 = vpop.eup %11231  ;;  %v9456_v43 = vmul.f32 -1.442695, %v6525_v41 }
0x5141   : > { %v11234_v29 = vpop.eup %11233  ;;  %v7230_v10 = vadd.f32 1.0, %v11232_v15 }
0x5142   : > { %v7229_v27 = vadd.f32 1.0, %v11234_v29 }
0x5143   : > { %11235 = vrcp.f32 %v7230_v10 }
0x5144   : > { %11237 = vrcp.f32 %v7229_v27 }
0x514d   : > { %v11236_v31 = vpop.eup %11235 }
0x514e   : > { %v11238_v44 = vpop.eup %11237  ;;  %v7238_v57 = vmul.f32 %v11236_v31, %v12890_v22  ;;  %v6944_v22 = vadd.f32 %v12899_v54, %v10277_v59 }
0x514f   : > { %v7237_v37 = vmul.f32 %v11238_v44, %v12892_v33 }
0x5150   : > { %v9468_v6 = vmul.f32 -1.442695, %v6944_v22 }
0x51b1   : > { %v7244_v30 = vpop.permute.xlu0 %7243 }
0x51b2   : > { %v7248_v1 = vmul.f32 %v11236_v31, %v7244_v30  ;;  %v7242_v2 = vpop.permute.xlu1 %7241 }
0x51b3   : > { %v7247_v56 = vmul.f32 %v11238_v44, %v7242_v2 }
0x51b4   : > { %7253 = vrot.lane.b32.xlu0 %v7248_v1, %s13737_s7 }
0x51b5   : > { %7251 = vrot.lane.b32.xlu1 %v7247_v56, %s13737_s7 }
0x5226   : > { %v7254_v62 = vpop.permute.xlu0 %7253 }
0x5227   : > { %v13044_v24 = vadd.f32 %v7254_v62, %v7238_v57  ;;  %v7252_v46 = vpop.permute.xlu1 %7251 }
0x5228   : > { %v13046_v17 = vadd.f32 %v7252_v46, %v7237_v37 }
0x5229   : > { %11239 = vtanh.f32 %v13044_v24 }
0x522a   : > { %11241 = vtanh.f32 %v13046_v17 }
0x522b   : > { %11243 = vtanh.f32 %v6939_v11 }
0x522c   : > { %11245 = vtanh.f32 %v6944_v22 }
0x522d   : > { %11247 = vtanh.f32 %v6520_v50 }
0x522e   : > { %11249 = vtanh.f32 %v6525_v41 }
0x522f   : > { %11251 = vpow2.f32 %v9467_v14 }
0x5230   : > { %11253 = vpow2.f32 %v9455_v26 }
0x5231   : > { %11255 = vpow2.f32 %v9468_v6 }
0x5232   : > { %11257 = vpow2.f32 %v9456_v43 }
0x5233   : > { %v11240_v3 = vpop.eup %11239 }
0x5234   : > { %v11242_v38 = vpop.eup %11241  ;;  %7265 = vrot.lane.b32.xlu0 %v11240_v3, %s13737_s7 }
0x5235   : > { %7263 = vrot.lane.b32.xlu1 %v11242_v38, %s13737_s7  ;;  %v11244_v33 = vpop.eup %11243 }
0x5236   : > { %v11246_v63 = vpop.eup %11245 }
0x5237   : > { %v11248_v32 = vpop.eup %11247 }
0x5238   : > { %7279 = vrot.lane.b32.xlu0 %v13007_v5, %s13734_s28  ;;  %v11250_v12 = vpop.eup %11249 }
0x5239   : > { %v11252_v21 = vpop.eup %11251 }
0x523a   : > { %v11254_v8 = vpop.eup %11253  ;;  %v6953_v29 = vadd.f32 1.0, %v11252_v21 }
0x523b   : > { %v6534_v30 = vadd.f32 1.0, %v11254_v8 }
0x523c   : > { %7281 = vrot.lane.b32.xlu0 %v13012_v39, %s13734_s28 }
0x5240   : > { %6965 = vrot.lane.b32.xlu0 %v11244_v33, %s13727_s29 }
0x5244   : > { %6967 = vrot.lane.b32.xlu0 %v11246_v63, %s13727_s29 }
0x52a6   : > { %v7266_v0 = vpop.permute.xlu0 %7265 }
0x52a7   : > { %v7264_v5 = vpop.permute.xlu1 %7263  ;;  %v7270_v39 = vmul.f32 %v11236_v31, %v7266_v0  ;;  %v11256_v31 = vpop.eup %11255 }
0x52a8   : > { %v7269_v40 = vmul.f32 %v11238_v44, %v7264_v5  ;;  %v11258_v1 = vpop.eup %11257  ;;  %v6954_v2 = vadd.f32 1.0, %v11256_v31 }
0x52a9   : > { %v6535_v56 = vadd.f32 1.0, %v11258_v1 }
0x52aa   : > { %7273 = vrot.lane.b32.xlu1 %v7269_v40, %s13735_s25  ;;  %v7280_v59 = vpop.permute.xlu0 %7279 }
0x52ae   : > { %7275 = vrot.lane.b32.xlu1 %v7270_v39, %s13735_s25  ;;  %v7282_v52 = vpop.permute.xlu0 %7281 }
0x52b2   : > { %6546 = vrot.lane.b32.xlu1 %v11248_v32, %s13727_s29  ;;  %v6966_v57 = vpop.permute.xlu0 %6965 }
0x52b6   : > { %6548 = vrot.lane.b32.xlu1 %v11250_v12, %s13727_s29  ;;  %v6968_v38 = vpop.permute.xlu0 %6967 }
0x531c   : > { %v13071_v36 = vpop.permute.xlu1 %7273 }
0x531d   : > { %v7285_v7 = vsel %vm1273_vm6, %v13071_v36, %v7280_v59 }
0x531e   : > { %10298 = vmatprep.mubr.msk.f32.mxu1 %vm964_vm3, %v7285_v7 }
0x5320   : > { %v13076_v19 = vpop.permute.xlu1 %7275 }
0x5321   : > { %v7286_v42 = vsel %vm1273_vm6, %v13076_v19, %v7282_v52 }
0x5322   : > { %10299 = vmatmul.mubr.msk.f32.vlgmr.msra.gmra.mrb[64].mxu1 %vm964_vm3, %v7286_v42 }
0x5323   : > { %10624 = vmatpush3.bf16.msra.mxu1 %v12474_v53 }
0x5324   : > { %10626 = vmatprep.subr.bf16.mxu1 %v12480_v23  ;;  %v6547_v62 = vpop.permute.xlu1 %6546 }
0x5327   : > { %10628 = vmatpush3.bf16.msra.mxu1 %v12480_v23 }
0x5328   : > { %10634 = vmatprep.subr.bf16.mxu1 %v12398_v34  ;;  %v6549_v33 = vpop.permute.xlu1 %6548 }
0x53f5   : > { %v10300_v15 = vpop.f32.mrb[64].mxu1 }
0x53f6   : > { %v7365_v10 = vadd.f32 %v12770_v25, %v10300_v15  ;;  %v7359_v27 = vpop.f32.mrb[65].mxu1 }
0x53f7   : > { %v7360_v44 = vadd.f32 %v12770_v25, %v7359_v27 }
0x53f8   : > { %11259 = vtanh.f32 %v7365_v10  ;;  %v9480_v40 = vmul.f32 -1.442695, %v7365_v10 }
0x53f9   : > { %11261 = vtanh.f32 %v7360_v44  ;;  %v9479_v0 = vmul.f32 -1.442695, %v7360_v44 }
0x53fa   : > { %11263 = vrcp.f32 %v6953_v29 }
0x53fb   : > { %11265 = vrcp.f32 %v6534_v30 }
0x53fc   : > { %11267 = vrcp.f32 %v6954_v2 }
0x53fd   : > { %11269 = vrcp.f32 %v6535_v56 }
0x53fe   : > { %11271 = vpow2.f32 %v9480_v40 }
0x53ff   : > { %11273 = vpow2.f32 %v9479_v0 }
0x5402   : > { %v11260_v37 = vpop.eup %11259 }
0x5403   : > { %v11262_v46 = vpop.eup %11261  ;;  %7388 = vrot.lane.b32.xlu0 %v11260_v37, %s13733_s1 }
0x5404   : > { %v13088_v11 = vpop.eup %11263  ;;  %7386 = vrot.lane.b32.xlu1 %v11262_v46, %s13733_s1 }
0x5405   : > { %v13091_v25 = vpop.eup %11265  ;;  %v6971_v3 = vmul.f32 %v13088_v11, %v6966_v57  ;;  %v6961_v43 = vmul.f32 %v13088_v11, %v12960_v48 }
0x5406   : > { %v6552_v22 = vmul.f32 %v13091_v25, %v6547_v62  ;;  %v13096_v63 = vpop.eup %11267  ;;  %v6542_v8 = vmul.f32 %v13091_v25, %v12962_v9 }
0x5407   : > { %6975 = vrot.lane.b32.xlu0 %v6971_v3, %s13725_s27  ;;  %v13099_v50 = vpop.eup %11269  ;;  %v6972_v41 = vmul.f32 %v13096_v63, %v6968_v38  ;;  %v6962_v27 = vmul.f32 %v13096_v63, %v12970_v58 }
0x5408   : > { %6556 = vrot.lane.b32.xlu1 %v6552_v22, %s13725_s27  ;;  %v6553_v5 = vmul.f32 %v13099_v50, %v6549_v33  ;;  %v11272_v39 = vpop.eup %11271  ;;  %v6543_v48 = vmul.f32 %v13099_v50, %v12972_v49 }
0x5409   : > { %v11274_v32 = vpop.eup %11273  ;;  %v7375_v12 = vadd.f32 1.0, %v11272_v39 }
0x540a   : > { %v7374_v59 = vadd.f32 1.0, %v11274_v32 }
0x540b   : > { %6977 = vrot.lane.b32.xlu0 %v6972_v41, %s13725_s27  ;;  %11275 = vrcp.f32 %v7375_v12 }
0x540c   : > { %6558 = vrot.lane.b32.xlu1 %v6553_v5, %s13725_s27  ;;  %11277 = vrcp.f32 %v7374_v59 }
0x5415   : > { %v13105_v7 = vpop.eup %11275 }
0x5416   : > { %v11278_v42 = vpop.eup %11277  ;;  %v7383_v49 = vmul.f32 %v13105_v7, %v12983_v18 }
0x5417   : > { %v7382_v62 = vmul.f32 %v11278_v42, %v12985_v60 }
0x5475   : > { %v7389_v52 = vpop.permute.xlu0 %7388 }
0x5476   : > { %v7393_v14 = vmul.f32 %v13105_v7, %v7389_v52  ;;  %v7387_v26 = vpop.permute.xlu1 %7386 }
0x5477   : > { %v7392_v6 = vmul.f32 %v11278_v42, %v7387_v26 }
0x5478   : > { %7398 = vrot.lane.b32.xlu0 %v7393_v14, %s13737_s7 }
0x5479   : > { %7396 = vrot.lane.b32.xlu1 %v7392_v6, %s13737_s7  ;;  %v6976_v21 = vpop.permute.xlu0 %6975 }
0x547a   : > { %v13114_v15 = vadd.f32 %v6976_v21, %v6961_v43  ;;  %v6557_v29 = vpop.permute.xlu1 %6556 }
0x547b   : > { %v13116_v10 = vadd.f32 %v6557_v29, %v6542_v8 }
0x547c   : > { %11279 = vtanh.f32 %v13114_v15 }
0x547d   : > { %11281 = vtanh.f32 %v13116_v10  ;;  %v6978_v31 = vpop.permute.xlu0 %6977 }
0x547e   : > { %v13124_v30 = vadd.f32 %v6978_v31, %v6962_v27  ;;  %v6559_v44 = vpop.permute.xlu1 %6558 }
0x547f   : > { %v13126_v9 = vadd.f32 %v6559_v44, %v6543_v48 }
0x5480   : > { %11283 = vtanh.f32 %v13124_v30 }
0x5481   : > { %11285 = vtanh.f32 %v13126_v9 }
0x5486   : > { %v11280_v1 = vpop.eup %11279 }
0x5487   : > { %v11282_v2 = vpop.eup %11281  ;;  %6987 = vrot.lane.b32.xlu0 %v11280_v1, %s13725_s27 }
0x5488   : > { %6568 = vrot.lane.b32.xlu1 %v11282_v2, %s13725_s27 }
0x548a   : > { %v11284_v58 = vpop.eup %11283 }
0x548b   : > { %v11286_v56 = vpop.eup %11285  ;;  %6989 = vrot.lane.b32.xlu0 %v11284_v58, %s13725_s27 }
0x548c   : > { %6570 = vrot.lane.b32.xlu1 %v11286_v56, %s13725_s27 }
0x54ea   : > { %v7399_v57 = vpop.permute.xlu0 %7398 }
0x54eb   : > { %v13137_v37 = vadd.f32 %v7399_v57, %v7383_v49  ;;  %v7397_v46 = vpop.permute.xlu1 %7396 }
0x54ec   : > { %v13139_v3 = vadd.f32 %v7397_v46, %v7382_v62 }
0x54ed   : > { %11287 = vtanh.f32 %v13137_v37 }
0x54ee   : > { %11289 = vtanh.f32 %v13139_v3 }
0x54f7   : > { %v11288_v38 = vpop.eup %11287 }
0x54f8   : > { %v11290_v22 = vpop.eup %11289  ;;  %7410 = vrot.lane.b32.xlu0 %v11288_v38, %s13737_s7 }
0x54f9   : > { %7408 = vrot.lane.b32.xlu1 %v11290_v22, %s13737_s7  ;;  %v6988_v33 = vpop.permute.xlu0 %6987 }
0x54fa   : > { %v6993_v18 = vmul.f32 %v13088_v11, %v6988_v33  ;;  %v6569_v41 = vpop.permute.xlu1 %6568 }
0x54fb   : > { %v13147_v60 = vmul.f32 %v13091_v25, %v6569_v41 }
0x54fd   : > { %7005 = vrot.lane.b32.xlu0 %v13147_v60, %s13735_s25  ;;  %6997 = vrot.lane.b32.xlu1 %v6993_v18, %s13729_s3  ;;  %v6990_v5 = vpop.permute.xlu0 %6989 }
0x54fe   : > { %v6994_v40 = vmul.f32 %v13096_v63, %v6990_v5  ;;  %v6571_v0 = vpop.permute.xlu1 %6570 }
0x54ff   : > { %v13154_v39 = vmul.f32 %v13099_v50, %v6571_v0 }
0x5501   : > { %7007 = vrot.lane.b32.xlu0 %v13154_v39, %s13735_s25  ;;  %6999 = vrot.lane.b32.xlu1 %v6994_v40, %s13729_s3 }
0x5505   : > { %7424 = vrot.lane.b32.xlu0 %v6993_v18, %s13733_s1 }
0x5509   : > { %7426 = vrot.lane.b32.xlu0 %v6994_v40, %s13733_s1 }
0x556a   : > { %v7411_v11 = vpop.permute.xlu0 %7410 }
0x556b   : > { %v7409_v25 = vpop.permute.xlu1 %7408  ;;  %v13166_v50 = vmul.f32 %v13105_v7, %v7411_v11  ;;  %v13180_v7 = vld [vmem:[%s13670_s11] sm:$0xff] }
0x556c   : > { %v13161_v32 = vmul.f32 %v11278_v42, %v7409_v25 }
0x556e   : > { %7418 = vrot.lane.b32.xlu1 %v13161_v32, %s13735_s25 }
0x556f   : > { %v6998_v63 = vpop.permute.xlu1 %6997  ;;  %v7006_v12 = vpop.permute.xlu0 %7005 }
0x5570   : > { %v7011_v59 = vsel %vm964_vm3, %v6998_v63, %v7006_v12 }
0x5571   : > { %10286 = vmatprep.mubr.msk.f32.mxu0 %vm1068_vm4, %v7011_v59 }
0x5572   : > { %7420 = vrot.lane.b32.xlu1 %v13166_v50, %s13735_s25 }
0x5573   : > { %v7000_v52 = vpop.permute.xlu1 %6999  ;;  %v7008_v14 = vpop.permute.xlu0 %7007 }
0x5574   : > { %v7012_v42 = vsel %vm964_vm3, %v7000_v52, %v7008_v14 }
0x5575   : > { %10287 = vmatmul.mubr.msk.f32.vlgmr.msra.gmra.mrb[50].mxu0 %vm1068_vm4, %v7012_v42 }
0x5576   : > { %10620 = vmatpush3.bf16.msra.mxu0 %v12398_v34 }
0x5577   : > { %10305 = vmatprep.subr.mxu0 %v12865_v20  ;;  %v7425_v26 = vpop.permute.xlu0 %7424 }
0x557a   : > { %10306 = vmatpush3.msra.mxu0 %v12865_v20 }
0x557b   : > { %10321 = vmatprep.subr.mxu0 %v13180_v7  ;;  %v7427_v21 = vpop.permute.xlu0 %7426 }
0x55e0   : > { %v7419_v6 = vpop.permute.xlu1 %7418 }
0x55e1   : > { %v7430_v43 = vsel %vm1273_vm6, %v7419_v6, %v7425_v26 }
0x55e2   : > { %10307 = vmatprep.mubr.msk.f32.mxu0 %vm1171_vm5, %v7430_v43 }
0x55e4   : > { %v7421_v8 = vpop.permute.xlu1 %7420 }
0x55e5   : > { %v7431_v29 = vsel %vm1273_vm6, %v7421_v8, %v7427_v21 }
0x55e6   : > { %10308 = vmatmul.mubr.msk.f32.vlgmr.msra.gmra.mrb[52].mxu0 %vm1171_vm5, %v7431_v29 }
0x55e7   : > { %10322 = vmatpush3.msra.mxu0 %v13180_v7  ;;  %10323 = vmatprep.mubr.msk.f32.mxu0 %vm1273_vm6, %v13071_v36 }
0x55e8   : > { %10630 = vmatprep.subr.bf16.mxu0 %v12357_v45 }
0x55ea   : > { %10324 = vmatmul.mubr.msk.f32.vlgmr.msra.gmra.mrb[54].mxu0 %vm1273_vm6, %v13076_v19 }
0x55eb   : > { %10632 = vmatpush3.bf16.msra.mxu0 %v12357_v45 }
0x55ec   : > { %10638 = vmatprep.subr.bf16.mxu0 %v12474_v53 }
0x5648   : > { %v10288_v20 = vpop.f32.mrb[50].mxu0 }
0x5649   : > { %v7085_v27 = vpop.f32.mrb[51].mxu0 }
0x564a   : > { %v7086_v6 = vadd.f32 %v13063_v51, %v7085_v27 }
0x56b9   : > { %v10309_v31 = vpop.f32.mrb[52].mxu0 }
0x56ba   : > { %v7504_v48 = vpop.f32.mrb[53].mxu0 }
0x56bb   : > { %v7505_v52 = vadd.f32 %v12899_v54, %v7504_v48 }
0x56bd   : > { %v10325_v44 = vpop.f32.mrb[54].mxu0 }
0x56be   : > { %v7788_v1 = vadd.f32 %v10325_v44, %v12335_v13  ;;  %v7778_v2 = vpop.f32.mrb[55].mxu0 }
0x56bf   : > { %v7787_v58 = vadd.f32 %v7778_v2, %v12337_v4  ;;  %v9483_v2 = vmul.f32 -1.442695, %v7505_v52 }
0x56c0   : > { %11291 = vtanh.f32 %v7788_v1  ;;  %v9492_v19 = vmul.f32 -1.442695, %v7788_v1 }
0x56c1   : > { %11293 = vtanh.f32 %v7787_v58  ;;  %v9491_v49 = vmul.f32 -1.442695, %v7787_v58  ;;  %v9471_v58 = vmul.f32 -1.442695, %v7086_v6 }
0x56c2   : > { %11295 = vpow2.f32 %v9492_v19 }
0x56c3   : > { %11297 = vpow2.f32 %v9491_v49 }
0x56ca   : > { %v11292_v36 = vpop.eup %11291 }
0x56cb   : > { %v11294_v56 = vpop.eup %11293  ;;  %7809 = vrot.lane.b32.xlu0 %v11292_v36, %s13733_s1 }
0x56cc   : > { %7807 = vrot.lane.b32.xlu1 %v11294_v56, %s13733_s1  ;;  %v11296_v57 = vpop.eup %11295 }
0x56cd   : > { %v11298_v62 = vpop.eup %11297  ;;  %v7796_v46 = vadd.f32 1.0, %v11296_v57 }
0x56ce   : > { %v7795_v38 = vadd.f32 1.0, %v11298_v62 }
0x56cf   : > { %11299 = vrcp.f32 %v7796_v46  ;;  %v13242_v46 = vld [vmem:[%s13673_s14] ss:$0 sm:$0xff] }
0x56d0   : > { %11301 = vrcp.f32 %v7795_v38 }
0x56d9   : > { %v11300_v22 = vpop.eup %11299 }
0x56da   : > { %v11302_v18 = vpop.eup %11301  ;;  %v7804_v0 = vmul.f32 %v11300_v22, %v13044_v24  ;;  %v7510_v24 = vadd.f32 %v12899_v54, %v10309_v31  ;;  %v7091_v54 = vadd.f32 %v13063_v51, %v10288_v20 }
0x56db   : > { %v7803_v25 = vmul.f32 %v11302_v18, %v13046_v17 }
0x56dc   : > { %v9484_v36 = vmul.f32 -1.442695, %v7510_v24  ;;  %v9472_v56 = vmul.f32 -1.442695, %v7091_v54 }
0x573d   : > { %v7810_v33 = vpop.permute.xlu0 %7809 }
0x573e   : > { %v7814_v41 = vmul.f32 %v11300_v22, %v7810_v33  ;;  %v7808_v5 = vpop.permute.xlu1 %7807 }
0x573f   : > { %v7813_v40 = vmul.f32 %v11302_v18, %v7808_v5 }
0x5740   : > { %7819 = vrot.lane.b32.xlu0 %v7814_v41, %s13737_s7 }
0x5741   : > { %7817 = vrot.lane.b32.xlu1 %v7813_v40, %s13737_s7 }
0x57b2   : > { %v7820_v11 = vpop.permute.xlu0 %7819 }
0x57b3   : > { %v13203_v63 = vadd.f32 %v7820_v11, %v7804_v0  ;;  %v7818_v12 = vpop.permute.xlu1 %7817 }
0x57b4   : > { %v13205_v59 = vadd.f32 %v7818_v12, %v7803_v25 }
0x57b5   : > { %11303 = vtanh.f32 %v13203_v63 }
0x57b6   : > { %11305 = vtanh.f32 %v13205_v59 }
0x57b7   : > { %11307 = vtanh.f32 %v7505_v52 }
0x57b8   : > { %11309 = vtanh.f32 %v7510_v24 }
0x57b9   : > { %11311 = vtanh.f32 %v7086_v6 }
0x57ba   : > { %11313 = vtanh.f32 %v7091_v54 }
0x57bb   : > { %11315 = vpow2.f32 %v9483_v2 }
0x57bc   : > { %11317 = vpow2.f32 %v9471_v58 }
0x57bd   : > { %11319 = vpow2.f32 %v9484_v36 }
0x57be   : > { %11321 = vpow2.f32 %v9472_v56 }
0x57bf   : > { %v11304_v14 = vpop.eup %11303 }
0x57c0   : > { %v11306_v42 = vpop.eup %11305  ;;  %7831 = vrot.lane.b32.xlu0 %v11304_v14, %s13737_s7 }
0x57c1   : > { %7829 = vrot.lane.b32.xlu1 %v11306_v42, %s13737_s7  ;;  %v11308_v17 = vpop.eup %11307 }
0x57c2   : > { %v11310_v26 = vpop.eup %11309 }
0x57c4   : > { %7845 = vrot.lane.b32.xlu0 %v13161_v32, %s13734_s28 }
0x57c8   : > { %7847 = vrot.lane.b32.xlu0 %v13166_v50, %s13734_s28  ;;  %v11312_v50 = vpop.eup %11311 }
0x57c9   : > { %v11314_v29 = vpop.eup %11313 }
0x57ca   : > { %v11316_v19 = vpop.eup %11315 }
0x57cb   : > { %v11318_v49 = vpop.eup %11317  ;;  %v7519_v62 = vadd.f32 1.0, %v11316_v19 }
0x57cc   : > { %7531 = vrot.lane.b32.xlu0 %v11308_v17, %s13727_s29  ;;  %v11320_v33 = vpop.eup %11319 }
0x57cd   : > { %v11322_v5 = vpop.eup %11321  ;;  %v7520_v40 = vadd.f32 1.0, %v11320_v33 }
0x57ce   : > { %v7101_v0 = vadd.f32 1.0, %v11322_v5 }
0x57d0   : > { %7533 = vrot.lane.b32.xlu0 %v11310_v26, %s13727_s29 }
0x5832   : > { %v7832_v8 = vpop.permute.xlu0 %7831 }
0x5833   : > { %v7830_v43 = vpop.permute.xlu1 %7829  ;;  %v7836_v32 = vmul.f32 %v11300_v22, %v7832_v8 }
0x5834   : > { %v7835_v21 = vmul.f32 %v11302_v18, %v7830_v43  ;;  %v7100_v18 = vadd.f32 1.0, %v11318_v49 }
0x5836   : > { %7839 = vrot.lane.b32.xlu1 %v7835_v21, %s13735_s25  ;;  %v7846_v31 = vpop.permute.xlu0 %7845 }
0x583a   : > { %7841 = vrot.lane.b32.xlu1 %v7836_v32, %s13735_s25  ;;  %v7848_v48 = vpop.permute.xlu0 %7847 }
0x583e   : > { %7112 = vrot.lane.b32.xlu1 %v11312_v50, %s13727_s29  ;;  %v7532_v11 = vpop.permute.xlu0 %7531 }
0x5842   : > { %7114 = vrot.lane.b32.xlu1 %v11314_v29, %s13727_s29  ;;  %v7534_v17 = vpop.permute.xlu0 %7533 }
0x58a8   : > { %v13225_v27 = vpop.permute.xlu1 %7839 }
0x58a9   : > { %v7851_v20 = vsel %vm1273_vm6, %v13225_v27, %v7846_v31 }
0x58aa   : > { %10330 = vmatprep.mubr.msk.f32.mxu0 %vm964_vm3, %v7851_v20 }
0x58ac   : > { %v13230_v44 = vpop.permute.xlu1 %7841 }
0x58ad   : > { %v7852_v1 = vsel %vm1273_vm6, %v13230_v44, %v7848_v48 }
0x58ae   : > { %10331 = vmatmul.mubr.msk.f32.vlgmr.msra.gmra.mrb[56].mxu0 %vm964_vm3, %v7852_v1 }
0x58af   : > { %10640 = vmatpush3.bf16.msra.mxu0 %v12474_v53 }
0x58b0   : > { %10642 = vmatprep.subr.bf16.mxu0 %v12480_v23  ;;  %v7113_v25 = vpop.permute.xlu1 %7112 }
0x58b3   : > { %10644 = vmatpush3.bf16.msra.mxu0 %v12480_v23 }
0x58b4   : > { %10650 = vmatprep.subr.bf16.mxu0 %v12398_v34  ;;  %v7115_v6 = vpop.permute.xlu1 %7114 }
0x5981   : > { %v10332_v57 = vpop.f32.mrb[56].mxu0 }
0x5982   : > { %v7931_v38 = vadd.f32 %v13242_v46, %v10332_v57  ;;  %v7925_v22 = vpop.f32.mrb[57].mxu0 }
0x5983   : > { %v7926_v41 = vadd.f32 %v13242_v46, %v7925_v22 }
0x5984   : > { %11323 = vtanh.f32 %v7931_v38  ;;  %v9496_v32 = vmul.f32 -1.442695, %v7931_v38 }
0x5985   : > { %11325 = vtanh.f32 %v7926_v41  ;;  %v9495_v50 = vmul.f32 -1.442695, %v7926_v41 }
0x5986   : > { %11327 = vrcp.f32 %v7519_v62 }
0x5987   : > { %11329 = vrcp.f32 %v7100_v18 }
0x5988   : > { %11331 = vrcp.f32 %v7520_v40 }
0x5989   : > { %11333 = vrcp.f32 %v7101_v0 }
0x598a   : > { %11335 = vpow2.f32 %v9496_v32 }
0x598b   : > { %11337 = vpow2.f32 %v9495_v50 }
0x598e   : > { %v11324_v12 = vpop.eup %11323 }
0x598f   : > { %v11326_v52 = vpop.eup %11325  ;;  %7954 = vrot.lane.b32.xlu0 %v11324_v12, %s13733_s1 }
0x5990   : > { %v13247_v14 = vpop.eup %11327  ;;  %7952 = vrot.lane.b32.xlu1 %v11326_v52, %s13733_s1 }
0x5991   : > { %v13250_v42 = vpop.eup %11329  ;;  %v7537_v24 = vmul.f32 %v13247_v14, %v7532_v11  ;;  %v7527_v49 = vmul.f32 %v13247_v14, %v13114_v15 }
0x5992   : > { %v7118_v26 = vmul.f32 %v13250_v42, %v7113_v25  ;;  %v13255_v54 = vpop.eup %11331  ;;  %v7108_v62 = vmul.f32 %v13250_v42, %v13116_v10 }
0x5993   : > { %7541 = vrot.lane.b32.xlu0 %v7537_v24, %s13725_s27  ;;  %v13258_v43 = vpop.eup %11333  ;;  %v7538_v21 = vmul.f32 %v13255_v54, %v7534_v17  ;;  %v7528_v18 = vmul.f32 %v13255_v54, %v13124_v30 }
0x5994   : > { %7122 = vrot.lane.b32.xlu1 %v7118_v26, %s13725_s27  ;;  %v7119_v8 = vmul.f32 %v13258_v43, %v7115_v6  ;;  %v11336_v29 = vpop.eup %11335  ;;  %v7109_v15 = vmul.f32 %v13258_v43, %v13126_v9 }
0x5995   : > { %v11338_v31 = vpop.eup %11337  ;;  %v7941_v20 = vadd.f32 1.0, %v11336_v29 }
0x5996   : > { %v7940_v48 = vadd.f32 1.0, %v11338_v31 }
0x5997   : > { %7543 = vrot.lane.b32.xlu0 %v7538_v21, %s13725_s27  ;;  %11339 = vrcp.f32 %v7941_v20 }
0x5998   : > { %7124 = vrot.lane.b32.xlu1 %v7119_v8, %s13725_s27  ;;  %11341 = vrcp.f32 %v7940_v48 }
0x59a1   : > { %v13264_v1 = vpop.eup %11339 }
0x59a2   : > { %v11342_v58 = vpop.eup %11341  ;;  %v7949_v9 = vmul.f32 %v13264_v1, %v13137_v37 }
0x59a3   : > { %v7948_v52 = vmul.f32 %v11342_v58, %v13139_v3 }
0x5a01   : > { %v7955_v2 = vpop.permute.xlu0 %7954 }
0x5a02   : > { %v7959_v36 = vmul.f32 %v13264_v1, %v7955_v2  ;;  %v7953_v56 = vpop.permute.xlu1 %7952 }
0x5a03   : > { %v7958_v19 = vmul.f32 %v11342_v58, %v7953_v56 }
0x5a04   : > { %7964 = vrot.lane.b32.xlu0 %v7959_v36, %s13737_s7 }
0x5a05   : > { %7962 = vrot.lane.b32.xlu1 %v7958_v19, %s13737_s7  ;;  %v7542_v57 = vpop.permute.xlu0 %7541 }
0x5a06   : > { %v13273_v38 = vadd.f32 %v7542_v57, %v7527_v49  ;;  %v7123_v22 = vpop.permute.xlu1 %7122 }
0x5a07   : > { %v13275_v33 = vadd.f32 %v7123_v22, %v7108_v62 }
0x5a08   : > { %11343 = vtanh.f32 %v13273_v38 }
0x5a09   : > { %11345 = vtanh.f32 %v13275_v33  ;;  %v7544_v41 = vpop.permute.xlu0 %7543 }
0x5a0a   : > { %v13283_v5 = vadd.f32 %v7544_v41, %v7528_v18  ;;  %v7125_v40 = vpop.permute.xlu1 %7124 }
0x5a0b   : > { %v13285_v10 = vadd.f32 %v7125_v40, %v7109_v15 }
0x5a0c   : > { %11347 = vtanh.f32 %v13283_v5 }
0x5a0d   : > { %11349 = vtanh.f32 %v13285_v10 }
0x5a12   : > { %v11344_v0 = vpop.eup %11343 }
0x5a13   : > { %v11346_v11 = vpop.eup %11345  ;;  %7553 = vrot.lane.b32.xlu0 %v11344_v0, %s13725_s27 }
0x5a14   : > { %7134 = vrot.lane.b32.xlu1 %v11346_v11, %s13725_s27 }
0x5a16   : > { %v11348_v30 = vpop.eup %11347 }
0x5a17   : > { %v11350_v25 = vpop.eup %11349  ;;  %7555 = vrot.lane.b32.xlu0 %v11348_v30, %s13725_s27 }
0x5a18   : > { %7136 = vrot.lane.b32.xlu1 %v11350_v25, %s13725_s27 }
0x5a76   : > { %v7965_v12 = vpop.permute.xlu0 %7964 }
0x5a77   : > { %v13296_v24 = vadd.f32 %v7965_v12, %v7949_v9  ;;  %v7963_v17 = vpop.permute.xlu1 %7962 }
0x5a78   : > { %v13298_v26 = vadd.f32 %v7963_v17, %v7948_v52 }
0x5a79   : > { %11351 = vtanh.f32 %v13296_v24 }
0x5a7a   : > { %11353 = vtanh.f32 %v13298_v26 }
0x5a83   : > { %v11352_v6 = vpop.eup %11351 }
0x5a84   : > { %v11354_v21 = vpop.eup %11353  ;;  %7976 = vrot.lane.b32.xlu0 %v11352_v6, %s13737_s7 }
0x5a85   : > { %7974 = vrot.lane.b32.xlu1 %v11354_v21, %s13737_s7  ;;  %v7554_v8 = vpop.permute.xlu0 %7553 }
0x5a86   : > { %v7559_v37 = vmul.f32 %v13247_v14, %v7554_v8  ;;  %v7135_v32 = vpop.permute.xlu1 %7134 }
0x5a87   : > { %v13306_v3 = vmul.f32 %v13250_v42, %v7135_v32 }
0x5a89   : > { %7571 = vrot.lane.b32.xlu0 %v13306_v3, %s13735_s25  ;;  %7563 = vrot.lane.b32.xlu1 %v7559_v37, %s13729_s3  ;;  %v7556_v50 = vpop.permute.xlu0 %7555 }
0x5a8a   : > { %v7560_v29 = vmul.f32 %v13255_v54, %v7556_v50  ;;  %v7137_v31 = vpop.permute.xlu1 %7136 }
0x5a8b   : > { %v13313_v20 = vmul.f32 %v13258_v43, %v7137_v31 }
0x5a8d   : > { %7573 = vrot.lane.b32.xlu0 %v13313_v20, %s13735_s25  ;;  %7565 = vrot.lane.b32.xlu1 %v7560_v29, %s13729_s3 }
0x5a91   : > { %7990 = vrot.lane.b32.xlu0 %v7559_v37, %s13733_s1 }
0x5a95   : > { %7992 = vrot.lane.b32.xlu0 %v7560_v29, %s13733_s1 }
0x5af6   : > { %v7977_v14 = vpop.permute.xlu0 %7976 }
0x5af7   : > { %v7975_v42 = vpop.permute.xlu1 %7974  ;;  %v13325_v43 = vmul.f32 %v13264_v1, %v7977_v14  ;;  %v13337_v1 = vld [vmem:[%s13674_s15 + $0x10] sm:$0xff] }
0x5af8   : > { %v13320_v48 = vmul.f32 %v11342_v58, %v7975_v42 }
0x5afa   : > { %7984 = vrot.lane.b32.xlu1 %v13320_v48, %s13735_s25 }
0x5afb   : > { %v7564_v54 = vpop.permute.xlu1 %7563  ;;  %v7572_v2 = vpop.permute.xlu0 %7571 }
0x5afc   : > { %v7577_v36 = vsel %vm964_vm3, %v7564_v54, %v7572_v2 }
0x5afd   : > { %10318 = vmatprep.mubr.msk.f32.mxu1 %vm1068_vm4, %v7577_v36  ;;  %v13365_v36 = vld [vmem:[%s13675_s16] ss:$0 sm:$0xff] }
0x5afe   : > { %7986 = vrot.lane.b32.xlu1 %v13325_v43, %s13735_s25 }
0x5aff   : > { %v7566_v56 = vpop.permute.xlu1 %7565  ;;  %v7574_v19 = vpop.permute.xlu0 %7573 }
0x5b00   : > { %v7578_v58 = vsel %vm964_vm3, %v7566_v56, %v7574_v19 }
0x5b01   : > { %10319 = vmatmul.mubr.msk.f32.vlgmr.msra.gmra.mrb[66].mxu1 %vm1068_vm4, %v7578_v58 }
0x5b02   : > { %10636 = vmatpush3.bf16.msra.mxu1 %v12398_v34 }
0x5b03   : > { %10337 = vmatprep.subr.mxu1 %v13337_v1  ;;  %v7991_v49 = vpop.permute.xlu0 %7990 }
0x5b06   : > { %10338 = vmatpush3.msra.mxu1 %v13337_v1 }
0x5b07   : > { %10353 = vmatprep.subr.mxu1 %v13180_v7  ;;  %v7993_v22 = vpop.permute.xlu0 %7992 }
0x5b6c   : > { %v7985_v57 = vpop.permute.xlu1 %7984 }
0x5b6d   : > { %v7996_v62 = vsel %vm1273_vm6, %v7985_v57, %v7991_v49 }
0x5b6e   : > { %10339 = vmatprep.mubr.msk.f32.mxu1 %vm1171_vm5, %v7996_v62 }
0x5b70   : > { %v7987_v18 = vpop.permute.xlu1 %7986 }
0x5b71   : > { %v7997_v41 = vsel %vm1273_vm6, %v7987_v18, %v7993_v22 }
0x5b72   : > { %10340 = vmatmul.mubr.msk.f32.vlgmr.msra.gmra.mrb[68].mxu1 %vm1171_vm5, %v7997_v41 }
0x5b73   : > { %10354 = vmatpush3.msra.mxu1 %v13180_v7  ;;  %10355 = vmatprep.mubr.msk.f32.mxu1 %vm1273_vm6, %v13225_v27 }
0x5b74   : > { %10646 = vmatprep.subr.bf16.mxu1 %v12357_v45 }
0x5b76   : > { %10356 = vmatmul.mubr.msk.f32.vlgmr.msra.gmra.mrb[70].mxu1 %vm1273_vm6, %v13230_v44 }
0x5b77   : > { %10648 = vmatpush3.bf16.msra.mxu1 %v12357_v45 }
0x5b78   : > { %10654 = vmatprep.subr.bf16.mxu1 %v12474_v53 }
0x5bd4   : > { %v10320_v15 = vpop.f32.mrb[66].mxu1 }
0x5bd5   : > { %v7651_v40 = vpop.f32.mrb[67].mxu1  ;;  %v7657_v62 = vadd.f32 %v13063_v51, %v10320_v15 }
0x5bd6   : > { %v7652_v57 = vadd.f32 %v13063_v51, %v7651_v40 }
0x5c45   : > { %v10341_v0 = vpop.f32.mrb[68].mxu1 }
0x5c46   : > { %v8070_v11 = vpop.f32.mrb[69].mxu1 }
0x5c47   : > { %v8071_v56 = vadd.f32 %v13365_v36, %v8070_v11 }
0x5c49   : > { %v10357_v30 = vpop.f32.mrb[70].mxu1 }
0x5c4a   : > { %v8354_v25 = vadd.f32 %v10357_v30, %v12335_v13  ;;  %v8344_v7 = vpop.f32.mrb[71].mxu1 }
0x5c4b   : > { %v8353_v9 = vadd.f32 %v8344_v7, %v12337_v4  ;;  %v9499_v7 = vmul.f32 -1.442695, %v8071_v56 }
0x5c4c   : > { %11355 = vtanh.f32 %v8354_v25  ;;  %v9508_v45 = vmul.f32 -1.442695, %v8354_v25 }
0x5c4d   : > { %11357 = vtanh.f32 %v8353_v9  ;;  %v9507_v44 = vmul.f32 -1.442695, %v8353_v9  ;;  %v9487_v9 = vmul.f32 -1.442695, %v7652_v57 }
0x5c4e   : > { %11359 = vpow2.f32 %v9508_v45 }
0x5c4f   : > { %11361 = vpow2.f32 %v9507_v44 }
0x5c56   : > { %v11356_v27 = vpop.eup %11355 }
0x5c57   : > { %v11358_v12 = vpop.eup %11357  ;;  %8375 = vrot.lane.b32.xlu0 %v11356_v27, %s13733_s1 }
0x5c58   : > { %8373 = vrot.lane.b32.xlu1 %v11358_v12, %s13733_s1  ;;  %v11360_v52 = vpop.eup %11359  ;;  %v9488_v12 = vmul.f32 -1.442695, %v7657_v62 }
0x5c59   : > { %v11362_v17 = vpop.eup %11361  ;;  %v8362_v6 = vadd.f32 1.0, %v11360_v52 }
0x5c5a   : > { %v8361_v21 = vadd.f32 1.0, %v11362_v17 }
0x5c5b   : > { %11363 = vrcp.f32 %v8362_v6 }
0x5c5c   : > { %11365 = vrcp.f32 %v8361_v21 }
0x5c65   : > { %v11364_v13 = vpop.eup %11363 }
0x5c66   : > { %v11366_v8 = vpop.eup %11365  ;;  %v8370_v29 = vmul.f32 %v11364_v13, %v13203_v63  ;;  %v8076_v63 = vadd.f32 %v13365_v36, %v10341_v0 }
0x5c67   : > { %v8369_v14 = vmul.f32 %v11366_v8, %v13205_v59 }
0x5c68   : > { %v9500_v27 = vmul.f32 -1.442695, %v8076_v63 }
0x5cc9   : > { %v8376_v4 = vpop.permute.xlu0 %8375 }
0x5cca   : > { %v8380_v37 = vmul.f32 %v11364_v13, %v8376_v4  ;;  %v8374_v32 = vpop.permute.xlu1 %8373 }
0x5ccb   : > { %v8379_v50 = vmul.f32 %v11366_v8, %v8374_v32 }
0x5ccc   : > { %8385 = vrot.lane.b32.xlu0 %v8380_v37, %s13737_s7 }
0x5ccd   : > { %8383 = vrot.lane.b32.xlu1 %v8379_v50, %s13737_s7 }
0x5d3e   : > { %v8386_v31 = vpop.permute.xlu0 %8385 }
0x5d3f   : > { %v8390_v42 = vadd.f32 %v8386_v31, %v8370_v29  ;;  %v8384_v54 = vpop.permute.xlu1 %8383 }
0x5d40   : > { %v8389_v2 = vadd.f32 %v8384_v54, %v8369_v14 }
0x5d41   : > { %11367 = vtanh.f32 %v8390_v42 }
0x5d42   : > { %11369 = vtanh.f32 %v8389_v2 }
0x5d43   : > { %11371 = vtanh.f32 %v8071_v56 }
0x5d44   : > { %11373 = vtanh.f32 %v8076_v63 }
0x5d45   : > { %11375 = vtanh.f32 %v7652_v57 }
0x5d46   : > { %11377 = vtanh.f32 %v7657_v62 }
0x5d47   : > { %11379 = vpow2.f32 %v9499_v7 }
0x5d48   : > { %11381 = vpow2.f32 %v9487_v9 }
0x5d49   : > { %11383 = vpow2.f32 %v9500_v27 }
0x5d4a   : > { %11385 = vpow2.f32 %v9488_v12 }
0x5d4b   : > { %v11368_v19 = vpop.eup %11367 }
0x5d4c   : > { %v11370_v58 = vpop.eup %11369  ;;  %8397 = vrot.lane.b32.xlu0 %v11368_v19, %s13737_s7 }
0x5d4d   : > { %8395 = vrot.lane.b32.xlu1 %v11370_v58, %s13737_s7  ;;  %v11372_v59 = vpop.eup %11371 }
0x5d4e   : > { %v11374_v49 = vpop.eup %11373 }
0x5d50   : > { %8411 = vrot.lane.b32.xlu0 %v13320_v48, %s13734_s28 }
0x5d54   : > { %8413 = vrot.lane.b32.xlu0 %v13325_v43, %s13734_s28  ;;  %v11376_v43 = vpop.eup %11375 }
0x5d55   : > { %v11378_v0 = vpop.eup %11377 }
0x5d56   : > { %v11380_v45 = vpop.eup %11379 }
0x5d57   : > { %v11382_v44 = vpop.eup %11381  ;;  %v8085_v17 = vadd.f32 1.0, %v11380_v45 }
0x5d58   : > { %8097 = vrot.lane.b32.xlu0 %v11372_v59, %s13727_s29 }
0x5d5c   : > { %8099 = vrot.lane.b32.xlu0 %v11374_v49, %s13727_s29 }
0x5dbe   : > { %v8398_v41 = vpop.permute.xlu0 %8397 }
0x5dbf   : > { %v8396_v22 = vpop.permute.xlu1 %8395  ;;  %v8402_v48 = vmul.f32 %v11364_v13, %v8398_v41  ;;  %v7666_v13 = vadd.f32 1.0, %v11382_v44 }
0x5dc0   : > { %v8401_v18 = vmul.f32 %v11366_v8, %v8396_v22 }
0x5dc2   : > { %8405 = vrot.lane.b32.xlu1 %v8401_v18, %s13735_s25  ;;  %v8412_v11 = vpop.permute.xlu0 %8411 }
0x5dc6   : > { %8407 = vrot.lane.b32.xlu1 %v8402_v48, %s13735_s25  ;;  %v8414_v15 = vpop.permute.xlu0 %8413 }
0x5dca   : > { %7678 = vrot.lane.b32.xlu1 %v11376_v43, %s13727_s29  ;;  %v8098_v32 = vpop.permute.xlu0 %8097 }
0x5dce   : > { %7680 = vrot.lane.b32.xlu1 %v11378_v0, %s13727_s29  ;;  %v8100_v54 = vpop.permute.xlu0 %8099 }
0x5e34   : > { %v8406_v40 = vpop.permute.xlu1 %8405 }
0x5e35   : > { %v8417_v51 = vsel %vm1273_vm6, %v8406_v40, %v8412_v11 }
0x5e36   : > { %10362 = vmatprep.mubr.msk.f32.mxu1 %vm964_vm3, %v8417_v51 }
0x5e38   : > { %v8408_v30 = vpop.permute.xlu1 %8407 }
0x5e39   : > { %v8418_v25 = vsel %vm1273_vm6, %v8408_v30, %v8414_v15 }
0x5e3a   : > { %10363 = vmatmul.mubr.msk.f32.vlgmr.msra.gmra.mrb[72].mxu1 %vm964_vm3, %v8418_v25 }
0x5e3b   : > { %10656 = vmatpush3.bf16.msra.mxu1 %v12474_v53  ;;  %v11384_v53 = vpop.eup %11383 }
0x5e3c   : > { %10658 = vmatprep.subr.bf16.mxu1 %v12480_v23  ;;  %v8086_v8 = vadd.f32 1.0, %v11384_v53  ;;  %v7679_v50 = vpop.permute.xlu1 %7678 }
0x5e3f   : > { %10660 = vmatpush3.bf16.msra.mxu1 %v12480_v23  ;;  %v11386_v23 = vpop.eup %11385 }
0x5e40   : > { %v7667_v37 = vadd.f32 1.0, %v11386_v23  ;;  %v7681_v56 = vpop.permute.xlu1 %7680 }
0x5f0d   : > { %v10364_v52 = vpop.f32.mrb[72].mxu1 }
0x5f0e   : > { %v8497_v6 = vadd.f32 %v13242_v46, %v10364_v52  ;;  %v8491_v21 = vpop.f32.mrb[73].mxu1 }
0x5f0f   : > { %v8492_v4 = vadd.f32 %v13242_v46, %v8491_v21 }
0x5f10   : > { %11387 = vtanh.f32 %v8497_v6  ;;  %v9512_v49 = vmul.f32 -1.442695, %v8497_v6 }
0x5f11   : > { %11389 = vtanh.f32 %v8492_v4  ;;  %v9511_v57 = vmul.f32 -1.442695, %v8492_v4 }
0x5f12   : > { %11391 = vrcp.f32 %v8085_v17 }
0x5f13   : > { %11393 = vrcp.f32 %v7666_v13 }
0x5f14   : > { %11395 = vrcp.f32 %v8086_v8 }
0x5f15   : > { %11397 = vrcp.f32 %v7667_v37 }
0x5f16   : > { %11399 = vpow2.f32 %v9512_v49 }
0x5f17   : > { %11401 = vpow2.f32 %v9511_v57 }
0x5f1a   : > { %v11388_v29 = vpop.eup %11387 }
0x5f1b   : > { %v11390_v31 = vpop.eup %11389  ;;  %8520 = vrot.lane.b32.xlu0 %v11388_v29, %s13733_s1 }
0x5f1c   : > { %v13393_v14 = vpop.eup %11391  ;;  %8518 = vrot.lane.b32.xlu1 %v11390_v31, %s13733_s1 }
0x5f1d   : > { %v13396_v46 = vpop.eup %11393  ;;  %v8103_v42 = vmul.f32 %v13393_v14, %v8098_v32  ;;  %v8093_v15 = vmul.f32 %v13393_v14, %v13273_v38 }
0x5f1e   : > { %v7684_v2 = vmul.f32 %v13396_v46, %v7679_v50  ;;  %v13401_v19 = vpop.eup %11395  ;;  %v7674_v25 = vmul.f32 %v13396_v46, %v13275_v33 }
0x5f1f   : > { %8107 = vrot.lane.b32.xlu0 %v8103_v42, %s13725_s27  ;;  %v13404_v58 = vpop.eup %11397  ;;  %v8104_v63 = vmul.f32 %v13401_v19, %v8100_v54  ;;  %v8094_v12 = vmul.f32 %v13401_v19, %v13283_v5 }
0x5f20   : > { %7688 = vrot.lane.b32.xlu1 %v7684_v2, %s13725_s27  ;;  %v7685_v59 = vmul.f32 %v13404_v58, %v7681_v56  ;;  %v11400_v62 = vpop.eup %11399  ;;  %v7675_v38 = vmul.f32 %v13404_v58, %v13285_v10 }
0x5f21   : > { %v11402_v22 = vpop.eup %11401  ;;  %v8507_v18 = vadd.f32 1.0, %v11400_v62 }
0x5f22   : > { %v8506_v41 = vadd.f32 1.0, %v11402_v22 }
0x5f23   : > { %8109 = vrot.lane.b32.xlu0 %v8104_v63, %s13725_s27  ;;  %11403 = vrcp.f32 %v8507_v18 }
0x5f24   : > { %7690 = vrot.lane.b32.xlu1 %v7685_v59, %s13725_s27  ;;  %11405 = vrcp.f32 %v8506_v41 }
0x5f2d   : > { %v13410_v48 = vpop.eup %11403 }
0x5f2e   : > { %v11406_v0 = vpop.eup %11405  ;;  %v8515_v10 = vmul.f32 %v13410_v48, %v13296_v24 }
0x5f2f   : > { %v8514_v13 = vmul.f32 %v11406_v0, %v13298_v26 }
0x5f8d   : > { %v8521_v43 = vpop.permute.xlu0 %8520 }
0x5f8e   : > { %v8525_v11 = vmul.f32 %v13410_v48, %v8521_v43  ;;  %v8519_v40 = vpop.permute.xlu1 %8518 }
0x5f8f   : > { %v8524_v51 = vmul.f32 %v11406_v0, %v8519_v40 }
0x5f90   : > { %8530 = vrot.lane.b32.xlu0 %v8525_v11, %s13737_s7 }
0x5f91   : > { %8528 = vrot.lane.b32.xlu1 %v8524_v51, %s13737_s7  ;;  %v8108_v30 = vpop.permute.xlu0 %8107 }
0x5f92   : > { %v13419_v7 = vadd.f32 %v8108_v30, %v8093_v15  ;;  %v7689_v9 = vpop.permute.xlu1 %7688 }
0x5f93   : > { %v13421_v27 = vadd.f32 %v7689_v9, %v7674_v25 }
0x5f94   : > { %11407 = vtanh.f32 %v13419_v7 }
0x5f95   : > { %11409 = vtanh.f32 %v13421_v27  ;;  %v8110_v45 = vpop.permute.xlu0 %8109 }
0x5f96   : > { %v13429_v44 = vadd.f32 %v8110_v45, %v8094_v12  ;;  %v7691_v52 = vpop.permute.xlu1 %7690 }
0x5f97   : > { %v13431_v33 = vadd.f32 %v7691_v52, %v7675_v38 }
0x5f98   : > { %11411 = vtanh.f32 %v13429_v44 }
0x5f99   : > { %11413 = vtanh.f32 %v13431_v33 }
0x5f9e   : > { %v11408_v17 = vpop.eup %11407 }
0x5f9f   : > { %v11410_v6 = vpop.eup %11409  ;;  %8119 = vrot.lane.b32.xlu0 %v11408_v17, %s13725_s27 }
0x5fa0   : > { %7700 = vrot.lane.b32.xlu1 %v11410_v6, %s13725_s27 }
0x5fa2   : > { %v11412_v5 = vpop.eup %11411 }
0x5fa3   : > { %v11414_v21 = vpop.eup %11413  ;;  %8121 = vrot.lane.b32.xlu0 %v11412_v5, %s13725_s27 }
0x5fa4   : > { %7702 = vrot.lane.b32.xlu1 %v11414_v21, %s13725_s27 }
0x6002   : > { %v8531_v53 = vpop.permute.xlu0 %8530 }
0x6003   : > { %v8535_v4 = vadd.f32 %v8531_v53, %v8515_v10  ;;  %v8529_v23 = vpop.permute.xlu1 %8528 }
0x6004   : > { %v8534_v8 = vadd.f32 %v8529_v23, %v8514_v13 }
0x6005   : > { %11415 = vtanh.f32 %v8535_v4 }
0x6006   : > { %11417 = vtanh.f32 %v8534_v8 }
0x600f   : > { %v11416_v37 = vpop.eup %11415 }
0x6010   : > { %v11418_v32 = vpop.eup %11417  ;;  %8542 = vrot.lane.b32.xlu0 %v11416_v37, %s13737_s7 }
0x6011   : > { %8540 = vrot.lane.b32.xlu1 %v11418_v32, %s13737_s7  ;;  %v8120_v50 = vpop.permute.xlu0 %8119 }
0x6012   : > { %v8125_v29 = vmul.f32 %v13393_v14, %v8120_v50  ;;  %v7701_v31 = vpop.permute.xlu1 %7700 }
0x6013   : > { %v13446_v24 = vmul.f32 %v13396_v46, %v7701_v31 }
0x6015   : > { %8137 = vrot.lane.b32.xlu0 %v13446_v24, %s13735_s25  ;;  %8129 = vrot.lane.b32.xlu1 %v8125_v29, %s13729_s3  ;;  %v8122_v26 = vpop.permute.xlu0 %8121 }
0x6016   : > { %v8126_v42 = vmul.f32 %v13401_v19, %v8122_v26  ;;  %v7703_v54 = vpop.permute.xlu1 %7702 }
0x6017   : > { %v13453_v2 = vmul.f32 %v13404_v58, %v7703_v54 }
0x6019   : > { %8139 = vrot.lane.b32.xlu0 %v13453_v2, %s13735_s25  ;;  %8131 = vrot.lane.b32.xlu1 %v8126_v42, %s13729_s3 }
0x601d   : > { %8556 = vrot.lane.b32.xlu0 %v8125_v29, %s13733_s1 }
0x6021   : > { %8558 = vrot.lane.b32.xlu0 %v8126_v42, %s13733_s1 }
0x6082   : > { %v8543_v14 = vpop.permute.xlu0 %8542 }
0x6083   : > { %v8541_v46 = vpop.permute.xlu1 %8540  ;;  %v8547_v59 = vmul.f32 %v13410_v48, %v8543_v14 }
0x6084   : > { %v8546_v56 = vmul.f32 %v11406_v0, %v8541_v46 }
0x6086   : > { %8550 = vrot.lane.b32.xlu1 %v8546_v56, %s13735_s25 }
0x6087   : > { %v8130_v63 = vpop.permute.xlu1 %8129  ;;  %v8138_v19 = vpop.permute.xlu0 %8137 }
0x6088   : > { %v8143_v58 = vsel %vm964_vm3, %v8130_v63, %v8138_v19 }
0x6089   : > { %10350 = vmatprep.mubr.msk.f32.mxu0 %vm1068_vm4, %v8143_v58 }
0x608a   : > { %8552 = vrot.lane.b32.xlu1 %v8547_v59, %s13735_s25 }
0x608b   : > { %v8132_v49 = vpop.permute.xlu1 %8131  ;;  %v8140_v57 = vpop.permute.xlu0 %8139 }
0x608c   : > { %v8144_v62 = vsel %vm964_vm3, %v8132_v49, %v8140_v57 }
0x608d   : > { %10351 = vmatmul.mubr.msk.f32.vlgmr.msra.gmra.mrb[58].mxu0 %vm1068_vm4, %v8144_v62 }
0x608e   : > { %10652 = vmatpush3.bf16.msra.mxu0 %v12398_v34  ;;  %v13477_v34 = vld [vmem:[%s13677_s18] ss:$0 sm:$0xff] }
0x608f   : > { %10369 = vmatprep.subr.mxu0 %v13337_v1  ;;  %v8557_v22 = vpop.permute.xlu0 %8556 }
0x6092   : > { %10370 = vmatpush3.msra.mxu0 %v13337_v1 }
0x6093   : > { %v8559_v48 = vpop.permute.xlu0 %8558 }
0x60f8   : > { %v8551_v18 = vpop.permute.xlu1 %8550 }
0x60f9   : > { %v8562_v41 = vsel %vm1273_vm6, %v8551_v18, %v8557_v22 }
0x60fa   : > { %10371 = vmatprep.mubr.msk.f32.mxu0 %vm1171_vm5, %v8562_v41 }
0x60fc   : > { %v8553_v43 = vpop.permute.xlu1 %8552 }
0x60fd   : > { %v8563_v0 = vsel %vm1273_vm6, %v8553_v43, %v8559_v48 }
0x60fe   : > { %10372 = vmatmul.mubr.msk.f32.vlgmr.msra.gmra.mrb[60].mxu0 %vm1171_vm5, %v8563_v0 }
0x6160   : > { %v10352_v11 = vpop.f32.mrb[58].mxu0 }
0x6161   : > { %v8217_v40 = vpop.f32.mrb[59].mxu0  ;;  %v8223_v51 = vadd.f32 %v13477_v34, %v10352_v11 }
0x6162   : > { %v8218_v1 = vadd.f32 %v13477_v34, %v8217_v40 }
0x6163   : > { %v9504_v9 = vmul.f32 -1.442695, %v8223_v51 }
0x6164   : > { %11419 = vtanh.f32 %v8218_v1  ;;  %v9503_v25 = vmul.f32 -1.442695, %v8218_v1 }
0x6165   : > { %11421 = vtanh.f32 %v8223_v51 }
0x6166   : > { %11423 = vpow2.f32 %v9503_v25 }
0x6167   : > { %11425 = vpow2.f32 %v9504_v9 }
0x616e   : > { %v11420_v15 = vpop.eup %11419 }
0x616f   : > { %8244 = vrot.lane.b32.xlu1 %v11420_v15, %s13727_s29  ;;  %v11422_v30 = vpop.eup %11421 }
0x6170   : > { %v11424_v12 = vpop.eup %11423 }
0x6171   : > { %v8232_v52 = vadd.f32 1.0, %v11424_v12  ;;  %v11426_v6 = vpop.eup %11425 }
0x6172   : > { %v8233_v21 = vadd.f32 1.0, %v11426_v6 }
0x6173   : > { %8246 = vrot.lane.b32.xlu1 %v11422_v30, %s13727_s29 }
0x61d1   : > { %v10373_v45 = vpop.f32.mrb[60].mxu0 }
0x61d2   : > { %v8636_v38 = vpop.f32.mrb[61].mxu0  ;;  %v8642_v5 = vadd.f32 %v13365_v36, %v10373_v45 }
0x61d3   : > { %v8637_v17 = vadd.f32 %v13365_v36, %v8636_v38 }
0x61d4   : > { %v9516_v50 = vmul.f32 -1.442695, %v8642_v5 }
0x61d5   : > { %11427 = vtanh.f32 %v8637_v17  ;;  %v9515_v36 = vmul.f32 -1.442695, %v8637_v17 }
0x61d6   : > { %11429 = vrcp.f32 %v8232_v52 }
0x61d7   : > { %11431 = vtanh.f32 %v8642_v5 }
0x61d8   : > { %11433 = vrcp.f32 %v8233_v21 }
0x61d9   : > { %11435 = vpow2.f32 %v9515_v36 }
0x61da   : > { %11437 = vpow2.f32 %v9516_v50 }
0x61df   : > { %v11428_v10 = vpop.eup %11427 }
0x61e0   : > { %8663 = vrot.lane.b32.xlu0 %v11428_v10, %s13727_s29  ;;  %v11430_v53 = vpop.eup %11429 }
0x61e1   : > { %v8245_v13 = vpop.permute.xlu1 %8244  ;;  %v11432_v23 = vpop.eup %11431  ;;  %v8240_v56 = vmul.f32 %v11430_v53, %v13421_v27 }
0x61e2   : > { %v8250_v4 = vmul.f32 %v11430_v53, %v8245_v13  ;;  %v11434_v8 = vpop.eup %11433 }
0x61e3   : > { %v11436_v29 = vpop.eup %11435  ;;  %v8241_v57 = vmul.f32 %v11434_v8, %v13431_v33 }
0x61e4   : > { %8254 = vrot.lane.b32.xlu1 %v8250_v4, %s13725_s27  ;;  %8665 = vrot.lane.b32.xlu0 %v11432_v23, %s13727_s29  ;;  %v8651_v31 = vadd.f32 1.0, %v11436_v29  ;;  %v11438_v26 = vpop.eup %11437 }
0x61e5   : > { %v8247_v37 = vpop.permute.xlu1 %8246  ;;  %v8652_v42 = vadd.f32 1.0, %v11438_v26 }
0x61e6   : > { %v8251_v32 = vmul.f32 %v11434_v8, %v8247_v37  ;;  %11439 = vrcp.f32 %v8651_v31 }
0x61e7   : > { %11441 = vrcp.f32 %v8652_v42 }
0x61e8   : > { %8256 = vrot.lane.b32.xlu1 %v8251_v32, %s13725_s27 }
0x61f0   : > { %v11440_v54 = vpop.eup %11439 }
0x61f1   : > { %v11442_v63 = vpop.eup %11441  ;;  %v8659_v41 = vmul.f32 %v11440_v54, %v13419_v7 }
0x61f2   : > { %v8660_v0 = vmul.f32 %v11442_v63, %v13429_v44 }
0x6252   : > { %v8664_v14 = vpop.permute.xlu0 %8663 }
0x6253   : > { %v8669_v46 = vmul.f32 %v11440_v54, %v8664_v14 }
0x6255   : > { %8673 = vrot.lane.b32.xlu0 %v8669_v46, %s13725_s27 }
0x6256   : > { %v8255_v19 = vpop.permute.xlu1 %8254  ;;  %v8666_v59 = vpop.permute.xlu0 %8665 }
0x6257   : > { %v13491_v58 = vadd.f32 %v8255_v19, %v8240_v56  ;;  %v8670_v49 = vmul.f32 %v11442_v63, %v8666_v59  ;;  %v770_v19 = vld [vmem:[%s13678_s19] sm:$0xff]  ;;  %v771_v59 = vld [vmem:[%s13678_s19 + $0x8] sm:$0xff] }
0x6259   : > { %11443 = vtanh.f32 %v13491_v58  ;;  %8675 = vrot.lane.b32.xlu0 %v8670_v49, %s13725_s27 }
0x625a   : > { %v8257_v62 = vpop.permute.xlu1 %8256 }
0x625b   : > { %v13496_v22 = vadd.f32 %v8257_v62, %v8241_v57  ;;  %v10661_v62 = vpack.c.bf16 %v771_v59, %v770_v19 }
0x625d   : > { %11445 = vtanh.f32 %v13496_v22  ;;  %10662 = vmatprep.subr.bf16.mxu0 %v10661_v62 }
0x625e   : > { %10664 = vmatpush3.bf16.msra.mxu0 %v10661_v62 }
0x6263   : > { %v11444_v18 = vpop.eup %11443 }
0x6264   : > { %8266 = vrot.lane.b32.xlu1 %v11444_v18, %s13725_s27 }
0x6267   : > { %v11446_v27 = vpop.eup %11445 }
0x6268   : > { %8268 = vrot.lane.b32.xlu1 %v11446_v27, %s13725_s27 }
0x62c7   : > { %v8674_v48 = vpop.permute.xlu0 %8673 }
0x62c8   : > { %v8679_v43 = vadd.f32 %v8674_v48, %v8659_v41 }
0x62ca   : > { %11447 = vtanh.f32 %v8679_v43 }
0x62cb   : > { %v8676_v11 = vpop.permute.xlu0 %8675 }
0x62cc   : > { %v8680_v33 = vadd.f32 %v8676_v11, %v8660_v0 }
0x62ce   : > { %11449 = vtanh.f32 %v8680_v33 }
0x62d4   : > { %v11448_v40 = vpop.eup %11447 }
0x62d5   : > { %8685 = vrot.lane.b32.xlu0 %v11448_v40, %s13725_s27 }
0x62d6   : > { %v8267_v1 = vpop.permute.xlu1 %8266 }
0x62d7   : > { %v13505_v15 = vmul.f32 %v11430_v53, %v8267_v1  ;;  %v9521_v1 = vld [vmem:[%s13679_s20] ss:$0 sm:$0xff] }
0x62d8   : > { %v11450_v51 = vpop.eup %11449 }
0x62d9   : > { %8687 = vrot.lane.b32.xlu0 %v11450_v51, %s13725_s27 }
0x62da   : > { %v8269_v30 = vpop.permute.xlu1 %8268 }
0x62db   : > { %v13509_v7 = vmul.f32 %v11434_v8, %v8269_v30 }
0x62dd   : > { %8703 = vrot.lane.b32.xlu0 %v13505_v15, %s13735_s25 }
0x62e1   : > { %8705 = vrot.lane.b32.xlu0 %v13509_v7, %s13735_s25 }
0x6347   : > { %v8686_v44 = vpop.permute.xlu0 %8685 }
0x6348   : > { %v8691_v25 = vmul.f32 %v11440_v54, %v8686_v44 }
0x634a   : > { %8695 = vrot.lane.b32.xlu1 %v8691_v25, %s13729_s3 }
0x634b   : > { %v8688_v9 = vpop.permute.xlu0 %8687 }
0x634c   : > { %v8692_v12 = vmul.f32 %v11442_v63, %v8688_v9 }
0x634e   : > { %8697 = vrot.lane.b32.xlu1 %v8692_v12, %s13729_s3 }
0x634f   : > { %v8704_v45 = vpop.permute.xlu0 %8703 }
0x6353   : > { %v8706_v17 = vpop.permute.xlu0 %8705 }
0x63bc   : > { %v8696_v38 = vpop.permute.xlu1 %8695 }
0x63bd   : > { %v8709_v52 = vsel %vm964_vm3, %v8696_v38, %v8704_v45 }
0x63be   : > { %10382 = vmatprep.mubr.msk.f32.mxu1 %vm1068_vm4, %v8709_v52 }
0x63c0   : > { %v8698_v6 = vpop.permute.xlu1 %8697 }
0x63c1   : > { %v8710_v5 = vsel %vm964_vm3, %v8698_v6, %v8706_v17 }
0x63c2   : > { %10383 = vmatmul.mubr.msk.f32.vlgmr.msra.gmra.mrb[74].mxu1 %vm1068_vm4, %v8710_v5 }
0x6495   : > { %v10384_v21 = vpop.f32.mrb[74].mxu1 }
0x6496   : > { %v8789_v10 = vadd.f32 %v13477_v34, %v10384_v21  ;;  %v8783_v53 = vpop.f32.mrb[75].mxu1 }
0x6497   : > { %v8784_v13 = vadd.f32 %v13477_v34, %v8783_v53 }
0x6498   : > { %11451 = vtanh.f32 %v8789_v10  ;;  %v9520_v8 = vmul.f32 -1.442695, %v8789_v10 }
0x6499   : > { %11453 = vtanh.f32 %v8784_v13  ;;  %v9519_v37 = vmul.f32 -1.442695, %v8784_v13 }
0x649a   : > { %11455 = vpow2.f32 %v9520_v8 }
0x649b   : > { %11457 = vpow2.f32 %v9519_v37 }
0x64a2   : > { %v11452_v4 = vpop.eup %11451 }
0x64a3   : > { %v11454_v23 = vpop.eup %11453  ;;  %8812 = vrot.lane.b32.xlu0 %v11452_v4, %s13727_s29 }
0x64a4   : > { %8810 = vrot.lane.b32.xlu1 %v11454_v23, %s13727_s29  ;;  %v11456_v32 = vpop.eup %11455 }
0x64a5   : > { %v11458_v36 = vpop.eup %11457  ;;  %v8799_v50 = vadd.f32 1.0, %v11456_v32 }
0x64a6   : > { %v8798_v29 = vadd.f32 1.0, %v11458_v36 }
0x64a7   : > { %11459 = vrcp.f32 %v8799_v50 }
0x64a8   : > { %11461 = vrcp.f32 %v8798_v29 }
0x64b1   : > { %v11460_v31 = vpop.eup %11459 }
0x64b2   : > { %v11462_v26 = vpop.eup %11461  ;;  %v8807_v46 = vmul.f32 %v11460_v31, %v13496_v22 }
0x64b3   : > { %v8806_v63 = vmul.f32 %v11462_v26, %v13491_v58 }
0x6515   : > { %v8813_v34 = vpop.permute.xlu0 %8812 }
0x6516   : > { %v8817_v42 = vmul.f32 %v11460_v31, %v8813_v34  ;;  %v8811_v54 = vpop.permute.xlu1 %8810 }
0x6517   : > { %v8816_v14 = vmul.f32 %v11462_v26, %v8811_v54 }
0x6518   : > { %8822 = vrot.lane.b32.xlu0 %v8817_v42, %s13725_s27 }
0x6519   : > { %8820 = vrot.lane.b32.xlu1 %v8816_v14, %s13725_s27 }
0x658a   : > { %v8823_v56 = vpop.permute.xlu0 %8822 }
0x658b   : > { %v8827_v49 = vadd.f32 %v8823_v56, %v8807_v46  ;;  %v8821_v57 = vpop.permute.xlu1 %8820  ;;  %v9115_v46 = vld [vmem:[%s12305_s2] sm:$0xff] (%p11661_p5)  ;;  %v9117_v56 = vld [vmem:[%s12305_s2 + $0x8] sm:$0xff] (%p11661_p5) }
0x658c   : > { %v8826_v18 = vadd.f32 %v8821_v57, %v8806_v63 }
0x658d   : > { %11463 = vtanh.f32 %v8827_v49 }
0x658e   : > { %11465 = vtanh.f32 %v8826_v18 }
0x6597   : > { %v11464_v22 = vpop.eup %11463 }
0x6598   : > { %v11466_v27 = vpop.eup %11465  ;;  %8834 = vrot.lane.b32.xlu0 %v11464_v22, %s13725_s27 }
0x6599   : > { %8832 = vrot.lane.b32.xlu1 %v11466_v27, %s13725_s27  ;;  %s9312_s27 = sshll.u32 %s11677_s26, 7  ;;  %s9540_s26 = sshll.u32 (%p11661_p5), %s11646_s30, 3 }
0x659a   : > { %s13585_s23 = scalar_lea.vmem [#allocation4], %s9312_s27  ;;  %s9085_s24 = scalar_lea.vmem (%p11661_p5), %s13680_s21, %s9540_s26 }
0x659b   : > { %9116 = vst [vmem:[%s9085_s24] sm:$0xff] (%p11661_p5), %v9115_v46  ;;  %9118 = vst [vmem:[%s9085_s24 + $0x10] sm:$0xff] (%p11661_p5), %v9117_v56 }
0x659c   : > { %8850 = vrot.lane.b32.xlu0 %v12682_v35, %s13729_s3 }
0x659d   : > { %8848 = vrot.lane.b32.xlu1 %v12675_v16, %s13729_s3 }
0x65a0   : > { %8854 = vrot.lane.b32.xlu0 %v12841_v55, %s13729_s3 }
0x65a1   : > { %8852 = vrot.lane.b32.xlu1 %v12834_v28, %s13729_s3 }
0x65a4   : > { %8858 = vrot.lane.b32.xlu0 %v13000_v47, %s13729_s3 }
0x65a5   : > { %8856 = vrot.lane.b32.xlu1 %v12993_v61, %s13729_s3 }
0x65a8   : > { %8862 = vrot.lane.b32.xlu0 %v13154_v39, %s13729_s3 }
0x65a9   : > { %8860 = vrot.lane.b32.xlu1 %v13147_v60, %s13729_s3 }
0x65ac   : > { %8866 = vrot.lane.b32.xlu0 %v13313_v20, %s13729_s3 }
0x65ad   : > { %8864 = vrot.lane.b32.xlu1 %v13306_v3, %s13729_s3 }
0x65b0   : > { %8870 = vrot.lane.b32.xlu0 %v13453_v2, %s13729_s3 }
0x65b1   : > { %8868 = vrot.lane.b32.xlu1 %v13446_v24, %s13729_s3 }
0x65b4   : > { %8874 = vrot.lane.b32.xlu0 %v13509_v7, %s13729_s3 }
0x65b5   : > { %8872 = vrot.lane.b32.xlu1 %v13505_v15, %s13729_s3 }
0x660a   : > { %v8835_v16 = vpop.permute.xlu0 %8834 }
0x660b   : > { %v8839_v35 = vmul.f32 %v11460_v31, %v8835_v16  ;;  %v8833_v28 = vpop.permute.xlu1 %8832 }
0x660c   : > { %v8838_v55 = vmul.f32 %v11462_v26, %v8833_v28 }
0x660d   : > { %8878 = vrot.lane.b32.xlu0 %v8839_v35, %s13729_s3 }
0x660e   : > { %v8851_v61 = vpop.permute.xlu0 %8850  ;;  %8876 = vrot.lane.b32.xlu1 %v8838_v55, %s13729_s3 }
0x660f   : > { %v8849_v47 = vpop.permute.xlu1 %8848 }
0x6610   : > { %10389 = vmatprep.mubr.msk.f32.mxu0 %vm964_vm3, %v8849_v47 }
0x6611   : > { %10390 = vmatmul.mubr.msk.f32.vlgmr.msra.gmra.mrb[62].mxu0 %vm964_vm3, %v8851_v61 }
0x6612   : > { %v8855_v60 = vpop.permute.xlu0 %8854 }
0x6613   : > { %v8853_v39 = vpop.permute.xlu1 %8852 }
0x6614   : > { %10392 = vmatprep.mubr.msk.f32.mxu0 %vm964_vm3, %v8853_v39 }
0x6615   : > { %10393 = vmatmul.mubr.msk.f32.gmra.mrb[64].mxu0 %vm964_vm3, %v8855_v60 }
0x6616   : > { %v8859_v3 = vpop.permute.xlu0 %8858 }
0x6617   : > { %v8857_v20 = vpop.permute.xlu1 %8856 }
0x6618   : > { %10395 = vmatprep.mubr.msk.f32.mxu0 %vm964_vm3, %v8857_v20 }
0x6619   : > { %10396 = vmatmul.mubr.msk.f32.gmra.mrb[66].mxu0 %vm964_vm3, %v8859_v3 }
0x661a   : > { %v8863_v24 = vpop.permute.xlu0 %8862 }
0x661b   : > { %v8861_v2 = vpop.permute.xlu1 %8860 }
0x661c   : > { %10398 = vmatprep.mubr.msk.f32.mxu0 %vm964_vm3, %v8861_v2 }
0x661d   : > { %10399 = vmatmul.mubr.msk.f32.gmra.mrb[68].mxu0 %vm964_vm3, %v8863_v24 }
0x661e   : > { %v8867_v58 = vpop.permute.xlu0 %8866 }
0x661f   : > { %v8865_v41 = vpop.permute.xlu1 %8864 }
0x6620   : > { %10401 = vmatprep.mubr.msk.f32.mxu0 %vm964_vm3, %v8865_v41 }
0x6621   : > { %10402 = vmatmul.mubr.msk.f32.gmra.mrb[70].mxu0 %vm964_vm3, %v8867_v58 }
0x6622   : > { %v8871_v48 = vpop.permute.xlu0 %8870 }
0x6623   : > { %v8869_v43 = vpop.permute.xlu1 %8868 }
0x6624   : > { %10404 = vmatprep.mubr.msk.f32.mxu0 %vm964_vm3, %v8869_v43 }
0x6625   : > { %10405 = vmatmul.mubr.msk.f32.gmra.mrb[72].mxu0 %vm964_vm3, %v8871_v48 }
0x6626   : > { %v8875_v11 = vpop.permute.xlu0 %8874 }
0x6627   : > { %v8873_v0 = vpop.permute.xlu1 %8872 }
0x6628   : > { %10407 = vmatprep.mubr.msk.f32.mxu0 %vm964_vm3, %v8873_v0 }
0x6629   : > { %10408 = vmatmul.mubr.msk.f32.gmra.mrb[74].mxu0 %vm964_vm3, %v8875_v11 }
0x667f   : > { %v8879_v40 = vpop.permute.xlu0 %8878 }
0x6680   : > { %v8877_v33 = vpop.permute.xlu1 %8876 }
0x6681   : > { %10410 = vmatprep.mubr.msk.f32.mxu0 %vm964_vm3, %v8877_v33 }
0x6682   : > { %10411 = vmatmul.mubr.msk.f32.gmra.mrb[76].mxu0 %vm964_vm3, %v8879_v40 }
0x66e4   : > { %v10391_v51 = vpop.f32.mrb[62].mxu0 }
0x66e5   : > { %v8984_v15 = vadd.f32 %v10391_v51, %v9521_v1  ;;  %v8978_v30 = vpop.f32.mrb[63].mxu0 }
0x66e6   : > { %v8979_v7 = vadd.f32 %v9521_v1, %v8978_v30 }
0x66e7   : > { %9058 = vst.msk [vmem:[%s13585_s23 + $0x8] sm:$0xff] %vm830_vm1, %v8984_v15 }
0x66e8   : > { %9057 = vst.msk [vmem:[%s13585_s23] sm:$0xff] %vm830_vm1, %v8979_v7  ;;  %v10394_v44 = vpop.f32.mrb[64].mxu0 }
0x66e9   : > { %v8994_v25 = vadd.f32 %v10394_v44, %v9521_v1  ;;  %v8988_v9 = vpop.f32.mrb[65].mxu0 }
0x66ea   : > { %v8989_v12 = vadd.f32 %v9521_v1, %v8988_v9 }
0x66eb   : > { %9060 = vst.msk [vmem:[%s13585_s23 + $0x18] sm:$0xff] %vm830_vm1, %v8994_v25 }
0x66ec   : > { %9059 = vst.msk [vmem:[%s13585_s23 + $0x10] sm:$0xff] %vm830_vm1, %v8989_v12  ;;  %v10397_v45 = vpop.f32.mrb[66].mxu0 }
0x66ed   : > { %v9004_v38 = vadd.f32 %v10397_v45, %v9521_v1  ;;  %v8998_v52 = vpop.f32.mrb[67].mxu0 }
0x66ee   : > { %v8999_v17 = vadd.f32 %v9521_v1, %v8998_v52 }
0x66ef   : > { %9062 = vst.msk [vmem:[%s13585_s23 + $0x28] sm:$0xff] %vm830_vm1, %v9004_v38 }
0x66f0   : > { %9061 = vst.msk [vmem:[%s13585_s23 + $0x20] sm:$0xff] %vm830_vm1, %v8999_v17  ;;  %v10400_v6 = vpop.f32.mrb[68].mxu0 }
0x66f1   : > { %v9014_v5 = vadd.f32 %v10400_v6, %v9521_v1  ;;  %v9008_v21 = vpop.f32.mrb[69].mxu0 }
0x66f2   : > { %v9009_v10 = vadd.f32 %v9521_v1, %v9008_v21 }
0x66f3   : > { %9064 = vst.msk [vmem:[%s13585_s23 + $0x38] sm:$0xff] %vm830_vm1, %v9014_v5 }
0x66f4   : > { %9063 = vst.msk [vmem:[%s13585_s23 + $0x30] sm:$0xff] %vm830_vm1, %v9009_v10  ;;  %v10403_v53 = vpop.f32.mrb[70].mxu0 }
0x66f5   : > { %v9024_v13 = vadd.f32 %v10403_v53, %v9521_v1  ;;  %v9018_v4 = vpop.f32.mrb[71].mxu0 }
0x66f6   : > { %v9019_v23 = vadd.f32 %v9521_v1, %v9018_v4 }
0x66f7   : > { %9066 = vst.msk [vmem:[%s13585_s23 + $0x48] sm:$0xff] %vm830_vm1, %v9024_v13 }
0x66f8   : > { %9065 = vst.msk [vmem:[%s13585_s23 + $0x40] sm:$0xff] %vm830_vm1, %v9019_v23  ;;  %v10406_v8 = vpop.f32.mrb[72].mxu0 }
0x66f9   : > { %v9034_v37 = vadd.f32 %v10406_v8, %v9521_v1  ;;  %v9028_v32 = vpop.f32.mrb[73].mxu0 }
0x66fa   : > { %v9029_v36 = vadd.f32 %v9521_v1, %v9028_v32 }
0x66fb   : > { %9068 = vst.msk [vmem:[%s13585_s23 + $0x58] sm:$0xff] %vm830_vm1, %v9034_v37 }
0x66fc   : > { %9067 = vst.msk [vmem:[%s13585_s23 + $0x50] sm:$0xff] %vm830_vm1, %v9029_v36  ;;  %v10409_v50 = vpop.f32.mrb[74].mxu0 }
0x66fd   : > { %v9044_v29 = vadd.f32 %v10409_v50, %v9521_v1  ;;  %v9038_v31 = vpop.f32.mrb[75].mxu0 }
0x66fe   : > { %v9039_v34 = vadd.f32 %v9521_v1, %v9038_v31 }
0x66ff   : > { %9070 = vst.msk [vmem:[%s13585_s23 + $0x68] sm:$0xff] %vm830_vm1, %v9044_v29 }
0x6700   : > { %9069 = vst.msk [vmem:[%s13585_s23 + $0x60] sm:$0xff] %vm830_vm1, %v9039_v34 }
0x6753   : > { %9083 = sbr.rel (!%p11661_p5) target bundleno = 26458 (0x675a), region = 146 }
0x6755   : > { %v10412_v26 = vpop.f32.mrb[76].mxu0 }
0x6756   : > { %v9054_v42 = vadd.f32 %v10412_v26, %v9521_v1  ;;  %v9048_v54 = vpop.f32.mrb[77].mxu0 }
0x6757   : > { %v9049_v14 = vadd.f32 %v9521_v1, %v9048_v54 }
0x6758   : > { %9072 = vst.msk [vmem:[%s13585_s23 + $0x78] sm:$0xff] %vm830_vm1, %v9054_v42 }
0x6759   : > { %9071 = vst.msk [vmem:[%s13585_s23 + $0x70] sm:$0xff] %vm830_vm1, %v9049_v14 }
0x675a PF: > { %9124 = sbr.rel (!%p11661_p5) target bundleno = 26468 (0x6764), region = 184  ;;  %s9541_s2 = sshll.u32 (%p11661_p5), %s11646_s30, 3  ;;  %v9184_v63 = vld [vmem:[%s13585_s23] sm:$0xff] (%p11661_p5)  ;;  %v9186_v19 = vld [vmem:[%s13585_s23 + $0x8] sm:$0xff] (%p11661_p5)  ;;  %v9188_v59 = vld [vmem:[%s13585_s23 + $0x10] sm:$0xff] (%p11661_p5) }
0x675b   : > { %s9126_s28 = scalar_lea.vmem (%p11661_p5), %s13681_s22, %s9541_s2  ;;  %v9190_v49 = vld [vmem:[%s13585_s23 + $0x18] sm:$0xff] (%p11661_p5)  ;;  %v9192_v57 = vld [vmem:[%s13585_s23 + $0x20] sm:$0xff] (%p11661_p5)  ;;  %v9194_v62 = vld [vmem:[%s13585_s23 + $0x28] sm:$0xff] (%p11661_p5) }
0x675c   : > { %9185 = vst [vmem:[%s9126_s28] sm:$0xff] (%p11661_p5), %v9184_v63  ;;  %9187 = vst [vmem:[%s9126_s28 + $0x10] sm:$0xff] (%p11661_p5), %v9186_v19  ;;  %v9196_v18 = vld [vmem:[%s13585_s23 + $0x30] sm:$0xff] (%p11661_p5)  ;;  %v9198_v22 = vld [vmem:[%s13585_s23 + $0x38] sm:$0xff] (%p11661_p5) }
0x675d   : > { %9189 = vst [vmem:[%s9126_s28 + $0x20] sm:$0xff] (%p11661_p5), %v9188_v59  ;;  %9191 = vst [vmem:[%s9126_s28 + $0x30] sm:$0xff] (%p11661_p5), %v9190_v49  ;;  %v9200_v27 = vld [vmem:[%s13585_s23 + $0x40] sm:$0xff] (%p11661_p5)  ;;  %v9202_v16 = vld [vmem:[%s13585_s23 + $0x48] sm:$0xff] (%p11661_p5) }
0x675e   : > { %9193 = vst [vmem:[%s9126_s28 + $0x40] sm:$0xff] (%p11661_p5), %v9192_v57  ;;  %9195 = vst [vmem:[%s9126_s28 + $0x50] sm:$0xff] (%p11661_p5), %v9194_v62  ;;  %v9204_v35 = vld [vmem:[%s13585_s23 + $0x50] sm:$0xff] (%p11661_p5)  ;;  %v9206_v28 = vld [vmem:[%s13585_s23 + $0x58] sm:$0xff] (%p11661_p5) }
0x675f   : > { %9197 = vst [vmem:[%s9126_s28 + $0x60] sm:$0xff] (%p11661_p5), %v9196_v18  ;;  %9199 = vst [vmem:[%s9126_s28 + $0x70] sm:$0xff] (%p11661_p5), %v9198_v22  ;;  %v9208_v55 = vld [vmem:[%s13585_s23 + $0x60] sm:$0xff] (%p11661_p5)  ;;  %v9210_v61 = vld [vmem:[%s13585_s23 + $0x68] sm:$0xff] (%p11661_p5) }
0x6760   : > { %9201 = vst [vmem:[%s9126_s28 + $0x80] sm:$0xff] (%p11661_p5), %v9200_v27  ;;  %9203 = vst [vmem:[%s9126_s28 + $0x90] sm:$0xff] (%p11661_p5), %v9202_v16  ;;  %v9212_v47 = vld [vmem:[%s13585_s23 + $0x70] sm:$0xff] (%p11661_p5)  ;;  %v9214_v60 = vld [vmem:[%s13585_s23 + $0x78] sm:$0xff] (%p11661_p5) }
0x6761   : > { %9205 = vst [vmem:[%s9126_s28 + $0xa0] sm:$0xff] %v9204_v35  ;;  %9207 = vst [vmem:[%s9126_s28 + $0xb0] sm:$0xff] %v9206_v28 }
0x6762   : > { %9209 = vst [vmem:[%s9126_s28 + $0xc0] sm:$0xff] %v9208_v55  ;;  %9211 = vst [vmem:[%s9126_s28 + $0xd0] sm:$0xff] %v9210_v61 }
0x6763   : > { %9213 = vst [vmem:[%s9126_s28 + $0xe0] sm:$0xff] %v9212_v47  ;;  %9215 = vst [vmem:[%s9126_s28 + $0xf0] sm:$0xff] %v9214_v60 }
0x6764 PF: > { %s13738_s3 = sld [smem:[#allocation5_spill]]  ;;  %s13739_s28 = sld [smem:[#allocation6_spill]] }
0x6765   : > { %p30_p10 = scmp.ge.s32.totalorder %s11649_s4, 4   ;;  %s13740_s29 = smov %s11649_s4 }
0x6767   :  { %32 = sbr.rel (!%p30_p10) target bundleno = 14 (0xe), region = 265 }

</bundles_post_ra>
